<compile_context>
chip_gen: v5e
topology: v5e:2x2
jax: 0.10.0
libtpu: 0.0.40
codegen_flags: <defaults>
</compile_context>

<pallas_src>
import math

import jax
import jax.numpy as jnp
from jax.experimental import pallas as pl
from jax.experimental.pallas import tpu as pltpu

CLASS_NUM = 4
GEO_NUM = 4
FEAT = CLASS_NUM + GEO_NUM          # feature_num (8)
D = FEAT * 8                        # hidden width of the attention blocks (64)
NUM_HEADS = 4
HEAD_DIM = D // NUM_HEADS           # 16
NUM_ATTN_LAYERS = 4
LEAK = 0.2

# (fan_in, fan_out) of the 7 "MLP" linears packed into one padded (7, D, D) slab:
#   slots 0-2 = encoder, 3-5 = decoder, 6 = block-diagonal class/geoparam branch.
MLP_DIMS = (
    (FEAT, 2 * FEAT), (2 * FEAT, 4 * FEAT), (4 * FEAT, D),
    (D, 4 * FEAT), (4 * FEAT, 2 * FEAT), (2 * FEAT, FEAT),
    (FEAT, FEAT),
)


# ----------------------------------------------------------------------------
# Pallas kernel: processes one tile of Bt batch elements per grid step.
# ----------------------------------------------------------------------------
def generator_kernel(x_ref, mlp_w_ref, mlp_b_ref, wqkv_ref, wo_ref, attn_b_ref,
                     out_ref, attn_sc):
    bt, e, _ = x_ref.shape            # batch tile size, element_num
    m = bt * e                        # fused matmul M dimension

    def lrelu(v):
        return jnp.where(v >= 0, v, LEAK * v)

    def mlp(v, l):
        k, n = MLP_DIMS[l]
        w = mlp_w_ref[l, :k, :n]                       # (k, n) slice of padded slab
        b = mlp_b_ref[l, :, :n]                        # (1, n)
        return jnp.dot(v, w, preferred_element_type=jnp.float32) + b

    x = x_ref[...].reshape(m, FEAT)                    # (M, F)

    # ---- encoder ----
    h = lrelu(mlp(x, 0))                               # (M, 2F)
    h = lrelu(mlp(h, 1))                               # (M, 4F)
    h = lrelu(mlp(h, 2))                               # (M, D)

    scale = 1.0 / math.sqrt(HEAD_DIM)

    # ---- 4 residual multi-head self-attention blocks ----
    for layer in range(NUM_ATTN_LAYERS):
        # fused Q|K|V projection: one matmul per layer.
        qkv = (jnp.dot(h, wqkv_ref[layer], preferred_element_type=jnp.float32)
               + attn_b_ref[layer, :, :3 * D])         # (M, 3D)
        qkv3 = qkv.reshape(bt, e, 3 * D)               # leading-dim split (cheap)
        for hd in range(NUM_HEADS):
            s = hd * HEAD_DIM
            qh = qkv3[:, :, s:s + HEAD_DIM]                        # (bt, E, hd)
            kh = qkv3[:, :, D + s:D + s + HEAD_DIM]
            vh = qkv3[:, :, 2 * D + s:2 * D + s + HEAD_DIM]
            logits = jnp.einsum('bqd,bkd->bqk', qh, kh,
                                preferred_element_type=jnp.float32) * scale
            logits = logits - jnp.max(logits, axis=-1, keepdims=True)
            p = jnp.exp(logits)
            p = p * pl.reciprocal(jnp.sum(p, axis=-1, keepdims=True),
                                  approx=True)
            oh = jnp.einsum('bqk,bkd->bqd', p, vh,
                            preferred_element_type=jnp.float32)    # (bt, E, hd)
            # write head output directly into the VMEM slab (no lane concat)
            attn_sc[:, :, s:s + HEAD_DIM] = oh
        attn = attn_sc[...].reshape(m, D)              # leading-dim merge (cheap)
        attn = (jnp.dot(attn, wo_ref[layer], preferred_element_type=jnp.float32)
                + attn_b_ref[layer, :, 3 * D:4 * D])
        h = lrelu(h + attn)

    # ---- decoder ----
    h = lrelu(mlp(h, 3))                               # (M, 4F)
    h = lrelu(mlp(h, 4))                               # (M, 2F)
    h = lrelu(mlp(h, 5))                               # (M, F)

    # ---- class / geoparam branches (block-diagonal == split+linear+cat) ----
    y = mlp(h, 6)                                      # (M, F)
    # sigmoid via tanh (EUP path, numerically stable, no precise divide)
    out_ref[...] = (0.5 * (jnp.tanh(0.5 * y) + 1.0)).astype(out_ref.dtype)


# ----------------------------------------------------------------------------
# Wrapper
# ----------------------------------------------------------------------------
def _pick_block_b(B, E):
    """Batch-tile size Bt.

    Fold as many batch elements as possible so the fused matmul M dimension
    (Bt*E) approaches ~128 rows (fills a v5e MXU pass), keep >=2 grid steps
    when possible (both v7x TensorCores get work on the 'parallel' axis), and
    keep the (Bt*E, FEAT) output block sublane-legal.
    """
    def legal(bt):
        return B % bt == 0 and ((bt * E) % 8 == 0 or bt == B)

    cands = [bt for bt in range(1, B + 1) if legal(bt)]
    multi = [bt for bt in cands if B // bt >= 2]
    pool = multi if multi else cands
    fits = [bt for bt in pool if bt * E <= 128]
    return max(fits) if fits else min(pool)


def generator_forward(x, params, block_b=None):
    B, E, F = x.shape
    assert F == FEAT
    mlp_w, mlp_b, wqkv, wo, attn_b = params

    bt = _pick_block_b(B, E) if block_b is None else block_b
    assert B % bt == 0, "batch tile must divide the batch"
    grid_b = pl.cdiv(B, bt)

    def const_spec(arr):
        nd = arr.ndim
        return pl.BlockSpec(arr.shape, lambda b, nd=nd: (0,) * nd)

    out_flat = pl.pallas_call(
        generator_kernel,
        out_shape=jax.ShapeDtypeStruct((B * E, FEAT), jnp.float32),
        grid_spec=pltpu.PrefetchScalarGridSpec(
            num_scalar_prefetch=0,
            grid=(grid_b,),
            in_specs=[pl.BlockSpec((bt, E, FEAT), lambda b: (b, 0, 0)),
                      const_spec(mlp_w), const_spec(mlp_b),
                      const_spec(wqkv), const_spec(wo), const_spec(attn_b)],
            out_specs=pl.BlockSpec((bt * E, FEAT), lambda b: (b, 0)),
            scratch_shapes=[pltpu.VMEM((bt, E, D), jnp.float32)],
        ),
        compiler_params=pltpu.CompilerParams(
            dimension_semantics=("parallel",)),
    )(x, mlp_w, mlp_b, wqkv, wo, attn_b)
    return out_flat.reshape(B, E, FEAT)


# ----------------------------------------------------------------------------
# Deterministic synthetic parameters, packed into 5 slabs.
# ----------------------------------------------------------------------------
def init_params(key):
    keys = jax.random.split(key, 32)
    it = iter(keys)

    def dense(fan_in, fan_out):
        kw, kb = jax.random.split(next(it))
        w = jax.random.normal(kw, (fan_in, fan_out), jnp.float32) * 0.1
        b = jax.random.normal(kb, (1, fan_out), jnp.float32) * 0.05
        return w, b

    # encoder / decoder linears packed into padded (7, D, D) / (7, 1, D) slabs
    mlp_w = jnp.zeros((len(MLP_DIMS), D, D), jnp.float32)
    mlp_b = jnp.zeros((len(MLP_DIMS), 1, D), jnp.float32)
    for i, (fi, fo) in enumerate(MLP_DIMS[:-1]):
        w, b = dense(fi, fo)
        mlp_w = mlp_w.at[i, :fi, :fo].set(w)
        mlp_b = mlp_b.at[i, :, :fo].set(b)

    # class / geoparam branches combined into an exact block-diagonal linear
    cw, cb = dense(CLASS_NUM, CLASS_NUM)
    gw, gb = dense(GEO_NUM, GEO_NUM)
    bw = jnp.zeros((FEAT, FEAT), jnp.float32)
    bw = bw.at[:CLASS_NUM, :CLASS_NUM].set(cw)
    bw = bw.at[CLASS_NUM:, CLASS_NUM:].set(gw)
    bb = jnp.concatenate([cb, gb], axis=-1)
    mlp_w = mlp_w.at[len(MLP_DIMS) - 1, :FEAT, :FEAT].set(bw)
    mlp_b = mlp_b.at[len(MLP_DIMS) - 1, :, :FEAT].set(bb)

    # 4 attention layers: fused QKV weight, O weight, fused biases
    wqkv_l, wo_l, ab_l = [], [], []
    for _ in range(NUM_ATTN_LAYERS):
        wq, bq = dense(D, D)
        wk, bk = dense(D, D)
        wv, bv = dense(D, D)
        wo, bo = dense(D, D)
        wqkv_l.append(jnp.concatenate([wq, wk, wv], axis=1))    # (D, 3D)
        wo_l.append(wo)                                         # (D, D)
        ab_l.append(jnp.concatenate([bq, bk, bv, bo], axis=1))  # (1, 4D)
    wqkv = jnp.stack(wqkv_l)            # (4, D, 3D)
    wo_s = jnp.stack(wo_l)              # (4, D, D)
    attn_b = jnp.stack(ab_l)            # (4, 1, 4D)

    return [mlp_w, mlp_b, wqkv, wo_s, attn_b]


# ----------------------------------------------------------------------------
# Pure-JAX reference (mirrors the torch forward) for a sanity check
# ----------------------------------------------------------------------------
def reference(x, params):
    mlp_w, mlp_b, wqkv, wo, attn_b = params
    lrelu = lambda v: jnp.where(v >= 0, v, LEAK * v)

    def mlp(v, l):
        k, n = MLP_DIMS[l]
        return v @ mlp_w[l, :k, :n] + mlp_b[l, :, :n]

    h = lrelu(mlp(x, 0))
    h = lrelu(mlp(h, 1))
    h = lrelu(mlp(h, 2))
    B, E, _ = h.shape
    for l in range(NUM_ATTN_LAYERS):
        qkv = h @ wqkv[l] + attn_b[l, :, :3 * D]
        q, k, v = jnp.split(qkv, 3, axis=-1)

        def split_heads(t):
            return t.reshape(B, E, NUM_HEADS, HEAD_DIM).transpose(0, 2, 1, 3)

        qh, kh, vh = map(split_heads, (q, k, v))
        logits = jnp.einsum('bhqd,bhkd->bhqk', qh, kh) / math.sqrt(HEAD_DIM)
        p = jax.nn.softmax(logits, axis=-1)
        o = jnp.einsum('bhqk,bhkd->bhqd', p, vh)
        o = o.transpose(0, 2, 1, 3).reshape(B, E, D)
        o = o @ wo[l] + attn_b[l, :, 3 * D:]
        h = lrelu(h + o)
    h = lrelu(mlp(h, 3))
    h = lrelu(mlp(h, 4))
    h = lrelu(mlp(h, 5))
    return jax.nn.sigmoid(mlp(h, 6))


if __name__ == "__main__":
    key = jax.random.PRNGKey(0)
    kx, kp = jax.random.split(key)

    B, E = 16, 8                               # batch, element_num (small)
    x = jax.random.normal(kx, (B, E, FEAT), jnp.float32)
    params = init_params(kp)

    out = jax.block_until_ready(generator_forward(x, params))

    ref = reference(x, params)
    assert out.shape == (B, E, FEAT)
    max_err = float(jnp.max(jnp.abs(out - ref)))
    assert jnp.allclose(out, ref, atol=1e-2, rtol=1e-2), \
        f"max abs diff {max_err}"

    print("KERNEL_OK")
</pallas_src>

<mosaic_0001>
module attributes {stable_mosaic.version = 11 : i64} {
  func.func @generator_kernel(%arg0: i32, %arg1: memref<8x8x8xf32, #tpu.memory_space<vmem>>, %arg2: memref<7x64x64xf32, #tpu.memory_space<vmem>>, %arg3: memref<7x1x64xf32, #tpu.memory_space<vmem>>, %arg4: memref<4x64x192xf32, #tpu.memory_space<vmem>>, %arg5: memref<4x64x64xf32, #tpu.memory_space<vmem>>, %arg6: memref<4x1x256xf32, #tpu.memory_space<vmem>>, %arg7: memref<64x8xf32, #tpu.memory_space<vmem>>, %arg8: memref<8x8x64xf32, #tpu.memory_space<vmem>>) attributes {dimension_semantics = [#tpu.dimension_semantics<parallel>], iteration_bounds = array<i64: 2>, scalar_prefetch = 0 : i64, scratch_operands = 1 : i64, tpu.core_type = #tpu.core_type<tc>, window_params = [{transform_indices = @transform_0, window_bounds = array<i64: 8, 8, 8>}, {pipeline_mode = #tpu.pipeline_mode<synchronous>, transform_indices = @transform_1, window_bounds = array<i64: 7, 64, 64>}, {pipeline_mode = #tpu.pipeline_mode<synchronous>, transform_indices = @transform_2, window_bounds = array<i64: 7, 1, 64>}, {pipeline_mode = #tpu.pipeline_mode<synchronous>, transform_indices = @transform_3, window_bounds = array<i64: 4, 64, 192>}, {pipeline_mode = #tpu.pipeline_mode<synchronous>, transform_indices = @transform_4, window_bounds = array<i64: 4, 64, 64>}, {pipeline_mode = #tpu.pipeline_mode<synchronous>, transform_indices = @transform_5, window_bounds = array<i64: 4, 1, 256>}, {transform_indices = @transform_6, window_bounds = array<i64: 64, 8>}]} {
    %c0 = arith.constant 0 : index
    %c0_0 = arith.constant 0 : index
    %c0_1 = arith.constant 0 : index
    %0 = vector.load %arg1[%c0, %c0_0, %c0_1] : memref<8x8x8xf32, #tpu.memory_space<vmem>>, vector<8x8x8xf32>
    %1 = vector.shape_cast %0 : vector<8x8x8xf32> to vector<64x8xf32>
    %c0_2 = arith.constant 0 : index
    %c0_3 = arith.constant 0 : index
    %c0_4 = arith.constant 0 : index
    %2 = vector.load %arg2[%c0_2, %c0_3, %c0_4] : memref<7x64x64xf32, #tpu.memory_space<vmem>>, vector<1x8x16xf32>
    %3 = vector.shape_cast %2 : vector<1x8x16xf32> to vector<8x16xf32>
    %c0_5 = arith.constant 0 : index
    %c0_6 = arith.constant 0 : index
    %c0_7 = arith.constant 0 : index
    %4 = vector.load %arg3[%c0_5, %c0_6, %c0_7] : memref<7x1x64xf32, #tpu.memory_space<vmem>>, vector<1x1x16xf32>
    %5 = vector.shape_cast %4 : vector<1x1x16xf32> to vector<1x16xf32>
    %cst = arith.constant dense<0.000000e+00> : vector<64x16xf32>
    %6 = tpu.matmul %1, %3, %cst {dimension_numbers = #tpu.dot_dimension_numbers<[1], [0], [0], [1], [0, 0, 1, 1], [], []>} : vector<64x8xf32>, vector<8x16xf32>, vector<64x16xf32> -> vector<64x16xf32>
    %7 = vector.broadcast %5 : vector<1x16xf32> to vector<64x16xf32>
    %8 = arith.addf %6, %7 : vector<64x16xf32>
    %cst_8 = arith.constant 0.000000e+00 : f32
    %9 = vector.broadcast %cst_8 : f32 to vector<64x16xf32>
    %10 = arith.cmpf oge, %8, %9 : vector<64x16xf32>
    %cst_9 = arith.constant 2.000000e-01 : f32
    %11 = vector.broadcast %cst_9 : f32 to vector<64x16xf32>
    %12 = arith.mulf %11, %8 : vector<64x16xf32>
    %13 = arith.select %10, %8, %12 : vector<64x16xi1>, vector<64x16xf32>
    %c1 = arith.constant 1 : index
    %c0_10 = arith.constant 0 : index
    %c0_11 = arith.constant 0 : index
    %14 = vector.load %arg2[%c1, %c0_10, %c0_11] : memref<7x64x64xf32, #tpu.memory_space<vmem>>, vector<1x16x32xf32>
    %15 = vector.shape_cast %14 : vector<1x16x32xf32> to vector<16x32xf32>
    %c1_12 = arith.constant 1 : index
    %c0_13 = arith.constant 0 : index
    %c0_14 = arith.constant 0 : index
    %16 = vector.load %arg3[%c1_12, %c0_13, %c0_14] : memref<7x1x64xf32, #tpu.memory_space<vmem>>, vector<1x1x32xf32>
    %17 = vector.shape_cast %16 : vector<1x1x32xf32> to vector<1x32xf32>
    %cst_15 = arith.constant dense<0.000000e+00> : vector<64x32xf32>
    %18 = tpu.matmul %13, %15, %cst_15 {dimension_numbers = #tpu.dot_dimension_numbers<[1], [0], [0], [1], [0, 0, 1, 1], [], []>} : vector<64x16xf32>, vector<16x32xf32>, vector<64x32xf32> -> vector<64x32xf32>
    %19 = vector.broadcast %17 : vector<1x32xf32> to vector<64x32xf32>
    %20 = arith.addf %18, %19 : vector<64x32xf32>
    %cst_16 = arith.constant 0.000000e+00 : f32
    %21 = vector.broadcast %cst_16 : f32 to vector<64x32xf32>
    %22 = arith.cmpf oge, %20, %21 : vector<64x32xf32>
    %cst_17 = arith.constant 2.000000e-01 : f32
    %23 = vector.broadcast %cst_17 : f32 to vector<64x32xf32>
    %24 = arith.mulf %23, %20 : vector<64x32xf32>
    %25 = arith.select %22, %20, %24 : vector<64x32xi1>, vector<64x32xf32>
    %c2 = arith.constant 2 : index
    %c0_18 = arith.constant 0 : index
    %c0_19 = arith.constant 0 : index
    %26 = vector.load %arg2[%c2, %c0_18, %c0_19] : memref<7x64x64xf32, #tpu.memory_space<vmem>>, vector<1x32x64xf32>
    %27 = vector.shape_cast %26 : vector<1x32x64xf32> to vector<32x64xf32>
    %c2_20 = arith.constant 2 : index
    %c0_21 = arith.constant 0 : index
    %c0_22 = arith.constant 0 : index
    %28 = vector.load %arg3[%c2_20, %c0_21, %c0_22] : memref<7x1x64xf32, #tpu.memory_space<vmem>>, vector<1x1x64xf32>
    %29 = vector.shape_cast %28 : vector<1x1x64xf32> to vector<1x64xf32>
    %cst_23 = arith.constant dense<0.000000e+00> : vector<64x64xf32>
    %30 = tpu.matmul %25, %27, %cst_23 {dimension_numbers = #tpu.dot_dimension_numbers<[1], [0], [0], [1], [0, 0, 1, 1], [], []>} : vector<64x32xf32>, vector<32x64xf32>, vector<64x64xf32> -> vector<64x64xf32>
    %31 = vector.broadcast %29 : vector<1x64xf32> to vector<64x64xf32>
    %32 = arith.addf %30, %31 : vector<64x64xf32>
    %cst_24 = arith.constant 0.000000e+00 : f32
    %33 = vector.broadcast %cst_24 : f32 to vector<64x64xf32>
    %34 = arith.cmpf oge, %32, %33 : vector<64x64xf32>
    %cst_25 = arith.constant 2.000000e-01 : f32
    %35 = vector.broadcast %cst_25 : f32 to vector<64x64xf32>
    %36 = arith.mulf %35, %32 : vector<64x64xf32>
    %37 = arith.select %34, %32, %36 : vector<64x64xi1>, vector<64x64xf32>
    %c0_26 = arith.constant 0 : index
    %c0_27 = arith.constant 0 : index
    %c0_28 = arith.constant 0 : index
    %38 = vector.load %arg4[%c0_26, %c0_27, %c0_28] : memref<4x64x192xf32, #tpu.memory_space<vmem>>, vector<1x64x192xf32>
    %39 = vector.shape_cast %38 : vector<1x64x192xf32> to vector<64x192xf32>
    %cst_29 = arith.constant dense<0.000000e+00> : vector<64x192xf32>
    %40 = tpu.matmul %37, %39, %cst_29 {dimension_numbers = #tpu.dot_dimension_numbers<[1], [0], [0], [1], [0, 0, 1, 1], [], []>} : vector<64x64xf32>, vector<64x192xf32>, vector<64x192xf32> -> vector<64x192xf32>
    %c0_30 = arith.constant 0 : index
    %c0_31 = arith.constant 0 : index
    %c0_32 = arith.constant 0 : index
    %41 = vector.load %arg6[%c0_30, %c0_31, %c0_32] : memref<4x1x256xf32, #tpu.memory_space<vmem>>, vector<1x1x192xf32>
    %42 = vector.shape_cast %41 : vector<1x1x192xf32> to vector<1x192xf32>
    %43 = vector.broadcast %42 : vector<1x192xf32> to vector<64x192xf32>
    %44 = arith.addf %40, %43 : vector<64x192xf32>
    %45 = vector.shape_cast %44 : vector<64x192xf32> to vector<8x8x192xf32>
    %46 = vector.extract_strided_slice %45 {offsets = [0, 0, 0], sizes = [8, 8, 16], strides = [1, 1, 1]} : vector<8x8x192xf32> to vector<8x8x16xf32>
    %47 = vector.extract_strided_slice %45 {offsets = [0, 0, 64], sizes = [8, 8, 16], strides = [1, 1, 1]} : vector<8x8x192xf32> to vector<8x8x16xf32>
    %48 = vector.extract_strided_slice %45 {offsets = [0, 0, 128], sizes = [8, 8, 16], strides = [1, 1, 1]} : vector<8x8x192xf32> to vector<8x8x16xf32>
    "tpu.trace_start"() <{level = 10 : i32, message = "bqd,bkd->bqk"}> : () -> ()
    %cst_33 = arith.constant dense<0.000000e+00> : vector<8x8x8xf32>
    %49 = tpu.matmul %46, %47, %cst_33 {dimension_numbers = #tpu.dot_dimension_numbers<[2], [2], [1], [1], [0, 0, 0, 1, 1, 1], [0], [0]>} : vector<8x8x16xf32>, vector<8x8x16xf32>, vector<8x8x8xf32> -> vector<8x8x8xf32>
    "tpu.trace_stop"() : () -> ()
    %cst_34 = arith.constant 2.500000e-01 : f32
    %50 = vector.broadcast %cst_34 : f32 to vector<8x8x8xf32>
    %51 = arith.mulf %49, %50 : vector<8x8x8xf32>
    %cst_35 = arith.constant dense<0xFF800000> : vector<8x8xf32>
    %52 = vector.multi_reduction <maximumf>, %51, %cst_35 [2] : vector<8x8x8xf32> to vector<8x8xf32>
    %53 = vector.shape_cast %52 : vector<8x8xf32> to vector<8x8x1xf32>
    %54 = vector.broadcast %53 : vector<8x8x1xf32> to vector<8x8x8xf32>
    %55 = arith.subf %51, %54 : vector<8x8x8xf32>
    %56 = math.exp %55 : vector<8x8x8xf32>
    %cst_36 = arith.constant dense<0.000000e+00> : vector<8x8xf32>
    %57 = vector.multi_reduction <add>, %56, %cst_36 [2] : vector<8x8x8xf32> to vector<8x8xf32>
    %58 = vector.shape_cast %57 : vector<8x8xf32> to vector<8x8x1xf32>
    %59 = tpu.reciprocal %58 {approx = true} : vector<8x8x1xf32> -> vector<8x8x1xf32>
    %60 = vector.broadcast %59 : vector<8x8x1xf32> to vector<8x8x8xf32>
    %61 = arith.mulf %56, %60 : vector<8x8x8xf32>
    "tpu.trace_start"() <{level = 10 : i32, message = "bqk,bkd->bqd"}> : () -> ()
    %cst_37 = arith.constant dense<0.000000e+00> : vector<8x8x16xf32>
    %62 = tpu.matmul %61, %48, %cst_37 {dimension_numbers = #tpu.dot_dimension_numbers<[2], [1], [1], [2], [0, 0, 0, 1, 1, 2], [0], [0]>} : vector<8x8x8xf32>, vector<8x8x16xf32>, vector<8x8x16xf32> -> vector<8x8x16xf32>
    "tpu.trace_stop"() : () -> ()
    %c0_38 = arith.constant 0 : index
    %c0_39 = arith.constant 0 : index
    %c0_40 = arith.constant 0 : index
    %63 = vector.load %arg8[%c0_38, %c0_39, %c0_40] : memref<8x8x64xf32, #tpu.memory_space<vmem>>, vector<8x8x16xf32>
    tpu.vector_store %arg8[%c0_38, %c0_39, %c0_40], %62 {strides = array<i32>} : memref<8x8x64xf32, #tpu.memory_space<vmem>>, vector<8x8x16xf32>,
    %64 = vector.extract_strided_slice %45 {offsets = [0, 0, 16], sizes = [8, 8, 16], strides = [1, 1, 1]} : vector<8x8x192xf32> to vector<8x8x16xf32>
    %65 = vector.extract_strided_slice %45 {offsets = [0, 0, 80], sizes = [8, 8, 16], strides = [1, 1, 1]} : vector<8x8x192xf32> to vector<8x8x16xf32>
    %66 = vector.extract_strided_slice %45 {offsets = [0, 0, 144], sizes = [8, 8, 16], strides = [1, 1, 1]} : vector<8x8x192xf32> to vector<8x8x16xf32>
    "tpu.trace_start"() <{level = 10 : i32, message = "bqd,bkd->bqk"}> : () -> ()
    %cst_41 = arith.constant dense<0.000000e+00> : vector<8x8x8xf32>
    %67 = tpu.matmul %64, %65, %cst_41 {dimension_numbers = #tpu.dot_dimension_numbers<[2], [2], [1], [1], [0, 0, 0, 1, 1, 1], [0], [0]>} : vector<8x8x16xf32>, vector<8x8x16xf32>, vector<8x8x8xf32> -> vector<8x8x8xf32>
    "tpu.trace_stop"() : () -> ()
    %cst_42 = arith.constant 2.500000e-01 : f32
    %68 = vector.broadcast %cst_42 : f32 to vector<8x8x8xf32>
    %69 = arith.mulf %67, %68 : vector<8x8x8xf32>
    %cst_43 = arith.constant dense<0xFF800000> : vector<8x8xf32>
    %70 = vector.multi_reduction <maximumf>, %69, %cst_43 [2] : vector<8x8x8xf32> to vector<8x8xf32>
    %71 = vector.shape_cast %70 : vector<8x8xf32> to vector<8x8x1xf32>
    %72 = vector.broadcast %71 : vector<8x8x1xf32> to vector<8x8x8xf32>
    %73 = arith.subf %69, %72 : vector<8x8x8xf32>
    %74 = math.exp %73 : vector<8x8x8xf32>
    %cst_44 = arith.constant dense<0.000000e+00> : vector<8x8xf32>
    %75 = vector.multi_reduction <add>, %74, %cst_44 [2] : vector<8x8x8xf32> to vector<8x8xf32>
    %76 = vector.shape_cast %75 : vector<8x8xf32> to vector<8x8x1xf32>
    %77 = tpu.reciprocal %76 {approx = true} : vector<8x8x1xf32> -> vector<8x8x1xf32>
    %78 = vector.broadcast %77 : vector<8x8x1xf32> to vector<8x8x8xf32>
    %79 = arith.mulf %74, %78 : vector<8x8x8xf32>
    "tpu.trace_start"() <{level = 10 : i32, message = "bqk,bkd->bqd"}> : () -> ()
    %cst_45 = arith.constant dense<0.000000e+00> : vector<8x8x16xf32>
    %80 = tpu.matmul %79, %66, %cst_45 {dimension_numbers = #tpu.dot_dimension_numbers<[2], [1], [1], [2], [0, 0, 0, 1, 1, 2], [0], [0]>} : vector<8x8x8xf32>, vector<8x8x16xf32>, vector<8x8x16xf32> -> vector<8x8x16xf32>
    "tpu.trace_stop"() : () -> ()
    %c0_46 = arith.constant 0 : index
    %c0_47 = arith.constant 0 : index
    %c16 = arith.constant 16 : index
    %81 = vector.load %arg8[%c0_46, %c0_47, %c16] : memref<8x8x64xf32, #tpu.memory_space<vmem>>, vector<8x8x16xf32>
    tpu.vector_store %arg8[%c0_46, %c0_47, %c16], %80 {strides = array<i32>} : memref<8x8x64xf32, #tpu.memory_space<vmem>>, vector<8x8x16xf32>,
    %82 = vector.extract_strided_slice %45 {offsets = [0, 0, 32], sizes = [8, 8, 16], strides = [1, 1, 1]} : vector<8x8x192xf32> to vector<8x8x16xf32>
    %83 = vector.extract_strided_slice %45 {offsets = [0, 0, 96], sizes = [8, 8, 16], strides = [1, 1, 1]} : vector<8x8x192xf32> to vector<8x8x16xf32>
    %84 = vector.extract_strided_slice %45 {offsets = [0, 0, 160], sizes = [8, 8, 16], strides = [1, 1, 1]} : vector<8x8x192xf32> to vector<8x8x16xf32>
    "tpu.trace_start"() <{level = 10 : i32, message = "bqd,bkd->bqk"}> : () -> ()
    %cst_48 = arith.constant dense<0.000000e+00> : vector<8x8x8xf32>
    %85 = tpu.matmul %82, %83, %cst_48 {dimension_numbers = #tpu.dot_dimension_numbers<[2], [2], [1], [1], [0, 0, 0, 1, 1, 1], [0], [0]>} : vector<8x8x16xf32>, vector<8x8x16xf32>, vector<8x8x8xf32> -> vector<8x8x8xf32>
    "tpu.trace_stop"() : () -> ()
    %cst_49 = arith.constant 2.500000e-01 : f32
    %86 = vector.broadcast %cst_49 : f32 to vector<8x8x8xf32>
    %87 = arith.mulf %85, %86 : vector<8x8x8xf32>
    %cst_50 = arith.constant dense<0xFF800000> : vector<8x8xf32>
    %88 = vector.multi_reduction <maximumf>, %87, %cst_50 [2] : vector<8x8x8xf32> to vector<8x8xf32>
    %89 = vector.shape_cast %88 : vector<8x8xf32> to vector<8x8x1xf32>
    %90 = vector.broadcast %89 : vector<8x8x1xf32> to vector<8x8x8xf32>
    %91 = arith.subf %87, %90 : vector<8x8x8xf32>
    %92 = math.exp %91 : vector<8x8x8xf32>
    %cst_51 = arith.constant dense<0.000000e+00> : vector<8x8xf32>
    %93 = vector.multi_reduction <add>, %92, %cst_51 [2] : vector<8x8x8xf32> to vector<8x8xf32>
    %94 = vector.shape_cast %93 : vector<8x8xf32> to vector<8x8x1xf32>
    %95 = tpu.reciprocal %94 {approx = true} : vector<8x8x1xf32> -> vector<8x8x1xf32>
    %96 = vector.broadcast %95 : vector<8x8x1xf32> to vector<8x8x8xf32>
    %97 = arith.mulf %92, %96 : vector<8x8x8xf32>
    "tpu.trace_start"() <{level = 10 : i32, message = "bqk,bkd->bqd"}> : () -> ()
    %cst_52 = arith.constant dense<0.000000e+00> : vector<8x8x16xf32>
    %98 = tpu.matmul %97, %84, %cst_52 {dimension_numbers = #tpu.dot_dimension_numbers<[2], [1], [1], [2], [0, 0, 0, 1, 1, 2], [0], [0]>} : vector<8x8x8xf32>, vector<8x8x16xf32>, vector<8x8x16xf32> -> vector<8x8x16xf32>
    "tpu.trace_stop"() : () -> ()
    %c0_53 = arith.constant 0 : index
    %c0_54 = arith.constant 0 : index
    %c32 = arith.constant 32 : index
    %99 = vector.load %arg8[%c0_53, %c0_54, %c32] : memref<8x8x64xf32, #tpu.memory_space<vmem>>, vector<8x8x16xf32>
    tpu.vector_store %arg8[%c0_53, %c0_54, %c32], %98 {strides = array<i32>} : memref<8x8x64xf32, #tpu.memory_space<vmem>>, vector<8x8x16xf32>,
    %100 = vector.extract_strided_slice %45 {offsets = [0, 0, 48], sizes = [8, 8, 16], strides = [1, 1, 1]} : vector<8x8x192xf32> to vector<8x8x16xf32>
    %101 = vector.extract_strided_slice %45 {offsets = [0, 0, 112], sizes = [8, 8, 16], strides = [1, 1, 1]} : vector<8x8x192xf32> to vector<8x8x16xf32>
    %102 = vector.extract_strided_slice %45 {offsets = [0, 0, 176], sizes = [8, 8, 16], strides = [1, 1, 1]} : vector<8x8x192xf32> to vector<8x8x16xf32>
    "tpu.trace_start"() <{level = 10 : i32, message = "bqd,bkd->bqk"}> : () -> ()
    %cst_55 = arith.constant dense<0.000000e+00> : vector<8x8x8xf32>
    %103 = tpu.matmul %100, %101, %cst_55 {dimension_numbers = #tpu.dot_dimension_numbers<[2], [2], [1], [1], [0, 0, 0, 1, 1, 1], [0], [0]>} : vector<8x8x16xf32>, vector<8x8x16xf32>, vector<8x8x8xf32> -> vector<8x8x8xf32>
    "tpu.trace_stop"() : () -> ()
    %cst_56 = arith.constant 2.500000e-01 : f32
    %104 = vector.broadcast %cst_56 : f32 to vector<8x8x8xf32>
    %105 = arith.mulf %103, %104 : vector<8x8x8xf32>
    %cst_57 = arith.constant dense<0xFF800000> : vector<8x8xf32>
    %106 = vector.multi_reduction <maximumf>, %105, %cst_57 [2] : vector<8x8x8xf32> to vector<8x8xf32>
    %107 = vector.shape_cast %106 : vector<8x8xf32> to vector<8x8x1xf32>
    %108 = vector.broadcast %107 : vector<8x8x1xf32> to vector<8x8x8xf32>
    %109 = arith.subf %105, %108 : vector<8x8x8xf32>
    %110 = math.exp %109 : vector<8x8x8xf32>
    %cst_58 = arith.constant dense<0.000000e+00> : vector<8x8xf32>
    %111 = vector.multi_reduction <add>, %110, %cst_58 [2] : vector<8x8x8xf32> to vector<8x8xf32>
    %112 = vector.shape_cast %111 : vector<8x8xf32> to vector<8x8x1xf32>
    %113 = tpu.reciprocal %112 {approx = true} : vector<8x8x1xf32> -> vector<8x8x1xf32>
    %114 = vector.broadcast %113 : vector<8x8x1xf32> to vector<8x8x8xf32>
    %115 = arith.mulf %110, %114 : vector<8x8x8xf32>
    "tpu.trace_start"() <{level = 10 : i32, message = "bqk,bkd->bqd"}> : () -> ()
    %cst_59 = arith.constant dense<0.000000e+00> : vector<8x8x16xf32>
    %116 = tpu.matmul %115, %102, %cst_59 {dimension_numbers = #tpu.dot_dimension_numbers<[2], [1], [1], [2], [0, 0, 0, 1, 1, 2], [0], [0]>} : vector<8x8x8xf32>, vector<8x8x16xf32>, vector<8x8x16xf32> -> vector<8x8x16xf32>
    "tpu.trace_stop"() : () -> ()
    %c0_60 = arith.constant 0 : index
    %c0_61 = arith.constant 0 : index
    %c48 = arith.constant 48 : index
    %117 = vector.load %arg8[%c0_60, %c0_61, %c48] : memref<8x8x64xf32, #tpu.memory_space<vmem>>, vector<8x8x16xf32>
    tpu.vector_store %arg8[%c0_60, %c0_61, %c48], %116 {strides = array<i32>} : memref<8x8x64xf32, #tpu.memory_space<vmem>>, vector<8x8x16xf32>,
    %c0_62 = arith.constant 0 : index
    %c0_63 = arith.constant 0 : index
    %c0_64 = arith.constant 0 : index
    %118 = vector.load %arg8[%c0_62, %c0_63, %c0_64] : memref<8x8x64xf32, #tpu.memory_space<vmem>>, vector<8x8x64xf32>
    %119 = vector.shape_cast %118 : vector<8x8x64xf32> to vector<64x64xf32>
    %c0_65 = arith.constant 0 : index
    %c0_66 = arith.constant 0 : index
    %c0_67 = arith.constant 0 : index
    %120 = vector.load %arg5[%c0_65, %c0_66, %c0_67] : memref<4x64x64xf32, #tpu.memory_space<vmem>>, vector<1x64x64xf32>
    %121 = vector.shape_cast %120 : vector<1x64x64xf32> to vector<64x64xf32>
    %cst_68 = arith.constant dense<0.000000e+00> : vector<64x64xf32>
    %122 = tpu.matmul %119, %121, %cst_68 {dimension_numbers = #tpu.dot_dimension_numbers<[1], [0], [0], [1], [0, 0, 1, 1], [], []>} : vector<64x64xf32>, vector<64x64xf32>, vector<64x64xf32> -> vector<64x64xf32>
    %c0_69 = arith.constant 0 : index
    %c0_70 = arith.constant 0 : index
    %c192 = arith.constant 192 : index
    %123 = vector.load %arg6[%c0_69, %c0_70, %c192] : memref<4x1x256xf32, #tpu.memory_space<vmem>>, vector<1x1x64xf32>
    %124 = vector.shape_cast %123 : vector<1x1x64xf32> to vector<1x64xf32>
    %125 = vector.broadcast %124 : vector<1x64xf32> to vector<64x64xf32>
    %126 = arith.addf %122, %125 : vector<64x64xf32>
    %127 = arith.addf %37, %126 : vector<64x64xf32>
    %cst_71 = arith.constant 0.000000e+00 : f32
    %128 = vector.broadcast %cst_71 : f32 to vector<64x64xf32>
    %129 = arith.cmpf oge, %127, %128 : vector<64x64xf32>
    %cst_72 = arith.constant 2.000000e-01 : f32
    %130 = vector.broadcast %cst_72 : f32 to vector<64x64xf32>
    %131 = arith.mulf %130, %127 : vector<64x64xf32>
    %132 = arith.select %129, %127, %131 : vector<64x64xi1>, vector<64x64xf32>
    %c1_73 = arith.constant 1 : index
    %c0_74 = arith.constant 0 : index
    %c0_75 = arith.constant 0 : index
    %133 = vector.load %arg4[%c1_73, %c0_74, %c0_75] : memref<4x64x192xf32, #tpu.memory_space<vmem>>, vector<1x64x192xf32>
    %134 = vector.shape_cast %133 : vector<1x64x192xf32> to vector<64x192xf32>
    %cst_76 = arith.constant dense<0.000000e+00> : vector<64x192xf32>
    %135 = tpu.matmul %132, %134, %cst_76 {dimension_numbers = #tpu.dot_dimension_numbers<[1], [0], [0], [1], [0, 0, 1, 1], [], []>} : vector<64x64xf32>, vector<64x192xf32>, vector<64x192xf32> -> vector<64x192xf32>
    %c1_77 = arith.constant 1 : index
    %c0_78 = arith.constant 0 : index
    %c0_79 = arith.constant 0 : index
    %136 = vector.load %arg6[%c1_77, %c0_78, %c0_79] : memref<4x1x256xf32, #tpu.memory_space<vmem>>, vector<1x1x192xf32>
    %137 = vector.shape_cast %136 : vector<1x1x192xf32> to vector<1x192xf32>
    %138 = vector.broadcast %137 : vector<1x192xf32> to vector<64x192xf32>
    %139 = arith.addf %135, %138 : vector<64x192xf32>
    %140 = vector.shape_cast %139 : vector<64x192xf32> to vector<8x8x192xf32>
    %141 = vector.extract_strided_slice %140 {offsets = [0, 0, 0], sizes = [8, 8, 16], strides = [1, 1, 1]} : vector<8x8x192xf32> to vector<8x8x16xf32>
    %142 = vector.extract_strided_slice %140 {offsets = [0, 0, 64], sizes = [8, 8, 16], strides = [1, 1, 1]} : vector<8x8x192xf32> to vector<8x8x16xf32>
    %143 = vector.extract_strided_slice %140 {offsets = [0, 0, 128], sizes = [8, 8, 16], strides = [1, 1, 1]} : vector<8x8x192xf32> to vector<8x8x16xf32>
    "tpu.trace_start"() <{level = 10 : i32, message = "bqd,bkd->bqk"}> : () -> ()
    %cst_80 = arith.constant dense<0.000000e+00> : vector<8x8x8xf32>
    %144 = tpu.matmul %141, %142, %cst_80 {dimension_numbers = #tpu.dot_dimension_numbers<[2], [2], [1], [1], [0, 0, 0, 1, 1, 1], [0], [0]>} : vector<8x8x16xf32>, vector<8x8x16xf32>, vector<8x8x8xf32> -> vector<8x8x8xf32>
    "tpu.trace_stop"() : () -> ()
    %cst_81 = arith.constant 2.500000e-01 : f32
    %145 = vector.broadcast %cst_81 : f32 to vector<8x8x8xf32>
    %146 = arith.mulf %144, %145 : vector<8x8x8xf32>
    %cst_82 = arith.constant dense<0xFF800000> : vector<8x8xf32>
    %147 = vector.multi_reduction <maximumf>, %146, %cst_82 [2] : vector<8x8x8xf32> to vector<8x8xf32>
    %148 = vector.shape_cast %147 : vector<8x8xf32> to vector<8x8x1xf32>
    %149 = vector.broadcast %148 : vector<8x8x1xf32> to vector<8x8x8xf32>
    %150 = arith.subf %146, %149 : vector<8x8x8xf32>
    %151 = math.exp %150 : vector<8x8x8xf32>
    %cst_83 = arith.constant dense<0.000000e+00> : vector<8x8xf32>
    %152 = vector.multi_reduction <add>, %151, %cst_83 [2] : vector<8x8x8xf32> to vector<8x8xf32>
    %153 = vector.shape_cast %152 : vector<8x8xf32> to vector<8x8x1xf32>
    %154 = tpu.reciprocal %153 {approx = true} : vector<8x8x1xf32> -> vector<8x8x1xf32>
    %155 = vector.broadcast %154 : vector<8x8x1xf32> to vector<8x8x8xf32>
    %156 = arith.mulf %151, %155 : vector<8x8x8xf32>
    "tpu.trace_start"() <{level = 10 : i32, message = "bqk,bkd->bqd"}> : () -> ()
    %cst_84 = arith.constant dense<0.000000e+00> : vector<8x8x16xf32>
    %157 = tpu.matmul %156, %143, %cst_84 {dimension_numbers = #tpu.dot_dimension_numbers<[2], [1], [1], [2], [0, 0, 0, 1, 1, 2], [0], [0]>} : vector<8x8x8xf32>, vector<8x8x16xf32>, vector<8x8x16xf32> -> vector<8x8x16xf32>
    "tpu.trace_stop"() : () -> ()
    %c0_85 = arith.constant 0 : index
    %c0_86 = arith.constant 0 : index
    %c0_87 = arith.constant 0 : index
    %158 = vector.load %arg8[%c0_85, %c0_86, %c0_87] : memref<8x8x64xf32, #tpu.memory_space<vmem>>, vector<8x8x16xf32>
    tpu.vector_store %arg8[%c0_85, %c0_86, %c0_87], %157 {strides = array<i32>} : memref<8x8x64xf32, #tpu.memory_space<vmem>>, vector<8x8x16xf32>,
    %159 = vector.extract_strided_slice %140 {offsets = [0, 0, 16], sizes = [8, 8, 16], strides = [1, 1, 1]} : vector<8x8x192xf32> to vector<8x8x16xf32>
    %160 = vector.extract_strided_slice %140 {offsets = [0, 0, 80], sizes = [8, 8, 16], strides = [1, 1, 1]} : vector<8x8x192xf32> to vector<8x8x16xf32>
    %161 = vector.extract_strided_slice %140 {offsets = [0, 0, 144], sizes = [8, 8, 16], strides = [1, 1, 1]} : vector<8x8x192xf32> to vector<8x8x16xf32>
    "tpu.trace_start"() <{level = 10 : i32, message = "bqd,bkd->bqk"}> : () -> ()
    %cst_88 = arith.constant dense<0.000000e+00> : vector<8x8x8xf32>
    %162 = tpu.matmul %159, %160, %cst_88 {dimension_numbers = #tpu.dot_dimension_numbers<[2], [2], [1], [1], [0, 0, 0, 1, 1, 1], [0], [0]>} : vector<8x8x16xf32>, vector<8x8x16xf32>, vector<8x8x8xf32> -> vector<8x8x8xf32>
    "tpu.trace_stop"() : () -> ()
    %cst_89 = arith.constant 2.500000e-01 : f32
    %163 = vector.broadcast %cst_89 : f32 to vector<8x8x8xf32>
    %164 = arith.mulf %162, %163 : vector<8x8x8xf32>
    %cst_90 = arith.constant dense<0xFF800000> : vector<8x8xf32>
    %165 = vector.multi_reduction <maximumf>, %164, %cst_90 [2] : vector<8x8x8xf32> to vector<8x8xf32>
    %166 = vector.shape_cast %165 : vector<8x8xf32> to vector<8x8x1xf32>
    %167 = vector.broadcast %166 : vector<8x8x1xf32> to vector<8x8x8xf32>
    %168 = arith.subf %164, %167 : vector<8x8x8xf32>
    %169 = math.exp %168 : vector<8x8x8xf32>
    %cst_91 = arith.constant dense<0.000000e+00> : vector<8x8xf32>
    %170 = vector.multi_reduction <add>, %169, %cst_91 [2] : vector<8x8x8xf32> to vector<8x8xf32>
    %171 = vector.shape_cast %170 : vector<8x8xf32> to vector<8x8x1xf32>
    %172 = tpu.reciprocal %171 {approx = true} : vector<8x8x1xf32> -> vector<8x8x1xf32>
    %173 = vector.broadcast %172 : vector<8x8x1xf32> to vector<8x8x8xf32>
    %174 = arith.mulf %169, %173 : vector<8x8x8xf32>
    "tpu.trace_start"() <{level = 10 : i32, message = "bqk,bkd->bqd"}> : () -> ()
    %cst_92 = arith.constant dense<0.000000e+00> : vector<8x8x16xf32>
    %175 = tpu.matmul %174, %161, %cst_92 {dimension_numbers = #tpu.dot_dimension_numbers<[2], [1], [1], [2], [0, 0, 0, 1, 1, 2], [0], [0]>} : vector<8x8x8xf32>, vector<8x8x16xf32>, vector<8x8x16xf32> -> vector<8x8x16xf32>
    "tpu.trace_stop"() : () -> ()
    %c0_93 = arith.constant 0 : index
    %c0_94 = arith.constant 0 : index
    %c16_95 = arith.constant 16 : index
    %176 = vector.load %arg8[%c0_93, %c0_94, %c16_95] : memref<8x8x64xf32, #tpu.memory_space<vmem>>, vector<8x8x16xf32>
    tpu.vector_store %arg8[%c0_93, %c0_94, %c16_95], %175 {strides = array<i32>} : memref<8x8x64xf32, #tpu.memory_space<vmem>>, vector<8x8x16xf32>,
    %177 = vector.extract_strided_slice %140 {offsets = [0, 0, 32], sizes = [8, 8, 16], strides = [1, 1, 1]} : vector<8x8x192xf32> to vector<8x8x16xf32>
    %178 = vector.extract_strided_slice %140 {offsets = [0, 0, 96], sizes = [8, 8, 16], strides = [1, 1, 1]} : vector<8x8x192xf32> to vector<8x8x16xf32>
    %179 = vector.extract_strided_slice %140 {offsets = [0, 0, 160], sizes = [8, 8, 16], strides = [1, 1, 1]} : vector<8x8x192xf32> to vector<8x8x16xf32>
    "tpu.trace_start"() <{level = 10 : i32, message = "bqd,bkd->bqk"}> : () -> ()
    %cst_96 = arith.constant dense<0.000000e+00> : vector<8x8x8xf32>
    %180 = tpu.matmul %177, %178, %cst_96 {dimension_numbers = #tpu.dot_dimension_numbers<[2], [2], [1], [1], [0, 0, 0, 1, 1, 1], [0], [0]>} : vector<8x8x16xf32>, vector<8x8x16xf32>, vector<8x8x8xf32> -> vector<8x8x8xf32>
    "tpu.trace_stop"() : () -> ()
    %cst_97 = arith.constant 2.500000e-01 : f32
    %181 = vector.broadcast %cst_97 : f32 to vector<8x8x8xf32>
    %182 = arith.mulf %180, %181 : vector<8x8x8xf32>
    %cst_98 = arith.constant dense<0xFF800000> : vector<8x8xf32>
    %183 = vector.multi_reduction <maximumf>, %182, %cst_98 [2] : vector<8x8x8xf32> to vector<8x8xf32>
    %184 = vector.shape_cast %183 : vector<8x8xf32> to vector<8x8x1xf32>
    %185 = vector.broadcast %184 : vector<8x8x1xf32> to vector<8x8x8xf32>
    %186 = arith.subf %182, %185 : vector<8x8x8xf32>
    %187 = math.exp %186 : vector<8x8x8xf32>
    %cst_99 = arith.constant dense<0.000000e+00> : vector<8x8xf32>
    %188 = vector.multi_reduction <add>, %187, %cst_99 [2] : vector<8x8x8xf32> to vector<8x8xf32>
    %189 = vector.shape_cast %188 : vector<8x8xf32> to vector<8x8x1xf32>
    %190 = tpu.reciprocal %189 {approx = true} : vector<8x8x1xf32> -> vector<8x8x1xf32>
    %191 = vector.broadcast %190 : vector<8x8x1xf32> to vector<8x8x8xf32>
    %192 = arith.mulf %187, %191 : vector<8x8x8xf32>
    "tpu.trace_start"() <{level = 10 : i32, message = "bqk,bkd->bqd"}> : () -> ()
    %cst_100 = arith.constant dense<0.000000e+00> : vector<8x8x16xf32>
    %193 = tpu.matmul %192, %179, %cst_100 {dimension_numbers = #tpu.dot_dimension_numbers<[2], [1], [1], [2], [0, 0, 0, 1, 1, 2], [0], [0]>} : vector<8x8x8xf32>, vector<8x8x16xf32>, vector<8x8x16xf32> -> vector<8x8x16xf32>
    "tpu.trace_stop"() : () -> ()
    %c0_101 = arith.constant 0 : index
    %c0_102 = arith.constant 0 : index
    %c32_103 = arith.constant 32 : index
    %194 = vector.load %arg8[%c0_101, %c0_102, %c32_103] : memref<8x8x64xf32, #tpu.memory_space<vmem>>, vector<8x8x16xf32>
    tpu.vector_store %arg8[%c0_101, %c0_102, %c32_103], %193 {strides = array<i32>} : memref<8x8x64xf32, #tpu.memory_space<vmem>>, vector<8x8x16xf32>,
    %195 = vector.extract_strided_slice %140 {offsets = [0, 0, 48], sizes = [8, 8, 16], strides = [1, 1, 1]} : vector<8x8x192xf32> to vector<8x8x16xf32>
    %196 = vector.extract_strided_slice %140 {offsets = [0, 0, 112], sizes = [8, 8, 16], strides = [1, 1, 1]} : vector<8x8x192xf32> to vector<8x8x16xf32>
    %197 = vector.extract_strided_slice %140 {offsets = [0, 0, 176], sizes = [8, 8, 16], strides = [1, 1, 1]} : vector<8x8x192xf32> to vector<8x8x16xf32>
    "tpu.trace_start"() <{level = 10 : i32, message = "bqd,bkd->bqk"}> : () -> ()
    %cst_104 = arith.constant dense<0.000000e+00> : vector<8x8x8xf32>
    %198 = tpu.matmul %195, %196, %cst_104 {dimension_numbers = #tpu.dot_dimension_numbers<[2], [2], [1], [1], [0, 0, 0, 1, 1, 1], [0], [0]>} : vector<8x8x16xf32>, vector<8x8x16xf32>, vector<8x8x8xf32> -> vector<8x8x8xf32>
    "tpu.trace_stop"() : () -> ()
    %cst_105 = arith.constant 2.500000e-01 : f32
    %199 = vector.broadcast %cst_105 : f32 to vector<8x8x8xf32>
    %200 = arith.mulf %198, %199 : vector<8x8x8xf32>
    %cst_106 = arith.constant dense<0xFF800000> : vector<8x8xf32>
    %201 = vector.multi_reduction <maximumf>, %200, %cst_106 [2] : vector<8x8x8xf32> to vector<8x8xf32>
    %202 = vector.shape_cast %201 : vector<8x8xf32> to vector<8x8x1xf32>
    %203 = vector.broadcast %202 : vector<8x8x1xf32> to vector<8x8x8xf32>
    %204 = arith.subf %200, %203 : vector<8x8x8xf32>
    %205 = math.exp %204 : vector<8x8x8xf32>
    %cst_107 = arith.constant dense<0.000000e+00> : vector<8x8xf32>
    %206 = vector.multi_reduction <add>, %205, %cst_107 [2] : vector<8x8x8xf32> to vector<8x8xf32>
    %207 = vector.shape_cast %206 : vector<8x8xf32> to vector<8x8x1xf32>
    %208 = tpu.reciprocal %207 {approx = true} : vector<8x8x1xf32> -> vector<8x8x1xf32>
    %209 = vector.broadcast %208 : vector<8x8x1xf32> to vector<8x8x8xf32>
    %210 = arith.mulf %205, %209 : vector<8x8x8xf32>
    "tpu.trace_start"() <{level = 10 : i32, message = "bqk,bkd->bqd"}> : () -> ()
    %cst_108 = arith.constant dense<0.000000e+00> : vector<8x8x16xf32>
    %211 = tpu.matmul %210, %197, %cst_108 {dimension_numbers = #tpu.dot_dimension_numbers<[2], [1], [1], [2], [0, 0, 0, 1, 1, 2], [0], [0]>} : vector<8x8x8xf32>, vector<8x8x16xf32>, vector<8x8x16xf32> -> vector<8x8x16xf32>
    "tpu.trace_stop"() : () -> ()
    %c0_109 = arith.constant 0 : index
    %c0_110 = arith.constant 0 : index
    %c48_111 = arith.constant 48 : index
    %212 = vector.load %arg8[%c0_109, %c0_110, %c48_111] : memref<8x8x64xf32, #tpu.memory_space<vmem>>, vector<8x8x16xf32>
    tpu.vector_store %arg8[%c0_109, %c0_110, %c48_111], %211 {strides = array<i32>} : memref<8x8x64xf32, #tpu.memory_space<vmem>>, vector<8x8x16xf32>,
    %c0_112 = arith.constant 0 : index
    %c0_113 = arith.constant 0 : index
    %c0_114 = arith.constant 0 : index
    %213 = vector.load %arg8[%c0_112, %c0_113, %c0_114] : memref<8x8x64xf32, #tpu.memory_space<vmem>>, vector<8x8x64xf32>
    %214 = vector.shape_cast %213 : vector<8x8x64xf32> to vector<64x64xf32>
    %c1_115 = arith.constant 1 : index
    %c0_116 = arith.constant 0 : index
    %c0_117 = arith.constant 0 : index
    %215 = vector.load %arg5[%c1_115, %c0_116, %c0_117] : memref<4x64x64xf32, #tpu.memory_space<vmem>>, vector<1x64x64xf32>
    %216 = vector.shape_cast %215 : vector<1x64x64xf32> to vector<64x64xf32>
    %cst_118 = arith.constant dense<0.000000e+00> : vector<64x64xf32>
    %217 = tpu.matmul %214, %216, %cst_118 {dimension_numbers = #tpu.dot_dimension_numbers<[1], [0], [0], [1], [0, 0, 1, 1], [], []>} : vector<64x64xf32>, vector<64x64xf32>, vector<64x64xf32> -> vector<64x64xf32>
    %c1_119 = arith.constant 1 : index
    %c0_120 = arith.constant 0 : index
    %c192_121 = arith.constant 192 : index
    %218 = vector.load %arg6[%c1_119, %c0_120, %c192_121] : memref<4x1x256xf32, #tpu.memory_space<vmem>>, vector<1x1x64xf32>
    %219 = vector.shape_cast %218 : vector<1x1x64xf32> to vector<1x64xf32>
    %220 = vector.broadcast %219 : vector<1x64xf32> to vector<64x64xf32>
    %221 = arith.addf %217, %220 : vector<64x64xf32>
    %222 = arith.addf %132, %221 : vector<64x64xf32>
    %cst_122 = arith.constant 0.000000e+00 : f32
    %223 = vector.broadcast %cst_122 : f32 to vector<64x64xf32>
    %224 = arith.cmpf oge, %222, %223 : vector<64x64xf32>
    %cst_123 = arith.constant 2.000000e-01 : f32
    %225 = vector.broadcast %cst_123 : f32 to vector<64x64xf32>
    %226 = arith.mulf %225, %222 : vector<64x64xf32>
    %227 = arith.select %224, %222, %226 : vector<64x64xi1>, vector<64x64xf32>
    %c2_124 = arith.constant 2 : index
    %c0_125 = arith.constant 0 : index
    %c0_126 = arith.constant 0 : index
    %228 = vector.load %arg4[%c2_124, %c0_125, %c0_126] : memref<4x64x192xf32, #tpu.memory_space<vmem>>, vector<1x64x192xf32>
    %229 = vector.shape_cast %228 : vector<1x64x192xf32> to vector<64x192xf32>
    %cst_127 = arith.constant dense<0.000000e+00> : vector<64x192xf32>
    %230 = tpu.matmul %227, %229, %cst_127 {dimension_numbers = #tpu.dot_dimension_numbers<[1], [0], [0], [1], [0, 0, 1, 1], [], []>} : vector<64x64xf32>, vector<64x192xf32>, vector<64x192xf32> -> vector<64x192xf32>
    %c2_128 = arith.constant 2 : index
    %c0_129 = arith.constant 0 : index
    %c0_130 = arith.constant 0 : index
    %231 = vector.load %arg6[%c2_128, %c0_129, %c0_130] : memref<4x1x256xf32, #tpu.memory_space<vmem>>, vector<1x1x192xf32>
    %232 = vector.shape_cast %231 : vector<1x1x192xf32> to vector<1x192xf32>
    %233 = vector.broadcast %232 : vector<1x192xf32> to vector<64x192xf32>
    %234 = arith.addf %230, %233 : vector<64x192xf32>
    %235 = vector.shape_cast %234 : vector<64x192xf32> to vector<8x8x192xf32>
    %236 = vector.extract_strided_slice %235 {offsets = [0, 0, 0], sizes = [8, 8, 16], strides = [1, 1, 1]} : vector<8x8x192xf32> to vector<8x8x16xf32>
    %237 = vector.extract_strided_slice %235 {offsets = [0, 0, 64], sizes = [8, 8, 16], strides = [1, 1, 1]} : vector<8x8x192xf32> to vector<8x8x16xf32>
    %238 = vector.extract_strided_slice %235 {offsets = [0, 0, 128], sizes = [8, 8, 16], strides = [1, 1, 1]} : vector<8x8x192xf32> to vector<8x8x16xf32>
    "tpu.trace_start"() <{level = 10 : i32, message = "bqd,bkd->bqk"}> : () -> ()
    %cst_131 = arith.constant dense<0.000000e+00> : vector<8x8x8xf32>
    %239 = tpu.matmul %236, %237, %cst_131 {dimension_numbers = #tpu.dot_dimension_numbers<[2], [2], [1], [1], [0, 0, 0, 1, 1, 1], [0], [0]>} : vector<8x8x16xf32>, vector<8x8x16xf32>, vector<8x8x8xf32> -> vector<8x8x8xf32>
    "tpu.trace_stop"() : () -> ()
    %cst_132 = arith.constant 2.500000e-01 : f32
    %240 = vector.broadcast %cst_132 : f32 to vector<8x8x8xf32>
    %241 = arith.mulf %239, %240 : vector<8x8x8xf32>
    %cst_133 = arith.constant dense<0xFF800000> : vector<8x8xf32>
    %242 = vector.multi_reduction <maximumf>, %241, %cst_133 [2] : vector<8x8x8xf32> to vector<8x8xf32>
    %243 = vector.shape_cast %242 : vector<8x8xf32> to vector<8x8x1xf32>
    %244 = vector.broadcast %243 : vector<8x8x1xf32> to vector<8x8x8xf32>
    %245 = arith.subf %241, %244 : vector<8x8x8xf32>
    %246 = math.exp %245 : vector<8x8x8xf32>
    %cst_134 = arith.constant dense<0.000000e+00> : vector<8x8xf32>
    %247 = vector.multi_reduction <add>, %246, %cst_134 [2] : vector<8x8x8xf32> to vector<8x8xf32>
    %248 = vector.shape_cast %247 : vector<8x8xf32> to vector<8x8x1xf32>
    %249 = tpu.reciprocal %248 {approx = true} : vector<8x8x1xf32> -> vector<8x8x1xf32>
    %250 = vector.broadcast %249 : vector<8x8x1xf32> to vector<8x8x8xf32>
    %251 = arith.mulf %246, %250 : vector<8x8x8xf32>
    "tpu.trace_start"() <{level = 10 : i32, message = "bqk,bkd->bqd"}> : () -> ()
    %cst_135 = arith.constant dense<0.000000e+00> : vector<8x8x16xf32>
    %252 = tpu.matmul %251, %238, %cst_135 {dimension_numbers = #tpu.dot_dimension_numbers<[2], [1], [1], [2], [0, 0, 0, 1, 1, 2], [0], [0]>} : vector<8x8x8xf32>, vector<8x8x16xf32>, vector<8x8x16xf32> -> vector<8x8x16xf32>
    "tpu.trace_stop"() : () -> ()
    %c0_136 = arith.constant 0 : index
    %c0_137 = arith.constant 0 : index
    %c0_138 = arith.constant 0 : index
    %253 = vector.load %arg8[%c0_136, %c0_137, %c0_138] : memref<8x8x64xf32, #tpu.memory_space<vmem>>, vector<8x8x16xf32>
    tpu.vector_store %arg8[%c0_136, %c0_137, %c0_138], %252 {strides = array<i32>} : memref<8x8x64xf32, #tpu.memory_space<vmem>>, vector<8x8x16xf32>,
    %254 = vector.extract_strided_slice %235 {offsets = [0, 0, 16], sizes = [8, 8, 16], strides = [1, 1, 1]} : vector<8x8x192xf32> to vector<8x8x16xf32>
    %255 = vector.extract_strided_slice %235 {offsets = [0, 0, 80], sizes = [8, 8, 16], strides = [1, 1, 1]} : vector<8x8x192xf32> to vector<8x8x16xf32>
    %256 = vector.extract_strided_slice %235 {offsets = [0, 0, 144], sizes = [8, 8, 16], strides = [1, 1, 1]} : vector<8x8x192xf32> to vector<8x8x16xf32>
    "tpu.trace_start"() <{level = 10 : i32, message = "bqd,bkd->bqk"}> : () -> ()
    %cst_139 = arith.constant dense<0.000000e+00> : vector<8x8x8xf32>
    %257 = tpu.matmul %254, %255, %cst_139 {dimension_numbers = #tpu.dot_dimension_numbers<[2], [2], [1], [1], [0, 0, 0, 1, 1, 1], [0], [0]>} : vector<8x8x16xf32>, vector<8x8x16xf32>, vector<8x8x8xf32> -> vector<8x8x8xf32>
    "tpu.trace_stop"() : () -> ()
    %cst_140 = arith.constant 2.500000e-01 : f32
    %258 = vector.broadcast %cst_140 : f32 to vector<8x8x8xf32>
    %259 = arith.mulf %257, %258 : vector<8x8x8xf32>
    %cst_141 = arith.constant dense<0xFF800000> : vector<8x8xf32>
    %260 = vector.multi_reduction <maximumf>, %259, %cst_141 [2] : vector<8x8x8xf32> to vector<8x8xf32>
    %261 = vector.shape_cast %260 : vector<8x8xf32> to vector<8x8x1xf32>
    %262 = vector.broadcast %261 : vector<8x8x1xf32> to vector<8x8x8xf32>
    %263 = arith.subf %259, %262 : vector<8x8x8xf32>
    %264 = math.exp %263 : vector<8x8x8xf32>
    %cst_142 = arith.constant dense<0.000000e+00> : vector<8x8xf32>
    %265 = vector.multi_reduction <add>, %264, %cst_142 [2] : vector<8x8x8xf32> to vector<8x8xf32>
    %266 = vector.shape_cast %265 : vector<8x8xf32> to vector<8x8x1xf32>
    %267 = tpu.reciprocal %266 {approx = true} : vector<8x8x1xf32> -> vector<8x8x1xf32>
    %268 = vector.broadcast %267 : vector<8x8x1xf32> to vector<8x8x8xf32>
    %269 = arith.mulf %264, %268 : vector<8x8x8xf32>
    "tpu.trace_start"() <{level = 10 : i32, message = "bqk,bkd->bqd"}> : () -> ()
    %cst_143 = arith.constant dense<0.000000e+00> : vector<8x8x16xf32>
    %270 = tpu.matmul %269, %256, %cst_143 {dimension_numbers = #tpu.dot_dimension_numbers<[2], [1], [1], [2], [0, 0, 0, 1, 1, 2], [0], [0]>} : vector<8x8x8xf32>, vector<8x8x16xf32>, vector<8x8x16xf32> -> vector<8x8x16xf32>
    "tpu.trace_stop"() : () -> ()
    %c0_144 = arith.constant 0 : index
    %c0_145 = arith.constant 0 : index
    %c16_146 = arith.constant 16 : index
    %271 = vector.load %arg8[%c0_144, %c0_145, %c16_146] : memref<8x8x64xf32, #tpu.memory_space<vmem>>, vector<8x8x16xf32>
    tpu.vector_store %arg8[%c0_144, %c0_145, %c16_146], %270 {strides = array<i32>} : memref<8x8x64xf32, #tpu.memory_space<vmem>>, vector<8x8x16xf32>,
    %272 = vector.extract_strided_slice %235 {offsets = [0, 0, 32], sizes = [8, 8, 16], strides = [1, 1, 1]} : vector<8x8x192xf32> to vector<8x8x16xf32>
    %273 = vector.extract_strided_slice %235 {offsets = [0, 0, 96], sizes = [8, 8, 16], strides = [1, 1, 1]} : vector<8x8x192xf32> to vector<8x8x16xf32>
    %274 = vector.extract_strided_slice %235 {offsets = [0, 0, 160], sizes = [8, 8, 16], strides = [1, 1, 1]} : vector<8x8x192xf32> to vector<8x8x16xf32>
    "tpu.trace_start"() <{level = 10 : i32, message = "bqd,bkd->bqk"}> : () -> ()
    %cst_147 = arith.constant dense<0.000000e+00> : vector<8x8x8xf32>
    %275 = tpu.matmul %272, %273, %cst_147 {dimension_numbers = #tpu.dot_dimension_numbers<[2], [2], [1], [1], [0, 0, 0, 1, 1, 1], [0], [0]>} : vector<8x8x16xf32>, vector<8x8x16xf32>, vector<8x8x8xf32> -> vector<8x8x8xf32>
    "tpu.trace_stop"() : () -> ()
    %cst_148 = arith.constant 2.500000e-01 : f32
    %276 = vector.broadcast %cst_148 : f32 to vector<8x8x8xf32>
    %277 = arith.mulf %275, %276 : vector<8x8x8xf32>
    %cst_149 = arith.constant dense<0xFF800000> : vector<8x8xf32>
    %278 = vector.multi_reduction <maximumf>, %277, %cst_149 [2] : vector<8x8x8xf32> to vector<8x8xf32>
    %279 = vector.shape_cast %278 : vector<8x8xf32> to vector<8x8x1xf32>
    %280 = vector.broadcast %279 : vector<8x8x1xf32> to vector<8x8x8xf32>
    %281 = arith.subf %277, %280 : vector<8x8x8xf32>
    %282 = math.exp %281 : vector<8x8x8xf32>
    %cst_150 = arith.constant dense<0.000000e+00> : vector<8x8xf32>
    %283 = vector.multi_reduction <add>, %282, %cst_150 [2] : vector<8x8x8xf32> to vector<8x8xf32>
    %284 = vector.shape_cast %283 : vector<8x8xf32> to vector<8x8x1xf32>
    %285 = tpu.reciprocal %284 {approx = true} : vector<8x8x1xf32> -> vector<8x8x1xf32>
    %286 = vector.broadcast %285 : vector<8x8x1xf32> to vector<8x8x8xf32>
    %287 = arith.mulf %282, %286 : vector<8x8x8xf32>
    "tpu.trace_start"() <{level = 10 : i32, message = "bqk,bkd->bqd"}> : () -> ()
    %cst_151 = arith.constant dense<0.000000e+00> : vector<8x8x16xf32>
    %288 = tpu.matmul %287, %274, %cst_151 {dimension_numbers = #tpu.dot_dimension_numbers<[2], [1], [1], [2], [0, 0, 0, 1, 1, 2], [0], [0]>} : vector<8x8x8xf32>, vector<8x8x16xf32>, vector<8x8x16xf32> -> vector<8x8x16xf32>
    "tpu.trace_stop"() : () -> ()
    %c0_152 = arith.constant 0 : index
    %c0_153 = arith.constant 0 : index
    %c32_154 = arith.constant 32 : index
    %289 = vector.load %arg8[%c0_152, %c0_153, %c32_154] : memref<8x8x64xf32, #tpu.memory_space<vmem>>, vector<8x8x16xf32>
    tpu.vector_store %arg8[%c0_152, %c0_153, %c32_154], %288 {strides = array<i32>} : memref<8x8x64xf32, #tpu.memory_space<vmem>>, vector<8x8x16xf32>,
    %290 = vector.extract_strided_slice %235 {offsets = [0, 0, 48], sizes = [8, 8, 16], strides = [1, 1, 1]} : vector<8x8x192xf32> to vector<8x8x16xf32>
    %291 = vector.extract_strided_slice %235 {offsets = [0, 0, 112], sizes = [8, 8, 16], strides = [1, 1, 1]} : vector<8x8x192xf32> to vector<8x8x16xf32>
    %292 = vector.extract_strided_slice %235 {offsets = [0, 0, 176], sizes = [8, 8, 16], strides = [1, 1, 1]} : vector<8x8x192xf32> to vector<8x8x16xf32>
    "tpu.trace_start"() <{level = 10 : i32, message = "bqd,bkd->bqk"}> : () -> ()
    %cst_155 = arith.constant dense<0.000000e+00> : vector<8x8x8xf32>
    %293 = tpu.matmul %290, %291, %cst_155 {dimension_numbers = #tpu.dot_dimension_numbers<[2], [2], [1], [1], [0, 0, 0, 1, 1, 1], [0], [0]>} : vector<8x8x16xf32>, vector<8x8x16xf32>, vector<8x8x8xf32> -> vector<8x8x8xf32>
    "tpu.trace_stop"() : () -> ()
    %cst_156 = arith.constant 2.500000e-01 : f32
    %294 = vector.broadcast %cst_156 : f32 to vector<8x8x8xf32>
    %295 = arith.mulf %293, %294 : vector<8x8x8xf32>
    %cst_157 = arith.constant dense<0xFF800000> : vector<8x8xf32>
    %296 = vector.multi_reduction <maximumf>, %295, %cst_157 [2] : vector<8x8x8xf32> to vector<8x8xf32>
    %297 = vector.shape_cast %296 : vector<8x8xf32> to vector<8x8x1xf32>
    %298 = vector.broadcast %297 : vector<8x8x1xf32> to vector<8x8x8xf32>
    %299 = arith.subf %295, %298 : vector<8x8x8xf32>
    %300 = math.exp %299 : vector<8x8x8xf32>
    %cst_158 = arith.constant dense<0.000000e+00> : vector<8x8xf32>
    %301 = vector.multi_reduction <add>, %300, %cst_158 [2] : vector<8x8x8xf32> to vector<8x8xf32>
    %302 = vector.shape_cast %301 : vector<8x8xf32> to vector<8x8x1xf32>
    %303 = tpu.reciprocal %302 {approx = true} : vector<8x8x1xf32> -> vector<8x8x1xf32>
    %304 = vector.broadcast %303 : vector<8x8x1xf32> to vector<8x8x8xf32>
    %305 = arith.mulf %300, %304 : vector<8x8x8xf32>
    "tpu.trace_start"() <{level = 10 : i32, message = "bqk,bkd->bqd"}> : () -> ()
    %cst_159 = arith.constant dense<0.000000e+00> : vector<8x8x16xf32>
    %306 = tpu.matmul %305, %292, %cst_159 {dimension_numbers = #tpu.dot_dimension_numbers<[2], [1], [1], [2], [0, 0, 0, 1, 1, 2], [0], [0]>} : vector<8x8x8xf32>, vector<8x8x16xf32>, vector<8x8x16xf32> -> vector<8x8x16xf32>
    "tpu.trace_stop"() : () -> ()
    %c0_160 = arith.constant 0 : index
    %c0_161 = arith.constant 0 : index
    %c48_162 = arith.constant 48 : index
    %307 = vector.load %arg8[%c0_160, %c0_161, %c48_162] : memref<8x8x64xf32, #tpu.memory_space<vmem>>, vector<8x8x16xf32>
    tpu.vector_store %arg8[%c0_160, %c0_161, %c48_162], %306 {strides = array<i32>} : memref<8x8x64xf32, #tpu.memory_space<vmem>>, vector<8x8x16xf32>,
    %c0_163 = arith.constant 0 : index
    %c0_164 = arith.constant 0 : index
    %c0_165 = arith.constant 0 : index
    %308 = vector.load %arg8[%c0_163, %c0_164, %c0_165] : memref<8x8x64xf32, #tpu.memory_space<vmem>>, vector<8x8x64xf32>
    %309 = vector.shape_cast %308 : vector<8x8x64xf32> to vector<64x64xf32>
    %c2_166 = arith.constant 2 : index
    %c0_167 = arith.constant 0 : index
    %c0_168 = arith.constant 0 : index
    %310 = vector.load %arg5[%c2_166, %c0_167, %c0_168] : memref<4x64x64xf32, #tpu.memory_space<vmem>>, vector<1x64x64xf32>
    %311 = vector.shape_cast %310 : vector<1x64x64xf32> to vector<64x64xf32>
    %cst_169 = arith.constant dense<0.000000e+00> : vector<64x64xf32>
    %312 = tpu.matmul %309, %311, %cst_169 {dimension_numbers = #tpu.dot_dimension_numbers<[1], [0], [0], [1], [0, 0, 1, 1], [], []>} : vector<64x64xf32>, vector<64x64xf32>, vector<64x64xf32> -> vector<64x64xf32>
    %c2_170 = arith.constant 2 : index
    %c0_171 = arith.constant 0 : index
    %c192_172 = arith.constant 192 : index
    %313 = vector.load %arg6[%c2_170, %c0_171, %c192_172] : memref<4x1x256xf32, #tpu.memory_space<vmem>>, vector<1x1x64xf32>
    %314 = vector.shape_cast %313 : vector<1x1x64xf32> to vector<1x64xf32>
    %315 = vector.broadcast %314 : vector<1x64xf32> to vector<64x64xf32>
    %316 = arith.addf %312, %315 : vector<64x64xf32>
    %317 = arith.addf %227, %316 : vector<64x64xf32>
    %cst_173 = arith.constant 0.000000e+00 : f32
    %318 = vector.broadcast %cst_173 : f32 to vector<64x64xf32>
    %319 = arith.cmpf oge, %317, %318 : vector<64x64xf32>
    %cst_174 = arith.constant 2.000000e-01 : f32
    %320 = vector.broadcast %cst_174 : f32 to vector<64x64xf32>
    %321 = arith.mulf %320, %317 : vector<64x64xf32>
    %322 = arith.select %319, %317, %321 : vector<64x64xi1>, vector<64x64xf32>
    %c3 = arith.constant 3 : index
    %c0_175 = arith.constant 0 : index
    %c0_176 = arith.constant 0 : index
    %323 = vector.load %arg4[%c3, %c0_175, %c0_176] : memref<4x64x192xf32, #tpu.memory_space<vmem>>, vector<1x64x192xf32>
    %324 = vector.shape_cast %323 : vector<1x64x192xf32> to vector<64x192xf32>
    %cst_177 = arith.constant dense<0.000000e+00> : vector<64x192xf32>
    %325 = tpu.matmul %322, %324, %cst_177 {dimension_numbers = #tpu.dot_dimension_numbers<[1], [0], [0], [1], [0, 0, 1, 1], [], []>} : vector<64x64xf32>, vector<64x192xf32>, vector<64x192xf32> -> vector<64x192xf32>
    %c3_178 = arith.constant 3 : index
    %c0_179 = arith.constant 0 : index
    %c0_180 = arith.constant 0 : index
    %326 = vector.load %arg6[%c3_178, %c0_179, %c0_180] : memref<4x1x256xf32, #tpu.memory_space<vmem>>, vector<1x1x192xf32>
    %327 = vector.shape_cast %326 : vector<1x1x192xf32> to vector<1x192xf32>
    %328 = vector.broadcast %327 : vector<1x192xf32> to vector<64x192xf32>
    %329 = arith.addf %325, %328 : vector<64x192xf32>
    %330 = vector.shape_cast %329 : vector<64x192xf32> to vector<8x8x192xf32>
    %331 = vector.extract_strided_slice %330 {offsets = [0, 0, 0], sizes = [8, 8, 16], strides = [1, 1, 1]} : vector<8x8x192xf32> to vector<8x8x16xf32>
    %332 = vector.extract_strided_slice %330 {offsets = [0, 0, 64], sizes = [8, 8, 16], strides = [1, 1, 1]} : vector<8x8x192xf32> to vector<8x8x16xf32>
    %333 = vector.extract_strided_slice %330 {offsets = [0, 0, 128], sizes = [8, 8, 16], strides = [1, 1, 1]} : vector<8x8x192xf32> to vector<8x8x16xf32>
    "tpu.trace_start"() <{level = 10 : i32, message = "bqd,bkd->bqk"}> : () -> ()
    %cst_181 = arith.constant dense<0.000000e+00> : vector<8x8x8xf32>
    %334 = tpu.matmul %331, %332, %cst_181 {dimension_numbers = #tpu.dot_dimension_numbers<[2], [2], [1], [1], [0, 0, 0, 1, 1, 1], [0], [0]>} : vector<8x8x16xf32>, vector<8x8x16xf32>, vector<8x8x8xf32> -> vector<8x8x8xf32>
    "tpu.trace_stop"() : () -> ()
    %cst_182 = arith.constant 2.500000e-01 : f32
    %335 = vector.broadcast %cst_182 : f32 to vector<8x8x8xf32>
    %336 = arith.mulf %334, %335 : vector<8x8x8xf32>
    %cst_183 = arith.constant dense<0xFF800000> : vector<8x8xf32>
    %337 = vector.multi_reduction <maximumf>, %336, %cst_183 [2] : vector<8x8x8xf32> to vector<8x8xf32>
    %338 = vector.shape_cast %337 : vector<8x8xf32> to vector<8x8x1xf32>
    %339 = vector.broadcast %338 : vector<8x8x1xf32> to vector<8x8x8xf32>
    %340 = arith.subf %336, %339 : vector<8x8x8xf32>
    %341 = math.exp %340 : vector<8x8x8xf32>
    %cst_184 = arith.constant dense<0.000000e+00> : vector<8x8xf32>
    %342 = vector.multi_reduction <add>, %341, %cst_184 [2] : vector<8x8x8xf32> to vector<8x8xf32>
    %343 = vector.shape_cast %342 : vector<8x8xf32> to vector<8x8x1xf32>
    %344 = tpu.reciprocal %343 {approx = true} : vector<8x8x1xf32> -> vector<8x8x1xf32>
    %345 = vector.broadcast %344 : vector<8x8x1xf32> to vector<8x8x8xf32>
    %346 = arith.mulf %341, %345 : vector<8x8x8xf32>
    "tpu.trace_start"() <{level = 10 : i32, message = "bqk,bkd->bqd"}> : () -> ()
    %cst_185 = arith.constant dense<0.000000e+00> : vector<8x8x16xf32>
    %347 = tpu.matmul %346, %333, %cst_185 {dimension_numbers = #tpu.dot_dimension_numbers<[2], [1], [1], [2], [0, 0, 0, 1, 1, 2], [0], [0]>} : vector<8x8x8xf32>, vector<8x8x16xf32>, vector<8x8x16xf32> -> vector<8x8x16xf32>
    "tpu.trace_stop"() : () -> ()
    %c0_186 = arith.constant 0 : index
    %c0_187 = arith.constant 0 : index
    %c0_188 = arith.constant 0 : index
    %348 = vector.load %arg8[%c0_186, %c0_187, %c0_188] : memref<8x8x64xf32, #tpu.memory_space<vmem>>, vector<8x8x16xf32>
    tpu.vector_store %arg8[%c0_186, %c0_187, %c0_188], %347 {strides = array<i32>} : memref<8x8x64xf32, #tpu.memory_space<vmem>>, vector<8x8x16xf32>,
    %349 = vector.extract_strided_slice %330 {offsets = [0, 0, 16], sizes = [8, 8, 16], strides = [1, 1, 1]} : vector<8x8x192xf32> to vector<8x8x16xf32>
    %350 = vector.extract_strided_slice %330 {offsets = [0, 0, 80], sizes = [8, 8, 16], strides = [1, 1, 1]} : vector<8x8x192xf32> to vector<8x8x16xf32>
    %351 = vector.extract_strided_slice %330 {offsets = [0, 0, 144], sizes = [8, 8, 16], strides = [1, 1, 1]} : vector<8x8x192xf32> to vector<8x8x16xf32>
    "tpu.trace_start"() <{level = 10 : i32, message = "bqd,bkd->bqk"}> : () -> ()
    %cst_189 = arith.constant dense<0.000000e+00> : vector<8x8x8xf32>
    %352 = tpu.matmul %349, %350, %cst_189 {dimension_numbers = #tpu.dot_dimension_numbers<[2], [2], [1], [1], [0, 0, 0, 1, 1, 1], [0], [0]>} : vector<8x8x16xf32>, vector<8x8x16xf32>, vector<8x8x8xf32> -> vector<8x8x8xf32>
    "tpu.trace_stop"() : () -> ()
    %cst_190 = arith.constant 2.500000e-01 : f32
    %353 = vector.broadcast %cst_190 : f32 to vector<8x8x8xf32>
    %354 = arith.mulf %352, %353 : vector<8x8x8xf32>
    %cst_191 = arith.constant dense<0xFF800000> : vector<8x8xf32>
    %355 = vector.multi_reduction <maximumf>, %354, %cst_191 [2] : vector<8x8x8xf32> to vector<8x8xf32>
    %356 = vector.shape_cast %355 : vector<8x8xf32> to vector<8x8x1xf32>
    %357 = vector.broadcast %356 : vector<8x8x1xf32> to vector<8x8x8xf32>
    %358 = arith.subf %354, %357 : vector<8x8x8xf32>
    %359 = math.exp %358 : vector<8x8x8xf32>
    %cst_192 = arith.constant dense<0.000000e+00> : vector<8x8xf32>
    %360 = vector.multi_reduction <add>, %359, %cst_192 [2] : vector<8x8x8xf32> to vector<8x8xf32>
    %361 = vector.shape_cast %360 : vector<8x8xf32> to vector<8x8x1xf32>
    %362 = tpu.reciprocal %361 {approx = true} : vector<8x8x1xf32> -> vector<8x8x1xf32>
    %363 = vector.broadcast %362 : vector<8x8x1xf32> to vector<8x8x8xf32>
    %364 = arith.mulf %359, %363 : vector<8x8x8xf32>
    "tpu.trace_start"() <{level = 10 : i32, message = "bqk,bkd->bqd"}> : () -> ()
    %cst_193 = arith.constant dense<0.000000e+00> : vector<8x8x16xf32>
    %365 = tpu.matmul %364, %351, %cst_193 {dimension_numbers = #tpu.dot_dimension_numbers<[2], [1], [1], [2], [0, 0, 0, 1, 1, 2], [0], [0]>} : vector<8x8x8xf32>, vector<8x8x16xf32>, vector<8x8x16xf32> -> vector<8x8x16xf32>
    "tpu.trace_stop"() : () -> ()
    %c0_194 = arith.constant 0 : index
    %c0_195 = arith.constant 0 : index
    %c16_196 = arith.constant 16 : index
    %366 = vector.load %arg8[%c0_194, %c0_195, %c16_196] : memref<8x8x64xf32, #tpu.memory_space<vmem>>, vector<8x8x16xf32>
    tpu.vector_store %arg8[%c0_194, %c0_195, %c16_196], %365 {strides = array<i32>} : memref<8x8x64xf32, #tpu.memory_space<vmem>>, vector<8x8x16xf32>,
    %367 = vector.extract_strided_slice %330 {offsets = [0, 0, 32], sizes = [8, 8, 16], strides = [1, 1, 1]} : vector<8x8x192xf32> to vector<8x8x16xf32>
    %368 = vector.extract_strided_slice %330 {offsets = [0, 0, 96], sizes = [8, 8, 16], strides = [1, 1, 1]} : vector<8x8x192xf32> to vector<8x8x16xf32>
    %369 = vector.extract_strided_slice %330 {offsets = [0, 0, 160], sizes = [8, 8, 16], strides = [1, 1, 1]} : vector<8x8x192xf32> to vector<8x8x16xf32>
    "tpu.trace_start"() <{level = 10 : i32, message = "bqd,bkd->bqk"}> : () -> ()
    %cst_197 = arith.constant dense<0.000000e+00> : vector<8x8x8xf32>
    %370 = tpu.matmul %367, %368, %cst_197 {dimension_numbers = #tpu.dot_dimension_numbers<[2], [2], [1], [1], [0, 0, 0, 1, 1, 1], [0], [0]>} : vector<8x8x16xf32>, vector<8x8x16xf32>, vector<8x8x8xf32> -> vector<8x8x8xf32>
    "tpu.trace_stop"() : () -> ()
    %cst_198 = arith.constant 2.500000e-01 : f32
    %371 = vector.broadcast %cst_198 : f32 to vector<8x8x8xf32>
    %372 = arith.mulf %370, %371 : vector<8x8x8xf32>
    %cst_199 = arith.constant dense<0xFF800000> : vector<8x8xf32>
    %373 = vector.multi_reduction <maximumf>, %372, %cst_199 [2] : vector<8x8x8xf32> to vector<8x8xf32>
    %374 = vector.shape_cast %373 : vector<8x8xf32> to vector<8x8x1xf32>
    %375 = vector.broadcast %374 : vector<8x8x1xf32> to vector<8x8x8xf32>
    %376 = arith.subf %372, %375 : vector<8x8x8xf32>
    %377 = math.exp %376 : vector<8x8x8xf32>
    %cst_200 = arith.constant dense<0.000000e+00> : vector<8x8xf32>
    %378 = vector.multi_reduction <add>, %377, %cst_200 [2] : vector<8x8x8xf32> to vector<8x8xf32>
    %379 = vector.shape_cast %378 : vector<8x8xf32> to vector<8x8x1xf32>
    %380 = tpu.reciprocal %379 {approx = true} : vector<8x8x1xf32> -> vector<8x8x1xf32>
    %381 = vector.broadcast %380 : vector<8x8x1xf32> to vector<8x8x8xf32>
    %382 = arith.mulf %377, %381 : vector<8x8x8xf32>
    "tpu.trace_start"() <{level = 10 : i32, message = "bqk,bkd->bqd"}> : () -> ()
    %cst_201 = arith.constant dense<0.000000e+00> : vector<8x8x16xf32>
    %383 = tpu.matmul %382, %369, %cst_201 {dimension_numbers = #tpu.dot_dimension_numbers<[2], [1], [1], [2], [0, 0, 0, 1, 1, 2], [0], [0]>} : vector<8x8x8xf32>, vector<8x8x16xf32>, vector<8x8x16xf32> -> vector<8x8x16xf32>
    "tpu.trace_stop"() : () -> ()
    %c0_202 = arith.constant 0 : index
    %c0_203 = arith.constant 0 : index
    %c32_204 = arith.constant 32 : index
    %384 = vector.load %arg8[%c0_202, %c0_203, %c32_204] : memref<8x8x64xf32, #tpu.memory_space<vmem>>, vector<8x8x16xf32>
    tpu.vector_store %arg8[%c0_202, %c0_203, %c32_204], %383 {strides = array<i32>} : memref<8x8x64xf32, #tpu.memory_space<vmem>>, vector<8x8x16xf32>,
    %385 = vector.extract_strided_slice %330 {offsets = [0, 0, 48], sizes = [8, 8, 16], strides = [1, 1, 1]} : vector<8x8x192xf32> to vector<8x8x16xf32>
    %386 = vector.extract_strided_slice %330 {offsets = [0, 0, 112], sizes = [8, 8, 16], strides = [1, 1, 1]} : vector<8x8x192xf32> to vector<8x8x16xf32>
    %387 = vector.extract_strided_slice %330 {offsets = [0, 0, 176], sizes = [8, 8, 16], strides = [1, 1, 1]} : vector<8x8x192xf32> to vector<8x8x16xf32>
    "tpu.trace_start"() <{level = 10 : i32, message = "bqd,bkd->bqk"}> : () -> ()
    %cst_205 = arith.constant dense<0.000000e+00> : vector<8x8x8xf32>
    %388 = tpu.matmul %385, %386, %cst_205 {dimension_numbers = #tpu.dot_dimension_numbers<[2], [2], [1], [1], [0, 0, 0, 1, 1, 1], [0], [0]>} : vector<8x8x16xf32>, vector<8x8x16xf32>, vector<8x8x8xf32> -> vector<8x8x8xf32>
    "tpu.trace_stop"() : () -> ()
    %cst_206 = arith.constant 2.500000e-01 : f32
    %389 = vector.broadcast %cst_206 : f32 to vector<8x8x8xf32>
    %390 = arith.mulf %388, %389 : vector<8x8x8xf32>
    %cst_207 = arith.constant dense<0xFF800000> : vector<8x8xf32>
    %391 = vector.multi_reduction <maximumf>, %390, %cst_207 [2] : vector<8x8x8xf32> to vector<8x8xf32>
    %392 = vector.shape_cast %391 : vector<8x8xf32> to vector<8x8x1xf32>
    %393 = vector.broadcast %392 : vector<8x8x1xf32> to vector<8x8x8xf32>
    %394 = arith.subf %390, %393 : vector<8x8x8xf32>
    %395 = math.exp %394 : vector<8x8x8xf32>
    %cst_208 = arith.constant dense<0.000000e+00> : vector<8x8xf32>
    %396 = vector.multi_reduction <add>, %395, %cst_208 [2] : vector<8x8x8xf32> to vector<8x8xf32>
    %397 = vector.shape_cast %396 : vector<8x8xf32> to vector<8x8x1xf32>
    %398 = tpu.reciprocal %397 {approx = true} : vector<8x8x1xf32> -> vector<8x8x1xf32>
    %399 = vector.broadcast %398 : vector<8x8x1xf32> to vector<8x8x8xf32>
    %400 = arith.mulf %395, %399 : vector<8x8x8xf32>
    "tpu.trace_start"() <{level = 10 : i32, message = "bqk,bkd->bqd"}> : () -> ()
    %cst_209 = arith.constant dense<0.000000e+00> : vector<8x8x16xf32>
    %401 = tpu.matmul %400, %387, %cst_209 {dimension_numbers = #tpu.dot_dimension_numbers<[2], [1], [1], [2], [0, 0, 0, 1, 1, 2], [0], [0]>} : vector<8x8x8xf32>, vector<8x8x16xf32>, vector<8x8x16xf32> -> vector<8x8x16xf32>
    "tpu.trace_stop"() : () -> ()
    %c0_210 = arith.constant 0 : index
    %c0_211 = arith.constant 0 : index
    %c48_212 = arith.constant 48 : index
    %402 = vector.load %arg8[%c0_210, %c0_211, %c48_212] : memref<8x8x64xf32, #tpu.memory_space<vmem>>, vector<8x8x16xf32>
    tpu.vector_store %arg8[%c0_210, %c0_211, %c48_212], %401 {strides = array<i32>} : memref<8x8x64xf32, #tpu.memory_space<vmem>>, vector<8x8x16xf32>,
    %c0_213 = arith.constant 0 : index
    %c0_214 = arith.constant 0 : index
    %c0_215 = arith.constant 0 : index
    %403 = vector.load %arg8[%c0_213, %c0_214, %c0_215] : memref<8x8x64xf32, #tpu.memory_space<vmem>>, vector<8x8x64xf32>
    %404 = vector.shape_cast %403 : vector<8x8x64xf32> to vector<64x64xf32>
    %c3_216 = arith.constant 3 : index
    %c0_217 = arith.constant 0 : index
    %c0_218 = arith.constant 0 : index
    %405 = vector.load %arg5[%c3_216, %c0_217, %c0_218] : memref<4x64x64xf32, #tpu.memory_space<vmem>>, vector<1x64x64xf32>
    %406 = vector.shape_cast %405 : vector<1x64x64xf32> to vector<64x64xf32>
    %cst_219 = arith.constant dense<0.000000e+00> : vector<64x64xf32>
    %407 = tpu.matmul %404, %406, %cst_219 {dimension_numbers = #tpu.dot_dimension_numbers<[1], [0], [0], [1], [0, 0, 1, 1], [], []>} : vector<64x64xf32>, vector<64x64xf32>, vector<64x64xf32> -> vector<64x64xf32>
    %c3_220 = arith.constant 3 : index
    %c0_221 = arith.constant 0 : index
    %c192_222 = arith.constant 192 : index
    %408 = vector.load %arg6[%c3_220, %c0_221, %c192_222] : memref<4x1x256xf32, #tpu.memory_space<vmem>>, vector<1x1x64xf32>
    %409 = vector.shape_cast %408 : vector<1x1x64xf32> to vector<1x64xf32>
    %410 = vector.broadcast %409 : vector<1x64xf32> to vector<64x64xf32>
    %411 = arith.addf %407, %410 : vector<64x64xf32>
    %412 = arith.addf %322, %411 : vector<64x64xf32>
    %cst_223 = arith.constant 0.000000e+00 : f32
    %413 = vector.broadcast %cst_223 : f32 to vector<64x64xf32>
    %414 = arith.cmpf oge, %412, %413 : vector<64x64xf32>
    %cst_224 = arith.constant 2.000000e-01 : f32
    %415 = vector.broadcast %cst_224 : f32 to vector<64x64xf32>
    %416 = arith.mulf %415, %412 : vector<64x64xf32>
    %417 = arith.select %414, %412, %416 : vector<64x64xi1>, vector<64x64xf32>
    %c3_225 = arith.constant 3 : index
    %c0_226 = arith.constant 0 : index
    %c0_227 = arith.constant 0 : index
    %418 = vector.load %arg2[%c3_225, %c0_226, %c0_227] : memref<7x64x64xf32, #tpu.memory_space<vmem>>, vector<1x64x32xf32>
    %419 = vector.shape_cast %418 : vector<1x64x32xf32> to vector<64x32xf32>
    %c3_228 = arith.constant 3 : index
    %c0_229 = arith.constant 0 : index
    %c0_230 = arith.constant 0 : index
    %420 = vector.load %arg3[%c3_228, %c0_229, %c0_230] : memref<7x1x64xf32, #tpu.memory_space<vmem>>, vector<1x1x32xf32>
    %421 = vector.shape_cast %420 : vector<1x1x32xf32> to vector<1x32xf32>
    %cst_231 = arith.constant dense<0.000000e+00> : vector<64x32xf32>
    %422 = tpu.matmul %417, %419, %cst_231 {dimension_numbers = #tpu.dot_dimension_numbers<[1], [0], [0], [1], [0, 0, 1, 1], [], []>} : vector<64x64xf32>, vector<64x32xf32>, vector<64x32xf32> -> vector<64x32xf32>
    %423 = vector.broadcast %421 : vector<1x32xf32> to vector<64x32xf32>
    %424 = arith.addf %422, %423 : vector<64x32xf32>
    %cst_232 = arith.constant 0.000000e+00 : f32
    %425 = vector.broadcast %cst_232 : f32 to vector<64x32xf32>
    %426 = arith.cmpf oge, %424, %425 : vector<64x32xf32>
    %cst_233 = arith.constant 2.000000e-01 : f32
    %427 = vector.broadcast %cst_233 : f32 to vector<64x32xf32>
    %428 = arith.mulf %427, %424 : vector<64x32xf32>
    %429 = arith.select %426, %424, %428 : vector<64x32xi1>, vector<64x32xf32>
    %c4 = arith.constant 4 : index
    %c0_234 = arith.constant 0 : index
    %c0_235 = arith.constant 0 : index
    %430 = vector.load %arg2[%c4, %c0_234, %c0_235] : memref<7x64x64xf32, #tpu.memory_space<vmem>>, vector<1x32x16xf32>
    %431 = vector.shape_cast %430 : vector<1x32x16xf32> to vector<32x16xf32>
    %c4_236 = arith.constant 4 : index
    %c0_237 = arith.constant 0 : index
    %c0_238 = arith.constant 0 : index
    %432 = vector.load %arg3[%c4_236, %c0_237, %c0_238] : memref<7x1x64xf32, #tpu.memory_space<vmem>>, vector<1x1x16xf32>
    %433 = vector.shape_cast %432 : vector<1x1x16xf32> to vector<1x16xf32>
    %cst_239 = arith.constant dense<0.000000e+00> : vector<64x16xf32>
    %434 = tpu.matmul %429, %431, %cst_239 {dimension_numbers = #tpu.dot_dimension_numbers<[1], [0], [0], [1], [0, 0, 1, 1], [], []>} : vector<64x32xf32>, vector<32x16xf32>, vector<64x16xf32> -> vector<64x16xf32>
    %435 = vector.broadcast %433 : vector<1x16xf32> to vector<64x16xf32>
    %436 = arith.addf %434, %435 : vector<64x16xf32>
    %cst_240 = arith.constant 0.000000e+00 : f32
    %437 = vector.broadcast %cst_240 : f32 to vector<64x16xf32>
    %438 = arith.cmpf oge, %436, %437 : vector<64x16xf32>
    %cst_241 = arith.constant 2.000000e-01 : f32
    %439 = vector.broadcast %cst_241 : f32 to vector<64x16xf32>
    %440 = arith.mulf %439, %436 : vector<64x16xf32>
    %441 = arith.select %438, %436, %440 : vector<64x16xi1>, vector<64x16xf32>
    %c5 = arith.constant 5 : index
    %c0_242 = arith.constant 0 : index
    %c0_243 = arith.constant 0 : index
    %442 = vector.load %arg2[%c5, %c0_242, %c0_243] : memref<7x64x64xf32, #tpu.memory_space<vmem>>, vector<1x16x8xf32>
    %443 = vector.shape_cast %442 : vector<1x16x8xf32> to vector<16x8xf32>
    %c5_244 = arith.constant 5 : index
    %c0_245 = arith.constant 0 : index
    %c0_246 = arith.constant 0 : index
    %444 = vector.load %arg3[%c5_244, %c0_245, %c0_246] : memref<7x1x64xf32, #tpu.memory_space<vmem>>, vector<1x1x8xf32>
    %445 = vector.shape_cast %444 : vector<1x1x8xf32> to vector<1x8xf32>
    %cst_247 = arith.constant dense<0.000000e+00> : vector<64x8xf32>
    %446 = tpu.matmul %441, %443, %cst_247 {dimension_numbers = #tpu.dot_dimension_numbers<[1], [0], [0], [1], [0, 0, 1, 1], [], []>} : vector<64x16xf32>, vector<16x8xf32>, vector<64x8xf32> -> vector<64x8xf32>
    %447 = vector.broadcast %445 : vector<1x8xf32> to vector<64x8xf32>
    %448 = arith.addf %446, %447 : vector<64x8xf32>
    %cst_248 = arith.constant 0.000000e+00 : f32
    %449 = vector.broadcast %cst_248 : f32 to vector<64x8xf32>
    %450 = arith.cmpf oge, %448, %449 : vector<64x8xf32>
    %cst_249 = arith.constant 2.000000e-01 : f32
    %451 = vector.broadcast %cst_249 : f32 to vector<64x8xf32>
    %452 = arith.mulf %451, %448 : vector<64x8xf32>
    %453 = arith.select %450, %448, %452 : vector<64x8xi1>, vector<64x8xf32>
    %c6 = arith.constant 6 : index
    %c0_250 = arith.constant 0 : index
    %c0_251 = arith.constant 0 : index
    %454 = vector.load %arg2[%c6, %c0_250, %c0_251] : memref<7x64x64xf32, #tpu.memory_space<vmem>>, vector<1x8x8xf32>
    %455 = vector.shape_cast %454 : vector<1x8x8xf32> to vector<8x8xf32>
    %c6_252 = arith.constant 6 : index
    %c0_253 = arith.constant 0 : index
    %c0_254 = arith.constant 0 : index
    %456 = vector.load %arg3[%c6_252, %c0_253, %c0_254] : memref<7x1x64xf32, #tpu.memory_space<vmem>>, vector<1x1x8xf32>
    %457 = vector.shape_cast %456 : vector<1x1x8xf32> to vector<1x8xf32>
    %cst_255 = arith.constant dense<0.000000e+00> : vector<64x8xf32>
    %458 = tpu.matmul %453, %455, %cst_255 {dimension_numbers = #tpu.dot_dimension_numbers<[1], [0], [0], [1], [0, 0, 1, 1], [], []>} : vector<64x8xf32>, vector<8x8xf32>, vector<64x8xf32> -> vector<64x8xf32>
    %459 = vector.broadcast %457 : vector<1x8xf32> to vector<64x8xf32>
    %460 = arith.addf %458, %459 : vector<64x8xf32>
    %cst_256 = arith.constant 5.000000e-01 : f32
    %461 = vector.broadcast %cst_256 : f32 to vector<64x8xf32>
    %462 = arith.mulf %461, %460 : vector<64x8xf32>
    %463 = math.tanh %462 : vector<64x8xf32>
    %cst_257 = arith.constant 1.000000e+00 : f32
    %464 = vector.broadcast %cst_257 : f32 to vector<64x8xf32>
    %465 = arith.addf %463, %464 : vector<64x8xf32>
    %cst_258 = arith.constant 5.000000e-01 : f32
    %466 = vector.broadcast %cst_258 : f32 to vector<64x8xf32>
    %467 = arith.mulf %466, %465 : vector<64x8xf32>
    %c0_259 = arith.constant 0 : index
    %c0_260 = arith.constant 0 : index
    %468 = vector.load %arg7[%c0_259, %c0_260] : memref<64x8xf32, #tpu.memory_space<vmem>>, vector<64x8xf32>
    tpu.vector_store %arg7[%c0_259, %c0_260], %467 {strides = array<i32>} : memref<64x8xf32, #tpu.memory_space<vmem>>, vector<64x8xf32>,
    return
  }
  func.func @transform_0(%arg0: i32) -> (i32, i32, i32) {
    %c0_i32 = arith.constant 0 : i32
    %c0_i32_0 = arith.constant 0 : i32
    %c0_i32_1 = arith.constant 0 : i32
    return %arg0, %c0_i32, %c0_i32_0 : i32, i32, i32
  }
  func.func @transform_1(%arg0: i32) -> (i32, i32, i32) {
    %c0_i32 = arith.constant 0 : i32
    %c0_i32_0 = arith.constant 0 : i32
    %c0_i32_1 = arith.constant 0 : i32
    %c0_i32_2 = arith.constant 0 : i32
    return %c0_i32, %c0_i32_0, %c0_i32_1 : i32, i32, i32
  }
  func.func @transform_2(%arg0: i32) -> (i32, i32, i32) {
    %c0_i32 = arith.constant 0 : i32
    %c0_i32_0 = arith.constant 0 : i32
    %c0_i32_1 = arith.constant 0 : i32
    %c0_i32_2 = arith.constant 0 : i32
    return %c0_i32, %c0_i32_0, %c0_i32_1 : i32, i32, i32
  }
  func.func @transform_3(%arg0: i32) -> (i32, i32, i32) {
    %c0_i32 = arith.constant 0 : i32
    %c0_i32_0 = arith.constant 0 : i32
    %c0_i32_1 = arith.constant 0 : i32
    %c0_i32_2 = arith.constant 0 : i32
    return %c0_i32, %c0_i32_0, %c0_i32_1 : i32, i32, i32
  }
  func.func @transform_4(%arg0: i32) -> (i32, i32, i32) {
    %c0_i32 = arith.constant 0 : i32
    %c0_i32_0 = arith.constant 0 : i32
    %c0_i32_1 = arith.constant 0 : i32
    %c0_i32_2 = arith.constant 0 : i32
    return %c0_i32, %c0_i32_0, %c0_i32_1 : i32, i32, i32
  }
  func.func @transform_5(%arg0: i32) -> (i32, i32, i32) {
    %c0_i32 = arith.constant 0 : i32
    %c0_i32_0 = arith.constant 0 : i32
    %c0_i32_1 = arith.constant 0 : i32
    %c0_i32_2 = arith.constant 0 : i32
    return %c0_i32, %c0_i32_0, %c0_i32_1 : i32, i32, i32
  }
  func.func @transform_6(%arg0: i32) -> (i32, i32) {
    %c0_i32 = arith.constant 0 : i32
    %c0_i32_0 = arith.constant 0 : i32
    return %arg0, %c0_i32 : i32, i32
  }
}

</mosaic_0001>

<bundles_post_ra>
// kernel: tpu_custom_call.1
= control target key start
LH: loop header
LB: loop body
LE: loop exit
PB: predicated region body
PF: predicated region fallthrough
CT: control target
= control target key end

     0   :  { %11 = vsyncpa [#allocation4], 0  ;;  %s15590_s0 = inlined_call_operand.vmem [shape: f32[16,8,8], index: 0, kind: input, shape index: {}]   ;;  %s15591_s1 = inlined_call_operand.hbm [shape: f32[7,64,64], index: 1, kind: input, shape index: {}]   ;;  %s15592_s2 = inlined_call_operand.vmem [shape: f32[7,1,64], index: 2, kind: input, shape index: {}]   ;;  %s15593_s3 = inlined_call_operand.hbm [shape: f32[4,64,192], index: 3, kind: input, shape index: {}]   ;;  %s15594_s4 = inlined_call_operand.hbm [shape: f32[4,64,64], index: 4, kind: input, shape index: {}]   ;;  %s15595_s5 = inlined_call_operand.vmem [shape: f32[4,1,256], index: 5, kind: input, shape index: {}]   ;;  %s15596_s6 = inlined_call_operand.vmem [shape: f32[128,8], index: 6, kind: output, shape index: {}]  }
   0x1   :  { %12 = vsyncpa [#allocation6], 0  ;;  %s12491_s21 = smov 0  }
   0x2 LB: > { %s208_s24 = sshll.u32 %s15593_s3, 4  ;;  %s10969_s25 = sadd.s32 4294967295, %s12440_s21   ;;  %s12440_s21 = sphi %s12491_s21, %s18_s21   ;;  %s209_s24 = int_to_ptr.hbm [resolvable:$true] %s208_s24 }
   0x3   : > { %p10971_p0 = scmp.ge.s32.totalorder %s12440_s21, 1  ;;  %p180_p1 = scmp.lt.s32.totalorder %s12440_s21, 3 }
   0x4   : > { %p12504_p2 = scmp.eq.s32.totalorder %s10969_s25, 0  ;;  %s12442_s28 = smov [#allocation5]  }
   0x5   : > { %p12508_p3 = pnand %p10971_p0, %p180_p1  ;;  %s210_s29 = sshll.u32 %s12442_s28, 4  ;;  %s211_s29 = int_to_ptr.vmem [resolvable:$true] %s210_s29 }
   0x6   : > { %s191_s8 = sshll.u32 %s15591_s1, 4  ;;  %s12443_s10 = smov [#allocation3]   ;;  %s192_s8 = int_to_ptr.hbm [resolvable:$true] %s191_s8 }
   0x7   : > { %p11549_p4 = pneg %p12508_p3  ;;  %s193_s11 = sshll.u32 %s12443_s10, 4  ;;  %s194_s11 = int_to_ptr.vmem [resolvable:$true] %s193_s11 }
   0x8   : > { %s12444_s12 = smov 256   ;;  %s12445_s13 = smov 16  }
   0x9   : > { %p12519_p5 = pnand %p12504_p2, %p11549_p4  ;;  %s222_s16 = sshll.u32 %s15594_s4, 4  ;;  %s223_s16 = int_to_ptr.hbm [resolvable:$true] %s222_s16 }
   0xa   : > { %s12446_s17 = smov 128   ;;  %s12447_s18 = smov 8  }
   0xb   : > { %11555 = dma.hbm_to_vmem [thread:$0]  (!%p12519_p5), %s209_s24, 8192, %s211_s29, [#allocation6], %s12444_s12, %s12444_s12, %s12445_s13  }
   0xc   : > { %11552 = dma.hbm_to_vmem [thread:$0]  (!%p12519_p5), %s192_s8, 7168, %s194_s11, [#allocation4], %s12446_s17, %s12446_s17, %s12447_s18  }
   0xd   : > { %s12448_s19 = smov [#allocation7]   ;;  %252 = sbr.rel (%p12508_p3) target bundleno = 10674 (0x29b2), region = 44 }
   0xe   : > { %s224_s20 = sshll.u32 %s12448_s19, 4  ;;  %s225_s20 = int_to_ptr.vmem [resolvable:$true] %s224_s20 }
   0xf   : > { %11558 = dma.hbm_to_vmem [thread:$0]  (!%p12519_p5), %s223_s16, 4096, %s225_s20, [#allocation6], %s12446_s17, %s12446_s17, %s12447_s18  }
  0x12   : > { %12431 = dma.done.wait (%p12504_p2), [#allocation4], 7168  }
  0x13   : > { %12433 = vsyncadd (%p12504_p2), [#allocation4], 4294960128 }
  0x14   : > { %12435 = dma.done.wait (%p12504_p2), [#allocation6], 12288  }
  0x15   : > { %12437 = vsyncadd (%p12504_p2), [#allocation6], 4294955008  ;;  %s10980_s22 = sshll.u32 %s10969_s25, 3  ;;  %vm318_vm0 = vcmask 64512   ;;  %v313_v0 = vld [vmem:[#allocation3] sm:$0xff]  ;;  %v410_v9 = vld [vmem:[#allocation3 + $0x48] sm:$0xff] }
  0x16   : > { %p294_p6 = scmp.lt.s32.totalorder %s10980_s22, 15  ;;  %358 = vmatpush.msra.mxu0 %v313_v0  ;;  %11534 = vmatpush.msra.mxu1 %v313_v0  ;;  %v409_v10 = vld [vmem:[#allocation3 + $0x40] sm:$0xff]  ;;  %vm416_vm2 = vcmask 130048   ;;  %v510_v31 = vld [vmem:[#allocation3 + $0x98] sm:$0xff]  ;;  %v509_v45 = vld [vmem:[#allocation3 + $0x90] sm:$0xff]  ;;  %vm516_vm11 = vcmask 261120  }
  0x17   : > { %11535 = vmatpush.msra.mxu2 %v313_v0  ;;  %11536 = vmatpush.msra.mxu3 %v313_v0  ;;  %v11797_v11 = vld [vmem:[%s15592_s2] ss:$0 sm:$0xff]  ;;  %v508_v46 = vld [vmem:[#allocation3 + $0x88] sm:$0xff]  ;;  %v12574_v48 = vld [vmem:[%s15592_s2 + $0x1] ss:$0 sm:$0xff]  ;;  %s12449_s11 = smov 64  }
  0x18   : > { %s15601_s22 = smov (!%p294_p6, %s10980_s22), 15  ;;  %455 = vmatpush.msrb.mxu1 %v410_v9  ;;  %v507_v47 = vld [vmem:[#allocation3 + $0x80] sm:$0xff]  ;;  %s12450_s12 = smov 48  }
  0x19   : > { %s10981_s23 = sshll.u32 %s15601_s22, 3  ;;  %553 = vmatpush.msrb.mxu2 %v510_v31  ;;  %v614_v9 = vld [vmem:[#allocation5 + $0x40] sm:$0xff]  ;;  %s12451_s13 = smov 112  }
  0x1a   : > { %s297_s28 = scalar_lea.vmem %s15590_s0, %s10981_s23  ;;  %456 = vmatpush.msrb.mxu1 %v409_v10  ;;  %v615_v10 = vld [vmem:[#allocation5 + $0x48] sm:$0xff]  ;;  %v606_v31 = vld [vmem:[#allocation5] sm:$0xff]  ;;  %s12452_s14 = smov 32  }
  0x1b   : > { %v305_v1 = vld [vmem:[%s297_s28] sm:$0xff]  ;;  %v307_v2 = vld [vmem:[%s297_s28 + $0x10] sm:$0xff]  ;;  %v308_v3 = vld [vmem:[%s297_s28 + $0x18] sm:$0xff]  ;;  %554 = vmatpush.msrb.mxu2 %v509_v45  ;;  %s12453_s15 = smov 96   ;;  %s12454_s16 = smov 16  }
  0x1c   : > { %10984 = vmatmul.msk.f32.vlgmr.msra.gmra.mxu0 %vm318_vm0, %v305_v1  ;;  %10986 = vmatmul.msk.f32.vlgmr.msra.gmra.mxu1 %vm318_vm0, %v307_v2  ;;  %v310_v4 = vld [vmem:[%s297_s28 + $0x28] sm:$0xff]  ;;  %v309_v6 = vld [vmem:[%s297_s28 + $0x20] sm:$0xff]  ;;  %v311_v7 = vld [vmem:[%s297_s28 + $0x30] sm:$0xff]  ;;  %s12455_s17 = smov 80   ;;  %s15561_s24 = scalar_lea.vmem %s15596_s6, %s10981_s23 }
  0x1d   : > { %10987 = vmatmul.msk.f32.vlgmr.msra.gmra.mxu2 %vm318_vm0, %v308_v3  ;;  %10989 = vmatmul.msk.f32.vlgmr.msra.gmra.mxu3 %vm318_vm0, %v310_v4  ;;  %v306_v5 = vld [vmem:[%s297_s28 + $0x8] sm:$0xff]  ;;  %v312_v8 = vld [vmem:[%s297_s28 + $0x38] sm:$0xff]  ;;  %v620_v1 = vld [vmem:[#allocation5 + $0x70] sm:$0xff] }
  0x1e   : > { %555 = vmatpush.msrb.mxu2 %v508_v46  ;;  %v621_v2 = vld [vmem:[#allocation5 + $0x78] sm:$0xff]  ;;  %v618_v3 = vld [vmem:[#allocation5 + $0x60] sm:$0xff]  ;;  %661 = vmatpush.msrb.mxu3 %v620_v1  ;;  %v619_v4 = vld [vmem:[#allocation5 + $0x68] sm:$0xff] }
  0x1f   : > { %702 = vmatpush.msrb.mxu0 %v621_v2 }
  0x20   : > { %556 = vmatpush.msrb.mxu2 %v507_v47  ;;  %662 = vmatpush.msrb.mxu3 %v618_v3  ;;  %v622_v3 = vld [vmem:[%s15595_s5] sm:$0x3] }
  0x21   : > { %703 = vmatpush.msrb.mxu0 %v619_v4  ;;  %v624_v4 = vperm.slane %v622_v3, 0 }
  0x24   : > { %10985 = vmatmul.msk.f32.gmra.mxu0 %vm318_vm0, %v306_v5 }
  0x25   : > { %10988 = vmatmul.msk.f32.gmra.mxu2 %vm318_vm0, %v309_v6  ;;  %10990 = vmatmul.msk.f32.gmra.mxu3 %vm318_vm0, %v311_v7  ;;  %v616_v6 = vld [vmem:[#allocation5 + $0x50] sm:$0xff]  ;;  %v617_v7 = vld [vmem:[#allocation5 + $0x58] sm:$0xff] }
  0x26   : > { %663 = vmatpush.msrb.mxu3 %v616_v6  ;;  %704 = vmatpush.msrb.mxu0 %v617_v7 }
  0x28   : > { %664 = vmatpush.msrb.mxu3 %v614_v9  ;;  %705 = vmatpush.msrb.mxu0 %v615_v10 }
  0x2d   : > { %10991 = vmatmul.msk.f32.gmra.mxu3 %vm318_vm0, %v312_v8 }
  0x99   : > { %v360_v12 = vpop.f32.mrf.mxu0  ;;  %v366_v17 = vpop.f32.mrf.mxu1 }
  0x9a   : > { %v361_v13 = vadd.f32 %v11797_v11, %v360_v12  ;;  %v367_v20 = vadd.f32 %v11797_v11, %v366_v17  ;;  %v612_v12 = vld [vmem:[#allocation5 + $0x30] sm:$0xff] }
  0x9b   : > { %665 = vmatpush.msrb.mxu3 %v612_v12 }
  0x9c   : > { %v392_v14 = vmul.f32 0.2, %v361_v13  ;;  %vm384_vm1 = vcmp.ge.f32.partialorder %v361_v13, 0.0  ;;  %v394_v23 = vmul.f32 0.2, %v367_v20  ;;  %vm386_vm4 = vcmp.ge.f32.partialorder %v367_v20, 0.0 }
  0x9e   : > { %v400_v15 = vsel %vm384_vm1, %v361_v13, %v392_v14  ;;  %v402_v24 = vsel %vm386_vm4, %v367_v20, %v394_v23  ;;  %v613_v13 = vld [vmem:[#allocation5 + $0x38] sm:$0xff] }
  0x9f   : > { %10993 = vmatmul.msk.f32.vlgmr.msrb.gmra.mxu1 %vm416_vm2, %v400_v15  ;;  %706 = vmatpush.msrb.mxu0 %v613_v13 }
  0xa0   : > { %v369_v22 = vpop.f32.mrf.mxu2  ;;  %v375_v30 = vpop.f32.mrf.mxu3 }
  0xa1   : > { %v363_v16 = vpop.f32.mrf.mxu0  ;;  %v370_v25 = vadd.f32 %v11797_v11, %v369_v22  ;;  %v376_v34 = vadd.f32 %v11797_v11, %v375_v30  ;;  %v609_v30 = vld [vmem:[#allocation5 + $0x18] sm:$0xff] }
  0xa2   : > { %v364_v18 = vadd.f32 %v11797_v11, %v363_v16 }
  0xa3   : > { %v395_v26 = vmul.f32 0.2, %v370_v25  ;;  %vm387_vm5 = vcmp.ge.f32.partialorder %v370_v25, 0.0  ;;  %v397_v36 = vmul.f32 0.2, %v376_v34  ;;  %vm389_vm7 = vcmp.ge.f32.partialorder %v376_v34, 0.0 }
  0xa4   : > { %vm385_vm3 = vcmp.ge.f32.partialorder %v364_v18, 0.0  ;;  %v393_v19 = vmul.f32 0.2, %v364_v18 }
  0xa5   : > { %v403_v28 = vsel %vm387_vm5, %v370_v25, %v395_v26  ;;  %v405_v37 = vsel %vm389_vm7, %v376_v34, %v397_v36 }
  0xa6   : > { %v401_v21 = vsel %vm385_vm3, %v364_v18, %v393_v19 }
  0xa7   : > { %10994 = vmatmul.msk.f32.gmra.mxu1 %vm416_vm2, %v401_v21 }
  0xa8   : > { %v372_v27 = vpop.f32.mrf.mxu2  ;;  %v378_v35 = vpop.f32.mrf.mxu3 }
  0xa9   : > { %v373_v29 = vadd.f32 %v11797_v11, %v372_v27  ;;  %v379_v38 = vadd.f32 %v11797_v11, %v378_v35  ;;  %v610_v27 = vld [vmem:[#allocation5 + $0x20] sm:$0xff] }
  0xaa   : > { %666 = vmatpush.msrb.mxu3 %v610_v27 }
  0xab   : > { %v396_v32 = vmul.f32 0.2, %v373_v29  ;;  %vm388_vm6 = vcmp.ge.f32.partialorder %v373_v29, 0.0  ;;  %v398_v39 = vmul.f32 0.2, %v379_v38  ;;  %vm390_vm8 = vcmp.ge.f32.partialorder %v379_v38, 0.0 }
  0xad   : > { %v404_v33 = vsel %vm388_vm6, %v373_v29, %v396_v32  ;;  %v406_v41 = vsel %vm390_vm8, %v379_v38, %v398_v39  ;;  %v608_v29 = vld [vmem:[#allocation5 + $0x10] sm:$0xff]  ;;  %v607_v32 = vld [vmem:[#allocation5 + $0x8] sm:$0xff]  ;;  %vm628_vm6 = vcmask 523264  }
  0xae   : > { %667 = vmatpush.msrb.mxu3 %v608_v29 }
  0xaf   : > { %10995 = vmatmul.msk.f32.gmra.mxu1 %vm416_vm2, %v402_v24 }
  0xb0   : > { %v381_v40 = vpop.f32.mrf.mxu3  ;;  %668 = vmatpush.msrb.mxu3 %v606_v31 }
  0xb1   : > { %v382_v42 = vadd.f32 %v11797_v11, %v381_v40 }
  0xb3   : > { %v399_v43 = vmul.f32 0.2, %v382_v42  ;;  %vm391_vm9 = vcmp.ge.f32.partialorder %v382_v42, 0.0 }
  0xb5   : > { %v407_v44 = vsel %vm391_vm9, %v382_v42, %v399_v43 }
  0xb7   : > { %10996 = vmatmul.msk.f32.gmra.mxu1 %vm416_vm2, %v403_v28  ;;  %v611_v28 = vld [vmem:[#allocation5 + $0x28] sm:$0xff] }
  0xb8   : > { %707 = vmatpush.msrb.mxu0 %v611_v28 }
  0xba   : > { %708 = vmatpush.msrb.mxu0 %v609_v30  ;;  %v12704_v30 = vperm.slane %v622_v3, 1 }
  0xbc   : > { %709 = vmatpush.msrb.mxu0 %v607_v32 }
  0xbf   : > { %10997 = vmatmul.msk.f32.gmra.mxu1 %vm416_vm2, %v404_v33  ;;  %v11799_v33 = vld [vmem:[%s15592_s2 + $0x2] ss:$0 sm:$0xff] }
  0xc7   : > { %10998 = vmatmul.msk.f32.gmra.mxu1 %vm416_vm2, %v405_v37 }
  0xcf   : > { %10999 = vmatmul.msk.f32.gmra.mxu1 %vm416_vm2, %v406_v41 }
  0xd7   : > { %11000 = vmatmul.msk.f32.gmra.mxu1 %vm416_vm2, %v407_v44 }
 0x11c   : > { %v458_v49 = vpop.f32.mrf.mxu1 }
 0x11d   : > { %v459_v50 = vadd.f32 %v12574_v48, %v458_v49 }
 0x11f   : > { %v490_v51 = vmul.f32 0.2, %v459_v50  ;;  %vm482_vm10 = vcmp.ge.f32.partialorder %v459_v50, 0.0 }
 0x121   : > { %v498_v52 = vsel %vm482_vm10, %v459_v50, %v490_v51 }
 0x122   : > { %11002 = vmatmul.msk.f32.vlgmr.msrb.gmra.mxu2 %vm516_vm11, %v498_v52 }
 0x124   : > { %v461_v53 = vpop.f32.mrf.mxu1 }
 0x125   : > { %v462_v54 = vadd.f32 %v12574_v48, %v461_v53 }
 0x127   : > { %vm483_vm12 = vcmp.ge.f32.partialorder %v462_v54, 0.0  ;;  %v491_v55 = vmul.f32 0.2, %v462_v54 }
 0x129   : > { %v499_v56 = vsel %vm483_vm12, %v462_v54, %v491_v55 }
 0x12a   : > { %11003 = vmatmul.msk.f32.gmra.mxu2 %vm516_vm11, %v499_v56 }
 0x12c   : > { %v464_v57 = vpop.f32.mrf.mxu1 }
 0x12d   : > { %v465_v58 = vadd.f32 %v12574_v48, %v464_v57 }
 0x12f   : > { %vm484_vm13 = vcmp.ge.f32.partialorder %v465_v58, 0.0  ;;  %v492_v59 = vmul.f32 0.2, %v465_v58 }
 0x131   : > { %v500_v60 = vsel %vm484_vm13, %v465_v58, %v492_v59 }
 0x132   : > { %11004 = vmatmul.msk.f32.gmra.mxu2 %vm516_vm11, %v500_v60 }
 0x134   : > { %v467_v61 = vpop.f32.mrf.mxu1 }
 0x135   : > { %v468_v62 = vadd.f32 %v12574_v48, %v467_v61 }
 0x137   : > { %vm485_vm14 = vcmp.ge.f32.partialorder %v468_v62, 0.0  ;;  %v493_v63 = vmul.f32 0.2, %v468_v62 }
 0x139   : > { %v501_v0 = vsel %vm485_vm14, %v468_v62, %v493_v63 }
 0x13a   : > { %11005 = vmatmul.msk.f32.gmra.mxu2 %vm516_vm11, %v501_v0 }
 0x13c   : > { %v470_v5 = vpop.f32.mrf.mxu1 }
 0x13d   : > { %v471_v8 = vadd.f32 %v12574_v48, %v470_v5 }
 0x13f   : > { %vm486_vm15 = vcmp.ge.f32.partialorder %v471_v8, 0.0  ;;  %v494_v11 = vmul.f32 0.2, %v471_v8 }
 0x141   : > { %v502_v14 = vsel %vm486_vm15, %v471_v8, %v494_v11  ;;  %vm1807_vm15 = vcmask 261248  }
 0x142   : > { %11006 = vmatmul.msk.f32.gmra.mxu2 %vm516_vm11, %v502_v14 }
 0x144   : > { %v473_v15 = vpop.f32.mrf.mxu1 }
 0x145   : > { %v474_v16 = vadd.f32 %v12574_v48, %v473_v15 }
 0x147   : > { %vm487_vm1 = vcmp.ge.f32.partialorder %v474_v16, 0.0  ;;  %v495_v17 = vmul.f32 0.2, %v474_v16 }
 0x149   : > { %v503_v18 = vsel %vm487_vm1, %v474_v16, %v495_v17  ;;  %vm2376_vm1 = vcmask 392448  }
 0x14a   : > { %11007 = vmatmul.msk.f32.gmra.mxu2 %vm516_vm11, %v503_v18 }
 0x14c   : > { %v476_v19 = vpop.f32.mrf.mxu1 }
 0x14d   : > { %v477_v20 = vadd.f32 %v12574_v48, %v476_v19 }
 0x14f   : > { %vm488_vm3 = vcmp.ge.f32.partialorder %v477_v20, 0.0  ;;  %v496_v21 = vmul.f32 0.2, %v477_v20 }
 0x151   : > { %v504_v22 = vsel %vm488_vm3, %v477_v20, %v496_v21  ;;  %vm2945_vm3 = vcmask 523648  }
 0x152   : > { %11008 = vmatmul.msk.f32.gmra.mxu2 %vm516_vm11, %v504_v22 }
 0x154   : > { %v479_v23 = vpop.f32.mrf.mxu1 }
 0x155   : > { %v480_v24 = vadd.f32 %v12574_v48, %v479_v23 }
 0x157   : > { %vm489_vm4 = vcmp.ge.f32.partialorder %v480_v24, 0.0  ;;  %v497_v25 = vmul.f32 0.2, %v480_v24 }
 0x159   : > { %v505_v26 = vsel %vm489_vm4, %v480_v24, %v497_v25 }
 0x15a   : > { %11009 = vmatmul.msk.f32.gmra.mxu2 %vm516_vm11, %v505_v26 }
 0x1a5   : > { %v558_v34 = vpop.f32.mrf.mxu2 }
 0x1a6   : > { %v559_v35 = vadd.f32 %v11799_v33, %v558_v34 }
 0x1a8   : > { %v590_v36 = vmul.f32 0.2, %v559_v35  ;;  %vm582_vm5 = vcmp.ge.f32.partialorder %v559_v35, 0.0 }
 0x1aa   : > { %v12595_v37 = vsel %vm582_vm5, %v559_v35, %v590_v36 }
 0x1ab   : > { %11010 = vmatmul.msk.f32.vlgmr.msrb.gmra.mxu3 %vm628_vm6, %v12595_v37  ;;  %11018 = vmatmul.msk.f32.vlgmr.msrb.gmra.mxu0 %vm628_vm6, %v12595_v37 }
 0x1ad   : > { %v561_v38 = vpop.f32.mrf.mxu2 }
 0x1ae   : > { %v562_v39 = vadd.f32 %v11799_v33, %v561_v38 }
 0x1b0   : > { %vm583_vm7 = vcmp.ge.f32.partialorder %v562_v39, 0.0  ;;  %v591_v40 = vmul.f32 0.2, %v562_v39 }
 0x1b2   : > { %v12601_v41 = vsel %vm583_vm7, %v562_v39, %v591_v40 }
 0x1b3   : > { %11011 = vmatmul.msk.f32.gmra.mxu3 %vm628_vm6, %v12601_v41  ;;  %11019 = vmatmul.msk.f32.gmra.mxu0 %vm628_vm6, %v12601_v41 }
 0x1b5   : > { %v564_v42 = vpop.f32.mrf.mxu2 }
 0x1b6   : > { %v565_v43 = vadd.f32 %v11799_v33, %v564_v42 }
 0x1b8   : > { %vm584_vm8 = vcmp.ge.f32.partialorder %v565_v43, 0.0  ;;  %v592_v44 = vmul.f32 0.2, %v565_v43 }
 0x1ba   : > { %v12607_v45 = vsel %vm584_vm8, %v565_v43, %v592_v44 }
 0x1bb   : > { %11012 = vmatmul.msk.f32.gmra.mxu3 %vm628_vm6, %v12607_v45  ;;  %11020 = vmatmul.msk.f32.gmra.mxu0 %vm628_vm6, %v12607_v45 }
 0x1bd   : > { %v567_v46 = vpop.f32.mrf.mxu2 }
 0x1be   : > { %v568_v47 = vadd.f32 %v11799_v33, %v567_v46 }
 0x1c0   : > { %vm585_vm9 = vcmp.ge.f32.partialorder %v568_v47, 0.0  ;;  %v593_v48 = vmul.f32 0.2, %v568_v47 }
 0x1c2   : > { %v12613_v49 = vsel %vm585_vm9, %v568_v47, %v593_v48 }
 0x1c3   : > { %11013 = vmatmul.msk.f32.gmra.mxu3 %vm628_vm6, %v12613_v49  ;;  %11021 = vmatmul.msk.f32.gmra.mxu0 %vm628_vm6, %v12613_v49 }
 0x1c5   : > { %v570_v50 = vpop.f32.mrf.mxu2 }
 0x1c6   : > { %v571_v51 = vadd.f32 %v11799_v33, %v570_v50 }
 0x1c8   : > { %vm586_vm10 = vcmp.ge.f32.partialorder %v571_v51, 0.0  ;;  %v594_v52 = vmul.f32 0.2, %v571_v51 }
 0x1ca   : > { %v12619_v53 = vsel %vm586_vm10, %v571_v51, %v594_v52 }
 0x1cb   : > { %11014 = vmatmul.msk.f32.gmra.mxu3 %vm628_vm6, %v12619_v53  ;;  %11022 = vmatmul.msk.f32.gmra.mxu0 %vm628_vm6, %v12619_v53 }
 0x1cd   : > { %v573_v54 = vpop.f32.mrf.mxu2 }
 0x1ce   : > { %v574_v55 = vadd.f32 %v11799_v33, %v573_v54 }
 0x1d0   : > { %vm587_vm12 = vcmp.ge.f32.partialorder %v574_v55, 0.0  ;;  %v595_v56 = vmul.f32 0.2, %v574_v55 }
 0x1d2   : > { %v12625_v57 = vsel %vm587_vm12, %v574_v55, %v595_v56 }
 0x1d3   : > { %11015 = vmatmul.msk.f32.gmra.mxu3 %vm628_vm6, %v12625_v57  ;;  %11023 = vmatmul.msk.f32.gmra.mxu0 %vm628_vm6, %v12625_v57 }
 0x1d5   : > { %v576_v58 = vpop.f32.mrf.mxu2 }
 0x1d6   : > { %v577_v59 = vadd.f32 %v11799_v33, %v576_v58 }
 0x1d8   : > { %vm588_vm13 = vcmp.ge.f32.partialorder %v577_v59, 0.0  ;;  %v596_v60 = vmul.f32 0.2, %v577_v59 }
 0x1da   : > { %v12631_v61 = vsel %vm588_vm13, %v577_v59, %v596_v60 }
 0x1db   : > { %11016 = vmatmul.msk.f32.gmra.mxu3 %vm628_vm6, %v12631_v61  ;;  %11024 = vmatmul.msk.f32.gmra.mxu0 %vm628_vm6, %v12631_v61 }
 0x1dd   : > { %v579_v62 = vpop.f32.mrf.mxu2 }
 0x1de   : > { %v580_v63 = vadd.f32 %v11799_v33, %v579_v62 }
 0x1e0   : > { %vm589_vm14 = vcmp.ge.f32.partialorder %v580_v63, 0.0  ;;  %v597_v0 = vmul.f32 0.2, %v580_v63 }
 0x1e2   : > { %v12637_v1 = vsel %vm589_vm14, %v580_v63, %v597_v0 }
 0x1e3   : > { %11017 = vmatmul.msk.f32.gmra.mxu3 %vm628_vm6, %v12637_v1  ;;  %11025 = vmatmul.msk.f32.gmra.mxu0 %vm628_vm6, %v12637_v1 }
 0x228   : > { %v711_v20 = vpop.f32.mrf.mxu0 }
 0x229   : > { %v12715_v33 = vadd.f32 %v711_v20, %v12704_v30 }
 0x22e   : > { %v670_v2 = vpop.f32.mrf.mxu3 }
 0x22f   : > { %v12650_v8 = vadd.f32 %v670_v2, %v624_v4 }
 0x230   : > { %v714_v21 = vpop.f32.mrf.mxu0 }
 0x231   : > { %v12732_v39 = vadd.f32 %v714_v21, %v12704_v30 }
 0x236   : > { %v673_v5 = vpop.f32.mrf.mxu3 }
 0x237   : > { %v12646_v6 = vadd.f32 %v673_v5, %v624_v4 }
 0x238   : > { %v717_v24 = vpop.f32.mrf.mxu0 }
 0x239   : > { %763 = vrot.lane.b32.xlu0 %v12646_v6, %s12449_s11  ;;  %v12709_v32 = vadd.f32 %v717_v24, %v12704_v30 }
 0x23e   : > { %v676_v7 = vpop.f32.mrf.mxu3 }
 0x23f   : > { %v12652_v9 = vadd.f32 %v676_v7, %v624_v4 }
 0x240   : > { %v720_v27 = vpop.f32.mrf.mxu0 }
 0x241   : > { %736 = vrot.lane.b32.xlu0 %v12650_v8, %s12449_s11  ;;  %790 = vrot.lane.b32.xlu1 %v12652_v9, %s12449_s11  ;;  %v12720_v36 = vadd.f32 %v720_v27, %v12704_v30 }
 0x246   : > { %v679_v10 = vpop.f32.mrf.mxu3 }
 0x247   : > { %v12658_v11 = vadd.f32 %v679_v10, %v624_v4 }
 0x248   : > { %v723_v28 = vpop.f32.mrf.mxu0 }
 0x249   : > { %817 = vrot.lane.b32.xlu2 %v12658_v11, %s12449_s11  ;;  %v12737_v42 = vadd.f32 %v723_v28, %v12704_v30 }
 0x24e   : > { %v682_v12 = vpop.f32.mrf.mxu3 }
 0x24f   : > { %v12662_v13 = vadd.f32 %v682_v12, %v624_v4 }
 0x250   : > { %v726_v34 = vpop.f32.mrf.mxu0 }
 0x251   : > { %844 = vrot.lane.b32.xlu1 %v12662_v13, %s12449_s11  ;;  %v12723_v38 = vadd.f32 %v726_v34, %v12704_v30 }
 0x256   : > { %v685_v14 = vpop.f32.mrf.mxu3 }
 0x257   : > { %v12666_v15 = vadd.f32 %v685_v14, %v624_v4 }
 0x259   : > { %871 = vrot.lane.b32.xlu0 %v12666_v15, %s12449_s11 }
 0x25e   : > { %v688_v16 = vpop.f32.mrf.mxu3 }
 0x25f   : > { %v12670_v17 = vadd.f32 %v688_v16, %v624_v4 }
 0x261   : > { %898 = vrot.lane.b32.xlu1 %v12670_v17, %s12449_s11  ;;  %1297 = vrot.lane.b32.xlu0 %v12652_v9, %s12450_s12 }
 0x266   : > { %v691_v18 = vpop.f32.mrf.mxu3 }
 0x267   : > { %v12676_v19 = vadd.f32 %v691_v18, %v624_v4 }
 0x269   : > { %925 = vrot.lane.b32.xlu2 %v12676_v19, %s12449_s11  ;;  %1239 = vrot.lane.b32.xlu1 %v12650_v8, %s12451_s13 }
 0x26a   : > { %1295 = vrot.lane.b32.xlu0 %v12652_v9, %s12451_s13 }
 0x271   : > { %1325 = vrot.lane.b32.xlu1 %v12658_v11, %s12450_s12  ;;  %1241 = vrot.lane.b32.xlu2 %v12650_v8, %s12450_s12 }
 0x272   : > { %1381 = vrot.lane.b32.xlu0 %v12666_v15, %s12450_s12 }
 0x279   : > { %1269 = vrot.lane.b32.xlu2 %v12646_v6, %s12450_s12 }
 0x2a3   : > { %v818_v22 = vpop.permute.xlu2 %817 }
 0x2ab   : > { %v764_v23 = vpop.permute.xlu0 %763 }
 0x2ac   : > { %11028 = vmatpush.xpose.msk.msra.mxu2 %vm416_vm2, %v764_v23 }
 0x2af   : > { %11029 = vmatmul.msk.f32.vlgmr.msra.gmra.mxu2 %vm416_vm2, %v12646_v6 }
 0x2b0   : > { %11032 = vmatpush.xpose.msk.msrb.mxu2 %vm416_vm2, %v818_v22 }
 0x2b3   : > { %v737_v25 = vpop.permute.xlu0 %736  ;;  %v791_v26 = vpop.permute.xlu1 %790 }
 0x2b4   : > { %11026 = vmatpush.xpose.msk.msra.mxu1 %vm416_vm2, %v737_v25 }
 0x2b7   : > { %11027 = vmatmul.msk.f32.vlgmr.msra.gmra.mxu1 %vm416_vm2, %v12650_v8  ;;  %11033 = vmatmul.msk.f32.vlgmr.msrb.gmra.mxu2 %vm416_vm2, %v12658_v11 }
 0x2b8   : > { %11030 = vmatpush.xpose.msk.msrb.mxu1 %vm416_vm2, %v791_v26 }
 0x2bf   : > { %11031 = vmatmul.msk.f32.vlgmr.msrb.gmra.mxu1 %vm416_vm2, %v12652_v9 }
 0x2c3   : > { %v845_v29 = vpop.permute.xlu1 %844  ;;  %v926_v31 = vpop.permute.xlu2 %925 }
 0x2c4   : > { %11034 = vmatpush.xpose.msk.msra.mxu3 %vm416_vm2, %v845_v29 }
 0x2c7   : > { %11035 = vmatmul.msk.f32.vlgmr.msra.gmra.mxu3 %vm416_vm2, %v12662_v13 }
 0x2c8   : > { %11040 = vmatpush.xpose.msk.msrb.mxu3 %vm416_vm2, %v926_v31 }
 0x2cb   : > { %v872_v35 = vpop.permute.xlu0 %871  ;;  %v12764_v16 = vpop.permute.xlu2 %1241 }
 0x2cc   : > { %1111 = vmatpush.msra.mxu3 %v12709_v32  ;;  %11036 = vmatpush.xpose.msk.msra.mxu1 %vm416_vm2, %v872_v35 }
 0x2cf   : > { %11037 = vmatmul.msk.f32.vlgmr.msra.gmra.mxu1 %vm416_vm2, %v12666_v15  ;;  %11041 = vmatmul.msk.f32.vlgmr.msrb.gmra.mxu3 %vm416_vm2, %v12676_v19 }
 0x2d0   : > { %1065 = vmatpush.msrb.mxu1 %v12715_v33  ;;  %1180 = vmatpush.msrb.mxu3 %v12723_v38 }
 0x2d2   : > { %1134 = vmatpush.msra.mxu1 %v12720_v36 }
 0x2d3   : > { %v899_v40 = vpop.permute.xlu1 %898  ;;  %v12762_v14 = vpop.permute.xlu0 %1297 }
 0x2d4   : > { %11038 = vmatpush.xpose.msk.msra.mxu2 %vm416_vm2, %v899_v40  ;;  %v12768_v20 = vpop.permute.xlu2 %1269 }
 0x2d7   : > { %11039 = vmatmul.msk.f32.vlgmr.msra.gmra.mxu2 %vm416_vm2, %v12670_v17 }
 0x2d8   : > { %1088 = vmatpush.msrb.mxu2 %v12732_v39 }
 0x2da   : > { %1157 = vmatpush.msra.mxu2 %v12737_v42 }
 0x2db   : > { %v12770_v21 = vpop.permute.xlu1 %1239 }
 0x2dc   : > { %v12766_v18 = vpop.permute.xlu0 %1295 }
 0x2e3   : > { %v12774_v25 = vpop.permute.xlu1 %1325 }
 0x2e4   : > { %v12772_v22 = vpop.permute.xlu0 %1381 }
 0x332   : > { %v786_v43 = vpop.f32.mrf.mxu2 }
 0x333   : > { %v952_v44 = vmul.f32 0.25, %v786_v43 }
 0x334   : > { %v759_v46 = vpop.f32.mrf.mxu1 }
 0x335   : > { %v951_v47 = vmul.f32 0.25, %v759_v46  ;;  %v962_v48 = vsel %vm318_vm0, %v952_v44, -inf }
 0x336   : > { %963 = vmax.xlane.f32.xlu2 %v962_v48 }
 0x337   : > { %v959_v50 = vsel %vm318_vm0, %v951_v47, -inf }
 0x338   : > { %960 = vmax.xlane.f32.xlu0 %v959_v50 }
 0x33a   : > { %v840_v51 = vpop.f32.mrf.mxu2 }
 0x33b   : > { %v954_v52 = vmul.f32 0.25, %v840_v51 }
 0x33c   : > { %v813_v54 = vpop.f32.mrf.mxu1 }
 0x33d   : > { %v953_v55 = vmul.f32 0.25, %v813_v54  ;;  %v968_v56 = vsel %vm318_vm0, %v954_v52, -inf }
 0x33e   : > { %969 = vmax.xlane.f32.xlu2 %v968_v56 }
 0x33f   : > { %v965_v58 = vsel %vm318_vm0, %v953_v55, -inf }
 0x340   : > { %966 = vmax.xlane.f32.xlu1 %v965_v58 }
 0x34a   : > { %v867_v59 = vpop.f32.mrf.mxu3 }
 0x34b   : > { %v955_v60 = vmul.f32 0.25, %v867_v59 }
 0x34c   : > { %v894_v62 = vpop.f32.mrf.mxu1 }
 0x34d   : > { %v956_v63 = vmul.f32 0.25, %v894_v62  ;;  %v971_v0 = vsel %vm318_vm0, %v955_v60, -inf }
 0x34e   : > { %972 = vmax.xlane.f32.xlu2 %v971_v0 }
 0x34f   : > { %v974_v2 = vsel %vm318_vm0, %v956_v63, -inf }
 0x350   : > { %975 = vmax.xlane.f32.xlu0 %v974_v2 }
 0x352   : > { %v948_v7 = vpop.f32.mrf.mxu3 }
 0x353   : > { %v12758_v10 = vmul.f32 0.25, %v948_v7 }
 0x355   : > { %v980_v12 = vsel %vm318_vm0, %v12758_v10, -inf }
 0x359   : > { %1323 = vrot.lane.b32.xlu1 %v12658_v11, %s12451_s13 }
 0x35a   : > { %v921_v3 = vpop.f32.mrf.mxu2 }
 0x35b   : > { %v12750_v4 = vmul.f32 0.25, %v921_v3 }
 0x35d   : > { %v977_v5 = vsel %vm318_vm0, %v12750_v4, -inf }
 0x35e   : > { %978 = vmax.xlane.f32.xlu2 %v977_v5 }
 0x364   : > { %1379 = vrot.lane.b32.xlu0 %v12666_v15, %s12451_s13 }
 0x376   : > { %1267 = vrot.lane.b32.xlu2 %v12646_v6, %s12451_s13 }
 0x383   : > { %981 = vmax.xlane.f32.xlu1 %v980_v12 }
 0x3a9   : > { %v964_v23 = vpop.xlane.xlu2 %963 }
 0x3aa   : > { %v984_v24 = vsub.f32 %v952_v44, %v964_v23 }
 0x3ab   : > { %v961_v26 = vpop.xlane.xlu0 %960 }
 0x3ac   : > { %v993_v27 = vmul.f32 1.442695, %v984_v24  ;;  %v983_v28 = vsub.f32 %v951_v47, %v961_v26 }
 0x3ae   : > { %11808 = vpow2.f32 %v993_v27  ;;  %v991_v29 = vmul.f32 1.442695, %v983_v28  ;;  %v11592_v27 = vpack.i.bf16 %v12715_v33, %v12723_v38 }
 0x3b0   : > { %11810 = vpow2.f32 %v991_v29 }
 0x3b1   : > { %v970_v31 = vpop.xlane.xlu2 %969 }
 0x3b2   : > { %v986_v34 = vsub.f32 %v954_v52, %v970_v31 }
 0x3b3   : > { %v967_v35 = vpop.xlane.xlu1 %966 }
 0x3b4   : > { %v12776_v40 = vpop.eup %11808  ;;  %v997_v43 = vmul.f32 1.442695, %v986_v34  ;;  %v985_v46 = vsub.f32 %v953_v55, %v967_v35 }
 0x3b5   : > { %v1010_v48 = vsel %vm318_vm0, %v12776_v40, 0.0 }
 0x3b6   : > { %v12780_v50 = vpop.eup %11810  ;;  %11812 = vpow2.f32 %v997_v43  ;;  %v995_v44 = vmul.f32 1.442695, %v985_v46  ;;  %1011 = vadd.xlane.f32.xlu0 %v1010_v48  ;;  %v11587_v43 = vpack.i.bf16 %v12709_v32, %v12732_v39  ;;  %v729_v46 = vpop.f32.mrf.mxu0 }
 0x3b7   : > { %v1007_v47 = vsel %vm318_vm0, %v12780_v50, 0.0 }
 0x3b8   : > { %11814 = vpow2.f32 %v995_v44  ;;  %1008 = vadd.xlane.f32.xlu1 %v1007_v47 }
 0x3bc   : > { %v12784_v51 = vpop.eup %11812 }
 0x3bd   : > { %v1016_v55 = vsel %vm318_vm0, %v12784_v51, 0.0 }
 0x3be   : > { %v12786_v52 = vpop.eup %11814 }
 0x3bf   : > { %v1013_v54 = vsel %vm318_vm0, %v12786_v52, 0.0 }
 0x3c0   : > { %1014 = vadd.xlane.f32.xlu2 %v1013_v54  ;;  %1017 = vadd.xlane.f32.xlu1 %v1016_v55  ;;  %v732_v54 = vpop.f32.mrf.mxu0 }
 0x3c1   : > { %v973_v56 = vpop.xlane.xlu2 %972 }
 0x3c2   : > { %v987_v58 = vsub.f32 %v955_v60, %v973_v56 }
 0x3c3   : > { %v976_v59 = vpop.xlane.xlu0 %975 }
 0x3c4   : > { %v999_v62 = vmul.f32 1.442695, %v987_v58  ;;  %v988_v0 = vsub.f32 %v956_v63, %v976_v59  ;;  %v12838_v59 = vadd.f32 %v732_v54, %v12704_v30 }
 0x3c6   : > { %11816 = vpow2.f32 %v999_v62  ;;  %v1001_v2 = vmul.f32 1.442695, %v988_v0 }
 0x3c8   : > { %11818 = vpow2.f32 %v1001_v2 }
 0x3cb   : > { %v12804_v60 = vpop.permute.xlu1 %1323 }
 0x3cc   : > { %v12792_v3 = vpop.eup %11816 }
 0x3cd   : > { %v1019_v5 = vsel %vm318_vm0, %v12792_v3, 0.0 }
 0x3ce   : > { %v12796_v7 = vpop.eup %11818  ;;  %1020 = vadd.xlane.f32.xlu0 %v1019_v5  ;;  %v12843_v5 = vadd.f32 %v729_v46, %v12704_v30 }
 0x3cf   : > { %v1022_v12 = vsel %vm318_vm0, %v12796_v7, 0.0 }
 0x3d0   : > { %1023 = vadd.xlane.f32.xlu2 %v1022_v12 }
 0x3d1   : > { %v979_v63 = vpop.xlane.xlu2 %978 }
 0x3d2   : > { %v989_v23 = vsub.f32 %v12750_v4, %v979_v63 }
 0x3d4   : > { %v1003_v24 = vmul.f32 1.442695, %v989_v23 }
 0x3d6   : > { %11820 = vpow2.f32 %v1003_v24 }
 0x3d9   : > { %1407 = vrot.lane.b32.xlu1 %v12670_v17, %s12451_s13  ;;  %v1268_v44 = vpop.permute.xlu2 %1267 }
 0x3dc   : > { %v12813_v31 = vpop.eup %11820 }
 0x3dd   : > { %v1025_v35 = vsel %vm318_vm0, %v12813_v31, 0.0 }
 0x3e8   : > { %1409 = vrot.lane.b32.xlu2 %v12670_v17, %s12450_s12 }
 0x3f0   : > { %1351 = vrot.lane.b32.xlu2 %v12662_v13, %s12451_s13 }
 0x3f6   : > { %v982_v26 = vpop.xlane.xlu1 %981 }
 0x3f7   : > { %v990_v28 = vsub.f32 %v12758_v10, %v982_v26  ;;  %v12829_v10 = vpop.permute.xlu0 %1379 }
 0x3f8   : > { %11593 = vrot.lane.b32.xlu2 %v11592_v27, %s12451_s13 }
 0x3f9   : > { %v1005_v29 = vmul.f32 1.442695, %v990_v28 }
 0x3fb   : > { %11822 = vpow2.f32 %v1005_v29 }
 0x400   : > { %1874 = vrot.lane.b32.xlu2 %v12652_v9, %s12452_s14 }
 0x401   : > { %v12817_v34 = vpop.eup %11822 }
 0x402   : > { %v1028_v4 = vsel %vm318_vm0, %v12817_v34, 0.0 }
 0x403   : > { %1029 = vadd.xlane.f32.xlu0 %v1028_v4  ;;  %1026 = vadd.xlane.f32.xlu1 %v1025_v35 }
 0x417   : > { %1353 = vrot.lane.b32.xlu0 %v12662_v13, %s12450_s12 }
 0x41c   : > { %1437 = vrot.lane.b32.xlu1 %v12676_v19, %s12450_s12 }
 0x41f   : > { %1435 = vrot.lane.b32.xlu0 %v12676_v19, %s12451_s13 }
 0x427   : > { %11588 = vrot.lane.b32.xlu0 %v11587_v43, %s12451_s13 }
 0x429   : > { %v1012_v48 = vpop.xlane.xlu0 %1011 }
 0x42a   : > { %11824 = vrcp.f32 %v1012_v48 }
 0x42b   : > { %v1009_v47 = vpop.xlane.xlu1 %1008 }
 0x42c   : > { %11826 = vrcp.f32 %v1009_v47 }
 0x42f   : > { %1846 = vrot.lane.b32.xlu0 %v12646_v6, %s12452_s14 }
 0x430   : > { %v11825_v55 = vpop.eup %11824 }
 0x431   : > { %v1040_v56 = vmul.f32 %v11825_v55, %v12776_v40 }
 0x432   : > { %v11827_v58 = vpop.eup %11826 }
 0x433   : > { %v1039_v62 = vmul.f32 %v11827_v58, %v12780_v50  ;;  %v1015_v0 = vpop.xlane.xlu2 %1014  ;;  %v1018_v2 = vpop.xlane.xlu1 %1017  ;;  %11043 = vmatmul.msk.f32.vlgmr.msrb.gmra.mxu2 %vm318_vm0, %v1040_v56 }
 0x434   : > { %11828 = vrcp.f32 %v1015_v0  ;;  %1226 = vmatpush.msrb.mxu2 %v12838_v59 }
 0x435   : > { %11830 = vrcp.f32 %v1018_v2  ;;  %11042 = vmatmul.msk.f32.vlgmr.msrb.gmra.mxu1 %vm318_vm0, %v1039_v62 }
 0x436   : > { %1203 = vmatpush.msrb.mxu1 %v12843_v5 }
 0x437   : > { %1844 = vrot.lane.b32.xlu0 %v12646_v6, %s12453_s15 }
 0x43a   : > { %v11829_v40 = vpop.eup %11828 }
 0x43b   : > { %v11831_v50 = vpop.eup %11830  ;;  %v1041_v12 = vmul.f32 %v11829_v40, %v12786_v52 }
 0x43c   : > { %v1042_v63 = vmul.f32 %v11831_v50, %v12784_v51 }
 0x43d   : > { %11044 = vmatmul.msk.f32.vlgmr.msra.gmra.mxu3 %vm318_vm0, %v1041_v12 }
 0x43e   : > { %11045 = vmatmul.msk.f32.vlgmr.msra.gmra.mxu1 %vm318_vm0, %v1042_v63  ;;  %11050 = vmatpush.xpose.msk.msra.mxu3 %vm416_vm2, %v12764_v16 }
 0x43f   : > { %11052 = vmatpush.xpose.msk.msra.mxu1 %vm416_vm2, %v12768_v20 }
 0x441   : > { %v1021_v30 = vpop.xlane.xlu0 %1020 }
 0x442   : > { %11832 = vrcp.f32 %v1021_v30 }
 0x443   : > { %v1024_v23 = vpop.xlane.xlu2 %1023 }
 0x444   : > { %11834 = vrcp.f32 %v1024_v23 }
 0x448   : > { %v11833_v24 = vpop.eup %11832 }
 0x449   : > { %v1043_v26 = vmul.f32 %v11833_v24, %v12792_v3 }
 0x44a   : > { %v11835_v52 = vpop.eup %11834 }
 0x44b   : > { %v1044_v51 = vmul.f32 %v11835_v52, %v12796_v7  ;;  %11046 = vmatmul.msk.f32.vlgmr.msra.gmra.mxu2 %vm318_vm0, %v1043_v26  ;;  %v1410_v16 = vpop.permute.xlu2 %1409  ;;  %v1408_v20 = vpop.permute.xlu1 %1407 }
 0x44c   : > { %11054 = vmatpush.xpose.msk.msra.mxu2 %vm416_vm2, %v12762_v14 }
 0x44d   : > { %11047 = vmatmul.msk.f32.vlgmr.msrb.gmra.mxu3 %vm318_vm0, %v1044_v51 }
 0x44e   : > { %11056 = vmatpush.xpose.msk.msrb.mxu3 %vm416_vm2, %v12774_v25 }
 0x453   : > { %v1352_v14 = vpop.permute.xlu2 %1351 }
 0x455   : > { %11051 = vmatmul.msk.f32.vlgmr.msra.gmra.mxu3 %vm416_vm2, %v12770_v21 }
 0x456   : > { %11062 = vmatpush.xpose.msk.msra.mxu3 %vm416_vm2, %v1410_v16 }
 0x45b   : > { %v11594_v21 = vpop.permute.xlu2 %11593 }
 0x45c   : > { %v11595_v46 = vunpack.i.l.bf16 %v11594_v21 }
 0x45d   : > { %11057 = vmatmul.msk.f32.vlgmr.msrb.gmra.mxu3 %vm416_vm2, %v12804_v60  ;;  %v11596_v60 = vunpack.i.h.bf16 %v11594_v21 }
 0x465   : > { %11063 = vmatmul.msk.f32.vlgmr.msra.gmra.mxu3 %vm416_vm2, %v1408_v20 }
 0x476   : > { %v1027_v3 = vpop.xlane.xlu1 %1026  ;;  %v1030_v7 = vpop.xlane.xlu0 %1029 }
 0x477   : > { %11836 = vrcp.f32 %v1027_v3 }
 0x478   : > { %11838 = vrcp.f32 %v1030_v7 }
 0x47d   : > { %v11837_v27 = vpop.eup %11836 }
 0x47e   : > { %v11839_v28 = vpop.eup %11838  ;;  %v1045_v25 = vmul.f32 %v11837_v27, %v12813_v31  ;;  %v11597_v27 = vpack.i.bf16 %v12737_v42, %v12843_v5 }
 0x47f   : > { %v1046_v29 = vmul.f32 %v11839_v28, %v12817_v34  ;;  %v12919_v28 = vpop.permute.xlu2 %1874 }
 0x480   : > { %11048 = vmatmul.msk.f32.vlgmr.msrb.gmra.mxu1 %vm318_vm0, %v1045_v25 }
 0x481   : > { %11049 = vmatmul.msk.f32.vlgmr.msrb.gmra.mxu2 %vm318_vm0, %v1046_v29 }
 0x482   : > { %11060 = vmatpush.xpose.msk.msrb.mxu2 %vm416_vm2, %v12772_v22 }
 0x488   : > { %11053 = vmatmul.msk.f32.vlgmr.msra.gmra.mxu1 %vm416_vm2, %v1268_v44 }
 0x489   : > { %11055 = vmatmul.msk.f32.vlgmr.msra.gmra.mxu2 %vm416_vm2, %v12766_v18  ;;  %v1354_v4 = vpop.permute.xlu0 %1353 }
 0x48a   : > { %11058 = vmatpush.xpose.msk.msrb.mxu1 %vm416_vm2, %v1354_v4 }
 0x48e   : > { %1581 = vmatpush.msra.mxu1 %v11596_v60  ;;  %v1438_v31 = vpop.permute.xlu1 %1437 }
 0x48f   : > { %11064 = vmatpush.xpose.msk.msra.mxu0 %vm416_vm2, %v1438_v31 }
 0x490   : > { %11059 = vmatmul.msk.f32.vlgmr.msrb.gmra.mxu1 %vm416_vm2, %v1352_v14 }
 0x491   : > { %11061 = vmatmul.msk.f32.vlgmr.msrb.gmra.mxu2 %vm416_vm2, %v12829_v10  ;;  %v1436_v22 = vpop.permute.xlu0 %1435 }
 0x492   : > { %11065 = vmatmul.msk.f32.vlgmr.msra.gmra.mxu0 %vm416_vm2, %v1436_v22 }
 0x499   : > { %v11589_v34 = vpop.permute.xlu0 %11588 }
 0x49a   : > { %v11591_v35 = vunpack.i.h.bf16 %v11589_v34  ;;  %v11590_v43 = vunpack.i.l.bf16 %v11589_v34 }
 0x49c   : > { %1608 = vmatpush.msra.mxu2 %v11590_v43  ;;  %1635 = vmatpush.msrb.mxu3 %v11591_v35 }
 0x49e   : > { %1716 = vmatpush.msrb.mxu2 %v11595_v46 }
 0x4b2   : > { %v1067_v18 = vpop.f32.mrf.mxu1 }
 0x4b3   : > { %1231 = vst.msk [vmem:[#allocation2] sm:$0xff] %vm416_vm2, %v1067_v18 }
 0x4b6   : > { %v1090_v48 = vpop.f32.mrf.mxu2 }
 0x4b7   : > { %1232 = vst.msk [vmem:[#allocation2 + $0x8] sm:$0xff] %vm416_vm2, %v1090_v48 }
 0x4bb   : > { %v1136_v44 = vpop.f32.mrf.mxu1 }
 0x4bc   : > { %1234 = vst.msk [vmem:[#allocation2 + $0x18] sm:$0xff] %vm416_vm2, %v1136_v44 }
 0x4c0   : > { %v1113_v10 = vpop.f32.mrf.mxu3 }
 0x4c1   : > { %1233 = vst.msk [vmem:[#allocation2 + $0x10] sm:$0xff] %vm416_vm2, %v1113_v10 }
 0x4ce   : > { %v1159_v47 = vpop.f32.mrf.mxu2 }
 0x4cf   : > { %1235 = vst.msk [vmem:[#allocation2 + $0x20] sm:$0xff] %vm416_vm2, %v1159_v47 }
 0x4d0   : > { %v1182_v54 = vpop.f32.mrf.mxu3 }
 0x4d1   : > { %1236 = vst.msk [vmem:[#allocation2 + $0x28] sm:$0xff] %vm416_vm2, %v1182_v54 }
 0x4d8   : > { %v1264_v55 = vpop.f32.mrf.mxu3 }
 0x4d9   : > { %v1463_v56 = vmul.f32 0.25, %v1264_v55 }
 0x4db   : > { %v1471_v58 = vsel %vm318_vm0, %v1463_v56, -inf }
 0x4dc   : > { %1472 = vmax.xlane.f32.xlu2 %v1471_v58 }
 0x4e0   : > { %v1348_v12 = vpop.f32.mrf.mxu3 }
 0x4e1   : > { %v1466_v63 = vmul.f32 0.25, %v1348_v12 }
 0x4e3   : > { %v1480_v51 = vsel %vm318_vm0, %v1466_v63, -inf }
 0x4e8   : > { %v1432_v25 = vpop.f32.mrf.mxu3 }
 0x4e9   : > { %v1469_v60 = vmul.f32 0.25, %v1432_v25 }
 0x4eb   : > { %v1489_v31 = vsel %vm318_vm0, %v1469_v60, -inf }
 0x4fd   : > { %v1205_v62 = vpop.f32.mrf.mxu1 }
 0x4fe   : > { %1237 = vst.msk [vmem:[#allocation2 + $0x30] sm:$0xff] %vm416_vm2, %v1205_v62 }
 0x504   : > { %v1228_v0 = vpop.f32.mrf.mxu2 }
 0x505   : > { %1238 = vst.msk [vmem:[#allocation2 + $0x38] sm:$0xff] %vm416_vm2, %v1228_v0  ;;  %v1292_v2 = vpop.f32.mrf.mxu1 }
 0x506   : > { %v1464_v40 = vmul.f32 0.25, %v1292_v2 }
 0x508   : > { %v1474_v50 = vsel %vm318_vm0, %v1464_v40, -inf }
 0x509   : > { %1475 = vmax.xlane.f32.xlu2 %v1474_v50  ;;  %v1847_v50 = vpop.permute.xlu0 %1846 }
 0x50c   : > { %v1320_v30 = vpop.f32.mrf.mxu2 }
 0x50d   : > { %v1376_v23 = vpop.f32.mrf.mxu1  ;;  %v1465_v22 = vmul.f32 0.25, %v1320_v30 }
 0x50e   : > { %v12897_v24 = vmul.f32 0.25, %v1376_v23 }
 0x50f   : > { %v1460_v26 = vpop.f32.mrf.mxu0  ;;  %v1477_v43 = vsel %vm318_vm0, %v1465_v22, -inf }
 0x510   : > { %v12899_v52 = vmul.f32 0.25, %v1460_v26  ;;  %v1483_v16 = vsel %vm318_vm0, %v12897_v24, -inf }
 0x511   : > { %1481 = vmax.xlane.f32.xlu2 %v1480_v51  ;;  %1484 = vmax.xlane.f32.xlu0 %v1483_v16 }
 0x512   : > { %v1492_v20 = vsel %vm318_vm0, %v12899_v52, -inf }
 0x513   : > { %1493 = vmax.xlane.f32.xlu1 %v1492_v20 }
 0x514   : > { %v1404_v3 = vpop.f32.mrf.mxu2 }
 0x515   : > { %v12906_v7 = vmul.f32 0.25, %v1404_v3 }
 0x517   : > { %v1486_v14 = vsel %vm318_vm0, %v12906_v7, -inf }
 0x519   : > { %1487 = vmax.xlane.f32.xlu0 %v1486_v14 }
 0x529   : > { %1818 = vrot.lane.b32.xlu2 %v12650_v8, %s12452_s14 }
 0x52c   : > { %11598 = vrot.lane.b32.xlu1 %v11597_v27, %s12451_s13 }
 0x52d   : > { %1958 = vrot.lane.b32.xlu0 %v12666_v15, %s12452_s14 }
 0x531   : > { %1956 = vrot.lane.b32.xlu2 %v12666_v15, %s12453_s15 }
 0x54f   : > { %v1473_v29 = vpop.xlane.xlu2 %1472 }
 0x550   : > { %v1495_v21 = vsub.f32 %v1463_v56, %v1473_v29 }
 0x552   : > { %v1503_v4 = vmul.f32 1.442695, %v1495_v21 }
 0x554   : > { %11840 = vpow2.f32 %v1503_v4 }
 0x556   : > { %1490 = vmax.xlane.f32.xlu1 %v1489_v31 }
 0x55a   : > { %v11841_v34 = vpop.eup %11840 }
 0x55b   : > { %v1519_v35 = vsel %vm318_vm0, %v11841_v34, 0.0 }
 0x55c   : > { %1520 = vadd.xlane.f32.xlu2 %v1519_v35 }
 0x55e   : > { %1478 = vmax.xlane.f32.xlu1 %v1477_v43 }
 0x577   : > { %1872 = vrot.lane.b32.xlu1 %v12652_v9, %s12453_s15 }
 0x57c   : > { %v1476_v46 = vpop.xlane.xlu2 %1475 }
 0x57d   : > { %v1496_v18 = vsub.f32 %v1464_v40, %v1476_v46 }
 0x57f   : > { %v1505_v48 = vmul.f32 1.442695, %v1496_v18  ;;  %1816 = vrot.lane.b32.xlu1 %v12650_v8, %s12453_s15 }
 0x581   : > { %11842 = vpow2.f32 %v1505_v48 }
 0x584   : > { %v1482_v44 = vpop.xlane.xlu2 %1481 }
 0x585   : > { %v1498_v10 = vsub.f32 %v1466_v63, %v1482_v44  ;;  %v12937_v63 = vpop.permute.xlu0 %1844 }
 0x586   : > { %v1494_v62 = vpop.xlane.xlu1 %1493 }
 0x587   : > { %v11843_v47 = vpop.eup %11842  ;;  %v1509_v54 = vmul.f32 1.442695, %v1498_v10  ;;  %v1502_v10 = vsub.f32 %v12899_v52, %v1494_v62  ;;  %v11602_v52 = vpack.i.bf16 %v12715_v33, %v12732_v39 }
 0x588   : > { %v1522_v55 = vsel %vm318_vm0, %v11843_v47, 0.0 }
 0x589   : > { %11844 = vpow2.f32 %v1509_v54  ;;  %1523 = vadd.xlane.f32.xlu0 %v1522_v55  ;;  %v1517_v54 = vmul.f32 1.442695, %v1502_v10 }
 0x58c   : > { %v1819_v12 = vpop.permute.xlu2 %1818 }
 0x58d   : > { %v1485_v23 = vpop.xlane.xlu0 %1484 }
 0x58e   : > { %v1499_v16 = vsub.f32 %v12897_v24, %v1485_v23 }
 0x58f   : > { %v12929_v56 = vpop.eup %11844 }
 0x590   : > { %v1528_v58 = vsel %vm318_vm0, %v12929_v56, 0.0  ;;  %v1511_v14 = vmul.f32 1.442695, %v1499_v16 }
 0x591   : > { %1529 = vadd.xlane.f32.xlu0 %v1528_v58 }
 0x594   : > { %v12939_v30 = vpop.permute.xlu2 %1956 }
 0x59e   : > { %v11599_v0 = vpop.permute.xlu1 %11598 }
 0x59f   : > { %v11601_v2 = vunpack.i.h.bf16 %v11599_v0  ;;  %v11600_v40 = vunpack.i.l.bf16 %v11599_v0 }
 0x5a1   : > { %1689 = vmatpush.msrb.mxu1 %v11601_v2  ;;  %1743 = vmatpush.msra.mxu3 %v11600_v40 }
 0x5a5   : > { %1928 = vrot.lane.b32.xlu0 %v12662_v13, %s12453_s15 }
 0x5ad   : > { %2014 = vrot.lane.b32.xlu0 %v12676_v19, %s12452_s14 }
 0x5c9   : > { %v1491_v26 = vpop.xlane.xlu1 %1490 }
 0x5ca   : > { %v1501_v51 = vsub.f32 %v1469_v60, %v1491_v26 }
 0x5cc   : > { %v1515_v20 = vmul.f32 1.442695, %v1501_v51 }
 0x5ce   : > { %11846 = vpow2.f32 %v1515_v20 }
 0x5cf   : > { %v1521_v3 = vpop.xlane.xlu2 %1520 }
 0x5d0   : > { %11848 = vrcp.f32 %v1521_v3 }
 0x5d1   : > { %v1479_v27 = vpop.xlane.xlu1 %1478  ;;  %11850 = vpow2.f32 %v1511_v14 }
 0x5d2   : > { %v1497_v25 = vsub.f32 %v1465_v22, %v1479_v27  ;;  %v1488_v22 = vpop.xlane.xlu0 %1487 }
 0x5d3   : > { %v1500_v0 = vsub.f32 %v12906_v7, %v1488_v22 }
 0x5d4   : > { %v11847_v29 = vpop.eup %11846  ;;  %v1507_v21 = vmul.f32 1.442695, %v1497_v25 }
 0x5d5   : > { %v1537_v4 = vsel %vm318_vm0, %v11847_v29, 0.0 }
 0x5d6   : > { %v11849_v31 = vpop.eup %11848  ;;  %11852 = vpow2.f32 %v1507_v21  ;;  %1538 = vadd.xlane.f32.xlu1 %v1537_v4 }
 0x5d7   : > { %v1551_v35 = vmul.f32 %v11849_v31, %v11841_v34  ;;  %v11851_v60 = vpop.eup %11850 }
 0x5d8   : > { %v1531_v46 = vsel %vm318_vm0, %v11851_v60, 0.0 }
 0x5d9   : > { %11066 = vmatmul.msk.f32.vlgmr.msra.gmra.mxu1 %vm318_vm0, %v1551_v35 }
 0x5da   : > { %11074 = vmatpush.xpose.msk.msra.mxu1 %vm416_vm2, %v1819_v12  ;;  %v12947_v18 = vpop.permute.xlu0 %1958 }
 0x5dc   : > { %v11853_v24 = vpop.eup %11852 }
 0x5dd   : > { %v1525_v43 = vsel %vm318_vm0, %v11853_v24, 0.0 }
 0x5de   : > { %1526 = vadd.xlane.f32.xlu2 %v1525_v43  ;;  %1532 = vadd.xlane.f32.xlu1 %v1531_v46 }
 0x5f6   : > { %1986 = vrot.lane.b32.xlu2 %v12670_v17, %s12452_s14 }
 0x5f7   : > { %1930 = vrot.lane.b32.xlu1 %v12662_v13, %s12452_s14 }
 0x5fc   : > { %v1524_v34 = vpop.xlane.xlu0 %1523 }
 0x5fd   : > { %11854 = vrcp.f32 %v1524_v34 }
 0x5fe   : > { %11856 = vpow2.f32 %v1517_v54 }
 0x5ff   : > { %1984 = vrot.lane.b32.xlu1 %v12670_v17, %s12453_s15 }
 0x603   : > { %v11855_v48 = vpop.eup %11854 }
 0x604   : > { %v1552_v44 = vmul.f32 %v11855_v48, %v11843_v47  ;;  %v12960_v55 = vpop.eup %11856  ;;  %v1513_v47 = vmul.f32 1.442695, %v1500_v0  ;;  %v1530_v25 = vpop.xlane.xlu0 %1529 }
 0x605   : > { %v1540_v58 = vsel %vm318_vm0, %v12960_v55, 0.0 }
 0x606   : > { %11067 = vmatmul.msk.f32.vlgmr.msra.gmra.mxu2 %vm318_vm0, %v1552_v44  ;;  %11858 = vpow2.f32 %v1513_v47 }
 0x607   : > { %11076 = vmatpush.xpose.msk.msra.mxu2 %vm416_vm2, %v1847_v50  ;;  %1641 = vrot.lane.b32.xlu1 %v12720_v36, %s12451_s13  ;;  %v1873_v50 = vpop.permute.xlu1 %1872 }
 0x60c   : > { %v11859_v2 = vpop.eup %11858 }
 0x60d   : > { %v1534_v40 = vsel %vm318_vm0, %v11859_v2, 0.0 }
 0x60f   : > { %v1817_v62 = vpop.permute.xlu1 %1816 }
 0x617   : > { %v1929_v4 = vpop.permute.xlu0 %1928 }
 0x61f   : > { %1541 = vadd.xlane.f32.xlu2 %v1540_v58  ;;  %v2015_v0 = vpop.permute.xlu0 %2014 }
 0x631   : > { %1535 = vadd.xlane.f32.xlu1 %v1534_v40 }
 0x637   : > { %2012 = vrot.lane.b32.xlu2 %v12676_v19, %s12453_s15 }
 0x63f   : > { %11603 = vrot.lane.b32.xlu2 %v11602_v52, %s12453_s15 }
 0x649   : > { %v1539_v12 = vpop.xlane.xlu1 %1538 }
 0x64a   : > { %1749 = vrot.lane.b32.xlu1 %v12838_v59, %s12451_s13 }
 0x651   : > { %v1527_v7 = vpop.xlane.xlu2 %1526  ;;  %v1533_v23 = vpop.xlane.xlu1 %1532 }
 0x652   : > { %11860 = vrcp.f32 %v1527_v7  ;;  %1902 = vrot.lane.b32.xlu1 %v12658_v11, %s12452_s14 }
 0x653   : > { %11862 = vrcp.f32 %v1533_v23 }
 0x654   : > { %11864 = vrcp.f32 %v1539_v12 }
 0x655   : > { %11866 = vrcp.f32 %v1530_v25 }
 0x658   : > { %v11861_v26 = vpop.eup %11860 }
 0x659   : > { %v11863_v51 = vpop.eup %11862  ;;  %v1553_v16 = vmul.f32 %v11861_v26, %v11853_v24  ;;  %v1987_v27 = vpop.permute.xlu2 %1986 }
 0x65a   : > { %v1555_v20 = vmul.f32 %v11863_v51, %v11851_v60  ;;  %1900 = vrot.lane.b32.xlu1 %v12658_v11, %s12453_s15  ;;  %v11865_v3 = vpop.eup %11864 }
 0x65b   : > { %11068 = vmatmul.msk.f32.vlgmr.msrb.gmra.mxu3 %vm318_vm0, %v1553_v16  ;;  %v1557_v14 = vmul.f32 %v11865_v3, %v11847_v29  ;;  %v11867_v29 = vpop.eup %11866 }
 0x65c   : > { %11070 = vmatmul.msk.f32.vlgmr.msrb.gmra.mxu1 %vm318_vm0, %v1555_v20  ;;  %11078 = vmatpush.xpose.msk.msrb.mxu3 %vm416_vm2, %v12919_v28  ;;  %v1554_v31 = vmul.f32 %v11867_v29, %v12929_v56 }
 0x663   : > { %11072 = vmatmul.msk.f32.vlgmr.msra.gmra.mxu3 %vm318_vm0, %v1557_v14 }
 0x664   : > { %11075 = vmatmul.msk.f32.vlgmr.msra.gmra.mxu1 %vm416_vm2, %v1817_v62  ;;  %11086 = vmatpush.xpose.msk.msra.mxu3 %vm416_vm2, %v1987_v27 }
 0x669   : > { %v1931_v21 = vpop.permute.xlu1 %1930 }
 0x66a   : > { %11082 = vmatpush.xpose.msk.msrb.mxu1 %vm416_vm2, %v1931_v21 }
 0x66b   : > { %11079 = vmatmul.msk.f32.vlgmr.msrb.gmra.mxu3 %vm416_vm2, %v1873_v50 }
 0x66d   : > { %11083 = vmatmul.msk.f32.vlgmr.msrb.gmra.mxu1 %vm416_vm2, %v1929_v4 }
 0x671   : > { %v1985_v28 = vpop.permute.xlu1 %1984 }
 0x673   : > { %11087 = vmatmul.msk.f32.vlgmr.msra.gmra.mxu3 %vm416_vm2, %v1985_v28 }
 0x679   : > { %v1642_v35 = vpop.permute.xlu1 %1641 }
 0x67a   : > { %1662 = vmatpush.msrb.mxu0 %v1642_v35 }
 0x67b   : > { %11069 = vmatmul.msk.f32.vlgmr.msrb.gmra.mxu0 %vm318_vm0, %v1554_v31 }
 0x689   : > { %v13022_v23 = vpop.f32.mrf.mxu2 }
 0x692   : > { %v1542_v60 = vpop.xlane.xlu2 %1541 }
 0x69a   : > { %v2013_v24 = vpop.permute.xlu2 %2012 }
 0x6a2   : > { %v11604_v43 = vpop.permute.xlu2 %11603 }
 0x6a3   : > { %v11606_v46 = vunpack.i.h.bf16 %v11604_v43  ;;  %v11605_v56 = vunpack.i.l.bf16 %v11604_v43 }
 0x6a4   : > { %v1536_v22 = vpop.xlane.xlu1 %1535 }
 0x6a5   : > { %11868 = vrcp.f32 %v1536_v22  ;;  %2157 = vmatpush.msra.mxu1 %v11606_v46 }
 0x6a6   : > { %11870 = vrcp.f32 %v1542_v60 }
 0x6ab   : > { %v11869_v34 = vpop.eup %11868 }
 0x6ac   : > { %v1556_v48 = vmul.f32 %v11869_v34, %v11859_v2  ;;  %v11871_v44 = vpop.eup %11870 }
 0x6ad   : > { %v1558_v10 = vmul.f32 %v11871_v44, %v12960_v55  ;;  %v11612_v44 = vpack.i.bf16 %v12843_v5, %v12737_v42 }
 0x6ae   : > { %11071 = vmatmul.msk.f32.vlgmr.msrb.gmra.mxu2 %vm318_vm0, %v1556_v48 }
 0x6af   : > { %11084 = vmatpush.xpose.msk.msrb.mxu2 %vm416_vm2, %v12947_v18 }
 0x6b6   : > { %11077 = vmatmul.msk.f32.vlgmr.msra.gmra.mxu2 %vm416_vm2, %v12937_v63  ;;  %v13002_v63 = vpop.f32.mrf.mxu1 }
 0x6b7   : > { %2183 = vmatpush.msra.mxu2 %v11605_v56 }
 0x6bc   : > { %v1750_v54 = vpop.permute.xlu1 %1749 }
 0x6bd   : > { %1770 = vmatpush.msra.mxu0 %v1750_v54 }
 0x6be   : > { %11073 = vmatmul.msk.f32.vlgmr.msra.gmra.mxu0 %vm318_vm0, %v1558_v10  ;;  %11085 = vmatmul.msk.f32.vlgmr.msrb.gmra.mxu2 %vm416_vm2, %v12939_v30 }
 0x6c4   : > { %v1903_v58 = vpop.permute.xlu1 %1902 }
 0x6c5   : > { %11080 = vmatpush.xpose.msk.msrb.mxu0 %vm416_vm2, %v1903_v58  ;;  %v11607_v58 = vpack.i.bf16 %v12723_v38, %v12709_v32 }
 0x6c9   : > { %11088 = vmatpush.xpose.msk.msra.mxu0 %vm416_vm2, %v2015_v0 }
 0x6cc   : > { %v1901_v18 = vpop.permute.xlu1 %1900 }
 0x6cd   : > { %11081 = vmatmul.msk.f32.vlgmr.msrb.gmra.mxu0 %vm416_vm2, %v1901_v18 }
 0x6d5   : > { %11089 = vmatmul.msk.f32.vlgmr.msra.gmra.mxu0 %vm416_vm2, %v2013_v24 }
 0x6d9   : > { %v13005_v55 = vpop.f32.mrf.mxu1 }
 0x6de   : > { %v13007_v47 = vpop.f32.mrf.mxu3 }
 0x6e1   : > { %v1841_v2 = vpop.f32.mrf.mxu1 }
 0x6e2   : > { %v2040_v40 = vmul.f32 0.25, %v1841_v2 }
 0x6e4   : > { %v2048_v30 = vsel %vm318_vm0, %v2040_v40, -inf }
 0x6e5   : > { %2049 = vmax.xlane.f32.xlu0 %v2048_v30 }
 0x6e6   : > { %v13010_v50 = vpop.f32.mrf.mxu3 }
 0x6ea   : > { %v1953_v14 = vpop.f32.mrf.mxu1 }
 0x6eb   : > { %v2044_v27 = vmul.f32 0.25, %v1953_v14 }
 0x6ed   : > { %v2060_v4 = vsel %vm318_vm0, %v2044_v27, -inf }
 0x6ee   : > { %v1897_v52 = vpop.f32.mrf.mxu3 }
 0x6ef   : > { %v13012_v62 = vmul.f32 0.25, %v1897_v52 }
 0x6f1   : > { %v2054_v12 = vsel %vm318_vm0, %v13012_v62, -inf }
 0x6f2   : > { %2055 = vmax.xlane.f32.xlu2 %v2054_v12 }
 0x6f6   : > { %v2009_v56 = vpop.f32.mrf.mxu3 }
 0x6f7   : > { %v13045_v10 = vmul.f32 0.25, %v2009_v56 }
 0x6f8   : > { %v13020_v7 = vpop.f32.mrf.mxu0 }
 0x6f9   : > { %v2066_v54 = vsel %vm318_vm0, %v13045_v10, -inf }
 0x70a   : > { %2415 = vrot.lane.b32.xlu2 %v12646_v6, %s12454_s16 }
 0x712   : > { %2413 = vrot.lane.b32.xlu2 %v12646_v6, %s12455_s17 }
 0x731   : > { %v13026_v51 = vpop.f32.mrf.mxu2 }
 0x739   : > { %v1869_v6 = vpop.f32.mrf.mxu2 }
 0x73a   : > { %v2041_v31 = vmul.f32 0.25, %v1869_v6 }
 0x73b   : > { %v13024_v26 = vpop.f32.mrf.mxu0 }
 0x73c   : > { %v2051_v24 = vsel %vm318_vm0, %v2041_v31, -inf }
 0x741   : > { %v1981_v43 = vpop.f32.mrf.mxu2 }
 0x742   : > { %v13038_v46 = vmul.f32 0.25, %v1981_v43 }
 0x744   : > { %v2063_v48 = vsel %vm318_vm0, %v13038_v46, -inf }
 0x74a   : > { %v1925_v16 = vpop.f32.mrf.mxu0 }
 0x74b   : > { %v13028_v20 = vmul.f32 0.25, %v1925_v16 }
 0x74d   : > { %v2057_v3 = vsel %vm318_vm0, %v13028_v20, -inf }
 0x74e   : > { %2058 = vmax.xlane.f32.xlu0 %v2057_v3 }
 0x752   : > { %v2037_v25 = vpop.f32.mrf.mxu0 }
 0x753   : > { %v13032_v21 = vmul.f32 0.25, %v2037_v25 }
 0x755   : > { %v2069_v28 = vsel %vm318_vm0, %v13032_v21, -inf }
 0x756   : > { %2061 = vmax.xlane.f32.xlu0 %v2060_v4  ;;  %2070 = vmax.xlane.f32.xlu1 %v2069_v28 }
 0x758   : > { %v2050_v29 = vpop.xlane.xlu0 %2049 }
 0x759   : > { %v2072_v35 = vsub.f32 %v2040_v40, %v2050_v29 }
 0x75b   : > { %v2080_v60 = vmul.f32 1.442695, %v2072_v35 }
 0x75d   : > { %11872 = vpow2.f32 %v2080_v60 }
 0x75e   : > { %2052 = vmax.xlane.f32.xlu1 %v2051_v24 }
 0x763   : > { %v11873_v22 = vpop.eup %11872 }
 0x764   : > { %v2096_v34 = vsel %vm318_vm0, %v11873_v22, 0.0 }
 0x765   : > { %2097 = vadd.xlane.f32.xlu2 %v2096_v34 }
 0x766   : > { %2064 = vmax.xlane.f32.xlu1 %v2063_v48 }
 0x76a   : > { %11613 = vrot.lane.b32.xlu0 %v11612_v44, %s12453_s15 }
 0x76e   : > { %2067 = vmax.xlane.f32.xlu1 %v2066_v54 }
 0x772   : > { %2387 = vrot.lane.b32.xlu0 %v12650_v8, %s12454_s16 }
 0x77d   : > { %2385 = vrot.lane.b32.xlu2 %v12650_v8, %s12455_s17  ;;  %v2056_v8 = vpop.xlane.xlu2 %2055 }
 0x785   : > { %2441 = vrot.lane.b32.xlu2 %v12652_v9, %s12455_s17  ;;  %v13075_v18 = vpop.permute.xlu2 %2415 }
 0x787   : > { %11608 = vrot.lane.b32.xlu1 %v11607_v58, %s12453_s15 }
 0x78d   : > { %2214 = vrot.lane.b32.xlu2 %v12720_v36, %s12453_s15  ;;  %v13080_v12 = vpop.permute.xlu2 %2413 }
 0x795   : > { %2318 = vrot.lane.b32.xlu2 %v12838_v59, %s12453_s15 }
 0x79d   : > { %2471 = vrot.lane.b32.xlu2 %v12658_v11, %s12454_s16 }
 0x7a5   : > { %2527 = vrot.lane.b32.xlu2 %v12666_v15, %s12454_s16 }
 0x7ad   : > { %2525 = vrot.lane.b32.xlu2 %v12666_v15, %s12455_s17  ;;  %v2074_v15 = vsub.f32 %v13012_v62, %v2056_v8 }
 0x7af   : > { %v2084_v16 = vmul.f32 1.442695, %v2074_v15 }
 0x7b5   : > { %2497 = vrot.lane.b32.xlu2 %v12662_v13, %s12455_s17 }
 0x7bd   : > { %2553 = vrot.lane.b32.xlu2 %v12670_v17, %s12455_s17 }
 0x7c1   : > { %v2059_v0 = vpop.xlane.xlu0 %2058 }
 0x7c2   : > { %v2075_v4 = vsub.f32 %v13028_v20, %v2059_v0 }
 0x7c4   : > { %v2086_v29 = vmul.f32 1.442695, %v2075_v4 }
 0x7c5   : > { %2581 = vrot.lane.b32.xlu2 %v12676_v19, %s12455_s17 }
 0x7c9   : > { %v13077_v2 = vpop.xlane.xlu1 %2070  ;;  %v2062_v40 = vpop.xlane.xlu0 %2061 }
 0x7ca   : > { %v2076_v30 = vsub.f32 %v2044_v27, %v2062_v40 }
 0x7cc   : > { %v2088_v52 = vmul.f32 1.442695, %v2076_v30 }
 0x7ce   : > { %11874 = vpow2.f32 %v2088_v52 }
 0x7cf   : > { %11876 = vpow2.f32 %v2084_v16 }
 0x7d1   : > { %v2053_v3 = vpop.xlane.xlu1 %2052 }
 0x7d2   : > { %v2073_v14 = vsub.f32 %v2041_v31, %v2053_v3 }
 0x7d4   : > { %v2082_v25 = vmul.f32 1.442695, %v2073_v14  ;;  %v13082_v6 = vpop.eup %11874 }
 0x7d5   : > { %v2108_v28 = vsel %vm318_vm0, %v13082_v6, 0.0  ;;  %v13087_v62 = vpop.eup %11876 }
 0x7d6   : > { %11878 = vpow2.f32 %v2082_v25  ;;  %2109 = vadd.xlane.f32.xlu1 %v2108_v28  ;;  %v2102_v20 = vsel %vm318_vm0, %v13087_v62, 0.0  ;;  %v2079_v28 = vsub.f32 %v13032_v21, %v13077_v2 }
 0x7d8   : > { %v2098_v27 = vpop.xlane.xlu2 %2097 }
 0x7d9   : > { %11880 = vrcp.f32 %v2098_v27  ;;  %v2065_v58 = vpop.xlane.xlu1 %2064  ;;  %v2094_v27 = vmul.f32 1.442695, %v2079_v28 }
 0x7da   : > { %11882 = vpow2.f32 %v2086_v29  ;;  %v2077_v3 = vsub.f32 %v13038_v46, %v2065_v58 }
 0x7dc   : > { %v13089_v35 = vpop.eup %11878  ;;  %v11614_v60 = vpop.permute.xlu0 %11613  ;;  %v2090_v14 = vmul.f32 1.442695, %v2077_v3 }
 0x7dd   : > { %v11615_v31 = vunpack.i.l.bf16 %v11614_v60  ;;  %v2099_v24 = vsel %vm318_vm0, %v13089_v35, 0.0  ;;  %v11616_v16 = vunpack.i.h.bf16 %v11614_v60 }
 0x7de   : > { %2100 = vadd.xlane.f32.xlu0 %v2099_v24  ;;  %2103 = vadd.xlane.f32.xlu1 %v2102_v20  ;;  %11884 = vpow2.f32 %v2090_v14 }
 0x7df   : > { %v11881_v43 = vpop.eup %11880  ;;  %2261 = vmatpush.msrb.mxu1 %v11615_v31 }
 0x7e0   : > { %v2128_v34 = vmul.f32 %v11881_v43, %v11873_v22  ;;  %v2386_v48 = vpop.permute.xlu2 %2385  ;;  %v11883_v56 = vpop.eup %11882 }
 0x7e1   : > { %v2105_v54 = vsel %vm318_vm0, %v11883_v56, 0.0  ;;  %v2068_v40 = vpop.xlane.xlu1 %2067 }
 0x7e2   : > { %11090 = vmatmul.msk.f32.vlgmr.msra.gmra.mxu1 %vm318_vm0, %v2128_v34 }
 0x7e4   : > { %v2388_v44 = vpop.permute.xlu0 %2387  ;;  %v11885_v4 = vpop.eup %11884 }
 0x7e5   : > { %11098 = vmatpush.xpose.msk.msra.mxu1 %vm416_vm2, %v2388_v44 }
 0x7e6   : > { %2106 = vadd.xlane.f32.xlu1 %v2105_v54 }
 0x7e8   : > { %v13098_v8 = vpop.permute.xlu2 %2441 }
 0x7f0   : > { %v2215_v0 = vpop.permute.xlu2 %2214 }
 0x7f1   : > { %2235 = vmatpush.msrb.mxu0 %v2215_v0 }
 0x7f2   : > { %2443 = vrot.lane.b32.xlu0 %v12652_v9, %s12454_s16  ;;  %v2078_v9 = vsub.f32 %v13045_v10, %v2068_v40 }
 0x7f4   : > { %v2092_v25 = vmul.f32 1.442695, %v2078_v9 }
 0x7f6   : > { %11886 = vpow2.f32 %v2092_v25 }
 0x7f7   : > { %11888 = vpow2.f32 %v2094_v27 }
 0x7f8   : > { %v2319_v22 = vpop.permute.xlu2 %2318 }
 0x7f9   : > { %2339 = vmatpush.msra.mxu0 %v2319_v22  ;;  %v11609_v30 = vpop.permute.xlu1 %11608 }
 0x7fa   : > { %v11611_v52 = vunpack.i.h.bf16 %v11609_v30  ;;  %v11610_v15 = vunpack.i.l.bf16 %v11609_v30 }
 0x7fc   : > { %2209 = vmatpush.msrb.mxu3 %v11610_v15  ;;  %2287 = vmatpush.msrb.mxu2 %v11611_v52 }
 0x7fe   : > { %2313 = vmatpush.msra.mxu3 %v11616_v16 }
 0x7ff   : > { %2469 = vrot.lane.b32.xlu1 %v12658_v11, %s12455_s17  ;;  %v2111_v11 = vsel %vm318_vm0, %v11885_v4, 0.0 }
 0x800   : > { %v2472_v54 = vpop.permute.xlu2 %2471 }
 0x807   : > { %2555 = vrot.lane.b32.xlu1 %v12670_v17, %s12454_s16  ;;  %v11887_v17 = vpop.eup %11886 }
 0x808   : > { %v2114_v46 = vsel %vm318_vm0, %v11887_v17, 0.0  ;;  %v11889_v29 = vpop.eup %11888 }
 0x80f   : > { %2583 = vrot.lane.b32.xlu1 %v12676_v19, %s12454_s16  ;;  %v2117_v19 = vsel %vm318_vm0, %v11889_v29, 0.0 }
 0x81c   : > { %2112 = vadd.xlane.f32.xlu0 %v2111_v11 }
 0x824   : > { %2115 = vadd.xlane.f32.xlu0 %v2114_v46 }
 0x82c   : > { %2118 = vadd.xlane.f32.xlu0 %v2117_v19 }
 0x840   : > { %2499 = vrot.lane.b32.xlu0 %v12662_v13, %s12454_s16 }
 0x849   : > { %v2110_v10 = vpop.xlane.xlu1 %2109 }
 0x84a   : > { %11890 = vrcp.f32 %v2110_v10 }
 0x850   : > { %v11891_v21 = vpop.eup %11890 }
 0x851   : > { %v2101_v2 = vpop.xlane.xlu0 %2100  ;;  %v2132_v60 = vmul.f32 %v11891_v21, %v13082_v6  ;;  %v2104_v31 = vpop.xlane.xlu1 %2103 }
 0x852   : > { %11892 = vrcp.f32 %v2101_v2 }
 0x853   : > { %11894 = vrcp.f32 %v2104_v31  ;;  %11094 = vmatmul.msk.f32.vlgmr.msrb.gmra.mxu1 %vm318_vm0, %v2132_v60 }
 0x858   : > { %v11893_v24 = vpop.eup %11892 }
 0x859   : > { %v11895_v20 = vpop.eup %11894  ;;  %v2129_v43 = vmul.f32 %v11893_v24, %v13089_v35  ;;  %v2107_v44 = vpop.xlane.xlu1 %2106 }
 0x85a   : > { %v2130_v34 = vmul.f32 %v11895_v20, %v13087_v62  ;;  %11896 = vrcp.f32 %v2107_v44  ;;  %v2528_v35 = vpop.permute.xlu2 %2527 }
 0x85b   : > { %11091 = vmatmul.msk.f32.vlgmr.msra.gmra.mxu2 %vm318_vm0, %v2129_v43  ;;  %11099 = vmatmul.msk.f32.vlgmr.msra.gmra.mxu1 %vm416_vm2, %v2386_v48 }
 0x85c   : > { %11092 = vmatmul.msk.f32.vlgmr.msrb.gmra.mxu3 %vm318_vm0, %v2130_v34  ;;  %11100 = vmatpush.xpose.msk.msra.mxu2 %vm416_vm2, %v13075_v18 }
 0x85f   : > { %v13145_v28 = vpop.f32.mrf.mxu1 }
 0x860   : > { %v11897_v13 = vpop.eup %11896 }
 0x861   : > { %v2131_v6 = vmul.f32 %v11897_v13, %v11883_v56 }
 0x862   : > { %v2526_v18 = vpop.permute.xlu2 %2525 }
 0x863   : > { %11093 = vmatmul.msk.f32.vlgmr.msrb.gmra.mxu0 %vm318_vm0, %v2131_v6 }
 0x864   : > { %v2444_v58 = vpop.permute.xlu0 %2443  ;;  %11104 = vmatpush.xpose.msk.msrb.mxu0 %vm416_vm2, %v2472_v54 }
 0x865   : > { %11102 = vmatpush.xpose.msk.msrb.mxu3 %vm416_vm2, %v2444_v58 }
 0x86a   : > { %v2498_v16 = vpop.permute.xlu2 %2497 }
 0x871   : > { %v2470_v0 = vpop.permute.xlu1 %2469 }
 0x872   : > { %v2554_v25 = vpop.permute.xlu2 %2553 }
 0x879   : > { %v2556_v30 = vpop.permute.xlu1 %2555 }
 0x881   : > { %v2584_v9 = vpop.permute.xlu1 %2583 }
 0x88f   : > { %v2113_v62 = vpop.xlane.xlu0 %2112 }
 0x890   : > { %11898 = vrcp.f32 %v2113_v62 }
 0x896   : > { %v11899_v40 = vpop.eup %11898 }
 0x897   : > { %v2133_v22 = vmul.f32 %v11899_v40, %v11885_v4  ;;  %v2116_v48 = vpop.xlane.xlu0 %2115  ;;  %v2582_v4 = vpop.permute.xlu2 %2581 }
 0x898   : > { %11900 = vrcp.f32 %v2116_v48 }
 0x899   : > { %11095 = vmatmul.msk.f32.vlgmr.msrb.gmra.mxu2 %vm318_vm0, %v2133_v22 }
 0x89a   : > { %11108 = vmatpush.xpose.msk.msrb.mxu2 %vm416_vm2, %v2528_v35 }
 0x89e   : > { %v11901_v56 = vpop.eup %11900 }
 0x89f   : > { %v2134_v52 = vmul.f32 %v11901_v56, %v11887_v17  ;;  %v2119_v15 = vpop.xlane.xlu0 %2118 }
 0x8a0   : > { %11902 = vrcp.f32 %v2119_v15  ;;  %v11622_v15 = vpack.i.bf16 %v12720_v36, %v12709_v32  ;;  %v11627_v32 = vpack.i.bf16 %v12723_v38, %v12737_v42 }
 0x8a1   : > { %11096 = vmatmul.msk.f32.vlgmr.msra.gmra.mxu3 %vm318_vm0, %v2134_v52  ;;  %11101 = vmatmul.msk.f32.vlgmr.msra.gmra.mxu2 %vm416_vm2, %v13080_v12 }
 0x8a2   : > { %11110 = vmatpush.xpose.msk.msra.mxu3 %vm416_vm2, %v2556_v30 }
 0x8a6   : > { %v11903_v3 = vpop.eup %11902 }
 0x8a7   : > { %v2135_v14 = vmul.f32 %v11903_v3, %v11889_v29 }
 0x8a9   : > { %11097 = vmatmul.msk.f32.vlgmr.msra.gmra.mxu0 %vm318_vm0, %v2135_v14  ;;  %11103 = vmatmul.msk.f32.vlgmr.msrb.gmra.mxu3 %vm416_vm2, %v13098_v8 }
 0x8aa   : > { %11109 = vmatmul.msk.f32.vlgmr.msrb.gmra.mxu2 %vm416_vm2, %v2526_v18  ;;  %11112 = vmatpush.xpose.msk.msra.mxu0 %vm416_vm2, %v2584_v9 }
 0x8b1   : > { %11105 = vmatmul.msk.f32.vlgmr.msrb.gmra.mxu0 %vm416_vm2, %v2470_v0  ;;  %11111 = vmatmul.msk.f32.vlgmr.msra.gmra.mxu3 %vm416_vm2, %v2554_v25 }
 0x8b2   : > { %v2500_v12 = vpop.permute.xlu0 %2499 }
 0x8b3   : > { %11106 = vmatpush.xpose.msk.msrb.mxu1 %vm416_vm2, %v2500_v12 }
 0x8b6   : > { %11107 = vmatmul.msk.f32.vlgmr.msrb.gmra.mxu1 %vm416_vm2, %v2498_v16  ;;  %v11617_v16 = vpack.i.bf16 %v12732_v39, %v12715_v33 }
 0x8b9   : > { %11113 = vmatmul.msk.f32.vlgmr.msra.gmra.mxu0 %vm416_vm2, %v2582_v4 }
 0x8d0   : > { %v13147_v8 = vpop.f32.mrf.mxu1 }
 0x8d8   : > { %v2410_v11 = vpop.f32.mrf.mxu1 }
 0x8d9   : > { %v2609_v27 = vmul.f32 0.25, %v2410_v11 }
 0x8db   : > { %v2617_v17 = vsel %vm318_vm0, %v2609_v27, -inf }
 0x8dc   : > { %2618 = vmax.xlane.f32.xlu0 %v2617_v17 }
 0x8de   : > { %v13150_v46 = vpop.f32.mrf.mxu2 }
 0x8df   : > { %v13154_v19 = vpop.f32.mrf.mxu3 }
 0x8e0   : > { %v13156_v10 = vpop.f32.mrf.mxu0 }
 0x91c   : > { %v13152_v29 = vpop.f32.mrf.mxu2 }
 0x924   : > { %v2438_v21 = vpop.f32.mrf.mxu2  ;;  %v13158_v60 = vpop.f32.mrf.mxu3 }
 0x925   : > { %v2610_v2 = vmul.f32 0.25, %v2438_v21 }
 0x926   : > { %v13160_v31 = vpop.f32.mrf.mxu0 }
 0x927   : > { %v2620_v24 = vsel %vm318_vm0, %v2610_v2, -inf }
 0x928   : > { %2621 = vmax.xlane.f32.xlu1 %v2620_v24 }
 0x92c   : > { %v2466_v13 = vpop.f32.mrf.mxu3 }
 0x92d   : > { %v2550_v20 = vpop.f32.mrf.mxu2  ;;  %v2611_v48 = vmul.f32 0.25, %v2466_v13 }
 0x92e   : > { %v2614_v43 = vmul.f32 0.25, %v2550_v20  ;;  %v2494_v34 = vpop.f32.mrf.mxu0 }
 0x92f   : > { %v2612_v44 = vmul.f32 0.25, %v2494_v34  ;;  %v2623_v30 = vsel %vm318_vm0, %v2611_v48, -inf }
 0x930   : > { %v2632_v6 = vsel %vm318_vm0, %v2614_v43, -inf }
 0x931   : > { %2633 = vmax.xlane.f32.xlu1 %v2632_v6  ;;  %v2626_v54 = vsel %vm318_vm0, %v2612_v44, -inf }
 0x932   : > { %2627 = vmax.xlane.f32.xlu0 %v2626_v54 }
 0x933   : > { %v2522_v58 = vpop.f32.mrf.mxu1 }
 0x934   : > { %v13165_v62 = vmul.f32 0.25, %v2522_v58  ;;  %v2578_v18 = vpop.f32.mrf.mxu3 }
 0x935   : > { %v13173_v56 = vmul.f32 0.25, %v2578_v18 }
 0x936   : > { %v2606_v35 = vpop.f32.mrf.mxu0  ;;  %v2629_v0 = vsel %vm318_vm0, %v13165_v62, -inf }
 0x937   : > { %v13169_v40 = vmul.f32 0.25, %v2606_v35  ;;  %2630 = vmax.xlane.f32.xlu2 %v2629_v0  ;;  %v2635_v52 = vsel %vm318_vm0, %v13173_v56, -inf }
 0x939   : > { %v2638_v22 = vsel %vm318_vm0, %v13169_v40, -inf }
 0x93a   : > { %2639 = vmax.xlane.f32.xlu0 %v2638_v22 }
 0x93f   : > { %2624 = vmax.xlane.f32.xlu2 %v2623_v30 }
 0x942   : > { %2636 = vmax.xlane.f32.xlu0 %v2635_v52 }
 0x94f   : > { %v2619_v3 = vpop.xlane.xlu0 %2618 }
 0x950   : > { %v2641_v14 = vsub.f32 %v2609_v27, %v2619_v3 }
 0x952   : > { %v2649_v9 = vmul.f32 1.442695, %v2641_v14 }
 0x954   : > { %11904 = vpow2.f32 %v2649_v9 }
 0x956   : > { %11623 = vrot.lane.b32.xlu0 %v11622_v15, %s12455_s17 }
 0x957   : > { %11618 = vrot.lane.b32.xlu2 %v11617_v16, %s12455_s17 }
 0x95a   : > { %v13184_v25 = vpop.eup %11904 }
 0x95b   : > { %v2665_v12 = vsel %vm318_vm0, %v13184_v25, 0.0 }
 0x980   : > { %2666 = vadd.xlane.f32.xlu2 %v2665_v12 }
 0x998   : > { %11628 = vrot.lane.b32.xlu2 %v11627_v32, %s12455_s17 }
 0x99b   : > { %v2622_v33 = vpop.xlane.xlu1 %2621 }
 0x99c   : > { %v2642_v36 = vsub.f32 %v2610_v2, %v2622_v33 }
 0x99e   : > { %v2651_v39 = vmul.f32 1.442695, %v2642_v36 }
 0x9a0   : > { %11906 = vpow2.f32 %v2651_v39  ;;  %2861 = vrot.lane.b32.xlu2 %v12843_v5, %s12455_s17 }
 0x9a4   : > { %v2634_v4 = vpop.xlane.xlu1 %2633 }
 0x9a5   : > { %v2646_v11 = vsub.f32 %v2614_v43, %v2634_v4  ;;  %v2628_v42 = vpop.xlane.xlu0 %2627 }
 0x9a6   : > { %v13193_v27 = vpop.eup %11906  ;;  %v2644_v43 = vsub.f32 %v2612_v44, %v2628_v42 }
 0x9a7   : > { %v2659_v17 = vmul.f32 1.442695, %v2646_v11  ;;  %v2668_v21 = vsel %vm318_vm0, %v13193_v27, 0.0 }
 0x9a8   : > { %2669 = vadd.xlane.f32.xlu1 %v2668_v21  ;;  %2887 = vrot.lane.b32.xlu2 %v12838_v59, %s12455_s17  ;;  %v2655_v59 = vmul.f32 1.442695, %v2644_v43 }
 0x9a9   : > { %11908 = vpow2.f32 %v2659_v17 }
 0x9aa   : > { %v2631_v38 = vpop.xlane.xlu2 %2630 }
 0x9ad   : > { %v2640_v13 = vpop.xlane.xlu0 %2639 }
 0x9ae   : > { %v2648_v3 = vsub.f32 %v13169_v40, %v2640_v13 }
 0x9af   : > { %v13199_v2 = vpop.eup %11908 }
 0x9b0   : > { %2352 = vrot.lane.b32.xlu2 %v13145_v28, %s12452_s14  ;;  %v2680_v5 = vsel %vm318_vm0, %v13199_v2, 0.0  ;;  %v2645_v28 = vsub.f32 %v13165_v62, %v2631_v38 }
 0x9b1   : > { %2681 = vadd.xlane.f32.xlu0 %v2680_v5 }
 0x9b2   : > { %v2625_v24 = vpop.xlane.xlu2 %2624  ;;  %v2657_v22 = vmul.f32 1.442695, %v2645_v28 }
 0x9b3   : > { %v2643_v20 = vsub.f32 %v2611_v48, %v2625_v24 }
 0x9b5   : > { %v2653_v34 = vmul.f32 1.442695, %v2643_v20  ;;  %v2637_v0 = vpop.xlane.xlu0 %2636 }
 0x9b7   : > { %11910 = vpow2.f32 %v2653_v34 }
 0x9b8   : > { %1785 = vrot.lane.b32.xlu2 %v13022_v23, %s12454_s16  ;;  %11912 = vpow2.f32 %v2655_v59  ;;  %v2647_v23 = vsub.f32 %v13173_v56, %v2637_v0  ;;  %v2663_v56 = vmul.f32 1.442695, %v2648_v3 }
 0x9b9   : > { %11914 = vpow2.f32 %v2657_v22 }
 0x9ba   : > { %v11619_v6 = vpop.permute.xlu2 %11618  ;;  %v2661_v30 = vmul.f32 1.442695, %v2647_v23  ;;  %v2969_v23 = vld [vmem:[#allocation7 + $0x38] sm:$0xff] }
 0x9bb   : > { %v11621_v54 = vunpack.i.h.bf16 %v11619_v6  ;;  %v11620_v58 = vunpack.i.l.bf16 %v11619_v6 }
 0x9bc   : > { %11916 = vpow2.f32 %v2661_v30  ;;  %v2966_v30 = vld [vmem:[#allocation7 + $0x20] sm:$0xff] }
 0x9bd   : > { %v13207_v35 = vpop.eup %11910  ;;  %2726 = vmatpush.msra.mxu1 %v11620_v58  ;;  %2752 = vmatpush.msra.mxu2 %v11621_v54  ;;  %11918 = vpow2.f32 %v2663_v56 }
 0x9be   : > { %v2671_v44 = vsel %vm318_vm0, %v13207_v35, 0.0  ;;  %v13212_v48 = vpop.eup %11912 }
 0x9bf   : > { %2672 = vadd.xlane.f32.xlu1 %v2671_v44  ;;  %v2674_v18 = vsel %vm318_vm0, %v13212_v48, 0.0  ;;  %v13219_v16 = vpop.eup %11914 }
 0x9c2   : > { %v11917_v14 = vpop.eup %11916 }
 0x9c3   : > { %v2683_v9 = vsel %vm318_vm0, %v11917_v14, 0.0  ;;  %v11919_v12 = vpop.eup %11918 }
 0x9c4   : > { %v2686_v40 = vsel %vm318_vm0, %v11919_v12, 0.0 }
 0x9c5   : > { %2354 = vrot.lane.b32.xlu0 %v13150_v46, %s12452_s14  ;;  %v2677_v46 = vsel %vm318_vm0, %v13219_v16, 0.0 }
 0x9c7   : > { %2675 = vadd.xlane.f32.xlu1 %v2674_v18  ;;  %v2968_v18 = vld [vmem:[#allocation7 + $0x30] sm:$0xff] }
 0x9c8   : > { %v11624_v62 = vpop.permute.xlu0 %11623 }
 0x9c9   : > { %v11626_v52 = vunpack.i.h.bf16 %v11624_v62  ;;  %v11625_v15 = vunpack.i.l.bf16 %v11624_v62  ;;  %v2967_v62 = vld [vmem:[#allocation7 + $0x28] sm:$0xff] }
 0x9cb   : > { %2778 = vmatpush.msrb.mxu3 %v11625_v15  ;;  %2804 = vmatpush.msrb.mxu0 %v11626_v52  ;;  %v2965_v52 = vld [vmem:[#allocation7 + $0x18] sm:$0xff]  ;;  %v2964_v15 = vld [vmem:[#allocation7 + $0x10] sm:$0xff] }
 0x9cd   : > { %2358 = vrot.lane.b32.xlu0 %v13156_v10, %s12452_s14 }
 0x9cf   : > { %2678 = vadd.xlane.f32.xlu1 %v2677_v46 }
 0x9d5   : > { %2360 = vrot.lane.b32.xlu0 %v13147_v8, %s12452_s14 }
 0x9d7   : > { %2684 = vadd.xlane.f32.xlu1 %v2683_v9 }
 0x9dd   : > { %2362 = vrot.lane.b32.xlu0 %v13152_v29, %s12452_s14 }
 0x9df   : > { %2687 = vadd.xlane.f32.xlu1 %v2686_v40 }
 0x9e5   : > { %2364 = vrot.lane.b32.xlu0 %v13158_v60, %s12452_s14 }
 0x9ed   : > { %2366 = vrot.lane.b32.xlu0 %v13160_v31, %s12452_s14 }
 0x9f3   : > { %v2667_v10 = vpop.xlane.xlu2 %2666 }
 0x9f4   : > { %11920 = vrcp.f32 %v2667_v10 }
 0x9f8   : > { %1783 = vrot.lane.b32.xlu1 %v13002_v63, %s12454_s16 }
 0x9fa   : > { %v11921_v8 = vpop.eup %11920 }
 0x9fb   : > { %v2697_v32 = vmul.f32 %v11921_v8, %v13184_v25  ;;  %v11629_v33 = vpop.permute.xlu2 %11628 }
 0x9fc   : > { %v11631_v36 = vunpack.i.h.bf16 %v11629_v33  ;;  %v11630_v29 = vunpack.i.l.bf16 %v11629_v33 }
 0x9fd   : > { %11114 = vmatmul.msk.f32.vlgmr.msra.gmra.mxu1 %vm318_vm0, %v2697_v32 }
 0x9fe   : > { %2830 = vmatpush.msrb.mxu1 %v11630_v29  ;;  %2856 = vmatpush.msrb.mxu2 %v11631_v36 }
 0xa00   : > { %3008 = vmatpush.msra.mxu1 %v2969_v23 }
 0xa02   : > { %3009 = vmatpush.msra.mxu1 %v2968_v18 }
 0xa03   : > { %v2862_v39 = vpop.permute.xlu2 %2861 }
 0xa04   : > { %2882 = vmatpush.msra.mxu3 %v2862_v39  ;;  %3010 = vmatpush.msra.mxu1 %v2967_v62  ;;  %v3088_v39 = vld [vmem:[#allocation5 + $0xf0] sm:$0xff] }
 0xa06   : > { %3011 = vmatpush.msra.mxu1 %v2966_v30 }
 0xa08   : > { %3012 = vmatpush.msra.mxu1 %v2965_v52 }
 0xa0a   : > { %3013 = vmatpush.msra.mxu1 %v2964_v15 }
 0xa0b   : > { %v2888_v60 = vpop.permute.xlu2 %2887 }
 0xa0c   : > { %2908 = vmatpush.msra.mxu0 %v2888_v60  ;;  %v3089_v60 = vld [vmem:[#allocation5 + $0xf8] sm:$0xff] }
 0xa13   : > { %v2353_v31 = vpop.permute.xlu2 %2352 }
 0xa1b   : > { %v2670_v4 = vpop.xlane.xlu1 %2669  ;;  %v1786_v11 = vpop.permute.xlu2 %1785 }
 0xa1c   : > { %11922 = vrcp.f32 %v2670_v4  ;;  %1809 = vst.msk [vmem:[#allocation2 + $0x8] sm:$0xff] %vm1807_vm15, %v1786_v11 }
 0xa22   : > { %v11923_v63 = vpop.eup %11922 }
 0xa23   : > { %v2698_v25 = vmul.f32 %v11923_v63, %v13193_v27  ;;  %v3086_v63 = vld [vmem:[#allocation5 + $0xe0] sm:$0xff] }
 0xa24   : > { %v2682_v17 = vpop.xlane.xlu0 %2681 }
 0xa25   : > { %11924 = vrcp.f32 %v2682_v17  ;;  %11115 = vmatmul.msk.f32.vlgmr.msra.gmra.mxu2 %vm318_vm0, %v2698_v25  ;;  %v3087_v25 = vld [vmem:[#allocation5 + $0xe8] sm:$0xff]  ;;  %v3084_v17 = vld [vmem:[#allocation5 + $0xd0] sm:$0xff] }
 0xa26   : > { %3129 = vmatpush.msra.mxu2 %v3088_v39 }
 0xa28   : > { %3130 = vmatpush.msra.mxu2 %v3086_v63 }
 0xa2a   : > { %3131 = vmatpush.msra.mxu2 %v3084_v17 }
 0xa2b   : > { %v11925_v21 = vpop.eup %11924 }
 0xa2c   : > { %v2702_v38 = vmul.f32 %v11925_v21, %v13199_v2  ;;  %v3085_v21 = vld [vmem:[#allocation5 + $0xd8] sm:$0xff] }
 0xa2e   : > { %11119 = vmatmul.msk.f32.vlgmr.msrb.gmra.mxu2 %vm318_vm0, %v2702_v38 }
 0xa32   : > { %v2673_v42 = vpop.xlane.xlu1 %2672 }
 0xa33   : > { %11926 = vrcp.f32 %v2673_v42  ;;  %v3082_v42 = vld [vmem:[#allocation5 + $0xc0] sm:$0xff] }
 0xa34   : > { %3132 = vmatpush.msra.mxu2 %v3082_v42 }
 0xa37   : > { %v2355_v5 = vpop.permute.xlu0 %2354 }
 0xa38   : > { %2378 = vst.msk [vmem:[#allocation2 + $0x8] sm:$0xff] %vm2376_vm1, %v2355_v5  ;;  %v3083_v5 = vld [vmem:[#allocation5 + $0xc8] sm:$0xff] }
 0xa39   : > { %v11927_v24 = vpop.eup %11926 }
 0xa3a   : > { %v2699_v20 = vmul.f32 %v11927_v24, %v13207_v35  ;;  %v2676_v43 = vpop.xlane.xlu1 %2675 }
 0xa3b   : > { %11928 = vrcp.f32 %v2676_v43  ;;  %v3080_v43 = vld [vmem:[#allocation5 + $0xb0] sm:$0xff] }
 0xa3c   : > { %11116 = vmatmul.msk.f32.vlgmr.msrb.gmra.mxu3 %vm318_vm0, %v2699_v20  ;;  %3133 = vmatpush.msra.mxu2 %v3080_v43 }
 0xa3d   : > { %3170 = vmatpush.msrb.mxu3 %v3089_v60 }
 0xa3f   : > { %v2359_v8 = vpop.permute.xlu0 %2358  ;;  %3171 = vmatpush.msrb.mxu3 %v3087_v25 }
 0xa41   : > { %v11929_v27 = vpop.eup %11928  ;;  %3172 = vmatpush.msrb.mxu3 %v3085_v21 }
 0xa42   : > { %v2700_v34 = vmul.f32 %v11929_v27, %v13212_v48  ;;  %v2679_v13 = vpop.xlane.xlu1 %2678  ;;  %v3081_v27 = vld [vmem:[#allocation5 + $0xb8] sm:$0xff] }
 0xa43   : > { %11930 = vrcp.f32 %v2679_v13  ;;  %3173 = vmatpush.msrb.mxu3 %v3083_v5  ;;  %v3079_v13 = vld [vmem:[#allocation5 + $0xa8] sm:$0xff] }
 0xa44   : > { %11117 = vmatmul.msk.f32.vlgmr.msrb.gmra.mxu0 %vm318_vm0, %v2700_v34  ;;  %v3078_v34 = vld [vmem:[#allocation5 + $0xa0] sm:$0xff] }
 0xa45   : > { %3174 = vmatpush.msrb.mxu3 %v3081_v27  ;;  %3134 = vmatpush.msra.mxu2 %v3078_v34 }
 0xa47   : > { %v2361_v29 = vpop.permute.xlu0 %2360  ;;  %3175 = vmatpush.msrb.mxu3 %v3079_v13 }
 0xa49   : > { %v11931_v2 = vpop.eup %11930 }
 0xa4a   : > { %v2701_v59 = vmul.f32 %v11931_v2, %v13219_v16  ;;  %v2685_v6 = vpop.xlane.xlu1 %2684  ;;  %v2962_v16 = vld [vmem:[#allocation7] sm:$0xff] }
 0xa4b   : > { %11932 = vrcp.f32 %v2685_v6  ;;  %v3077_v6 = vld [vmem:[#allocation5 + $0x98] sm:$0xff] }
 0xa4c   : > { %11118 = vmatmul.msk.f32.vlgmr.msrb.gmra.mxu1 %vm318_vm0, %v2701_v59  ;;  %v3076_v59 = vld [vmem:[#allocation5 + $0x90] sm:$0xff]  ;;  %3176 = vmatpush.msrb.mxu3 %v3077_v6 }
 0xa4d   : > { %3135 = vmatpush.msra.mxu2 %v3076_v59 }
 0xa4f   : > { %v2363_v38 = vpop.permute.xlu0 %2362 }
 0xa51   : > { %v11933_v54 = vpop.eup %11932 }
 0xa52   : > { %v2703_v58 = vmul.f32 %v11933_v54, %v11917_v14  ;;  %v2688_v35 = vpop.xlane.xlu1 %2687  ;;  %v3074_v54 = vld [vmem:[#allocation5 + $0x80] sm:$0xff] }
 0xa53   : > { %11934 = vrcp.f32 %v2688_v35  ;;  %3136 = vmatpush.msra.mxu2 %v3074_v54 }
 0xa54   : > { %11120 = vmatmul.msk.f32.vlgmr.msra.gmra.mxu3 %vm318_vm0, %v2703_v58  ;;  %v3075_v58 = vld [vmem:[#allocation5 + $0x88] sm:$0xff] }
 0xa55   : > { %3177 = vmatpush.msrb.mxu3 %v3075_v58 }
 0xa57   : > { %v2365_v35 = vpop.permute.xlu0 %2364 }
 0xa59   : > { %v11935_v28 = vpop.eup %11934 }
 0xa5a   : > { %v2704_v44 = vmul.f32 %v11935_v28, %v11919_v12 }
 0xa5c   : > { %11121 = vmatmul.msk.f32.vlgmr.msra.gmra.mxu0 %vm318_vm0, %v2704_v44 }
 0xa6a   : > { %v1784_v0 = vpop.permute.xlu1 %1783 }
 0xa6b   : > { %1808 = vst.msk [vmem:[#allocation2] sm:$0xff] %vm1807_vm15, %v1784_v0 }
 0xa6c   : > { %2377 = vst.msk [vmem:[#allocation2] sm:$0xff] %vm2376_vm1, %v2353_v31 }
 0xa7a   : > { %v2728_v22 = vpop.f32.mrf.mxu1 }
 0xa7b   : > { %2921 = vrot.lane.b32.xlu2 %v2728_v22, %s12450_s12 }
 0xa83   : > { %1787 = vrot.lane.b32.xlu2 %v13007_v47, %s12454_s16  ;;  %v2963_v47 = vld [vmem:[#allocation7 + $0x8] sm:$0xff] }
 0xa84   : > { %3014 = vmatpush.msra.mxu1 %v2963_v47 }
 0xa86   : > { %3015 = vmatpush.msra.mxu1 %v2962_v16 }
 0xaa8   : > { %v2754_v48 = vpop.f32.mrf.mxu2 }
 0xaa9   : > { %2923 = vrot.lane.b32.xlu1 %v2754_v48, %s12450_s12  ;;  %v2367_v48 = vpop.permute.xlu0 %2366 }
 0xab1   : > { %2356 = vrot.lane.b32.xlu1 %v13154_v19, %s12452_s14  ;;  %v2858_v56 = vpop.f32.mrf.mxu2 }
 0xab9   : > { %1789 = vrot.lane.b32.xlu1 %v13020_v7, %s12454_s16 }
 0xabf   : > { %v2780_v3 = vpop.f32.mrf.mxu3 }
 0xac0   : > { %2925 = vrot.lane.b32.xlu2 %v2780_v3, %s12450_s12 }
 0xac1   : > { %1791 = vrot.lane.b32.xlu1 %v13005_v55, %s12454_s16  ;;  %v2806_v19 = vpop.f32.mrf.mxu0 }
 0xac8   : > { %2927 = vrot.lane.b32.xlu2 %v2806_v19, %s12450_s12 }
 0xac9   : > { %1793 = vrot.lane.b32.xlu1 %v13026_v51, %s12454_s16  ;;  %v2832_v46 = vpop.f32.mrf.mxu1  ;;  %v11800_v51 = vld [vmem:[%s15595_s5 + $0x1] ss:$0 sm:$0xff] }
 0xad0   : > { %2929 = vrot.lane.b32.xlu2 %v2832_v46, %s12450_s12 }
 0xad1   : > { %1795 = vrot.lane.b32.xlu1 %v13010_v50, %s12454_s16 }
 0xad5   : > { %v2922_v7 = vpop.permute.xlu2 %2921 }
 0xad6   : > { %2946 = vst.msk [vmem:[#allocation2] sm:$0xff] %vm2945_vm3, %v2922_v7 }
 0xad7   : > { %v2884_v50 = vpop.f32.mrf.mxu3 }
 0xad8   : > { %2931 = vrot.lane.b32.xlu2 %v2858_v56, %s12450_s12 }
 0xad9   : > { %1797 = vrot.lane.b32.xlu1 %v13024_v26, %s12454_s16  ;;  %v2910_v9 = vpop.f32.mrf.mxu0 }
 0xadd   : > { %v1788_v55 = vpop.permute.xlu2 %1787  ;;  %v2954_v14 = vld [vmem:[#allocation2] sm:$0xff] }
 0xade   : > { %1810 = vst.msk [vmem:[#allocation2 + $0x10] sm:$0xff] %vm1807_vm15, %v1788_v55  ;;  %11122 = vmatmul.msk.f32.vlgmr.msra.gmra.mxu1 %vm628_vm6, %v2954_v14 }
 0xae0   : > { %2933 = vrot.lane.b32.xlu2 %v2884_v50, %s12450_s12 }
 0xae1   : > { %2973 = vrot.lane.b32.xlu1 %v11800_v51, %s12449_s11 }
 0xae8   : > { %2935 = vrot.lane.b32.xlu2 %v2910_v9, %s12450_s12 }
 0xb1a   : > { %v2926_v12 = vpop.permute.xlu2 %2925 }
 0xb1b   : > { %v2924_v26 = vpop.permute.xlu1 %2923 }
 0xb1c   : > { %2947 = vst.msk [vmem:[#allocation2 + $0x8] sm:$0xff] %vm2945_vm3, %v2924_v26 }
 0xb22   : > { %v2928_v32 = vpop.permute.xlu2 %2927 }
 0xb23   : > { %v2357_v40 = vpop.permute.xlu1 %2356  ;;  %v2955_v10 = vld [vmem:[#allocation2 + $0x8] sm:$0xff] }
 0xb24   : > { %2379 = vst.msk [vmem:[#allocation2 + $0x10] sm:$0xff] %vm2376_vm1, %v2357_v40  ;;  %11123 = vmatmul.msk.f32.gmra.mxu1 %vm628_vm6, %v2955_v10 }
 0xb25   : > { %2948 = vst.msk [vmem:[#allocation2 + $0x10] sm:$0xff] %vm2945_vm3, %v2926_v12 }
 0xb2a   : > { %v2930_v31 = vpop.permute.xlu2 %2929 }
 0xb2b   : > { %v1790_v33 = vpop.permute.xlu1 %1789 }
 0xb2c   : > { %1811 = vst.msk [vmem:[#allocation2 + $0x18] sm:$0xff] %vm1807_vm15, %v1790_v33  ;;  %v2956_v36 = vld [vmem:[#allocation2 + $0x10] sm:$0xff] }
 0xb2d   : > { %2380 = vst.msk [vmem:[#allocation2 + $0x18] sm:$0xff] %vm2376_vm1, %v2359_v8  ;;  %11124 = vmatmul.msk.f32.gmra.mxu1 %vm628_vm6, %v2956_v36 }
 0xb2e   : > { %2949 = vst.msk [vmem:[#allocation2 + $0x18] sm:$0xff] %vm2945_vm3, %v2928_v32 }
 0xb32   : > { %v2932_v24 = vpop.permute.xlu2 %2931 }
 0xb33   : > { %v1792_v4 = vpop.permute.xlu1 %1791 }
 0xb34   : > { %1812 = vst.msk [vmem:[#allocation2 + $0x20] sm:$0xff] %vm1807_vm15, %v1792_v4 }
 0xb35   : > { %2381 = vst.msk [vmem:[#allocation2 + $0x20] sm:$0xff] %vm2376_vm1, %v2361_v29  ;;  %v2957_v11 = vld [vmem:[#allocation2 + $0x18] sm:$0xff] }
 0xb36   : > { %2950 = vst.msk [vmem:[#allocation2 + $0x20] sm:$0xff] %vm2945_vm3, %v2930_v31  ;;  %11125 = vmatmul.msk.f32.gmra.mxu1 %vm628_vm6, %v2957_v11 }
 0xb3a   : > { %v2934_v28 = vpop.permute.xlu2 %2933 }
 0xb3b   : > { %v1794_v20 = vpop.permute.xlu1 %1793 }
 0xb3c   : > { %1813 = vst.msk [vmem:[#allocation2 + $0x28] sm:$0xff] %vm1807_vm15, %v1794_v20 }
 0xb3d   : > { %2382 = vst.msk [vmem:[#allocation2 + $0x28] sm:$0xff] %vm2376_vm1, %v2363_v38  ;;  %v2958_v2 = vld [vmem:[#allocation2 + $0x20] sm:$0xff] }
 0xb3e   : > { %2951 = vst.msk [vmem:[#allocation2 + $0x28] sm:$0xff] %vm2945_vm3, %v2932_v24  ;;  %11126 = vmatmul.msk.f32.gmra.mxu1 %vm628_vm6, %v2958_v2 }
 0xb42   : > { %v2936_v23 = vpop.permute.xlu2 %2935 }
 0xb43   : > { %v1796_v44 = vpop.permute.xlu1 %1795 }
 0xb44   : > { %1814 = vst.msk [vmem:[#allocation2 + $0x30] sm:$0xff] %vm1807_vm15, %v1796_v44 }
 0xb45   : > { %2383 = vst.msk [vmem:[#allocation2 + $0x30] sm:$0xff] %vm2376_vm1, %v2365_v35  ;;  %v2959_v0 = vld [vmem:[#allocation2 + $0x28] sm:$0xff] }
 0xb46   : > { %2952 = vst.msk [vmem:[#allocation2 + $0x30] sm:$0xff] %vm2945_vm3, %v2934_v28  ;;  %11127 = vmatmul.msk.f32.gmra.mxu1 %vm628_vm6, %v2959_v0 }
 0xb4b   : > { %v1798_v22 = vpop.permute.xlu1 %1797 }
 0xb4c   : > { %1815 = vst.msk [vmem:[#allocation2 + $0x38] sm:$0xff] %vm1807_vm15, %v1798_v22 }
 0xb4d   : > { %2384 = vst.msk [vmem:[#allocation2 + $0x38] sm:$0xff] %vm2376_vm1, %v2367_v48  ;;  %v2960_v18 = vld [vmem:[#allocation2 + $0x30] sm:$0xff] }
 0xb4e   : > { %2953 = vst.msk [vmem:[#allocation2 + $0x38] sm:$0xff] %vm2945_vm3, %v2936_v23  ;;  %11128 = vmatmul.msk.f32.gmra.mxu1 %vm628_vm6, %v2960_v18 }
 0xb53   : > { %v2974_v30 = vpop.permute.xlu1 %2973 }
 0xb55   : > { %v2961_v62 = vld [vmem:[#allocation2 + $0x38] sm:$0xff] }
 0xb56   : > { %11129 = vmatmul.msk.f32.gmra.mxu1 %vm628_vm6, %v2961_v62 }
 0xb5b   : > { %v3017_v52 = vpop.f32.mrf.mxu1 }
 0xb5c   : > { %v3018_v15 = vadd.f32 %v3017_v52, %v2974_v30 }
 0xb5e   : > { %v3041_v47 = vadd.f32 %v3018_v15, %v12595_v37 }
 0xb60   : > { %vm3049_vm4 = vcmp.ge.f32.partialorder %v3041_v47, 0.0  ;;  %v3057_v16 = vmul.f32 0.2, %v3041_v47 }
 0xb62   : > { %v13311_v3 = vsel %vm3049_vm4, %v3041_v47, %v3057_v16 }
 0xb63   : > { %11131 = vmatmul.msk.f32.vlgmr.msra.gmra.mxu2 %vm628_vm6, %v13311_v3  ;;  %11139 = vmatmul.msk.f32.vlgmr.msrb.gmra.mxu3 %vm628_vm6, %v13311_v3 }
 0xba1   : > { %v3020_v19 = vpop.f32.mrf.mxu1 }
 0xba2   : > { %v3021_v46 = vadd.f32 %v3020_v19, %v2974_v30 }
 0xba4   : > { %v3042_v7 = vadd.f32 %v3021_v46, %v12601_v41 }
 0xba6   : > { %vm3050_vm5 = vcmp.ge.f32.partialorder %v3042_v7, 0.0  ;;  %v3058_v56 = vmul.f32 0.2, %v3042_v7 }
 0xba8   : > { %v13318_v55 = vsel %vm3050_vm5, %v3042_v7, %v3058_v56 }
 0xba9   : > { %11132 = vmatmul.msk.f32.gmra.mxu2 %vm628_vm6, %v13318_v55  ;;  %11140 = vmatmul.msk.f32.gmra.mxu3 %vm628_vm6, %v13318_v55 }
 0xbaa   : > { %v3023_v37 = vpop.f32.mrf.mxu1 }
 0xbab   : > { %v3024_v14 = vadd.f32 %v3023_v37, %v2974_v30 }
 0xbad   : > { %v3043_v51 = vadd.f32 %v3024_v14, %v12607_v45 }
 0xbaf   : > { %vm3051_vm7 = vcmp.ge.f32.partialorder %v3043_v51, 0.0  ;;  %v3059_v50 = vmul.f32 0.2, %v3043_v51 }
 0xbb1   : > { %v13325_v9 = vsel %vm3051_vm7, %v3043_v51, %v3059_v50 }
 0xbb2   : > { %11133 = vmatmul.msk.f32.gmra.mxu2 %vm628_vm6, %v13325_v9  ;;  %11141 = vmatmul.msk.f32.gmra.mxu3 %vm628_vm6, %v13325_v9 }
 0xbb3   : > { %v3026_v41 = vpop.f32.mrf.mxu1 }
 0xbb4   : > { %v3027_v12 = vadd.f32 %v3026_v41, %v2974_v30 }
 0xbb6   : > { %v3044_v26 = vadd.f32 %v3027_v12, %v12613_v49 }
 0xbb8   : > { %vm3052_vm8 = vcmp.ge.f32.partialorder %v3044_v26, 0.0  ;;  %v3060_v40 = vmul.f32 0.2, %v3044_v26 }
 0xbba   : > { %v13332_v10 = vsel %vm3052_vm8, %v3044_v26, %v3060_v40 }
 0xbbb   : > { %v3029_v8 = vpop.f32.mrf.mxu1  ;;  %11134 = vmatmul.msk.f32.gmra.mxu2 %vm628_vm6, %v13332_v10  ;;  %11142 = vmatmul.msk.f32.gmra.mxu3 %vm628_vm6, %v13332_v10 }
 0xbbc   : > { %v3030_v45 = vadd.f32 %v3029_v8, %v2974_v30 }
 0xbbe   : > { %v3045_v32 = vadd.f32 %v3030_v45, %v12619_v53 }
 0xbc0   : > { %vm3053_vm9 = vcmp.ge.f32.partialorder %v3045_v32, 0.0  ;;  %v3061_v33 = vmul.f32 0.2, %v3045_v32 }
 0xbc2   : > { %v13339_v36 = vsel %vm3053_vm9, %v3045_v32, %v3061_v33 }
 0xbc3   : > { %v3032_v29 = vpop.f32.mrf.mxu1  ;;  %11135 = vmatmul.msk.f32.gmra.mxu2 %vm628_vm6, %v13339_v36  ;;  %11143 = vmatmul.msk.f32.gmra.mxu3 %vm628_vm6, %v13339_v36 }
 0xbc4   : > { %v3033_v49 = vadd.f32 %v3032_v29, %v2974_v30 }
 0xbc6   : > { %v3046_v39 = vadd.f32 %v3033_v49, %v12625_v57 }
 0xbc8   : > { %vm3054_vm10 = vcmp.ge.f32.partialorder %v3046_v39, 0.0  ;;  %v3062_v60 = vmul.f32 0.2, %v3046_v39 }
 0xbca   : > { %v13346_v31 = vsel %vm3054_vm10, %v3046_v39, %v3062_v60 }
 0xbcb   : > { %v3035_v4 = vpop.f32.mrf.mxu1  ;;  %11136 = vmatmul.msk.f32.gmra.mxu2 %vm628_vm6, %v13346_v31  ;;  %11144 = vmatmul.msk.f32.gmra.mxu3 %vm628_vm6, %v13346_v31 }
 0xbcc   : > { %v3036_v53 = vadd.f32 %v3035_v4, %v2974_v30 }
 0xbce   : > { %v3047_v11 = vadd.f32 %v3036_v53, %v12631_v61  ;;  %v11130_v61 = vld [vmem:[%s15595_s5 + $0x2] sm:$0x3] }
 0xbcf   : > { %v3093_v5 = vperm.slane %v11130_v61, 0  ;;  %v13375_v43 = vperm.slane %v11130_v61, 1 }
 0xbd0   : > { %vm3055_vm12 = vcmp.ge.f32.partialorder %v3047_v11, 0.0  ;;  %v3063_v63 = vmul.f32 0.2, %v3047_v11 }
 0xbd2   : > { %v13353_v25 = vsel %vm3055_vm12, %v3047_v11, %v3063_v63 }
 0xbd3   : > { %v3038_v17 = vpop.f32.mrf.mxu1  ;;  %11137 = vmatmul.msk.f32.gmra.mxu2 %vm628_vm6, %v13353_v25  ;;  %11145 = vmatmul.msk.f32.gmra.mxu3 %vm628_vm6, %v13353_v25 }
 0xbd4   : > { %v3039_v57 = vadd.f32 %v3038_v17, %v2974_v30 }
 0xbd6   : > { %v3048_v21 = vadd.f32 %v3039_v57, %v12637_v1 }
 0xbd8   : > { %vm3056_vm13 = vcmp.ge.f32.partialorder %v3048_v21, 0.0  ;;  %v3064_v38 = vmul.f32 0.2, %v3048_v21 }
 0xbda   : > { %v13360_v42 = vsel %vm3056_vm13, %v3048_v21, %v3064_v38 }
 0xbdb   : > { %11138 = vmatmul.msk.f32.gmra.mxu2 %vm628_vm6, %v13360_v42  ;;  %11146 = vmatmul.msk.f32.gmra.mxu3 %vm628_vm6, %v13360_v42 }
 0xbe6   : > { %v3138_v24 = vpop.f32.mrf.mxu2  ;;  %v13373_v1 = vpop.f32.mrf.mxu3 }
 0xbe7   : > { %v13369_v20 = vadd.f32 %v3138_v24, %v3093_v5  ;;  %v13473_v32 = vadd.f32 %v13373_v1, %v13375_v43 }
 0xbe9   : > { %3204 = vrot.lane.b32.xlu0 %v13369_v20, %s12449_s11 }
 0xc2c   : > { %v3141_v27 = vpop.f32.mrf.mxu2  ;;  %v3182_v34 = vpop.f32.mrf.mxu3 }
 0xc2d   : > { %v13377_v13 = vadd.f32 %v3141_v27, %v3093_v5  ;;  %v13380_v2 = vadd.f32 %v3182_v34, %v13375_v43 }
 0xc2f   : > { %3231 = vrot.lane.b32.xlu2 %v13377_v13, %s12449_s11  ;;  %3556 = vmatpush.msrb.mxu1 %v13380_v2 }
 0xc35   : > { %v3144_v59 = vpop.f32.mrf.mxu2  ;;  %v3185_v6 = vpop.f32.mrf.mxu3 }
 0xc36   : > { %v13385_v54 = vadd.f32 %v3144_v59, %v3093_v5  ;;  %v13388_v58 = vadd.f32 %v3185_v6, %v13375_v43 }
 0xc38   : > { %3258 = vrot.lane.b32.xlu1 %v13385_v54, %s12449_s11  ;;  %3579 = vmatpush.msrb.mxu2 %v13388_v58 }
 0xc3e   : > { %v3147_v35 = vpop.f32.mrf.mxu2  ;;  %v3188_v28 = vpop.f32.mrf.mxu3 }
 0xc3f   : > { %v13393_v44 = vadd.f32 %v3147_v35, %v3093_v5  ;;  %v13396_v0 = vadd.f32 %v3188_v28, %v13375_v43 }
 0xc41   : > { %3285 = vrot.lane.b32.xlu0 %v13393_v44, %s12449_s11  ;;  %3602 = vmatpush.msra.mxu3 %v13396_v0  ;;  %v11677_v22 = vpack.i.bf16 %v13396_v0, %v13388_v58 }
 0xc46   : > { %v3150_v48 = vpop.f32.mrf.mxu2  ;;  %v3191_v23 = vpop.f32.mrf.mxu3 }
 0xc47   : > { %v13403_v18 = vadd.f32 %v3150_v48, %v3093_v5  ;;  %v13479_v33 = vadd.f32 %v3191_v23, %v13375_v43 }
 0xc49   : > { %3312 = vrot.lane.b32.xlu2 %v13403_v18, %s12449_s11 }
 0xc4e   : > { %v3153_v62 = vpop.f32.mrf.mxu2  ;;  %v3194_v30 = vpop.f32.mrf.mxu3 }
 0xc4f   : > { %v13407_v52 = vadd.f32 %v3153_v62, %v3093_v5  ;;  %v13410_v15 = vadd.f32 %v3194_v30, %v13375_v43 }
 0xc51   : > { %3339 = vrot.lane.b32.xlu1 %v13407_v52, %s12449_s11  ;;  %3648 = vmatpush.msra.mxu1 %v13410_v15 }
 0xc56   : > { %v3156_v47 = vpop.f32.mrf.mxu2  ;;  %v3197_v16 = vpop.f32.mrf.mxu3 }
 0xc57   : > { %v13415_v19 = vadd.f32 %v3156_v47, %v3093_v5  ;;  %v13418_v46 = vadd.f32 %v3197_v16, %v13375_v43 }
 0xc59   : > { %3765 = vrot.lane.b32.xlu1 %v13385_v54, %s12450_s12  ;;  %3366 = vrot.lane.b32.xlu0 %v13415_v19, %s12449_s11 }
 0xc5a   : > { %3671 = vmatpush.msra.mxu2 %v13418_v46 }
 0xc5b   : > { %v3205_v7 = vpop.permute.xlu0 %3204 }
 0xc5c   : > { %11147 = vmatpush.xpose.msk.msrb.mxu0 %vm416_vm2, %v3205_v7 }
 0xc5e   : > { %v3159_v56 = vpop.f32.mrf.mxu2  ;;  %v3200_v37 = vpop.f32.mrf.mxu3 }
 0xc5f   : > { %v13426_v14 = vadd.f32 %v3159_v56, %v3093_v5  ;;  %v13429_v51 = vadd.f32 %v3200_v37, %v13375_v43  ;;  %11148 = vmatmul.msk.f32.vlgmr.msrb.gmra.mxu0 %vm416_vm2, %v13369_v20 }
 0xc61   : > { %3793 = vrot.lane.b32.xlu1 %v13393_v44, %s12450_s12  ;;  %3709 = vrot.lane.b32.xlu0 %v13369_v20, %s12450_s12 }
 0xc62   : > { %3393 = vrot.lane.b32.xlu2 %v13426_v14, %s12449_s11  ;;  %3694 = vmatpush.msrb.mxu3 %v13429_v51 }
 0xc69   : > { %3791 = vrot.lane.b32.xlu1 %v13393_v44, %s12451_s13  ;;  %3707 = vrot.lane.b32.xlu0 %v13369_v20, %s12451_s13 }
 0xc6a   : > { %3763 = vrot.lane.b32.xlu2 %v13385_v54, %s12451_s13 }
 0xc71   : > { %3821 = vrot.lane.b32.xlu1 %v13403_v18, %s12450_s12  ;;  %3737 = vrot.lane.b32.xlu0 %v13377_v13, %s12450_s12 }
 0xc72   : > { %3877 = vrot.lane.b32.xlu2 %v13415_v19, %s12450_s12 }
 0xc7a   : > { %3875 = vrot.lane.b32.xlu2 %v13415_v19, %s12451_s13 }
 0xc89   : > { %v3232_v50 = vpop.permute.xlu2 %3231 }
 0xc8a   : > { %11149 = vmatpush.xpose.msk.msra.mxu0 %vm416_vm2, %v3232_v50 }
 0xc8d   : > { %11150 = vmatmul.msk.f32.vlgmr.msra.gmra.mxu0 %vm416_vm2, %v13377_v13 }
 0xca3   : > { %v3313_v26 = vpop.permute.xlu2 %3312 }
 0xcaa   : > { %v3259_v41 = vpop.permute.xlu1 %3258 }
 0xcab   : > { %11151 = vmatpush.xpose.msk.msrb.mxu0 %vm416_vm2, %v3259_v41 }
 0xcae   : > { %11152 = vmatmul.msk.f32.vlgmr.msrb.gmra.mxu0 %vm416_vm2, %v13385_v54 }
 0xcb3   : > { %v3286_v12 = vpop.permute.xlu0 %3285 }
 0xcb4   : > { %11153 = vmatpush.xpose.msk.msra.mxu0 %vm416_vm2, %v3286_v12 }
 0xcb7   : > { %11154 = vmatmul.msk.f32.vlgmr.msra.gmra.mxu0 %vm416_vm2, %v13393_v44 }
 0xcb8   : > { %11155 = vmatpush.xpose.msk.msrb.mxu0 %vm416_vm2, %v3313_v26 }
 0xcbc   : > { %v3394_v45 = vpop.permute.xlu2 %3393 }
 0xcbf   : > { %11156 = vmatmul.msk.f32.vlgmr.msrb.gmra.mxu0 %vm416_vm2, %v13403_v18 }
 0xcc3   : > { %v3340_v40 = vpop.permute.xlu1 %3339 }
 0xcc4   : > { %11157 = vmatpush.xpose.msk.msra.mxu0 %vm416_vm2, %v3340_v40  ;;  %v13514_v41 = vpop.permute.xlu2 %3763 }
 0xcc7   : > { %11158 = vmatmul.msk.f32.vlgmr.msra.gmra.mxu0 %vm416_vm2, %v13407_v52 }
 0xccb   : > { %v3367_v8 = vpop.permute.xlu0 %3366  ;;  %v13508_v30 = vpop.permute.xlu1 %3765 }
 0xccc   : > { %11159 = vmatpush.xpose.msk.msrb.mxu0 %vm416_vm2, %v3367_v8 }
 0xccf   : > { %11160 = vmatmul.msk.f32.vlgmr.msrb.gmra.mxu0 %vm416_vm2, %v13415_v19 }
 0xcd0   : > { %11161 = vmatpush.xpose.msk.msra.mxu0 %vm416_vm2, %v3394_v45  ;;  %v13520_v45 = vpop.permute.xlu2 %3877 }
 0xcd3   : > { %v13502_v23 = vpop.permute.xlu0 %3709  ;;  %v13512_v16 = vpop.permute.xlu1 %3793 }
 0xcd4   : > { %3533 = vmatpush.msrb.mxu0 %v13473_v32 }
 0xcd7   : > { %11162 = vmatmul.msk.f32.vlgmr.msra.gmra.mxu0 %vm416_vm2, %v13426_v14 }
 0xcd8   : > { %3625 = vmatpush.msra.mxu0 %v13479_v33 }
 0xcdb   : > { %v13506_v62 = vpop.permute.xlu0 %3707  ;;  %v13516_v12 = vpop.permute.xlu1 %3791 }
 0xcdc   : > { %v3227_v29 = vpop.f32.mrf.mxu0 }
 0xcdd   : > { %v3419_v49 = vmul.f32 0.25, %v3227_v29 }
 0xcdf   : > { %v3427_v39 = vsel %vm318_vm0, %v3419_v49, -inf }
 0xce0   : > { %3428 = vmax.xlane.f32.xlu0 %v3427_v39 }
 0xce3   : > { %v13510_v47 = vpop.permute.xlu0 %3737  ;;  %v13522_v29 = vpop.permute.xlu1 %3821 }
 0xd0a   : > { %v3254_v60 = vpop.f32.mrf.mxu0 }
 0xd0b   : > { %v3420_v4 = vmul.f32 0.25, %v3254_v60 }
 0xd0d   : > { %v3430_v53 = vsel %vm318_vm0, %v3420_v4, -inf }
 0xd0e   : > { %3431 = vmax.xlane.f32.xlu0 %v3430_v53 }
 0xd2b   : > { %v3281_v11 = vpop.f32.mrf.mxu0 }
 0xd2c   : > { %v3421_v63 = vmul.f32 0.25, %v3281_v11  ;;  %v13530_v11 = vpop.permute.xlu2 %3875 }
 0xd2e   : > { %v3433_v17 = vsel %vm318_vm0, %v3421_v63, -inf }
 0xd2f   : > { %3434 = vmax.xlane.f32.xlu1 %v3433_v17 }
 0xd34   : > { %v3308_v57 = vpop.f32.mrf.mxu0 }
 0xd35   : > { %v3422_v21 = vmul.f32 0.25, %v3308_v57 }
 0xd37   : > { %v3436_v38 = vsel %vm318_vm0, %v3422_v21, -inf }
 0xd38   : > { %3437 = vmax.xlane.f32.xlu2 %v3436_v38 }
 0xd3c   : > { %v3335_v61 = vpop.f32.mrf.mxu0 }
 0xd3d   : > { %v3423_v5 = vmul.f32 0.25, %v3335_v61 }
 0xd3f   : > { %v3439_v24 = vsel %vm318_vm0, %v3423_v5, -inf }
 0xd40   : > { %3440 = vmax.xlane.f32.xlu2 %v3439_v24 }
 0xd44   : > { %v3362_v1 = vpop.f32.mrf.mxu0 }
 0xd45   : > { %v3424_v43 = vmul.f32 0.25, %v3362_v1 }
 0xd47   : > { %v3442_v27 = vsel %vm318_vm0, %v3424_v43, -inf }
 0xd48   : > { %3443 = vmax.xlane.f32.xlu0 %v3442_v27 }
 0xd4c   : > { %v3389_v34 = vpop.f32.mrf.mxu0 }
 0xd4d   : > { %v13490_v59 = vmul.f32 0.25, %v3389_v34 }
 0xd4f   : > { %v3445_v6 = vsel %vm318_vm0, %v13490_v59, -inf }
 0xd50   : > { %3446 = vmax.xlane.f32.xlu1 %v3445_v6 }
 0xd53   : > { %v3429_v7 = vpop.xlane.xlu0 %3428 }
 0xd54   : > { %v3416_v35 = vpop.f32.mrf.mxu0  ;;  %v3451_v56 = vsub.f32 %v3419_v49, %v3429_v7 }
 0xd55   : > { %v13494_v28 = vmul.f32 0.25, %v3416_v35 }
 0xd56   : > { %v3459_v37 = vmul.f32 1.442695, %v3451_v56 }
 0xd57   : > { %v3448_v48 = vsel %vm318_vm0, %v13494_v28, -inf }
 0xd58   : > { %3905 = vrot.lane.b32.xlu2 %v13426_v14, %s12450_s12  ;;  %3449 = vmax.xlane.f32.xlu1 %v3448_v48  ;;  %11936 = vpow2.f32 %v3459_v37 }
 0xd5c   : > { %3735 = vrot.lane.b32.xlu0 %v13377_v13, %s12451_s13 }
 0xd5e   : > { %v13518_v8 = vpop.eup %11936 }
 0xd5f   : > { %v3475_v39 = vsel %vm318_vm0, %v13518_v8, 0.0 }
 0xd71   : > { %3819 = vrot.lane.b32.xlu1 %v13403_v18, %s12451_s13 }
 0xd81   : > { %v3432_v50 = vpop.xlane.xlu0 %3431 }
 0xd82   : > { %v3452_v26 = vsub.f32 %v3420_v4, %v3432_v50 }
 0xd84   : > { %v3461_v40 = vmul.f32 1.442695, %v3452_v26 }
 0xd86   : > { %11938 = vpow2.f32 %v3461_v40 }
 0xd8c   : > { %v13526_v49 = vpop.eup %11938 }
 0xd8d   : > { %v3478_v53 = vsel %vm318_vm0, %v13526_v49, 0.0 }
 0xd9b   : > { %3476 = vadd.xlane.f32.xlu1 %v3475_v39 }
 0xda2   : > { %v3435_v60 = vpop.xlane.xlu1 %3434 }
 0xda3   : > { %v3453_v4 = vsub.f32 %v3421_v63, %v3435_v60  ;;  %3479 = vadd.xlane.f32.xlu1 %v3478_v53 }
 0xda5   : > { %v3463_v17 = vmul.f32 1.442695, %v3453_v4 }
 0xda7   : > { %11940 = vpow2.f32 %v3463_v17 }
 0xdab   : > { %v3438_v57 = vpop.xlane.xlu2 %3437 }
 0xdac   : > { %v3454_v38 = vsub.f32 %v3422_v21, %v3438_v57 }
 0xdad   : > { %v13532_v61 = vpop.eup %11940 }
 0xdae   : > { %v3465_v24 = vmul.f32 1.442695, %v3454_v38  ;;  %v3481_v1 = vsel %vm318_vm0, %v13532_v61, 0.0 }
 0xdaf   : > { %3482 = vadd.xlane.f32.xlu2 %v3481_v1 }
 0xdb0   : > { %11942 = vpow2.f32 %v3465_v24  ;;  %v13589_v24 = vpack.i.bf16 %v13479_v33, %v13380_v2 }
 0xdb3   : > { %v3441_v27 = vpop.xlane.xlu2 %3440 }
 0xdb4   : > { %v3455_v34 = vsub.f32 %v3423_v5, %v3441_v27  ;;  %v13548_v5 = vpack.i.bf16 %v13418_v46, %v13396_v0  ;;  %v11647_v27 = vpack.i.bf16 %v13410_v15, %v13429_v51 }
 0xdb6   : > { %v13536_v6 = vpop.eup %11942  ;;  %v3467_v35 = vmul.f32 1.442695, %v3455_v34 }
 0xdb7   : > { %v3484_v63 = vsel %vm318_vm0, %v13536_v6, 0.0 }
 0xdb8   : > { %11944 = vpow2.f32 %v3467_v35  ;;  %3485 = vadd.xlane.f32.xlu0 %v3484_v63 }
 0xdbb   : > { %v3444_v48 = vpop.xlane.xlu0 %3443 }
 0xdbc   : > { %v3456_v21 = vsub.f32 %v3424_v43, %v3444_v48  ;;  %3847 = vrot.lane.b32.xlu1 %v13407_v52, %s12451_s13 }
 0xdbe   : > { %v13542_v7 = vpop.eup %11944  ;;  %v3469_v56 = vmul.f32 1.442695, %v3456_v21  ;;  %v3906_v21 = vpop.permute.xlu2 %3905 }
 0xdbf   : > { %v3487_v37 = vsel %vm318_vm0, %v13542_v7, 0.0 }
 0xdc0   : > { %11946 = vpow2.f32 %v3469_v56  ;;  %3488 = vadd.xlane.f32.xlu0 %v3487_v37 }
 0xdc3   : > { %v3447_v50 = vpop.xlane.xlu1 %3446 }
 0xdc4   : > { %v3457_v26 = vsub.f32 %v13490_v59, %v3447_v50  ;;  %11638 = vrot.lane.b32.xlu1 %v13548_v5, %s12451_s13 }
 0xdc6   : > { %v13553_v43 = vpop.eup %11946  ;;  %v3471_v40 = vmul.f32 1.442695, %v3457_v26 }
 0xdc7   : > { %v3490_v39 = vsel %vm318_vm0, %v13553_v43, 0.0 }
 0xdc8   : > { %11948 = vpow2.f32 %v3471_v40  ;;  %3491 = vadd.xlane.f32.xlu0 %v3490_v39 }
 0xdcb   : > { %v3450_v60 = vpop.xlane.xlu1 %3449 }
 0xdcc   : > { %v3458_v53 = vsub.f32 %v13494_v28, %v3450_v60  ;;  %4285 = vrot.lane.b32.xlu1 %v13369_v20, %s12452_s14  ;;  %v11632_v28 = vpack.i.bf16 %v13473_v32, %v13388_v58 }
 0xdce   : > { %v13560_v4 = vpop.eup %11948  ;;  %v3473_v59 = vmul.f32 1.442695, %v3458_v53  ;;  %v3736_v50 = vpop.permute.xlu0 %3735 }
 0xdcf   : > { %v3493_v17 = vsel %vm318_vm0, %v13560_v4, 0.0 }
 0xdd0   : > { %11950 = vpow2.f32 %v3473_v59  ;;  %3494 = vadd.xlane.f32.xlu2 %v3493_v17 }
 0xdd4   : > { %4283 = vrot.lane.b32.xlu1 %v13369_v20, %s12453_s15 }
 0xdd6   : > { %v13566_v57 = vpop.eup %11950 }
 0xdd7   : > { %v3496_v38 = vsel %vm318_vm0, %v13566_v57, 0.0 }
 0xdd8   : > { %3497 = vadd.xlane.f32.xlu2 %v3496_v38 }
 0xddc   : > { %3849 = vrot.lane.b32.xlu0 %v13407_v52, %s12450_s12  ;;  %4313 = vrot.lane.b32.xlu1 %v13377_v13, %s12452_s14 }
 0xde3   : > { %v3820_v1 = vpop.permute.xlu1 %3819 }
 0xde4   : > { %4341 = vrot.lane.b32.xlu0 %v13385_v54, %s12452_s14  ;;  %4451 = vrot.lane.b32.xlu1 %v13415_v19, %s12453_s15 }
 0xdec   : > { %4369 = vrot.lane.b32.xlu0 %v13393_v44, %s12452_s14 }
 0xdf0   : > { %3903 = vrot.lane.b32.xlu2 %v13426_v14, %s12451_s13 }
 0xdf4   : > { %4397 = vrot.lane.b32.xlu0 %v13403_v18, %s12452_s14 }
 0xdf8   : > { %11633 = vrot.lane.b32.xlu2 %v11632_v28, %s12451_s13 }
 0xe00   : > { %11643 = vrot.lane.b32.xlu2 %v13589_v24, %s12451_s13 }
 0xe08   : > { %11648 = vrot.lane.b32.xlu2 %v11647_v27, %s12451_s13 }
 0xe0e   : > { %v3477_v34 = vpop.xlane.xlu1 %3476 }
 0xe0f   : > { %11952 = vrcp.f32 %v3477_v34 }
 0xe10   : > { %4339 = vrot.lane.b32.xlu2 %v13385_v54, %s12453_s15 }
 0xe15   : > { %v11953_v35 = vpop.eup %11952 }
 0xe16   : > { %v3507_v63 = vmul.f32 %v11953_v35, %v13518_v8  ;;  %v3480_v48 = vpop.xlane.xlu1 %3479 }
 0xe17   : > { %11954 = vrcp.f32 %v3480_v48 }
 0xe18   : > { %4453 = vrot.lane.b32.xlu2 %v13415_v19, %s12452_s14  ;;  %11163 = vmatmul.msk.f32.vlgmr.msrb.gmra.mxu0 %vm318_vm0, %v3507_v63 }
 0xe19   : > { %11171 = vmatpush.xpose.msk.msrb.mxu0 %vm416_vm2, %v13502_v23 }
 0xe1d   : > { %v11955_v56 = vpop.eup %11954 }
 0xe1e   : > { %v3508_v37 = vmul.f32 %v11955_v56, %v13526_v49 }
 0xe20   : > { %11164 = vmatmul.msk.f32.vlgmr.msrb.gmra.mxu1 %vm318_vm0, %v3508_v37  ;;  %4367 = vrot.lane.b32.xlu2 %v13393_v44, %s12453_s15 }
 0xe21   : > { %11173 = vmatpush.xpose.msk.msrb.mxu1 %vm416_vm2, %v13510_v47 }
 0xe22   : > { %v3483_v8 = vpop.xlane.xlu2 %3482 }
 0xe23   : > { %11956 = vrcp.f32 %v3483_v8 }
 0xe29   : > { %v11957_v26 = vpop.eup %11956 }
 0xe2a   : > { %v3509_v40 = vmul.f32 %v11957_v26, %v13532_v61 }
 0xe2b   : > { %v3486_v39 = vpop.xlane.xlu0 %3485 }
 0xe2c   : > { %11958 = vrcp.f32 %v3486_v39  ;;  %11165 = vmatmul.msk.f32.vlgmr.msrb.gmra.mxu2 %vm318_vm0, %v3509_v40 }
 0xe2d   : > { %11175 = vmatpush.xpose.msk.msrb.mxu2 %vm416_vm2, %v13508_v30 }
 0xe32   : > { %v11959_v23 = vpop.eup %11958 }
 0xe33   : > { %v3510_v49 = vmul.f32 %v11959_v23, %v13536_v6  ;;  %v3489_v60 = vpop.xlane.xlu0 %3488 }
 0xe34   : > { %11960 = vrcp.f32 %v3489_v60 }
 0xe35   : > { %11166 = vmatmul.msk.f32.vlgmr.msra.gmra.mxu3 %vm318_vm0, %v3510_v49 }
 0xe36   : > { %11177 = vmatpush.xpose.msk.msra.mxu3 %vm416_vm2, %v13512_v16 }
 0xe3a   : > { %v11961_v47 = vpop.eup %11960 }
 0xe3b   : > { %v3511_v61 = vmul.f32 %v11961_v47, %v13542_v7  ;;  %v3492_v53 = vpop.xlane.xlu0 %3491 }
 0xe3c   : > { %11962 = vrcp.f32 %v3492_v53 }
 0xe3d   : > { %11167 = vmatmul.msk.f32.vlgmr.msra.gmra.mxu0 %vm318_vm0, %v3511_v61 }
 0xe3e   : > { %11179 = vmatpush.xpose.msk.msra.mxu0 %vm416_vm2, %v13522_v29 }
 0xe42   : > { %v11963_v30 = vpop.eup %11962 }
 0xe43   : > { %v3512_v6 = vmul.f32 %v11963_v30, %v13553_v43  ;;  %v3495_v59 = vpop.xlane.xlu2 %3494  ;;  %v3848_v43 = vpop.permute.xlu1 %3847 }
 0xe44   : > { %11964 = vrcp.f32 %v3495_v59 }
 0xe45   : > { %11168 = vmatmul.msk.f32.vlgmr.msra.gmra.mxu1 %vm318_vm0, %v3512_v6  ;;  %11172 = vmatmul.msk.f32.vlgmr.msrb.gmra.mxu0 %vm416_vm2, %v13506_v62 }
 0xe4a   : > { %v11965_v16 = vpop.eup %11964 }
 0xe4b   : > { %v3513_v7 = vmul.f32 %v11965_v16, %v13560_v4  ;;  %v3498_v17 = vpop.xlane.xlu2 %3497  ;;  %v11639_v4 = vpop.permute.xlu1 %11638 }
 0xe4c   : > { %11966 = vrcp.f32 %v3498_v17 }
 0xe4d   : > { %11169 = vmatmul.msk.f32.vlgmr.msra.gmra.mxu2 %vm318_vm0, %v3513_v7  ;;  %11174 = vmatmul.msk.f32.vlgmr.msrb.gmra.mxu1 %vm416_vm2, %v3736_v50 }
 0xe4e   : > { %11180 = vmatmul.msk.f32.vlgmr.msra.gmra.mxu0 %vm416_vm2, %v3820_v1  ;;  %11183 = vmatpush.xpose.msk.msra.mxu2 %vm416_vm2, %v13520_v45  ;;  %v3850_v29 = vpop.permute.xlu0 %3849  ;;  %v11640_v45 = vunpack.i.l.bf16 %v11639_v4 }
 0xe4f   : > { %11181 = vmatpush.xpose.msk.msra.mxu1 %vm416_vm2, %v3850_v29 }
 0xe52   : > { %v11967_v38 = vpop.eup %11966 }
 0xe53   : > { %v3514_v62 = vmul.f32 %v11967_v38, %v13566_v57  ;;  %v3904_v28 = vpop.permute.xlu2 %3903  ;;  %v11641_v57 = vunpack.i.h.bf16 %v11639_v4 }
 0xe55   : > { %11170 = vmatmul.msk.f32.vlgmr.msrb.gmra.mxu3 %vm318_vm0, %v3514_v62  ;;  %11176 = vmatmul.msk.f32.vlgmr.msrb.gmra.mxu2 %vm416_vm2, %v13514_v41 }
 0xe56   : > { %11182 = vmatmul.msk.f32.vlgmr.msra.gmra.mxu1 %vm416_vm2, %v3848_v43  ;;  %11185 = vmatpush.xpose.msk.msrb.mxu3 %vm416_vm2, %v3906_v21 }
 0xe5b   : > { %v11634_v1 = vpop.permute.xlu2 %11633 }
 0xe5c   : > { %v11636_v27 = vunpack.i.h.bf16 %v11634_v1  ;;  %v11635_v34 = vunpack.i.l.bf16 %v11634_v1 }
 0xe5d   : > { %11178 = vmatmul.msk.f32.vlgmr.msra.gmra.mxu3 %vm416_vm2, %v13516_v12  ;;  %11184 = vmatmul.msk.f32.vlgmr.msra.gmra.mxu2 %vm416_vm2, %v13530_v11 }
 0xe5e   : > { %4130 = vmatpush.msra.mxu3 %v11640_v45  ;;  %4049 = vmatpush.msrb.mxu0 %v11636_v27 }
 0xe5f   : > { %4103 = vmatpush.msrb.mxu2 %v11635_v34 }
 0xe61   : > { %4211 = vmatpush.msra.mxu2 %v11641_v57 }
 0xe63   : > { %v11644_v41 = vpop.permute.xlu2 %11643 }
 0xe64   : > { %v11646_v35 = vunpack.i.h.bf16 %v11644_v41  ;;  %v11645_v63 = vunpack.i.l.bf16 %v11644_v41 }
 0xe65   : > { %11186 = vmatmul.msk.f32.vlgmr.msrb.gmra.mxu3 %vm416_vm2, %v3904_v28 }
 0xe66   : > { %4076 = vmatpush.msrb.mxu1 %v11645_v63  ;;  %4157 = vmatpush.msra.mxu0 %v11646_v35  ;;  %v13669_v35 = vpop.permute.xlu1 %4285  ;;  %v13671_v63 = vpop.permute.xlu0 %4341 }
 0xe6b   : > { %v11649_v48 = vpop.permute.xlu2 %11648 }
 0xe6c   : > { %v11651_v21 = vunpack.i.h.bf16 %v11649_v48  ;;  %v11650_v56 = vunpack.i.l.bf16 %v11649_v48 }
 0xe6e   : > { %4184 = vmatpush.msra.mxu1 %v11651_v21  ;;  %4238 = vmatpush.msrb.mxu3 %v11650_v56  ;;  %v13673_v48 = vpop.permute.xlu1 %4283  ;;  %v13675_v21 = vpop.permute.xlu0 %4369 }
 0xe76   : > { %v13677_v56 = vpop.permute.xlu1 %4313 }
 0xe95   : > { %v3535_v12 = vpop.f32.mrf.mxu0 }
 0xe96   : > { %3699 = vst.msk [vmem:[#allocation2] sm:$0xff] %vm416_vm2, %v3535_v12  ;;  %v13679_v12 = vpop.permute.xlu0 %4397 }
 0xe9d   : > { %v3558_v11 = vpop.f32.mrf.mxu1 }
 0xe9e   : > { %3700 = vst.msk [vmem:[#allocation2 + $0x8] sm:$0xff] %vm416_vm2, %v3558_v11  ;;  %v13681_v11 = vpop.permute.xlu2 %4339 }
 0xeaf   : > { %v3581_v37 = vpop.f32.mrf.mxu2 }
 0xeb0   : > { %3701 = vst.msk [vmem:[#allocation2 + $0x10] sm:$0xff] %vm416_vm2, %v3581_v37 }
 0xeb8   : > { %v3604_v8 = vpop.f32.mrf.mxu3 }
 0xeb9   : > { %3702 = vst.msk [vmem:[#allocation2 + $0x18] sm:$0xff] %vm416_vm2, %v3604_v8  ;;  %v13683_v8 = vpop.permute.xlu1 %4451 }
 0xeba   : > { %v3627_v50 = vpop.f32.mrf.mxu0 }
 0xebb   : > { %3703 = vst.msk [vmem:[#allocation2 + $0x20] sm:$0xff] %vm416_vm2, %v3627_v50 }
 0xec2   : > { %v3650_v26 = vpop.f32.mrf.mxu1  ;;  %v3732_v40 = vpop.f32.mrf.mxu0 }
 0xec3   : > { %3704 = vst.msk [vmem:[#allocation2 + $0x28] sm:$0xff] %vm416_vm2, %v3650_v26  ;;  %v3931_v39 = vmul.f32 0.25, %v3732_v40  ;;  %v13685_v40 = vpop.permute.xlu2 %4453 }
 0xec5   : > { %v3939_v23 = vsel %vm318_vm0, %v3931_v39, -inf }
 0xec6   : > { %3940 = vmax.xlane.f32.xlu0 %v3939_v23 }
 0xeca   : > { %v3760_v49 = vpop.f32.mrf.mxu1 }
 0xecb   : > { %v3932_v60 = vmul.f32 0.25, %v3760_v49  ;;  %v3844_v47 = vpop.f32.mrf.mxu0 }
 0xecc   : > { %v3935_v61 = vmul.f32 0.25, %v3844_v47 }
 0xecd   : > { %v3942_v53 = vsel %vm318_vm0, %v3932_v60, -inf }
 0xece   : > { %3943 = vmax.xlane.f32.xlu0 %v3942_v53  ;;  %v3951_v30 = vsel %vm318_vm0, %v3935_v61, -inf }
 0xecf   : > { %3952 = vmax.xlane.f32.xlu1 %v3951_v30 }
 0xed0   : > { %v3673_v6 = vpop.f32.mrf.mxu2 }
 0xed1   : > { %3705 = vst.msk [vmem:[#allocation2 + $0x30] sm:$0xff] %vm416_vm2, %v3673_v6 }
 0xed3   : > { %v3872_v59 = vpop.f32.mrf.mxu1 }
 0xed4   : > { %v3936_v16 = vmul.f32 0.25, %v3872_v59 }
 0xed6   : > { %v3954_v7 = vsel %vm318_vm0, %v3936_v16, -inf }
 0xed7   : > { %3955 = vmax.xlane.f32.xlu0 %v3954_v7 }
 0xed8   : > { %v3696_v17 = vpop.f32.mrf.mxu3  ;;  %v3788_v29 = vpop.f32.mrf.mxu2 }
 0xed9   : > { %3706 = vst.msk [vmem:[#allocation2 + $0x38] sm:$0xff] %vm416_vm2, %v3696_v17  ;;  %v3933_v43 = vmul.f32 0.25, %v3788_v29  ;;  %v13691_v17 = vpop.permute.xlu2 %4367 }
 0xedb   : > { %v3945_v38 = vsel %vm318_vm0, %v3933_v43, -inf }
 0xedc   : > { %3946 = vmax.xlane.f32.xlu2 %v3945_v38 }
 0xee0   : > { %v3816_v62 = vpop.f32.mrf.mxu3  ;;  %v3900_v28 = vpop.f32.mrf.mxu2 }
 0xee1   : > { %v3934_v4 = vmul.f32 0.25, %v3816_v62  ;;  %v3937_v1 = vmul.f32 0.25, %v3900_v28 }
 0xee3   : > { %v3957_v45 = vsel %vm318_vm0, %v3937_v1, -inf  ;;  %v3948_v27 = vsel %vm318_vm0, %v3934_v4, -inf }
 0xee4   : > { %3958 = vmax.xlane.f32.xlu2 %v3957_v45  ;;  %3949 = vmax.xlane.f32.xlu1 %v3948_v27 }
 0xee8   : > { %v3928_v34 = vpop.f32.mrf.mxu3 }
 0xee9   : > { %v13659_v57 = vmul.f32 0.25, %v3928_v34 }
 0xeeb   : > { %4311 = vrot.lane.b32.xlu0 %v13377_v13, %s12453_s15  ;;  %v3960_v41 = vsel %vm318_vm0, %v13659_v57, -inf }
 0xeec   : > { %3961 = vmax.xlane.f32.xlu2 %v3960_v41 }
 0xefd   : > { %4481 = vrot.lane.b32.xlu1 %v13426_v14, %s12452_s14 }
 0xf04   : > { %4395 = vrot.lane.b32.xlu2 %v13403_v18, %s12453_s15 }
 0xf39   : > { %v3941_v37 = vpop.xlane.xlu0 %3940 }
 0xf3a   : > { %v3963_v50 = vsub.f32 %v3931_v39, %v3941_v37 }
 0xf3c   : > { %v3971_v26 = vmul.f32 1.442695, %v3963_v50 }
 0xf3e   : > { %11968 = vpow2.f32 %v3971_v26 }
 0xf41   : > { %v3944_v23 = vpop.xlane.xlu0 %3943 }
 0xf42   : > { %v3964_v49 = vsub.f32 %v3932_v60, %v3944_v23  ;;  %v3953_v47 = vpop.xlane.xlu1 %3952 }
 0xf43   : > { %v3967_v53 = vsub.f32 %v3935_v61, %v3953_v47 }
 0xf44   : > { %v13687_v30 = vpop.eup %11968  ;;  %v3973_v6 = vmul.f32 1.442695, %v3964_v49 }
 0xf45   : > { %v3979_v59 = vmul.f32 1.442695, %v3967_v53  ;;  %v3987_v7 = vsel %vm318_vm0, %v13687_v30, 0.0 }
 0xf46   : > { %11970 = vpow2.f32 %v3973_v6  ;;  %3988 = vadd.xlane.f32.xlu2 %v3987_v7 }
 0xf47   : > { %11972 = vpow2.f32 %v3979_v59 }
 0xf4a   : > { %v3956_v39 = vpop.xlane.xlu0 %3955 }
 0xf4b   : > { %v3968_v29 = vsub.f32 %v3936_v16, %v3956_v39 }
 0xf4c   : > { %v13693_v38 = vpop.eup %11970 }
 0xf4d   : > { %v13695_v62 = vpop.eup %11972  ;;  %v3981_v60 = vmul.f32 1.442695, %v3968_v29  ;;  %v3990_v61 = vsel %vm318_vm0, %v13693_v38, 0.0 }
 0xf4e   : > { %3991 = vadd.xlane.f32.xlu0 %v3990_v61  ;;  %v3999_v28 = vsel %vm318_vm0, %v13695_v62, 0.0  ;;  %v11652_v61 = vpack.i.bf16 %v13388_v58, %v13473_v32 }
 0xf4f   : > { %11974 = vpow2.f32 %v3981_v60  ;;  %4000 = vadd.xlane.f32.xlu1 %v3999_v28  ;;  %v3947_v45 = vpop.xlane.xlu2 %3946  ;;  %v11667_v28 = vpack.i.bf16 %v13429_v51, %v13410_v15 }
 0xf50   : > { %v3965_v27 = vsub.f32 %v3933_v43, %v3947_v45 }
 0xf52   : > { %v3975_v34 = vmul.f32 1.442695, %v3965_v27 }
 0xf54   : > { %11976 = vpow2.f32 %v3975_v34 }
 0xf55   : > { %v13701_v41 = vpop.eup %11974 }
 0xf56   : > { %v4002_v16 = vsel %vm318_vm0, %v13701_v41, 0.0 }
 0xf57   : > { %4003 = vadd.xlane.f32.xlu0 %v4002_v16  ;;  %v3959_v37 = vpop.xlane.xlu2 %3958  ;;  %v3950_v50 = vpop.xlane.xlu1 %3949 }
 0xf58   : > { %v3969_v26 = vsub.f32 %v3937_v1, %v3959_v37  ;;  %v3966_v23 = vsub.f32 %v3934_v4, %v3950_v50 }
 0xf5a   : > { %v11977_v49 = vpop.eup %11976  ;;  %v3983_v47 = vmul.f32 1.442695, %v3969_v26  ;;  %v3977_v53 = vmul.f32 1.442695, %v3966_v23 }
 0xf5b   : > { %v3993_v6 = vsel %vm318_vm0, %v11977_v49, 0.0 }
 0xf5c   : > { %11978 = vpow2.f32 %v3983_v47  ;;  %3994 = vadd.xlane.f32.xlu1 %v3993_v6 }
 0xf5d   : > { %11980 = vpow2.f32 %v3977_v53  ;;  %v4312_v45 = vpop.permute.xlu0 %4311 }
 0xf5e   : > { %4479 = vrot.lane.b32.xlu2 %v13426_v14, %s12453_s15 }
 0xf5f   : > { %v3962_v43 = vpop.xlane.xlu2 %3961 }
 0xf60   : > { %v3970_v59 = vsub.f32 %v13659_v57, %v3962_v43 }
 0xf62   : > { %v13709_v7 = vpop.eup %11978  ;;  %v3985_v39 = vmul.f32 1.442695, %v3970_v59 }
 0xf63   : > { %v11981_v29 = vpop.eup %11980  ;;  %v4005_v4 = vsel %vm318_vm0, %v13709_v7, 0.0 }
 0xf64   : > { %11982 = vpow2.f32 %v3985_v39  ;;  %4006 = vadd.xlane.f32.xlu1 %v4005_v4  ;;  %v3996_v1 = vsel %vm318_vm0, %v11981_v29, 0.0 }
 0xf65   : > { %3997 = vadd.xlane.f32.xlu0 %v3996_v1 }
 0xf66   : > { %4853 = vrot.lane.b32.xlu2 %v13369_v20, %s12454_s16 }
 0xf6a   : > { %v13716_v60 = vpop.eup %11982 }
 0xf6b   : > { %v4008_v57 = vsel %vm318_vm0, %v13716_v60, 0.0 }
 0xf6d   : > { %4009 = vadd.xlane.f32.xlu0 %v4008_v57 }
 0xf6f   : > { %v4482_v34 = vpop.permute.xlu1 %4481 }
 0xf7d   : > { %4423 = vrot.lane.b32.xlu1 %v13407_v52, %s12453_s15 }
 0xf81   : > { %4425 = vrot.lane.b32.xlu0 %v13407_v52, %s12452_s14 }
 0xf85   : > { %11658 = vrot.lane.b32.xlu1 %v13589_v24, %s12453_s15  ;;  %v4396_v24 = vpop.permute.xlu2 %4395 }
 0xf89   : > { %11653 = vrot.lane.b32.xlu0 %v11652_v61, %s12453_s15 }
 0xf8d   : > { %4909 = vrot.lane.b32.xlu1 %v13385_v54, %s12454_s16 }
 0xf91   : > { %11663 = vrot.lane.b32.xlu0 %v13548_v5, %s12453_s15 }
 0xf99   : > { %11668 = vrot.lane.b32.xlu0 %v11667_v28, %s12453_s15 }
 0xfa1   : > { %4851 = vrot.lane.b32.xlu0 %v13369_v20, %s12455_s17 }
 0xfb9   : > { %v3989_v27 = vpop.xlane.xlu2 %3988 }
 0xfba   : > { %11984 = vrcp.f32 %v3989_v27 }
 0xfc0   : > { %v11985_v16 = vpop.eup %11984 }
 0xfc1   : > { %v4019_v37 = vmul.f32 %v11985_v16, %v13687_v30  ;;  %v3992_v50 = vpop.xlane.xlu0 %3991  ;;  %v4480_v4 = vpop.permute.xlu2 %4479 }
 0xfc2   : > { %11986 = vrcp.f32 %v3992_v50  ;;  %v4001_v26 = vpop.xlane.xlu1 %4000 }
 0xfc3   : > { %11988 = vrcp.f32 %v4001_v26  ;;  %11187 = vmatmul.msk.f32.vlgmr.msrb.gmra.mxu0 %vm318_vm0, %v4019_v37 }
 0xfc4   : > { %11195 = vmatpush.xpose.msk.msrb.mxu0 %vm416_vm2, %v13669_v35 }
 0xfc8   : > { %v11987_v5 = vpop.eup %11986 }
 0xfc9   : > { %v11989_v23 = vpop.eup %11988  ;;  %v4020_v20 = vmul.f32 %v11987_v5, %v13693_v38 }
 0xfca   : > { %v4023_v47 = vmul.f32 %v11989_v23, %v13695_v62  ;;  %v4004_v53 = vpop.xlane.xlu0 %4003 }
 0xfcb   : > { %11990 = vrcp.f32 %v4004_v53  ;;  %11188 = vmatmul.msk.f32.vlgmr.msrb.gmra.mxu1 %vm318_vm0, %v4020_v20 }
 0xfcc   : > { %11191 = vmatmul.msk.f32.vlgmr.msra.gmra.mxu0 %vm318_vm0, %v4023_v47  ;;  %11197 = vmatpush.xpose.msk.msrb.mxu1 %vm416_vm2, %v13677_v56 }
 0xfcd   : > { %11203 = vmatpush.xpose.msk.msra.mxu0 %vm416_vm2, %v13679_v12 }
 0xfcf   : > { %v3995_v30 = vpop.xlane.xlu1 %3994 }
 0xfd0   : > { %11992 = vrcp.f32 %v3995_v30 }
 0xfd1   : > { %v11991_v35 = vpop.eup %11990 }
 0xfd2   : > { %v4024_v6 = vmul.f32 %v11991_v35, %v13701_v41 }
 0xfd4   : > { %11192 = vmatmul.msk.f32.vlgmr.msra.gmra.mxu1 %vm318_vm0, %v4024_v6  ;;  %11196 = vmatmul.msk.f32.vlgmr.msrb.gmra.mxu0 %vm416_vm2, %v13673_v48 }
 0xfd6   : > { %v11993_v38 = vpop.eup %11992 }
 0xfd7   : > { %v4021_v62 = vmul.f32 %v11993_v38, %v11977_v49  ;;  %v4007_v43 = vpop.xlane.xlu1 %4006 }
 0xfd8   : > { %v3998_v59 = vpop.xlane.xlu0 %3997  ;;  %11994 = vrcp.f32 %v4007_v43 }
 0xfd9   : > { %11996 = vrcp.f32 %v3998_v59  ;;  %11189 = vmatmul.msk.f32.vlgmr.msrb.gmra.mxu2 %vm318_vm0, %v4021_v62 }
 0xfda   : > { %11199 = vmatpush.xpose.msk.msrb.mxu2 %vm416_vm2, %v13671_v63 }
 0xfdc   : > { %11198 = vmatmul.msk.f32.vlgmr.msrb.gmra.mxu1 %vm416_vm2, %v4312_v45  ;;  %11204 = vmatmul.msk.f32.vlgmr.msra.gmra.mxu0 %vm416_vm2, %v4396_v24 }
 0xfde   : > { %v11995_v56 = vpop.eup %11994 }
 0xfdf   : > { %v11997_v12 = vpop.eup %11996  ;;  %v4025_v41 = vmul.f32 %v11995_v56, %v13709_v7 }
 0xfe0   : > { %v4022_v48 = vmul.f32 %v11997_v12, %v11981_v29  ;;  %v4010_v39 = vpop.xlane.xlu0 %4009 }
 0xfe1   : > { %11998 = vrcp.f32 %v4010_v39  ;;  %11193 = vmatmul.msk.f32.vlgmr.msra.gmra.mxu2 %vm318_vm0, %v4025_v41 }
 0xfe2   : > { %11190 = vmatmul.msk.f32.vlgmr.msra.gmra.mxu3 %vm318_vm0, %v4022_v48  ;;  %11207 = vmatpush.xpose.msk.msra.mxu2 %vm416_vm2, %v13685_v40 }
 0xfe3   : > { %11201 = vmatpush.xpose.msk.msra.mxu3 %vm416_vm2, %v13675_v21 }
 0xfe7   : > { %v11999_v63 = vpop.eup %11998 }
 0xfe8   : > { %v4026_v49 = vmul.f32 %v11999_v63, %v13716_v60 }
 0xfe9   : > { %11200 = vmatmul.msk.f32.vlgmr.msrb.gmra.mxu2 %vm416_vm2, %v13681_v11 }
 0xfea   : > { %11194 = vmatmul.msk.f32.vlgmr.msrb.gmra.mxu3 %vm318_vm0, %v4026_v49 }
 0xfeb   : > { %11209 = vmatpush.xpose.msk.msrb.mxu3 %vm416_vm2, %v4482_v34 }
 0xfef   : > { %v4424_v7 = vpop.permute.xlu1 %4423 }
 0xff1   : > { %11208 = vmatmul.msk.f32.vlgmr.msra.gmra.mxu2 %vm416_vm2, %v13683_v8 }
 0xff2   : > { %11202 = vmatmul.msk.f32.vlgmr.msra.gmra.mxu3 %vm416_vm2, %v13691_v17 }
 0xff3   : > { %v4426_v40 = vpop.permute.xlu0 %4425 }
 0xff4   : > { %11205 = vmatpush.xpose.msk.msra.mxu1 %vm416_vm2, %v4426_v40 }
 0xff7   : > { %11206 = vmatmul.msk.f32.vlgmr.msra.gmra.mxu1 %vm416_vm2, %v4424_v7  ;;  %v11659_v21 = vpop.permute.xlu1 %11658 }
 0xff8   : > { %v11660_v29 = vunpack.i.l.bf16 %v11659_v21  ;;  %v11661_v57 = vunpack.i.h.bf16 %v11659_v21 }
 0xffa   : > { %11210 = vmatmul.msk.f32.vlgmr.msrb.gmra.mxu3 %vm416_vm2, %v4480_v4  ;;  %4650 = vmatpush.msrb.mxu1 %v11660_v29 }
 0xffb   : > { %v11654_v11 = vpop.permute.xlu0 %11653 }
 0xffc   : > { %v11656_v1 = vunpack.i.h.bf16 %v11654_v11  ;;  %v11655_v60 = vunpack.i.l.bf16 %v11654_v11 }
 0xffe   : > { %4624 = vmatpush.msrb.mxu0 %v11655_v60  ;;  %4676 = vmatpush.msrb.mxu2 %v11656_v1 }
0x1000   : > { %4728 = vmatpush.msra.mxu0 %v11661_v57  ;;  %v13813_v57 = vpop.permute.xlu1 %4909 }
0x1003   : > { %v11664_v8 = vpop.permute.xlu0 %11663 }
0x1004   : > { %v11666_v17 = vunpack.i.h.bf16 %v11664_v8  ;;  %v11665_v61 = vunpack.i.l.bf16 %v11664_v8 }
0x1006   : > { %4702 = vmatpush.msra.mxu3 %v11665_v61  ;;  %4780 = vmatpush.msra.mxu2 %v11666_v17 }
0x100b   : > { %v11669_v28 = vpop.permute.xlu0 %11668 }
0x100c   : > { %v11671_v24 = vunpack.i.h.bf16 %v11669_v28  ;;  %v11670_v45 = vunpack.i.l.bf16 %v11669_v28 }
0x100e   : > { %4754 = vmatpush.msra.mxu1 %v11670_v45  ;;  %4806 = vmatpush.msrb.mxu3 %v11671_v24 }
0x1013   : > { %v13811_v60 = vpop.permute.xlu0 %4851 }
0x1040   : > { %v13778_v27 = vpop.f32.mrf.mxu0 }
0x1048   : > { %v13780_v34 = vpop.f32.mrf.mxu1 }
0x1049   : > { %v13782_v16 = vpop.f32.mrf.mxu0 }
0x1051   : > { %v13784_v37 = vpop.f32.mrf.mxu1  ;;  %v4308_v50 = vpop.f32.mrf.mxu0 }
0x1052   : > { %v4507_v26 = vmul.f32 0.25, %v4308_v50 }
0x1054   : > { %v4515_v5 = vsel %vm318_vm0, %v4507_v26, -inf }
0x1055   : > { %4516 = vmax.xlane.f32.xlu0 %v4515_v5 }
0x1059   : > { %v4336_v23 = vpop.f32.mrf.mxu1  ;;  %v4420_v20 = vpop.f32.mrf.mxu0 }
0x105a   : > { %v4508_v47 = vmul.f32 0.25, %v4336_v23  ;;  %v4511_v53 = vmul.f32 0.25, %v4420_v20 }
0x105c   : > { %v4518_v30 = vsel %vm318_vm0, %v4508_v47, -inf  ;;  %v4527_v35 = vsel %vm318_vm0, %v4511_v53, -inf  ;;  %v13789_v6 = vpop.f32.mrf.mxu2 }
0x105d   : > { %4519 = vmax.xlane.f32.xlu1 %v4518_v30  ;;  %4528 = vmax.xlane.f32.xlu0 %v4527_v35  ;;  %v4854_v30 = vpop.permute.xlu2 %4853 }
0x1064   : > { %v13791_v38 = vpop.f32.mrf.mxu2 }
0x1065   : > { %v13793_v62 = vpop.f32.mrf.mxu3 }
0x106c   : > { %v4364_v43 = vpop.f32.mrf.mxu2 }
0x106d   : > { %v13795_v59 = vpop.f32.mrf.mxu3  ;;  %v4509_v56 = vmul.f32 0.25, %v4364_v43 }
0x106f   : > { %v4521_v12 = vsel %vm318_vm0, %v4509_v56, -inf }
0x1070   : > { %4522 = vmax.xlane.f32.xlu2 %v4521_v12 }
0x1074   : > { %v4448_v41 = vpop.f32.mrf.mxu1  ;;  %v4476_v48 = vpop.f32.mrf.mxu2 }
0x1075   : > { %v4512_v39 = vmul.f32 0.25, %v4448_v41  ;;  %v4392_v63 = vpop.f32.mrf.mxu3  ;;  %v4513_v49 = vmul.f32 0.25, %v4476_v48 }
0x1076   : > { %v4510_v7 = vmul.f32 0.25, %v4392_v63 }
0x1077   : > { %v4530_v40 = vsel %vm318_vm0, %v4512_v39, -inf  ;;  %v4533_v21 = vsel %vm318_vm0, %v4513_v49, -inf }
0x1078   : > { %4531 = vmax.xlane.f32.xlu0 %v4530_v40  ;;  %v4524_v29 = vsel %vm318_vm0, %v4510_v7, -inf  ;;  %4534 = vmax.xlane.f32.xlu1 %v4533_v21 }
0x1079   : > { %4525 = vmax.xlane.f32.xlu2 %v4524_v29 }
0x107d   : > { %v4504_v4 = vpop.f32.mrf.mxu3 }
0x107e   : > { %v13807_v11 = vmul.f32 0.25, %v4504_v4 }
0x1080   : > { %v4536_v1 = vsel %vm318_vm0, %v13807_v11, -inf }
0x108c   : > { %4907 = vrot.lane.b32.xlu0 %v13385_v54, %s12455_s17 }
0x1091   : > { %4879 = vrot.lane.b32.xlu2 %v13377_v13, %s12455_s17  ;;  %4881 = vrot.lane.b32.xlu1 %v13377_v13, %s12454_s16 }
0x10ba   : > { %4537 = vmax.xlane.f32.xlu2 %v4536_v1 }
0x10c8   : > { %v4517_v8 = vpop.xlane.xlu0 %4516 }
0x10c9   : > { %v4539_v17 = vsub.f32 %v4507_v26, %v4517_v8 }
0x10cb   : > { %v4547_v54 = vmul.f32 1.442695, %v4539_v17 }
0x10cd   : > { %12000 = vpow2.f32 %v4547_v54 }
0x10d0   : > { %v4529_v61 = vpop.xlane.xlu0 %4528  ;;  %v4520_v28 = vpop.xlane.xlu1 %4519 }
0x10d1   : > { %v4543_v24 = vsub.f32 %v4511_v53, %v4529_v61  ;;  %v4540_v45 = vsub.f32 %v4508_v47, %v4520_v28 }
0x10d3   : > { %v12001_v13 = vpop.eup %12000  ;;  %v4555_v50 = vmul.f32 1.442695, %v4543_v24  ;;  %v4549_v5 = vmul.f32 1.442695, %v4540_v45 }
0x10d4   : > { %v4563_v23 = vsel %vm318_vm0, %v12001_v13, 0.0 }
0x10d5   : > { %12002 = vpow2.f32 %v4555_v50  ;;  %4564 = vadd.xlane.f32.xlu1 %v4563_v23 }
0x10d6   : > { %12004 = vpow2.f32 %v4549_v5 }
0x10db   : > { %v13816_v20 = vpop.eup %12002 }
0x10dc   : > { %v13818_v35 = vpop.eup %12004  ;;  %v4575_v26 = vsel %vm318_vm0, %v13816_v20, 0.0 }
0x10dd   : > { %4576 = vadd.xlane.f32.xlu1 %v4575_v26  ;;  %v4566_v47 = vsel %vm318_vm0, %v13818_v35, 0.0 }
0x10de   : > { %4567 = vadd.xlane.f32.xlu2 %v4566_v47 }
0x10e3   : > { %v4523_v53 = vpop.xlane.xlu2 %4522 }
0x10e4   : > { %v4541_v43 = vsub.f32 %v4509_v56, %v4523_v53 }
0x10e6   : > { %v4551_v12 = vmul.f32 1.442695, %v4541_v43 }
0x10e8   : > { %12006 = vpow2.f32 %v4551_v12 }
0x10eb   : > { %v4532_v41 = vpop.xlane.xlu0 %4531  ;;  %v4535_v48 = vpop.xlane.xlu1 %4534 }
0x10ec   : > { %v4544_v63 = vsub.f32 %v4512_v39, %v4532_v41  ;;  %v4526_v40 = vpop.xlane.xlu2 %4525  ;;  %v4545_v21 = vsub.f32 %v4513_v49, %v4535_v48 }
0x10ed   : > { %v4542_v1 = vsub.f32 %v4510_v7, %v4526_v40 }
0x10ee   : > { %v12007_v29 = vpop.eup %12006  ;;  %v4557_v4 = vmul.f32 1.442695, %v4544_v63  ;;  %v4559_v8 = vmul.f32 1.442695, %v4545_v21 }
0x10ef   : > { %v4569_v17 = vsel %vm318_vm0, %v12007_v29, 0.0  ;;  %v4553_v54 = vmul.f32 1.442695, %v4542_v1 }
0x10f0   : > { %12008 = vpow2.f32 %v4557_v4  ;;  %4570 = vadd.xlane.f32.xlu0 %v4569_v17 }
0x10f1   : > { %12010 = vpow2.f32 %v4559_v8 }
0x10f2   : > { %12012 = vpow2.f32 %v4553_v54 }
0x10f4   : > { %v4880_v7 = vpop.permute.xlu2 %4879 }
0x10f6   : > { %v12009_v61 = vpop.eup %12008 }
0x10f7   : > { %v4578_v56 = vsel %vm318_vm0, %v12009_v61, 0.0  ;;  %v12011_v28 = vpop.eup %12010 }
0x10f8   : > { %4579 = vadd.xlane.f32.xlu2 %v4578_v56  ;;  %v4581_v39 = vsel %vm318_vm0, %v12011_v28, 0.0  ;;  %v12013_v49 = vpop.eup %12012 }
0x10f9   : > { %4582 = vadd.xlane.f32.xlu1 %v4581_v39  ;;  %v4572_v24 = vsel %vm318_vm0, %v12013_v49, 0.0 }
0x1100   : > { %4573 = vadd.xlane.f32.xlu2 %v4572_v24 }
0x1103   : > { %v4882_v23 = vpop.permute.xlu1 %4881 }
0x1104   : > { %4937 = vrot.lane.b32.xlu0 %v13393_v44, %s12454_s16 }
0x110c   : > { %4963 = vrot.lane.b32.xlu0 %v13403_v18, %s12455_s17 }
0x1112   : > { %4935 = vrot.lane.b32.xlu1 %v13393_v44, %s12455_s17 }
0x1114   : > { %4993 = vrot.lane.b32.xlu0 %v13407_v52, %s12454_s16 }
0x1118   : > { %4965 = vrot.lane.b32.xlu2 %v13403_v18, %s12454_s16 }
0x111a   : > { %5021 = vrot.lane.b32.xlu1 %v13415_v19, %s12454_s16 }
0x111c   : > { %5047 = vrot.lane.b32.xlu0 %v13426_v14, %s12455_s17 }
0x1122   : > { %4991 = vrot.lane.b32.xlu1 %v13407_v52, %s12455_s17 }
0x112d   : > { %v4538_v45 = vpop.xlane.xlu2 %4537 }
0x112e   : > { %v4546_v50 = vsub.f32 %v13807_v11, %v4538_v45 }
0x1130   : > { %v4561_v44 = vmul.f32 1.442695, %v4546_v50 }
0x1132   : > { %12014 = vpow2.f32 %v4561_v44 }
0x1138   : > { %v13845_v5 = vpop.eup %12014 }
0x1139   : > { %v4584_v18 = vsel %vm318_vm0, %v13845_v5, 0.0 }
0x1141   : > { %4585 = vadd.xlane.f32.xlu2 %v4584_v18 }
0x1148   : > { %v4565_v26 = vpop.xlane.xlu1 %4564 }
0x1149   : > { %12016 = vrcp.f32 %v4565_v26 }
0x114f   : > { %v12017_v47 = vpop.eup %12016 }
0x1150   : > { %v4595_v53 = vmul.f32 %v12017_v47, %v12001_v13  ;;  %v4577_v43 = vpop.xlane.xlu1 %4576  ;;  %v4908_v13 = vpop.permute.xlu0 %4907 }
0x1151   : > { %v4568_v12 = vpop.xlane.xlu2 %4567  ;;  %12018 = vrcp.f32 %v4577_v43 }
0x1152   : > { %12020 = vrcp.f32 %v4568_v12  ;;  %11211 = vmatmul.msk.f32.vlgmr.msrb.gmra.mxu0 %vm318_vm0, %v4595_v53 }
0x1153   : > { %11219 = vmatpush.xpose.msk.msrb.mxu0 %vm416_vm2, %v4854_v30 }
0x1157   : > { %v12019_v52 = vpop.eup %12018 }
0x1158   : > { %v12021_v11 = vpop.eup %12020  ;;  %v4599_v41 = vmul.f32 %v12019_v52, %v13816_v20 }
0x1159   : > { %v4596_v48 = vmul.f32 %v12021_v11, %v13818_v35  ;;  %5019 = vrot.lane.b32.xlu2 %v13415_v19, %s12455_s17 }
0x115a   : > { %11215 = vmatmul.msk.f32.vlgmr.msra.gmra.mxu0 %vm318_vm0, %v4599_v41 }
0x115b   : > { %11212 = vmatmul.msk.f32.vlgmr.msrb.gmra.mxu1 %vm318_vm0, %v4596_v48 }
0x115c   : > { %11221 = vmatpush.xpose.msk.msrb.mxu1 %vm416_vm2, %v4882_v23 }
0x1161   : > { %5049 = vrot.lane.b32.xlu2 %v13426_v14, %s12454_s16 }
0x1162   : > { %11220 = vmatmul.msk.f32.vlgmr.msrb.gmra.mxu0 %vm416_vm2, %v13811_v60 }
0x1163   : > { %v4571_v30 = vpop.xlane.xlu0 %4570 }
0x1164   : > { %12022 = vrcp.f32 %v4571_v30 }
0x116a   : > { %v12023_v20 = vpop.eup %12022 }
0x116b   : > { %v4597_v35 = vmul.f32 %v12023_v20, %v12007_v29  ;;  %v4580_v63 = vpop.xlane.xlu2 %4579 }
0x116c   : > { %12024 = vrcp.f32 %v4580_v63  ;;  %v4583_v19 = vpop.xlane.xlu1 %4582 }
0x116d   : > { %11213 = vmatmul.msk.f32.vlgmr.msrb.gmra.mxu2 %vm318_vm0, %v4597_v35  ;;  %12026 = vrcp.f32 %v4583_v19 }
0x116e   : > { %11223 = vmatpush.xpose.msk.msrb.mxu2 %vm416_vm2, %v13813_v57 }
0x1172   : > { %v12025_v40 = vpop.eup %12024 }
0x1173   : > { %v4600_v21 = vmul.f32 %v12025_v40, %v12009_v61  ;;  %v4574_v4 = vpop.xlane.xlu2 %4573  ;;  %v12027_v14 = vpop.eup %12026 }
0x1174   : > { %12028 = vrcp.f32 %v4574_v4  ;;  %v4601_v1 = vmul.f32 %v12027_v14, %v12011_v28 }
0x1175   : > { %11216 = vmatmul.msk.f32.vlgmr.msra.gmra.mxu1 %vm318_vm0, %v4600_v21 }
0x1176   : > { %v4938_v60 = vpop.permute.xlu0 %4937  ;;  %11217 = vmatmul.msk.f32.vlgmr.msra.gmra.mxu2 %vm318_vm0, %v4601_v1 }
0x117a   : > { %v12029_v29 = vpop.eup %12028 }
0x117b   : > { %v4598_v8 = vmul.f32 %v12029_v29, %v12013_v49  ;;  %v4966_v17 = vpop.permute.xlu2 %4965 }
0x117c   : > { %11227 = vmatpush.xpose.msk.msra.mxu0 %vm416_vm2, %v4966_v17 }
0x117d   : > { %11214 = vmatmul.msk.f32.vlgmr.msra.gmra.mxu3 %vm318_vm0, %v4598_v8  ;;  %11222 = vmatmul.msk.f32.vlgmr.msrb.gmra.mxu1 %vm416_vm2, %v4880_v7 }
0x117e   : > { %11225 = vmatpush.xpose.msk.msra.mxu3 %vm416_vm2, %v4938_v60  ;;  %v4964_v57 = vpop.permute.xlu0 %4963  ;;  %11224 = vmatmul.msk.f32.vlgmr.msrb.gmra.mxu2 %vm416_vm2, %v4908_v13 }
0x117f   : > { %11228 = vmatmul.msk.f32.vlgmr.msra.gmra.mxu0 %vm416_vm2, %v4964_v57 }
0x1184   : > { %v4936_v54 = vpop.permute.xlu1 %4935 }
0x1186   : > { %v4994_v61 = vpop.permute.xlu0 %4993 }
0x1187   : > { %11229 = vmatpush.xpose.msk.msra.mxu1 %vm416_vm2, %v4994_v61 }
0x118c   : > { %v5022_v56 = vpop.permute.xlu1 %5021 }
0x118d   : > { %11231 = vmatpush.xpose.msk.msra.mxu2 %vm416_vm2, %v5022_v56 }
0x118e   : > { %v5048_v50 = vpop.permute.xlu0 %5047 }
0x1194   : > { %v4992_v28 = vpop.permute.xlu1 %4991 }
0x1195   : > { %11230 = vmatmul.msk.f32.vlgmr.msra.gmra.mxu1 %vm416_vm2, %v4992_v28 }
0x11b4   : > { %v4586_v39 = vpop.xlane.xlu2 %4585 }
0x11b5   : > { %12030 = vrcp.f32 %v4586_v39 }
0x11bb   : > { %v12031_v49 = vpop.eup %12030 }
0x11bc   : > { %v4602_v24 = vmul.f32 %v12031_v49, %v13845_v5  ;;  %v5020_v7 = vpop.permute.xlu2 %5019 }
0x11bd   : > { %11232 = vmatmul.msk.f32.vlgmr.msra.gmra.mxu2 %vm416_vm2, %v5020_v7 }
0x11be   : > { %11218 = vmatmul.msk.f32.vlgmr.msrb.gmra.mxu3 %vm318_vm0, %v4602_v24 }
0x11c4   : > { %v5050_v45 = vpop.permute.xlu2 %5049 }
0x11c5   : > { %11233 = vmatpush.xpose.msk.msrb.mxu3 %vm416_vm2, %v5050_v45  ;;  %v11672_v45 = vpack.i.bf16 %v13380_v2, %v13473_v32 }
0x11c6   : > { %11226 = vmatmul.msk.f32.vlgmr.msra.gmra.mxu3 %vm416_vm2, %v4936_v54 }
0x11ce   : > { %11234 = vmatmul.msk.f32.vlgmr.msrb.gmra.mxu3 %vm416_vm2, %v5048_v50 }
0x11cf   : > { %v13882_v44 = vpop.f32.mrf.mxu0 }
0x11d7   : > { %v13884_v23 = vpop.f32.mrf.mxu0 }
0x11d8   : > { %v13887_v47 = vpop.f32.mrf.mxu1 }
0x11df   : > { %v4876_v18 = vpop.f32.mrf.mxu0 }
0x11e0   : > { %v5075_v26 = vmul.f32 0.25, %v4876_v18 }
0x11e2   : > { %v5083_v5 = vsel %vm318_vm0, %v5075_v26, -inf }
0x11e3   : > { %5084 = vmax.xlane.f32.xlu1 %v5083_v5 }
0x11f0   : > { %v13889_v53 = vpop.f32.mrf.mxu2 }
0x11f2   : > { %v13891_v43 = vpop.f32.mrf.mxu1 }
0x11f9   : > { %v13893_v12 = vpop.f32.mrf.mxu2 }
0x11fa   : > { %v4904_v52 = vpop.f32.mrf.mxu1 }
0x11fb   : > { %v5076_v11 = vmul.f32 0.25, %v4904_v52 }
0x11fc   : > { %v4988_v41 = vpop.f32.mrf.mxu0 }
0x11fd   : > { %v5079_v48 = vmul.f32 0.25, %v4988_v41  ;;  %v5086_v13 = vsel %vm318_vm0, %v5076_v11, -inf }
0x11fe   : > { %5087 = vmax.xlane.f32.xlu2 %v5086_v13 }
0x11ff   : > { %v5095_v30 = vsel %vm318_vm0, %v5079_v48, -inf }
0x1200   : > { %5096 = vmax.xlane.f32.xlu1 %v5095_v30  ;;  %v13899_v4 = vpop.f32.mrf.mxu3 }
0x1201   : > { %v4932_v20 = vpop.f32.mrf.mxu2 }
0x1202   : > { %v5077_v35 = vmul.f32 0.25, %v4932_v20 }
0x1204   : > { %v5089_v63 = vsel %vm318_vm0, %v5077_v35, -inf }
0x1205   : > { %5090 = vmax.xlane.f32.xlu0 %v5089_v63 }
0x1212   : > { %v5016_v19 = vpop.f32.mrf.mxu1 }
0x1213   : > { %v5080_v40 = vmul.f32 0.25, %v5016_v19 }
0x1215   : > { %v5098_v21 = vsel %vm318_vm0, %v5080_v40, -inf }
0x1216   : > { %5099 = vmax.xlane.f32.xlu0 %v5098_v21 }
0x1240   : > { %v5044_v8 = vpop.f32.mrf.mxu2 }
0x1241   : > { %v13901_v14 = vpop.f32.mrf.mxu3  ;;  %v5081_v17 = vmul.f32 0.25, %v5044_v8 }
0x1243   : > { %v5101_v56 = vsel %vm318_vm0, %v5081_v17, -inf }
0x1249   : > { %v4960_v1 = vpop.f32.mrf.mxu3 }
0x124a   : > { %v5078_v60 = vmul.f32 0.25, %v4960_v1 }
0x124c   : > { %v5092_v29 = vsel %vm318_vm0, %v5078_v60, -inf }
0x124d   : > { %5093 = vmax.xlane.f32.xlu2 %v5092_v29 }
0x1251   : > { %v5072_v57 = vpop.f32.mrf.mxu3 }
0x1252   : > { %v5082_v54 = vmul.f32 0.25, %v5072_v57 }
0x1254   : > { %v5104_v61 = vsel %vm318_vm0, %v5082_v54, -inf }
0x1255   : > { %5105 = vmax.xlane.f32.xlu1 %v5104_v61  ;;  %5102 = vmax.xlane.f32.xlu2 %v5101_v56 }
0x1256   : > { %v5085_v28 = vpop.xlane.xlu1 %5084 }
0x1257   : > { %v5107_v39 = vsub.f32 %v5075_v26, %v5085_v28  ;;  %v11682_v26 = vpack.i.bf16 %v13410_v15, %v13479_v33 }
0x1259   : > { %v5115_v49 = vmul.f32 1.442695, %v5107_v39 }
0x125b   : > { %12032 = vpow2.f32 %v5115_v49 }
0x1261   : > { %v13906_v24 = vpop.eup %12032 }
0x1262   : > { %v5131_v7 = vsel %vm318_vm0, %v13906_v24, 0.0 }
0x1263   : > { %5132 = vadd.xlane.f32.xlu0 %v5131_v7 }
0x126e   : > { %11673 = vrot.lane.b32.xlu1 %v11672_v45, %s12455_s17 }
0x1271   : > { %v5088_v50 = vpop.xlane.xlu2 %5087 }
0x1272   : > { %v5108_v18 = vsub.f32 %v5076_v11, %v5088_v50 }
0x1273   : > { %v5097_v5 = vpop.xlane.xlu1 %5096 }
0x1274   : > { %v5117_v52 = vmul.f32 1.442695, %v5108_v18  ;;  %v5111_v41 = vsub.f32 %v5079_v48, %v5097_v5 }
0x1276   : > { %12034 = vpow2.f32 %v5117_v52  ;;  %11683 = vrot.lane.b32.xlu1 %v11682_v26, %s12455_s17  ;;  %v5123_v13 = vmul.f32 1.442695, %v5111_v41 }
0x1278   : > { %v5091_v30 = vpop.xlane.xlu0 %5090  ;;  %12036 = vpow2.f32 %v5123_v13 }
0x1279   : > { %v5109_v20 = vsub.f32 %v5077_v35, %v5091_v30 }
0x127b   : > { %v5119_v19 = vmul.f32 1.442695, %v5109_v20 }
0x127c   : > { %v13916_v63 = vpop.eup %12034 }
0x127d   : > { %v5134_v2 = vsel %vm318_vm0, %v13916_v63, 0.0  ;;  %12038 = vpow2.f32 %v5119_v19 }
0x127e   : > { %5327 = vrot.lane.b32.xlu1 %v13418_v46, %s12455_s17  ;;  %5135 = vadd.xlane.f32.xlu2 %v5134_v2  ;;  %v13922_v15 = vpop.eup %12036 }
0x127f   : > { %v5143_v11 = vsel %vm318_vm0, %v13922_v15, 0.0 }
0x1283   : > { %v13924_v32 = vpop.eup %12038 }
0x1284   : > { %v5137_v33 = vsel %vm318_vm0, %v13924_v32, 0.0 }
0x1285   : > { %5138 = vadd.xlane.f32.xlu0 %v5137_v33 }
0x1286   : > { %4251 = vrot.lane.b32.xlu1 %v13778_v27, %s12454_s16  ;;  %5144 = vadd.xlane.f32.xlu2 %v5143_v11 }
0x1289   : > { %v5100_v48 = vpop.xlane.xlu0 %5099 }
0x128a   : > { %v5112_v35 = vsub.f32 %v5080_v40, %v5100_v48 }
0x128c   : > { %v5125_v21 = vmul.f32 1.442695, %v5112_v35 }
0x128e   : > { %4819 = vrot.lane.b32.xlu1 %v13882_v44, %s12452_s14  ;;  %12040 = vpow2.f32 %v5125_v21 }
0x1294   : > { %v13934_v46 = vpop.eup %12040 }
0x1295   : > { %v5146_v1 = vsel %vm318_vm0, %v13934_v46, 0.0 }
0x1296   : > { %4821 = vrot.lane.b32.xlu1 %v13887_v47, %s12452_s14  ;;  %5147 = vadd.xlane.f32.xlu2 %v5146_v1 }
0x1299   : > { %11678 = vrot.lane.b32.xlu0 %v11677_v22, %s12455_s17 }
0x12c0   : > { %v5094_v27 = vpop.xlane.xlu2 %5093 }
0x12c1   : > { %v5110_v40 = vsub.f32 %v5078_v60, %v5094_v27 }
0x12c3   : > { %v5121_v29 = vmul.f32 1.442695, %v5110_v40 }
0x12c5   : > { %12042 = vpow2.f32 %v5121_v29 }
0x12c8   : > { %v5106_v44 = vpop.xlane.xlu1 %5105  ;;  %v5103_v8 = vpop.xlane.xlu2 %5102 }
0x12c9   : > { %v5114_v57 = vsub.f32 %v5082_v54, %v5106_v44  ;;  %v5113_v61 = vsub.f32 %v5081_v17, %v5103_v8 }
0x12cb   : > { %v13944_v56 = vpop.eup %12042  ;;  %v5129_v47 = vmul.f32 1.442695, %v5114_v57  ;;  %v5127_v28 = vmul.f32 1.442695, %v5113_v61 }
0x12cc   : > { %v5140_v39 = vsel %vm318_vm0, %v13944_v56, 0.0 }
0x12cd   : > { %12044 = vpow2.f32 %v5129_v47  ;;  %5141 = vadd.xlane.f32.xlu2 %v5140_v39 }
0x12ce   : > { %12046 = vpow2.f32 %v5127_v28 }
0x12d3   : > { %v13948_v58 = vpop.eup %12044 }
0x12d4   : > { %v13950_v0 = vpop.eup %12046  ;;  %v5152_v22 = vsel %vm318_vm0, %v13948_v58, 0.0 }
0x12d5   : > { %5153 = vadd.xlane.f32.xlu0 %v5152_v22  ;;  %v5149_v60 = vsel %vm318_vm0, %v13950_v0, 0.0  ;;  %v5433_v22 = vld [vmem:[#allocation7 + $0x68] sm:$0xff] }
0x12d6   : > { %5150 = vadd.xlane.f32.xlu2 %v5149_v60  ;;  %v5133_v17 = vpop.xlane.xlu0 %5132  ;;  %v5432_v60 = vld [vmem:[#allocation7 + $0x60] sm:$0xff] }
0x12d7   : > { %12048 = vrcp.f32 %v5133_v17  ;;  %v5431_v17 = vld [vmem:[#allocation7 + $0x58] sm:$0xff] }
0x12dd   : > { %v12049_v54 = vpop.eup %12048 }
0x12de   : > { %v5163_v50 = vmul.f32 %v12049_v54, %v13906_v24  ;;  %v5430_v54 = vld [vmem:[#allocation7 + $0x50] sm:$0xff] }
0x12e0   : > { %v11674_v49 = vpop.permute.xlu1 %11673 }
0x12e1   : > { %v11676_v7 = vunpack.i.h.bf16 %v11674_v49  ;;  %v11675_v45 = vunpack.i.l.bf16 %v11674_v49 }
0x12e3   : > { %5192 = vmatpush.msrb.mxu0 %v11675_v45  ;;  %5218 = vmatpush.msrb.mxu1 %v11676_v7 }
0x12e4   : > { %11235 = vmatmul.msk.f32.vlgmr.msrb.gmra.mxu0 %vm318_vm0, %v5163_v50 }
0x12e8   : > { %v11684_v18 = vpop.permute.xlu1 %11683 }
0x12e9   : > { %v11686_v5 = vunpack.i.h.bf16 %v11684_v18  ;;  %v11685_v52 = vunpack.i.l.bf16 %v11684_v18  ;;  %4823 = vrot.lane.b32.xlu0 %v13889_v53, %s12452_s14 }
0x12eb   : > { %5296 = vmatpush.msra.mxu0 %v11685_v52  ;;  %5322 = vmatpush.msra.mxu1 %v11686_v5 }
0x12ee   : > { %5353 = vrot.lane.b32.xlu2 %v13429_v51, %s12455_s17 }
0x12f0   : > { %v5328_v26 = vpop.permute.xlu1 %5327 }
0x12f1   : > { %v5136_v41 = vpop.xlane.xlu2 %5135  ;;  %4259 = vrot.lane.b32.xlu0 %v13782_v16, %s12454_s16 }
0x12f2   : > { %12050 = vrcp.f32 %v5136_v41 }
0x12f6   : > { %4253 = vrot.lane.b32.xlu2 %v13780_v34, %s12454_s16 }
0x12f8   : > { %v12051_v24 = vpop.eup %12050  ;;  %v4252_v13 = vpop.permute.xlu1 %4251 }
0x12f9   : > { %v5164_v30 = vmul.f32 %v12051_v24, %v13916_v63  ;;  %4275 = vst.msk [vmem:[#allocation2] sm:$0xff] %vm1807_vm15, %v4252_v13  ;;  %4261 = vrot.lane.b32.xlu0 %v13784_v37, %s12454_s16  ;;  %v5145_v53 = vpop.xlane.xlu2 %5144  ;;  %v5139_v34 = vpop.xlane.xlu0 %5138 }
0x12fa   : > { %12052 = vrcp.f32 %v5145_v53 }
0x12fb   : > { %11236 = vmatmul.msk.f32.vlgmr.msrb.gmra.mxu1 %vm318_vm0, %v5164_v30  ;;  %12054 = vrcp.f32 %v5139_v34 }
0x1300   : > { %v4820_v51 = vpop.permute.xlu1 %4819  ;;  %v12053_v20 = vpop.eup %12052 }
0x1301   : > { %4843 = vst.msk [vmem:[#allocation2] sm:$0xff] %vm2376_vm1, %v4820_v51  ;;  %4263 = vrot.lane.b32.xlu0 %v13791_v38, %s12454_s16  ;;  %v5167_v16 = vmul.f32 %v12053_v20, %v13922_v15  ;;  %v12055_v63 = vpop.eup %12054 }
0x1302   : > { %v5165_v11 = vmul.f32 %v12055_v63, %v13924_v32  ;;  %v5552_v63 = vld [vmem:[#allocation5 + $0x160] sm:$0xff] }
0x1303   : > { %11239 = vmatmul.msk.f32.vlgmr.msra.gmra.mxu0 %vm318_vm0, %v5167_v16  ;;  %v5554_v16 = vld [vmem:[#allocation5 + $0x170] sm:$0xff] }
0x1304   : > { %5595 = vmatpush.msrb.mxu1 %v5554_v16 }
0x1306   : > { %5596 = vmatpush.msrb.mxu1 %v5552_v63 }
0x1308   : > { %v4822_v8 = vpop.permute.xlu1 %4821 }
0x1309   : > { %4265 = vrot.lane.b32.xlu0 %v13795_v59, %s12454_s16  ;;  %v5148_v37 = vpop.xlane.xlu2 %5147 }
0x130a   : > { %12056 = vrcp.f32 %v5148_v37  ;;  %v5555_v37 = vld [vmem:[#allocation5 + $0x178] sm:$0xff] }
0x130b   : > { %v11679_v19 = vpop.permute.xlu0 %11678 }
0x130c   : > { %v11681_v2 = vunpack.i.h.bf16 %v11679_v19  ;;  %v11680_v33 = vunpack.i.l.bf16 %v11679_v19  ;;  %v5553_v19 = vld [vmem:[#allocation5 + $0x168] sm:$0xff] }
0x130e   : > { %5244 = vmatpush.msrb.mxu2 %v11680_v33  ;;  %5270 = vmatpush.msra.mxu3 %v11681_v2  ;;  %v5550_v2 = vld [vmem:[#allocation5 + $0x150] sm:$0xff]  ;;  %v5551_v33 = vld [vmem:[#allocation5 + $0x158] sm:$0xff] }
0x130f   : > { %11237 = vmatmul.msk.f32.vlgmr.msrb.gmra.mxu2 %vm318_vm0, %v5165_v11  ;;  %5597 = vmatpush.msrb.mxu1 %v5550_v2  ;;  %v5548_v11 = vld [vmem:[#allocation5 + $0x140] sm:$0xff] }
0x1310   : > { %v12057_v38 = vpop.eup %12056  ;;  %5348 = vmatpush.msra.mxu2 %v5328_v26 }
0x1311   : > { %v5168_v15 = vmul.f32 %v12057_v38, %v13934_v46  ;;  %v5549_v38 = vld [vmem:[#allocation5 + $0x148] sm:$0xff]  ;;  %5598 = vmatpush.msrb.mxu1 %v5548_v11 }
0x1312   : > { %5636 = vmatpush.msrb.mxu2 %v5555_v37 }
0x1313   : > { %11240 = vmatmul.msk.f32.vlgmr.msra.gmra.mxu1 %vm318_vm0, %v5168_v15  ;;  %v5546_v15 = vld [vmem:[#allocation5 + $0x130] sm:$0xff] }
0x1314   : > { %5637 = vmatpush.msrb.mxu2 %v5553_v19  ;;  %5599 = vmatpush.msrb.mxu1 %v5546_v15 }
0x1316   : > { %5638 = vmatpush.msrb.mxu2 %v5551_v33 }
0x1318   : > { %5639 = vmatpush.msrb.mxu2 %v5549_v38 }
0x1340   : > { %v5142_v48 = vpop.xlane.xlu2 %5141 }
0x1341   : > { %12058 = vrcp.f32 %v5142_v48  ;;  %v5547_v48 = vld [vmem:[#allocation5 + $0x138] sm:$0xff] }
0x1342   : > { %5640 = vmatpush.msrb.mxu2 %v5547_v48 }
0x1347   : > { %v12059_v59 = vpop.eup %12058 }
0x1348   : > { %v5166_v35 = vmul.f32 %v12059_v59, %v13944_v56  ;;  %v5154_v21 = vpop.xlane.xlu0 %5153  ;;  %v5544_v59 = vld [vmem:[#allocation5 + $0x120] sm:$0xff] }
0x1349   : > { %v5151_v1 = vpop.xlane.xlu2 %5150  ;;  %12060 = vrcp.f32 %v5154_v21  ;;  %v5542_v21 = vld [vmem:[#allocation5 + $0x110] sm:$0xff]  ;;  %5600 = vmatpush.msrb.mxu1 %v5544_v59 }
0x134a   : > { %12062 = vrcp.f32 %v5151_v1  ;;  %11238 = vmatmul.msk.f32.vlgmr.msra.gmra.mxu3 %vm318_vm0, %v5166_v35  ;;  %v5545_v35 = vld [vmem:[#allocation5 + $0x128] sm:$0xff]  ;;  %v5543_v1 = vld [vmem:[#allocation5 + $0x118] sm:$0xff] }
0x134b   : > { %5641 = vmatpush.msrb.mxu2 %v5545_v35  ;;  %5601 = vmatpush.msrb.mxu1 %v5542_v21 }
0x134d   : > { %5642 = vmatpush.msrb.mxu2 %v5543_v1 }
0x134f   : > { %v12061_v32 = vpop.eup %12060 }
0x1350   : > { %v12063_v27 = vpop.eup %12062  ;;  %v5170_v40 = vmul.f32 %v12061_v32, %v13948_v58 }
0x1351   : > { %v5169_v29 = vmul.f32 %v12063_v27, %v13950_v0  ;;  %v5354_v46 = vpop.permute.xlu2 %5353  ;;  %v5540_v27 = vld [vmem:[#allocation5 + $0x100] sm:$0xff] }
0x1352   : > { %5374 = vmatpush.msrb.mxu3 %v5354_v46  ;;  %5602 = vmatpush.msrb.mxu1 %v5540_v27 }
0x1353   : > { %11241 = vmatmul.msk.f32.vlgmr.msra.gmra.mxu2 %vm318_vm0, %v5169_v29  ;;  %11242 = vmatmul.msk.f32.vlgmr.msrb.gmra.mxu3 %vm318_vm0, %v5170_v40  ;;  %v5541_v40 = vld [vmem:[#allocation5 + $0x108] sm:$0xff] }
0x1354   : > { %5643 = vmatpush.msrb.mxu2 %v5541_v40 }
0x1359   : > { %v4254_v44 = vpop.permute.xlu2 %4253 }
0x135a   : > { %4276 = vst.msk [vmem:[#allocation2 + $0x8] sm:$0xff] %vm1807_vm15, %v4254_v44 }
0x135b   : > { %4844 = vst.msk [vmem:[#allocation2 + $0x8] sm:$0xff] %vm2376_vm1, %v4822_v8  ;;  %v4824_v57 = vpop.permute.xlu0 %4823 }
0x1361   : > { %v5194_v61 = vpop.f32.mrf.mxu0 }
0x1362   : > { %5387 = vrot.lane.b32.xlu1 %v5194_v61, %s12450_s12 }
0x1363   : > { %v4260_v56 = vpop.permute.xlu0 %4259 }
0x1364   : > { %4279 = vst.msk [vmem:[#allocation2 + $0x20] sm:$0xff] %vm1807_vm15, %v4260_v56 }
0x136a   : > { %4255 = vrot.lane.b32.xlu1 %v13789_v6, %s12454_s16  ;;  %v5435_v6 = vld [vmem:[#allocation7 + $0x78] sm:$0xff] }
0x136b   : > { %v4262_v47 = vpop.permute.xlu0 %4261  ;;  %5474 = vmatpush.msrb.mxu0 %v5435_v6 }
0x136c   : > { %4280 = vst.msk [vmem:[#allocation2 + $0x28] sm:$0xff] %vm1807_vm15, %v4262_v47 }
0x1372   : > { %4257 = vrot.lane.b32.xlu1 %v13793_v62, %s12454_s16  ;;  %v5434_v62 = vld [vmem:[#allocation7 + $0x70] sm:$0xff] }
0x1373   : > { %v4264_v28 = vpop.permute.xlu0 %4263  ;;  %5475 = vmatpush.msrb.mxu0 %v5434_v62 }
0x1374   : > { %4281 = vst.msk [vmem:[#allocation2 + $0x30] sm:$0xff] %vm1807_vm15, %v4264_v28 }
0x1375   : > { %5476 = vmatpush.msrb.mxu0 %v5433_v22 }
0x1377   : > { %5477 = vmatpush.msrb.mxu0 %v5432_v60 }
0x1378   : > { %v5220_v39 = vpop.f32.mrf.mxu1 }
0x1379   : > { %5389 = vrot.lane.b32.xlu2 %v5220_v39, %s12450_s12  ;;  %5478 = vmatpush.msrb.mxu0 %v5431_v17 }
0x137b   : > { %v4266_v58 = vpop.permute.xlu0 %4265  ;;  %5479 = vmatpush.msrb.mxu0 %v5430_v54 }
0x137c   : > { %4282 = vst.msk [vmem:[#allocation2 + $0x38] sm:$0xff] %vm1807_vm15, %v4266_v58 }
0x1380   : > { %v5298_v45 = vpop.f32.mrf.mxu0 }
0x1390   : > { %v5324_v18 = vpop.f32.mrf.mxu1 }
0x1392   : > { %v5246_v0 = vpop.f32.mrf.mxu2 }
0x1393   : > { %5391 = vrot.lane.b32.xlu2 %v5246_v0, %s12450_s12 }
0x139b   : > { %4825 = vrot.lane.b32.xlu2 %v13899_v4, %s12452_s14  ;;  %v5429_v4 = vld [vmem:[#allocation7 + $0x48] sm:$0xff] }
0x139c   : > { %5480 = vmatpush.msrb.mxu0 %v5429_v4 }
0x13a3   : > { %4827 = vrot.lane.b32.xlu2 %v13884_v23, %s12452_s14  ;;  %v5428_v23 = vld [vmem:[#allocation7 + $0x40] sm:$0xff] }
0x13a4   : > { %5481 = vmatpush.msrb.mxu0 %v5428_v23 }
0x13ab   : > { %4829 = vrot.lane.b32.xlu2 %v13891_v43, %s12452_s14  ;;  %v11801_v43 = vld [vmem:[%s15595_s5 + $0x3] ss:$0 sm:$0xff] }
0x13ac   : > { %5439 = vrot.lane.b32.xlu0 %v11801_v43, %s12449_s11 }
0x13b3   : > { %4831 = vrot.lane.b32.xlu2 %v13893_v12, %s12452_s14 }
0x13bb   : > { %4833 = vrot.lane.b32.xlu2 %v13901_v14, %s12452_s14 }
0x13cd   : > { %v5272_v12 = vpop.f32.mrf.mxu3 }
0x13ce   : > { %5393 = vrot.lane.b32.xlu1 %v5272_v12, %s12450_s12 }
0x13d3   : > { %v5390_v49 = vpop.permute.xlu2 %5389 }
0x13d4   : > { %5412 = vst.msk [vmem:[#allocation2 + $0x8] sm:$0xff] %vm2945_vm3, %v5390_v49  ;;  %v5388_v7 = vpop.permute.xlu1 %5387 }
0x13d5   : > { %5411 = vst.msk [vmem:[#allocation2] sm:$0xff] %vm2945_vm3, %v5388_v7 }
0x13d6   : > { %5395 = vrot.lane.b32.xlu1 %v5298_v45, %s12450_s12  ;;  %v5350_v26 = vpop.f32.mrf.mxu2  ;;  %v5376_v41 = vpop.f32.mrf.mxu3 }
0x13db   : > { %v5420_v52 = vld [vmem:[#allocation2 + $0x8] sm:$0xff] }
0x13dc   : > { %v4256_v14 = vpop.permute.xlu1 %4255  ;;  %v5419_v50 = vld [vmem:[#allocation2] sm:$0xff] }
0x13dd   : > { %4277 = vst.msk [vmem:[#allocation2 + $0x10] sm:$0xff] %vm1807_vm15, %v4256_v14  ;;  %11244 = vmatmul.msk.f32.vlgmr.msrb.gmra.mxu0 %vm628_vm6, %v5419_v50 }
0x13de   : > { %4845 = vst.msk [vmem:[#allocation2 + $0x10] sm:$0xff] %vm2376_vm1, %v4824_v57  ;;  %5397 = vrot.lane.b32.xlu1 %v5324_v18, %s12450_s12 }
0x13e4   : > { %v4258_v5 = vpop.permute.xlu1 %4257 }
0x13e5   : > { %4278 = vst.msk [vmem:[#allocation2 + $0x18] sm:$0xff] %vm1807_vm15, %v4258_v5  ;;  %11245 = vmatmul.msk.f32.gmra.mxu0 %vm628_vm6, %v5420_v52 }
0x13e6   : > { %5399 = vrot.lane.b32.xlu1 %v5350_v26, %s12450_s12 }
0x13ed   : > { %v5392_v24 = vpop.permute.xlu2 %5391 }
0x13ee   : > { %5401 = vrot.lane.b32.xlu1 %v5376_v41, %s12450_s12  ;;  %5413 = vst.msk [vmem:[#allocation2 + $0x10] sm:$0xff] %vm2945_vm3, %v5392_v24 }
0x13f5   : > { %v4826_v13 = vpop.permute.xlu2 %4825  ;;  %v5421_v30 = vld [vmem:[#allocation2 + $0x10] sm:$0xff] }
0x13f6   : > { %4846 = vst.msk [vmem:[#allocation2 + $0x18] sm:$0xff] %vm2376_vm1, %v4826_v13  ;;  %11246 = vmatmul.msk.f32.gmra.mxu0 %vm628_vm6, %v5421_v30  ;;  %v11252_v30 = vld [vmem:[%s15595_s5 + $0x4] sm:$0x3] }
0x13f7   : > { %v14121_v59 = vperm.slane %v11252_v30, 1 }
0x13fd   : > { %v4828_v53 = vpop.permute.xlu2 %4827 }
0x13fe   : > { %4847 = vst.msk [vmem:[#allocation2 + $0x20] sm:$0xff] %vm2376_vm1, %v4828_v53  ;;  %v14091_v53 = vperm.slane %v11252_v30, 0 }
0x1405   : > { %v4830_v51 = vpop.permute.xlu2 %4829 }
0x1406   : > { %4848 = vst.msk [vmem:[#allocation2 + $0x28] sm:$0xff] %vm2376_vm1, %v4830_v51 }
0x140d   : > { %v4832_v20 = vpop.permute.xlu2 %4831 }
0x140e   : > { %4849 = vst.msk [vmem:[#allocation2 + $0x30] sm:$0xff] %vm2376_vm1, %v4832_v20 }
0x1415   : > { %v4834_v34 = vpop.permute.xlu2 %4833 }
0x1416   : > { %4850 = vst.msk [vmem:[#allocation2 + $0x38] sm:$0xff] %vm2376_vm1, %v4834_v34 }
0x141e   : > { %v14039_v56 = vpop.permute.xlu0 %5439 }
0x1440   : > { %v5394_v32 = vpop.permute.xlu1 %5393 }
0x1441   : > { %5414 = vst.msk [vmem:[#allocation2 + $0x18] sm:$0xff] %vm2945_vm3, %v5394_v32 }
0x1448   : > { %v5396_v29 = vpop.permute.xlu1 %5395  ;;  %v5422_v46 = vld [vmem:[#allocation2 + $0x18] sm:$0xff] }
0x1449   : > { %5415 = vst.msk [vmem:[#allocation2 + $0x20] sm:$0xff] %vm2945_vm3, %v5396_v29  ;;  %11247 = vmatmul.msk.f32.gmra.mxu0 %vm628_vm6, %v5422_v46 }
0x1450   : > { %v5398_v44 = vpop.permute.xlu1 %5397  ;;  %v5423_v8 = vld [vmem:[#allocation2 + $0x20] sm:$0xff] }
0x1451   : > { %5416 = vst.msk [vmem:[#allocation2 + $0x28] sm:$0xff] %vm2945_vm3, %v5398_v44  ;;  %11248 = vmatmul.msk.f32.gmra.mxu0 %vm628_vm6, %v5423_v8 }
0x1458   : > { %v5400_v57 = vpop.permute.xlu1 %5399  ;;  %v5424_v61 = vld [vmem:[#allocation2 + $0x28] sm:$0xff] }
0x1459   : > { %5417 = vst.msk [vmem:[#allocation2 + $0x30] sm:$0xff] %vm2945_vm3, %v5400_v57  ;;  %11249 = vmatmul.msk.f32.gmra.mxu0 %vm628_vm6, %v5424_v61 }
0x145a   : > { %v5483_v47 = vpop.f32.mrf.mxu0 }
0x145b   : > { %v5484_v28 = vadd.f32 %v5483_v47, %v14039_v56 }
0x145d   : > { %v5507_v39 = vadd.f32 %v5484_v28, %v13311_v3 }
0x145f   : > { %vm5515_vm14 = vcmp.ge.f32.partialorder %v5507_v39, 0.0  ;;  %v5523_v58 = vmul.f32 0.2, %v5507_v39 }
0x1460   : > { %v5402_v0 = vpop.permute.xlu1 %5401  ;;  %v5425_v6 = vld [vmem:[#allocation2 + $0x30] sm:$0xff] }
0x1461   : > { %5418 = vst.msk [vmem:[#allocation2 + $0x38] sm:$0xff] %vm2945_vm3, %v5402_v0  ;;  %11250 = vmatmul.msk.f32.gmra.mxu0 %vm628_vm6, %v5425_v6  ;;  %v14047_v62 = vsel %vm5515_vm14, %v5507_v39, %v5523_v58 }
0x1462   : > { %v5486_v22 = vpop.f32.mrf.mxu0  ;;  %11253 = vmatmul.msk.f32.vlgmr.msrb.gmra.mxu1 %vm628_vm6, %v14047_v62  ;;  %11261 = vmatmul.msk.f32.vlgmr.msrb.gmra.mxu2 %vm628_vm6, %v14047_v62 }
0x1463   : > { %v5487_v60 = vadd.f32 %v5486_v22, %v14039_v56 }
0x1465   : > { %v5508_v3 = vadd.f32 %v5487_v60, %v13318_v55 }
0x1467   : > { %vm5516_vm4 = vcmp.ge.f32.partialorder %v5508_v3, 0.0  ;;  %v5524_v17 = vmul.f32 0.2, %v5508_v3 }
0x1468   : > { %v5426_v54 = vld [vmem:[#allocation2 + $0x38] sm:$0xff] }
0x1469   : > { %11251 = vmatmul.msk.f32.gmra.mxu0 %vm628_vm6, %v5426_v54  ;;  %v14056_v4 = vsel %vm5516_vm4, %v5508_v3, %v5524_v17 }
0x146a   : > { %11254 = vmatmul.msk.f32.gmra.mxu1 %vm628_vm6, %v14056_v4  ;;  %11262 = vmatmul.msk.f32.gmra.mxu2 %vm628_vm6, %v14056_v4 }
0x1473   : > { %v5489_v23 = vpop.f32.mrf.mxu0 }
0x1474   : > { %v5490_v43 = vadd.f32 %v5489_v23, %v14039_v56 }
0x1476   : > { %v5509_v12 = vadd.f32 %v5490_v43, %v13325_v9 }
0x1478   : > { %vm5517_vm5 = vcmp.ge.f32.partialorder %v5509_v12, 0.0  ;;  %v5525_v55 = vmul.f32 0.2, %v5509_v12 }
0x147a   : > { %v14064_v49 = vsel %vm5517_vm5, %v5509_v12, %v5525_v55 }
0x147b   : > { %11255 = vmatmul.msk.f32.gmra.mxu1 %vm628_vm6, %v14064_v49  ;;  %11263 = vmatmul.msk.f32.gmra.mxu2 %vm628_vm6, %v14064_v49 }
0x14c6   : > { %v5492_v7 = vpop.f32.mrf.mxu0 }
0x14c7   : > { %v5493_v45 = vadd.f32 %v5492_v7, %v14039_v56 }
0x14c9   : > { %v5510_v14 = vadd.f32 %v5493_v45, %v13332_v10 }
0x14cb   : > { %vm5518_vm7 = vcmp.ge.f32.partialorder %v5510_v14, 0.0  ;;  %v5526_v50 = vmul.f32 0.2, %v5510_v14 }
0x14cd   : > { %v14072_v18 = vsel %vm5518_vm7, %v5510_v14, %v5526_v50 }
0x14ce   : > { %v5495_v9 = vpop.f32.mrf.mxu0  ;;  %11256 = vmatmul.msk.f32.gmra.mxu1 %vm628_vm6, %v14072_v18  ;;  %11264 = vmatmul.msk.f32.gmra.mxu2 %vm628_vm6, %v14072_v18 }
0x14cf   : > { %v5496_v5 = vadd.f32 %v5495_v9, %v14039_v56 }
0x14d1   : > { %v5511_v52 = vadd.f32 %v5496_v5, %v13339_v36 }
0x14d3   : > { %vm5519_vm8 = vcmp.ge.f32.partialorder %v5511_v52, 0.0  ;;  %v5527_v26 = vmul.f32 0.2, %v5511_v52 }
0x14d5   : > { %v14080_v41 = vsel %vm5519_vm8, %v5511_v52, %v5527_v26 }
0x14d6   : > { %v5498_v10 = vpop.f32.mrf.mxu0  ;;  %11257 = vmatmul.msk.f32.gmra.mxu1 %vm628_vm6, %v14080_v41  ;;  %11265 = vmatmul.msk.f32.gmra.mxu2 %vm628_vm6, %v14080_v41 }
0x14d7   : > { %v5499_v24 = vadd.f32 %v5498_v10, %v14039_v56 }
0x14d9   : > { %v5512_v13 = vadd.f32 %v5499_v24, %v13346_v31 }
0x14db   : > { %vm5520_vm9 = vcmp.ge.f32.partialorder %v5512_v13, 0.0  ;;  %v5528_v36 = vmul.f32 0.2, %v5512_v13 }
0x14dd   : > { %v14093_v51 = vsel %vm5520_vm9, %v5512_v13, %v5528_v36 }
0x14de   : > { %v5501_v20 = vpop.f32.mrf.mxu0  ;;  %11258 = vmatmul.msk.f32.gmra.mxu1 %vm628_vm6, %v14093_v51  ;;  %11266 = vmatmul.msk.f32.gmra.mxu2 %vm628_vm6, %v14093_v51 }
0x14df   : > { %v5502_v34 = vadd.f32 %v5501_v20, %v14039_v56  ;;  %v5604_v31 = vpop.f32.mrf.mxu1 }
0x14e0   : > { %v14101_v16 = vadd.f32 %v5604_v31, %v14091_v53 }
0x14e1   : > { %v5513_v37 = vadd.f32 %v5502_v34, %v13353_v25 }
0x14e2   : > { %5670 = vrot.lane.b32.xlu2 %v14101_v16, %s12449_s11 }
0x14e3   : > { %vm5521_vm10 = vcmp.ge.f32.partialorder %v5513_v37, 0.0  ;;  %v5529_v63 = vmul.f32 0.2, %v5513_v37 }
0x14e5   : > { %v14106_v19 = vpop.f32.mrf.mxu2  ;;  %v14108_v2 = vsel %vm5521_vm10, %v5513_v37, %v5529_v63 }
0x14e6   : > { %v5504_v33 = vpop.f32.mrf.mxu0  ;;  %11259 = vmatmul.msk.f32.gmra.mxu1 %vm628_vm6, %v14108_v2  ;;  %11267 = vmatmul.msk.f32.gmra.mxu2 %vm628_vm6, %v14108_v2  ;;  %v14223_v24 = vadd.f32 %v14106_v19, %v14121_v59 }
0x14e7   : > { %v5505_v11 = vadd.f32 %v5504_v33, %v14039_v56  ;;  %v5607_v38 = vpop.f32.mrf.mxu1 }
0x14e8   : > { %v14116_v25 = vadd.f32 %v5607_v38, %v14091_v53 }
0x14e9   : > { %v5514_v15 = vadd.f32 %v5505_v11, %v13360_v42 }
0x14ea   : > { %5697 = vrot.lane.b32.xlu1 %v14116_v25, %s12449_s11 }
0x14eb   : > { %vm5522_vm12 = vcmp.ge.f32.partialorder %v5514_v15, 0.0  ;;  %v5530_v48 = vmul.f32 0.2, %v5514_v15 }
0x14ed   : > { %v5648_v35 = vpop.f32.mrf.mxu2  ;;  %v14123_v21 = vsel %vm5522_vm12, %v5514_v15, %v5530_v48 }
0x14ee   : > { %v14126_v1 = vadd.f32 %v5648_v35, %v14121_v59  ;;  %11260 = vmatmul.msk.f32.gmra.mxu1 %vm628_vm6, %v14123_v21  ;;  %11268 = vmatmul.msk.f32.gmra.mxu2 %vm628_vm6, %v14123_v21 }
0x14f0   : > { %6022 = vmatpush.msra.mxu0 %v14126_v1 }
0x14f8   : > { %v5610_v42 = vpop.f32.mrf.mxu1 }
0x14f9   : > { %v14134_v32 = vadd.f32 %v5610_v42, %v14091_v53 }
0x14fb   : > { %5724 = vrot.lane.b32.xlu0 %v14134_v32, %s12449_s11 }
0x14fe   : > { %v5651_v27 = vpop.f32.mrf.mxu2 }
0x14ff   : > { %v14139_v40 = vadd.f32 %v5651_v27, %v14121_v59 }
0x1501   : > { %6045 = vmatpush.msra.mxu1 %v14139_v40 }
0x153c   : > { %v5671_v29 = vpop.permute.xlu2 %5670 }
0x153d   : > { %11269 = vmatpush.xpose.msk.msra.mxu3 %vm416_vm2, %v5671_v29 }
0x1540   : > { %11270 = vmatmul.msk.f32.vlgmr.msra.gmra.mxu3 %vm416_vm2, %v14101_v16 }
0x154b   : > { %v5613_v46 = vpop.f32.mrf.mxu1 }
0x154c   : > { %v14146_v44 = vadd.f32 %v5613_v46, %v14091_v53 }
0x154e   : > { %5751 = vrot.lane.b32.xlu2 %v14146_v44, %s12449_s11 }
0x1551   : > { %v5654_v8 = vpop.f32.mrf.mxu2 }
0x1552   : > { %v14151_v57 = vadd.f32 %v5654_v8, %v14121_v59 }
0x1553   : > { %v5616_v61 = vpop.f32.mrf.mxu1 }
0x1554   : > { %v14154_v56 = vadd.f32 %v5616_v61, %v14091_v53  ;;  %6068 = vmatpush.msra.mxu2 %v14151_v57 }
0x1556   : > { %5778 = vrot.lane.b32.xlu1 %v14154_v56, %s12449_s11 }
0x1559   : > { %v5657_v47 = vpop.f32.mrf.mxu2 }
0x155a   : > { %v14228_v36 = vadd.f32 %v5657_v47, %v14121_v59 }
0x155b   : > { %v5619_v28 = vpop.f32.mrf.mxu1 }
0x155c   : > { %v14160_v39 = vadd.f32 %v5619_v28, %v14091_v53  ;;  %v5698_v58 = vpop.permute.xlu1 %5697 }
0x155d   : > { %11271 = vmatpush.xpose.msk.msrb.mxu3 %vm416_vm2, %v5698_v58 }
0x155e   : > { %5805 = vrot.lane.b32.xlu0 %v14160_v39, %s12449_s11 }
0x1560   : > { %11272 = vmatmul.msk.f32.vlgmr.msrb.gmra.mxu3 %vm416_vm2, %v14116_v25 }
0x1561   : > { %v5660_v0 = vpop.f32.mrf.mxu2 }
0x1562   : > { %v14168_v6 = vadd.f32 %v5660_v0, %v14121_v59 }
0x1563   : > { %v5622_v22 = vpop.f32.mrf.mxu1 }
0x1564   : > { %v14171_v60 = vadd.f32 %v5622_v22, %v14091_v53  ;;  %6114 = vmatpush.msrb.mxu0 %v14168_v6 }
0x1566   : > { %5832 = vrot.lane.b32.xlu2 %v14171_v60, %s12449_s11  ;;  %6173 = vrot.lane.b32.xlu0 %v14101_v16, %s12451_s13 }
0x1569   : > { %v5663_v3 = vpop.f32.mrf.mxu2 }
0x156a   : > { %v14179_v17 = vadd.f32 %v5663_v3, %v14121_v59 }
0x156b   : > { %v5625_v54 = vpop.f32.mrf.mxu1 }
0x156c   : > { %v14182_v23 = vadd.f32 %v5625_v54, %v14091_v53  ;;  %6137 = vmatpush.msrb.mxu1 %v14179_v17 }
0x156d   : > { %v5725_v43 = vpop.permute.xlu0 %5724 }
0x156e   : > { %6175 = vrot.lane.b32.xlu2 %v14101_v16, %s12450_s12  ;;  %6259 = vrot.lane.b32.xlu0 %v14146_v44, %s12450_s12 }
0x156f   : > { %11273 = vmatpush.xpose.msk.msra.mxu3 %vm416_vm2, %v5725_v43  ;;  %5859 = vrot.lane.b32.xlu1 %v14182_v23, %s12449_s11 }
0x1571   : > { %v5666_v12 = vpop.f32.mrf.mxu2 }
0x1572   : > { %v14193_v55 = vadd.f32 %v5666_v12, %v14121_v59  ;;  %11274 = vmatmul.msk.f32.vlgmr.msra.gmra.mxu3 %vm416_vm2, %v14134_v32 }
0x1574   : > { %6160 = vmatpush.msrb.mxu2 %v14193_v55  ;;  %v11722_v7 = vpack.i.bf16 %v14179_v17, %v14193_v55  ;;  %v11737_v45 = vpack.i.bf16 %v14193_v55, %v14179_v17 }
0x1576   : > { %6257 = vrot.lane.b32.xlu2 %v14146_v44, %s12451_s13 }
0x1577   : > { %6287 = vrot.lane.b32.xlu1 %v14154_v56, %s12450_s12 }
0x157f   : > { %6285 = vrot.lane.b32.xlu1 %v14154_v56, %s12451_s13 }
0x15a8   : > { %v5752_v14 = vpop.permute.xlu2 %5751 }
0x15a9   : > { %11275 = vmatpush.xpose.msk.msrb.mxu3 %vm416_vm2, %v5752_v14 }
0x15ac   : > { %11276 = vmatmul.msk.f32.vlgmr.msrb.gmra.mxu3 %vm416_vm2, %v14146_v44 }
0x15c0   : > { %v5833_v10 = vpop.permute.xlu2 %5832 }
0x15c3   : > { %v5693_v50 = vpop.f32.mrf.mxu3 }
0x15c4   : > { %v5885_v9 = vmul.f32 0.25, %v5693_v50 }
0x15c6   : > { %v5893_v5 = vsel %vm318_vm0, %v5885_v9, -inf }
0x15c7   : > { %5894 = vmax.xlane.f32.xlu0 %v5893_v5 }
0x15c8   : > { %v5779_v52 = vpop.permute.xlu1 %5778 }
0x15c9   : > { %11277 = vmatpush.xpose.msk.msra.mxu3 %vm416_vm2, %v5779_v52 }
0x15cc   : > { %11278 = vmatmul.msk.f32.vlgmr.msra.gmra.mxu3 %vm416_vm2, %v14154_v56 }
0x15d0   : > { %v5806_v26 = vpop.permute.xlu0 %5805 }
0x15d1   : > { %11279 = vmatpush.xpose.msk.msrb.mxu3 %vm416_vm2, %v5806_v26 }
0x15d4   : > { %11280 = vmatmul.msk.f32.vlgmr.msrb.gmra.mxu3 %vm416_vm2, %v14160_v39 }
0x15d5   : > { %11281 = vmatpush.xpose.msk.msra.mxu3 %vm416_vm2, %v5833_v10 }
0x15d8   : > { %v14235_v63 = vpop.permute.xlu0 %6173 }
0x15dc   : > { %11282 = vmatmul.msk.f32.vlgmr.msra.gmra.mxu3 %vm416_vm2, %v14171_v60 }
0x15e0   : > { %v14237_v11 = vpop.permute.xlu0 %6259 }
0x15e1   : > { %v5860_v13 = vpop.permute.xlu1 %5859 }
0x15e2   : > { %11283 = vmatpush.xpose.msk.msrb.mxu3 %vm416_vm2, %v5860_v13 }
0x15e3   : > { %v5720_v30 = vpop.f32.mrf.mxu3 }
0x15e4   : > { %v5886_v53 = vmul.f32 0.25, %v5720_v30 }
0x15e5   : > { %11284 = vmatmul.msk.f32.vlgmr.msrb.gmra.mxu3 %vm416_vm2, %v14182_v23 }
0x15e6   : > { %5999 = vmatpush.msra.mxu3 %v14223_v24  ;;  %v5896_v20 = vsel %vm318_vm0, %v5886_v53, -inf }
0x15e7   : > { %5897 = vmax.xlane.f32.xlu0 %v5896_v20 }
0x15e8   : > { %6091 = vmatpush.msrb.mxu3 %v14228_v36 }
0x15e9   : > { %v14246_v22 = vpop.permute.xlu1 %6287 }
0x15f1   : > { %v14252_v12 = vpop.permute.xlu1 %6285 }
0x15f5   : > { %v5747_v34 = vpop.f32.mrf.mxu3 }
0x15f6   : > { %v5887_v31 = vmul.f32 0.25, %v5747_v34 }
0x15f8   : > { %v5899_v37 = vsel %vm318_vm0, %v5887_v31, -inf }
0x15f9   : > { %5900 = vmax.xlane.f32.xlu1 %v5899_v37 }
0x162f   : > { %v5774_v19 = vpop.f32.mrf.mxu3 }
0x1630   : > { %v5888_v33 = vmul.f32 0.25, %v5774_v19 }
0x1632   : > { %v5902_v38 = vsel %vm318_vm0, %v5888_v33, -inf }
0x1633   : > { %5903 = vmax.xlane.f32.xlu1 %v5902_v38 }
0x163a   : > { %v5895_v15 = vpop.xlane.xlu0 %5894 }
0x163b   : > { %v5917_v48 = vsub.f32 %v5885_v9, %v5895_v15  ;;  %v6176_v15 = vpop.permute.xlu2 %6175 }
0x163d   : > { %v5925_v59 = vmul.f32 1.442695, %v5917_v48 }
0x163f   : > { %12064 = vpow2.f32 %v5925_v59 }
0x1643   : > { %v14272_v48 = vpop.permute.xlu2 %6257 }
0x1645   : > { %v12065_v35 = vpop.eup %12064 }
0x1646   : > { %v5941_v42 = vsel %vm318_vm0, %v12065_v35, 0.0 }
0x1647   : > { %5942 = vadd.xlane.f32.xlu1 %v5941_v42 }
0x164f   : > { %v5801_v27 = vpop.f32.mrf.mxu3 }
0x1650   : > { %v5889_v29 = vmul.f32 0.25, %v5801_v27 }
0x1652   : > { %v5905_v46 = vsel %vm318_vm0, %v5889_v29, -inf }
0x1653   : > { %5906 = vmax.xlane.f32.xlu2 %v5905_v46 }
0x1657   : > { %v5828_v8 = vpop.f32.mrf.mxu3 }
0x1658   : > { %v5890_v61 = vmul.f32 0.25, %v5828_v8 }
0x165a   : > { %v5908_v47 = vsel %vm318_vm0, %v5890_v61, -inf  ;;  %v5898_v26 = vpop.xlane.xlu0 %5897 }
0x165b   : > { %5909 = vmax.xlane.f32.xlu0 %v5908_v47  ;;  %v5918_v10 = vsub.f32 %v5886_v53, %v5898_v26 }
0x165d   : > { %v5927_v13 = vmul.f32 1.442695, %v5918_v10 }
0x165f   : > { %v5855_v28 = vpop.f32.mrf.mxu3 }
0x1660   : > { %v5891_v58 = vmul.f32 0.25, %v5855_v28  ;;  %6203 = vrot.lane.b32.xlu1 %v14116_v25, %s12450_s12  ;;  %v14288_v28 = vpack.i.bf16 %v14228_v36, %v14223_v24 }
0x1662   : > { %v5911_v0 = vsel %vm318_vm0, %v5891_v58, -inf }
0x1663   : > { %5912 = vmax.xlane.f32.xlu2 %v5911_v0 }
0x1668   : > { %v5882_v3 = vpop.f32.mrf.mxu3 }
0x1669   : > { %v14248_v54 = vmul.f32 0.25, %v5882_v3 }
0x166b   : > { %v5914_v43 = vsel %vm318_vm0, %v14248_v54, -inf }
0x166c   : > { %5915 = vmax.xlane.f32.xlu2 %v5914_v43  ;;  %v5901_v14 = vpop.xlane.xlu1 %5900 }
0x166d   : > { %v5919_v50 = vsub.f32 %v5887_v31, %v5901_v14 }
0x166f   : > { %6371 = vrot.lane.b32.xlu0 %v14182_v23, %s12450_s12  ;;  %v5929_v9 = vmul.f32 1.442695, %v5919_v50 }
0x1671   : > { %12066 = vpow2.f32 %v5929_v9  ;;  %v11692_v9 = vpack.i.bf16 %v14126_v1, %v14151_v57 }
0x1672   : > { %12068 = vpow2.f32 %v5927_v13 }
0x1677   : > { %6201 = vrot.lane.b32.xlu0 %v14116_v25, %s12451_s13  ;;  %v14260_v5 = vpop.eup %12066 }
0x1678   : > { %v5947_v52 = vsel %vm318_vm0, %v14260_v5, 0.0  ;;  %v14264_v34 = vpop.eup %12068 }
0x1679   : > { %v5944_v37 = vsel %vm318_vm0, %v14264_v34, 0.0 }
0x1684   : > { %6369 = vrot.lane.b32.xlu2 %v14182_v23, %s12451_s13 }
0x168a   : > { %5948 = vadd.xlane.f32.xlu1 %v5947_v52 }
0x16a6   : > { %v5904_v30 = vpop.xlane.xlu1 %5903 }
0x16a7   : > { %v5920_v20 = vsub.f32 %v5888_v33, %v5904_v30 }
0x16a9   : > { %v5931_v31 = vmul.f32 1.442695, %v5920_v20 }
0x16ab   : > { %12070 = vpow2.f32 %v5931_v31 }
0x16ad   : > { %5945 = vadd.xlane.f32.xlu2 %v5944_v37 }
0x16b1   : > { %v14268_v19 = vpop.eup %12070 }
0x16b2   : > { %v5950_v38 = vsel %vm318_vm0, %v14268_v19, 0.0 }
0x16b3   : > { %5951 = vadd.xlane.f32.xlu1 %v5950_v38 }
0x16ba   : > { %v5943_v53 = vpop.xlane.xlu1 %5942 }
0x16bb   : > { %12072 = vrcp.f32 %v5943_v53  ;;  %v11702_v53 = vpack.i.bf16 %v14179_v17, %v14168_v6 }
0x16c1   : > { %v12073_v33 = vpop.eup %12072 }
0x16c2   : > { %v5973_v59 = vmul.f32 %v12073_v33, %v12065_v35 }
0x16c4   : > { %11285 = vmatmul.msk.f32.vlgmr.msra.gmra.mxu3 %vm318_vm0, %v5973_v59 }
0x16c5   : > { %6229 = vrot.lane.b32.xlu2 %v14134_v32, %s12451_s13  ;;  %11293 = vmatpush.xpose.msk.msra.mxu3 %vm416_vm2, %v6176_v15 }
0x16c6   : > { %v5907_v42 = vpop.xlane.xlu2 %5906 }
0x16c7   : > { %v5921_v27 = vsub.f32 %v5889_v29, %v5907_v42 }
0x16c9   : > { %v5933_v46 = vmul.f32 1.442695, %v5921_v27 }
0x16cb   : > { %12074 = vpow2.f32 %v5933_v46 }
0x16cc   : > { %6315 = vrot.lane.b32.xlu1 %v14160_v39, %s12450_s12 }
0x16ce   : > { %v5910_v35 = vpop.xlane.xlu0 %5909 }
0x16cf   : > { %v5922_v29 = vsub.f32 %v5890_v61, %v5910_v35 }
0x16d1   : > { %v14280_v8 = vpop.eup %12074  ;;  %v5935_v0 = vmul.f32 1.442695, %v5922_v29 }
0x16d2   : > { %v5953_v47 = vsel %vm318_vm0, %v14280_v8, 0.0  ;;  %v6204_v52 = vpop.permute.xlu1 %6203 }
0x16d3   : > { %5954 = vadd.xlane.f32.xlu0 %v5953_v47  ;;  %12076 = vpow2.f32 %v5935_v0 }
0x16d4   : > { %6343 = vrot.lane.b32.xlu1 %v14171_v60, %s12450_s12 }
0x16d6   : > { %v5913_v3 = vpop.xlane.xlu2 %5912 }
0x16d7   : > { %v5923_v43 = vsub.f32 %v5891_v58, %v5913_v3 }
0x16d9   : > { %v5937_v14 = vmul.f32 1.442695, %v5923_v43  ;;  %v14296_v50 = vpop.eup %12076 }
0x16da   : > { %v5956_v61 = vsel %vm318_vm0, %v14296_v50, 0.0 }
0x16db   : > { %12078 = vpow2.f32 %v5937_v14 }
0x16dc   : > { %11688 = vrot.lane.b32.xlu1 %v14288_v28, %s12451_s13 }
0x16df   : > { %v5916_v10 = vpop.xlane.xlu2 %5915 }
0x16e0   : > { %v5924_v30 = vsub.f32 %v14248_v54, %v5916_v10 }
0x16e1   : > { %v14303_v58 = vpop.eup %12078  ;;  %v6372_v47 = vpop.permute.xlu0 %6371 }
0x16e2   : > { %v5959_v26 = vsel %vm318_vm0, %v14303_v58, 0.0  ;;  %v5939_v20 = vmul.f32 1.442695, %v5924_v30 }
0x16e4   : > { %6863 = vrot.lane.b32.xlu1 %v14154_v56, %s12452_s14 }
0x16e7   : > { %6231 = vrot.lane.b32.xlu0 %v14134_v32, %s12450_s12  ;;  %v14320_v54 = vpop.permute.xlu2 %6369 }
0x16ec   : > { %11693 = vrot.lane.b32.xlu1 %v11692_v9, %s12451_s13 }
0x16ee   : > { %5957 = vadd.xlane.f32.xlu2 %v5956_v61 }
0x16f4   : > { %6835 = vrot.lane.b32.xlu1 %v14146_v44, %s12452_s14 }
0x16f6   : > { %5960 = vadd.xlane.f32.xlu2 %v5959_v26 }
0x16fd   : > { %v5949_v13 = vpop.xlane.xlu1 %5948 }
0x16fe   : > { %12080 = vrcp.f32 %v5949_v13 }
0x16ff   : > { %12082 = vpow2.f32 %v5939_v20 }
0x1704   : > { %v12081_v31 = vpop.eup %12080 }
0x1705   : > { %v5975_v37 = vmul.f32 %v12081_v31, %v14260_v5  ;;  %v14312_v38 = vpop.eup %12082 }
0x1706   : > { %v5962_v15 = vsel %vm318_vm0, %v14312_v38, 0.0 }
0x1707   : > { %11287 = vmatmul.msk.f32.vlgmr.msra.gmra.mxu1 %vm318_vm0, %v5975_v37 }
0x170e   : > { %6341 = vrot.lane.b32.xlu2 %v14171_v60, %s12451_s13 }
0x1711   : > { %5963 = vadd.xlane.f32.xlu0 %v5962_v15 }
0x1716   : > { %6751 = vrot.lane.b32.xlu2 %v14101_v16, %s12452_s14 }
0x171e   : > { %6861 = vrot.lane.b32.xlu2 %v14154_v56, %s12453_s15 }
0x1720   : > { %v5946_v5 = vpop.xlane.xlu2 %5945 }
0x1721   : > { %12084 = vrcp.f32 %v5946_v5 }
0x1725   : > { %6313 = vrot.lane.b32.xlu0 %v14160_v39, %s12451_s13 }
0x1726   : > { %11703 = vrot.lane.b32.xlu2 %v11702_v53, %s12451_s13  ;;  %v5952_v33 = vpop.xlane.xlu1 %5951 }
0x1727   : > { %v12085_v59 = vpop.eup %12084  ;;  %12086 = vrcp.f32 %v5952_v33 }
0x1728   : > { %v5974_v42 = vmul.f32 %v12085_v59, %v14264_v34  ;;  %v11697_v34 = vpack.i.bf16 %v14139_v40, %v14193_v55  ;;  %v6230_v61 = vpop.permute.xlu2 %6229 }
0x172a   : > { %11286 = vmatmul.msk.f32.vlgmr.msra.gmra.mxu0 %vm318_vm0, %v5974_v42 }
0x172b   : > { %11295 = vmatpush.xpose.msk.msra.mxu0 %vm416_vm2, %v6204_v52 }
0x172d   : > { %v12087_v27 = vpop.eup %12086  ;;  %6749 = vrot.lane.b32.xlu0 %v14101_v16, %s12453_s15 }
0x172e   : > { %v5976_v46 = vmul.f32 %v12087_v27, %v14268_v19  ;;  %6779 = vrot.lane.b32.xlu2 %v14116_v25, %s12452_s14  ;;  %v6202_v19 = vpop.permute.xlu0 %6201 }
0x1730   : > { %11288 = vmatmul.msk.f32.vlgmr.msra.gmra.mxu2 %vm318_vm0, %v5976_v46 }
0x1731   : > { %11299 = vmatpush.xpose.msk.msra.mxu2 %vm416_vm2, %v14237_v11 }
0x1735   : > { %11698 = vrot.lane.b32.xlu0 %v11697_v34, %s12451_s13 }
0x1736   : > { %6777 = vrot.lane.b32.xlu2 %v14116_v25, %s12453_s15 }
0x173d   : > { %6833 = vrot.lane.b32.xlu0 %v14146_v44, %s12453_s15 }
0x173e   : > { %6807 = vrot.lane.b32.xlu2 %v14134_v32, %s12452_s14  ;;  %v6316_v35 = vpop.permute.xlu1 %6315 }
0x1745   : > { %6947 = vrot.lane.b32.xlu0 %v14182_v23, %s12452_s14 }
0x1746   : > { %v5955_v11 = vpop.xlane.xlu0 %5954  ;;  %v6344_v0 = vpop.permute.xlu1 %6343 }
0x1747   : > { %12088 = vrcp.f32 %v5955_v11  ;;  %v6001_v29 = vpop.f32.mrf.mxu3 }
0x1748   : > { %6165 = vst.msk [vmem:[#allocation2] sm:$0xff] %vm416_vm2, %v6001_v29 }
0x174d   : > { %v12089_v3 = vpop.eup %12088 }
0x174e   : > { %v5977_v43 = vmul.f32 %v12089_v3, %v14280_v8  ;;  %v11689_v14 = vpop.permute.xlu1 %11688 }
0x174f   : > { %v11690_v9 = vunpack.i.l.bf16 %v11689_v14  ;;  %v11691_v26 = vunpack.i.h.bf16 %v11689_v14 }
0x1750   : > { %11289 = vmatmul.msk.f32.vlgmr.msrb.gmra.mxu3 %vm318_vm0, %v5977_v43 }
0x1751   : > { %11301 = vmatpush.xpose.msk.msrb.mxu3 %vm416_vm2, %v14246_v22 }
0x1756   : > { %v14361_v10 = vpop.permute.xlu1 %6863 }
0x1758   : > { %11294 = vmatmul.msk.f32.vlgmr.msra.gmra.mxu3 %vm416_vm2, %v14235_v63 }
0x1759   : > { %6515 = vmatpush.msra.mxu3 %v11690_v9  ;;  %v6232_v52 = vpop.permute.xlu0 %6231 }
0x175a   : > { %11297 = vmatpush.xpose.msk.msra.mxu1 %vm416_vm2, %v6232_v52 }
0x175e   : > { %v11694_v63 = vpop.permute.xlu1 %11693 }
0x175f   : > { %v11696_v37 = vunpack.i.h.bf16 %v11694_v63  ;;  %v11695_v42 = vunpack.i.l.bf16 %v11694_v63 }
0x1760   : > { %11302 = vmatmul.msk.f32.vlgmr.msrb.gmra.mxu3 %vm416_vm2, %v14252_v12 }
0x1761   : > { %v5958_v8 = vpop.xlane.xlu2 %5957  ;;  %6623 = vmatpush.msrb.mxu3 %v11691_v26 }
0x1762   : > { %12090 = vrcp.f32 %v5958_v8 }
0x1768   : > { %v12091_v22 = vpop.eup %12090 }
0x1769   : > { %v5978_v13 = vmul.f32 %v12091_v22, %v14296_v50  ;;  %v5961_v30 = vpop.xlane.xlu2 %5960 }
0x176a   : > { %12092 = vrcp.f32 %v5961_v30 }
0x176b   : > { %11290 = vmatmul.msk.f32.vlgmr.msrb.gmra.mxu0 %vm318_vm0, %v5978_v13 }
0x176c   : > { %11303 = vmatpush.xpose.msk.msrb.mxu0 %vm416_vm2, %v6316_v35 }
0x1770   : > { %v12093_v20 = vpop.eup %12092 }
0x1771   : > { %v5979_v31 = vmul.f32 %v12093_v20, %v14303_v58  ;;  %v6342_v12 = vpop.permute.xlu2 %6341 }
0x1773   : > { %11291 = vmatmul.msk.f32.vlgmr.msrb.gmra.mxu1 %vm318_vm0, %v5979_v31  ;;  %11296 = vmatmul.msk.f32.vlgmr.msra.gmra.mxu0 %vm416_vm2, %v6202_v19 }
0x1774   : > { %11305 = vmatpush.xpose.msk.msrb.mxu1 %vm416_vm2, %v6344_v0  ;;  %6542 = vmatpush.msra.mxu0 %v11696_v37 }
0x1779   : > { %v14371_v50 = vpop.permute.xlu2 %6751 }
0x177b   : > { %11298 = vmatmul.msk.f32.vlgmr.msra.gmra.mxu1 %vm416_vm2, %v6230_v61 }
0x1781   : > { %v14375_v58 = vpop.permute.xlu2 %6861 }
0x1783   : > { %11306 = vmatmul.msk.f32.vlgmr.msrb.gmra.mxu1 %vm416_vm2, %v6342_v12 }
0x1784   : > { %v5964_v15 = vpop.xlane.xlu0 %5963  ;;  %v6047_v5 = vpop.f32.mrf.mxu1 }
0x1785   : > { %12094 = vrcp.f32 %v5964_v15  ;;  %6167 = vst.msk [vmem:[#allocation2 + $0x10] sm:$0xff] %vm416_vm2, %v6047_v5 }
0x1789   : > { %v11704_v59 = vpop.permute.xlu2 %11703 }
0x178a   : > { %v11705_v27 = vunpack.i.l.bf16 %v11704_v59  ;;  %v11706_v11 = vunpack.i.h.bf16 %v11704_v59 }
0x178b   : > { %v12095_v53 = vpop.eup %12094 }
0x178c   : > { %v5980_v33 = vmul.f32 %v12095_v53, %v14312_v38 }
0x178e   : > { %11292 = vmatmul.msk.f32.vlgmr.msrb.gmra.mxu2 %vm318_vm0, %v5980_v33 }
0x178f   : > { %11307 = vmatpush.xpose.msk.msrb.mxu2 %vm416_vm2, %v6372_v47 }
0x1796   : > { %11300 = vmatmul.msk.f32.vlgmr.msra.gmra.mxu2 %vm416_vm2, %v14272_v48 }
0x1797   : > { %6596 = vmatpush.msra.mxu2 %v11695_v42  ;;  %v6314_v46 = vpop.permute.xlu0 %6313 }
0x1798   : > { %11304 = vmatmul.msk.f32.vlgmr.msrb.gmra.mxu0 %vm416_vm2, %v6314_v46 }
0x1799   : > { %6650 = vmatpush.msrb.mxu0 %v11705_v27 }
0x179e   : > { %11308 = vmatmul.msk.f32.vlgmr.msrb.gmra.mxu2 %vm416_vm2, %v14320_v54 }
0x179f   : > { %v14385_v34 = vpop.permute.xlu0 %6749 }
0x17a7   : > { %v6024_v38 = vpop.f32.mrf.mxu0  ;;  %v11699_v19 = vpop.permute.xlu0 %11698 }
0x17a8   : > { %6166 = vst.msk [vmem:[#allocation2 + $0x8] sm:$0xff] %vm416_vm2, %v6024_v38  ;;  %v11701_v47 = vunpack.i.h.bf16 %v11699_v19  ;;  %v11700_v35 = vunpack.i.l.bf16 %v11699_v19 }
0x17aa   : > { %6569 = vmatpush.msra.mxu1 %v11701_v47  ;;  %6704 = vmatpush.msrb.mxu2 %v11700_v35  ;;  %v14409_v35 = vpop.permute.xlu2 %6779 }
0x17ac   : > { %6677 = vmatpush.msrb.mxu1 %v11706_v11 }
0x17af   : > { %v14405_v19 = vpop.permute.xlu0 %6833 }
0x17b3   : > { %v6070_v48 = vpop.f32.mrf.mxu2 }
0x17b4   : > { %6168 = vst.msk [vmem:[#allocation2 + $0x18] sm:$0xff] %vm416_vm2, %v6070_v48 }
0x17b7   : > { %v14407_v47 = vpop.permute.xlu0 %6947 }
0x17d3   : > { %v6093_v29 = vpop.f32.mrf.mxu3 }
0x17d4   : > { %6169 = vst.msk [vmem:[#allocation2 + $0x20] sm:$0xff] %vm416_vm2, %v6093_v29 }
0x17db   : > { %v6198_v0 = vpop.f32.mrf.mxu3 }
0x17dc   : > { %v6397_v54 = vmul.f32 0.25, %v6198_v0  ;;  %v14411_v0 = vpop.permute.xlu2 %6777 }
0x17de   : > { %v6405_v3 = vsel %vm318_vm0, %v6397_v54, -inf }
0x17df   : > { %6406 = vmax.xlane.f32.xlu0 %v6405_v3 }
0x17e3   : > { %v6310_v43 = vpop.f32.mrf.mxu3 }
0x17e4   : > { %v6401_v14 = vmul.f32 0.25, %v6310_v43 }
0x17e6   : > { %v6417_v9 = vsel %vm318_vm0, %v6401_v14, -inf }
0x17e7   : > { %6418 = vmax.xlane.f32.xlu1 %v6417_v9  ;;  %v14417_v9 = vpop.permute.xlu1 %6835 }
0x17e8   : > { %v6116_v61 = vpop.f32.mrf.mxu0 }
0x17e9   : > { %6170 = vst.msk [vmem:[#allocation2 + $0x28] sm:$0xff] %vm416_vm2, %v6116_v61  ;;  %v14419_v61 = vpop.permute.xlu2 %6807 }
0x17f0   : > { %v6139_v52 = vpop.f32.mrf.mxu1  ;;  %v6226_v26 = vpop.f32.mrf.mxu0 }
0x17f1   : > { %6171 = vst.msk [vmem:[#allocation2 + $0x30] sm:$0xff] %vm416_vm2, %v6139_v52  ;;  %v6398_v8 = vmul.f32 0.25, %v6226_v26 }
0x17f3   : > { %v6408_v22 = vsel %vm318_vm0, %v6398_v8, -inf }
0x17f4   : > { %6409 = vmax.xlane.f32.xlu0 %v6408_v22 }
0x17f8   : > { %v6254_v13 = vpop.f32.mrf.mxu1 }
0x17f9   : > { %v6399_v30 = vmul.f32 0.25, %v6254_v13 }
0x17fb   : > { %v6411_v63 = vsel %vm318_vm0, %v6399_v30, -inf }
0x17fc   : > { %6412 = vmax.xlane.f32.xlu2 %v6411_v63 }
0x1800   : > { %v6366_v20 = vpop.f32.mrf.mxu1 }
0x1801   : > { %v6403_v31 = vmul.f32 0.25, %v6366_v20 }
0x1803   : > { %v6423_v37 = vsel %vm318_vm0, %v6403_v31, -inf }
0x1804   : > { %6424 = vmax.xlane.f32.xlu1 %v6423_v37 }
0x1811   : > { %v6162_v12 = vpop.f32.mrf.mxu2 }
0x1812   : > { %6172 = vst.msk [vmem:[#allocation2 + $0x38] sm:$0xff] %vm416_vm2, %v6162_v12 }
0x1815   : > { %v6338_v15 = vpop.f32.mrf.mxu0 }
0x1816   : > { %v6402_v5 = vmul.f32 0.25, %v6338_v15 }
0x1818   : > { %v6420_v53 = vsel %vm318_vm0, %v6402_v5, -inf }
0x1819   : > { %v6282_v33 = vpop.f32.mrf.mxu2  ;;  %6421 = vmax.xlane.f32.xlu0 %v6420_v53 }
0x181a   : > { %v6400_v59 = vmul.f32 0.25, %v6282_v33 }
0x181c   : > { %v6414_v42 = vsel %vm318_vm0, %v6400_v59, -inf }
0x181d   : > { %6415 = vmax.xlane.f32.xlu2 %v6414_v42 }
0x1821   : > { %v6394_v27 = vpop.f32.mrf.mxu2 }
0x1822   : > { %v6404_v46 = vmul.f32 0.25, %v6394_v27 }
0x1824   : > { %v6426_v38 = vsel %vm318_vm0, %v6404_v46, -inf }
0x1825   : > { %6427 = vmax.xlane.f32.xlu1 %v6426_v38 }
0x182d   : > { %6945 = vrot.lane.b32.xlu0 %v14182_v23, %s12453_s15 }
0x183e   : > { %6891 = vrot.lane.b32.xlu1 %v14160_v39, %s12452_s14 }
0x1852   : > { %v6407_v11 = vpop.xlane.xlu0 %6406 }
0x1853   : > { %v6429_v48 = vsub.f32 %v6397_v54, %v6407_v11 }
0x1855   : > { %v6437_v29 = vmul.f32 1.442695, %v6429_v48 }
0x1857   : > { %12096 = vpow2.f32 %v6437_v29 }
0x185a   : > { %v6419_v52 = vpop.xlane.xlu1 %6418 }
0x185b   : > { %v6433_v13 = vsub.f32 %v6401_v14, %v6419_v52 }
0x185d   : > { %v14413_v3 = vpop.eup %12096  ;;  %v6445_v54 = vmul.f32 1.442695, %v6433_v13 }
0x185e   : > { %v6453_v43 = vsel %vm318_vm0, %v14413_v3, 0.0 }
0x185f   : > { %6454 = vadd.xlane.f32.xlu2 %v6453_v43 }
0x1867   : > { %v6410_v26 = vpop.xlane.xlu0 %6409 }
0x1868   : > { %v6430_v22 = vsub.f32 %v6398_v8, %v6410_v26 }
0x186a   : > { %v6439_v63 = vmul.f32 1.442695, %v6430_v22 }
0x186c   : > { %12098 = vpow2.f32 %v6439_v63 }
0x186d   : > { %12100 = vpow2.f32 %v6445_v54 }
0x186f   : > { %v6413_v20 = vpop.xlane.xlu2 %6412 }
0x1870   : > { %v6431_v12 = vsub.f32 %v6399_v30, %v6413_v20 }
0x1872   : > { %v14421_v37 = vpop.eup %12098  ;;  %v6441_v53 = vmul.f32 1.442695, %v6431_v12 }
0x1873   : > { %v6456_v15 = vsel %vm318_vm0, %v14421_v37, 0.0  ;;  %v12101_v33 = vpop.eup %12100 }
0x1874   : > { %6457 = vadd.xlane.f32.xlu0 %v6456_v15  ;;  %12102 = vpow2.f32 %v6441_v53  ;;  %v6465_v14 = vsel %vm318_vm0, %v12101_v33, 0.0 }
0x1877   : > { %6805 = vrot.lane.b32.xlu2 %v14134_v32, %s12453_s15  ;;  %v6425_v30 = vpop.xlane.xlu1 %6424 }
0x1878   : > { %v6435_v11 = vsub.f32 %v6403_v31, %v6425_v30 }
0x187a   : > { %v14428_v8 = vpop.eup %12102  ;;  %v6449_v52 = vmul.f32 1.442695, %v6435_v11 }
0x187b   : > { %v6459_v42 = vsel %vm318_vm0, %v14428_v8, 0.0 }
0x187c   : > { %6466 = vadd.xlane.f32.xlu0 %v6465_v14 }
0x1884   : > { %6460 = vadd.xlane.f32.xlu0 %v6459_v42 }
0x188c   : > { %v6422_v27 = vpop.xlane.xlu0 %6421 }
0x188d   : > { %v6434_v38 = vsub.f32 %v6402_v5, %v6422_v27 }
0x188f   : > { %v6447_v48 = vmul.f32 1.442695, %v6434_v38 }
0x1890   : > { %v6416_v29 = vpop.xlane.xlu2 %6415 }
0x1891   : > { %12104 = vpow2.f32 %v6447_v48  ;;  %v6432_v43 = vsub.f32 %v6400_v59, %v6416_v29 }
0x1893   : > { %v6443_v26 = vmul.f32 1.442695, %v6432_v43 }
0x1895   : > { %12106 = vpow2.f32 %v6443_v26 }
0x1896   : > { %12108 = vpow2.f32 %v6449_v52 }
0x1897   : > { %v12105_v22 = vpop.eup %12104 }
0x1898   : > { %v6428_v13 = vpop.xlane.xlu1 %6427  ;;  %v6468_v63 = vsel %vm318_vm0, %v12105_v22, 0.0 }
0x1899   : > { %v6436_v54 = vsub.f32 %v6404_v46, %v6428_v13  ;;  %6469 = vadd.xlane.f32.xlu1 %v6468_v63  ;;  %v11712_v46 = vpack.i.bf16 %v14151_v57, %v14126_v1 }
0x189b   : > { %v12107_v20 = vpop.eup %12106  ;;  %v6451_v12 = vmul.f32 1.442695, %v6436_v54 }
0x189c   : > { %v6462_v15 = vsel %vm318_vm0, %v12107_v20, 0.0  ;;  %v14434_v5 = vpop.eup %12108 }
0x189d   : > { %12110 = vpow2.f32 %v6451_v12  ;;  %6463 = vadd.xlane.f32.xlu0 %v6462_v15  ;;  %v6471_v31 = vsel %vm318_vm0, %v14434_v5, 0.0 }
0x189f   : > { %v14468_v30 = vpop.permute.xlu0 %6945 }
0x18a1   : > { %6472 = vadd.xlane.f32.xlu1 %v6471_v31 }
0x18a3   : > { %v14438_v59 = vpop.eup %12110 }
0x18a4   : > { %v6474_v53 = vsel %vm318_vm0, %v14438_v59, 0.0 }
0x18a5   : > { %6475 = vadd.xlane.f32.xlu2 %v6474_v53 }
0x18b1   : > { %6919 = vrot.lane.b32.xlu0 %v14171_v60, %s12452_s14 }
0x18b9   : > { %11708 = vrot.lane.b32.xlu0 %v14288_v28, %s12453_s15  ;;  %v11717_v28 = vpack.i.bf16 %v14168_v6, %v14139_v40 }
0x18ba   : > { %6889 = vrot.lane.b32.xlu1 %v14160_v39, %s12453_s15 }
0x18bd   : > { %6917 = vrot.lane.b32.xlu2 %v14171_v60, %s12453_s15 }
0x18c1   : > { %7317 = vrot.lane.b32.xlu0 %v14101_v16, %s12455_s17 }
0x18c2   : > { %7319 = vrot.lane.b32.xlu1 %v14101_v16, %s12454_s16 }
0x18c5   : > { %11713 = vrot.lane.b32.xlu2 %v11712_v46, %s12453_s15 }
0x18c9   : > { %11718 = vrot.lane.b32.xlu0 %v11717_v28, %s12453_s15 }
0x18ca   : > { %11723 = vrot.lane.b32.xlu1 %v11722_v7, %s12453_s15 }
0x18d2   : > { %v6455_v14 = vpop.xlane.xlu2 %6454 }
0x18d3   : > { %12112 = vrcp.f32 %v6455_v14 }
0x18d9   : > { %v12113_v42 = vpop.eup %12112 }
0x18da   : > { %v6485_v16 = vmul.f32 %v12113_v42, %v14413_v3 }
0x18dc   : > { %11309 = vmatmul.msk.f32.vlgmr.msra.gmra.mxu3 %vm318_vm0, %v6485_v16 }
0x18dd   : > { %11317 = vmatpush.xpose.msk.msra.mxu3 %vm416_vm2, %v14371_v50 }
0x18e7   : > { %v6458_v27 = vpop.xlane.xlu0 %6457 }
0x18e8   : > { %12114 = vrcp.f32 %v6458_v27 }
0x18ee   : > { %v12115_v38 = vpop.eup %12114 }
0x18ef   : > { %v6486_v11 = vmul.f32 %v12115_v38, %v14421_v37  ;;  %v6467_v48 = vpop.xlane.xlu0 %6466 }
0x18f0   : > { %12116 = vrcp.f32 %v6467_v48 }
0x18f1   : > { %11310 = vmatmul.msk.f32.vlgmr.msra.gmra.mxu0 %vm318_vm0, %v6486_v11 }
0x18f2   : > { %11319 = vmatpush.xpose.msk.msra.mxu0 %vm416_vm2, %v14409_v35  ;;  %v6892_v35 = vpop.permute.xlu1 %6891 }
0x18f6   : > { %v12117_v7 = vpop.eup %12116 }
0x18f7   : > { %v6489_v3 = vmul.f32 %v12117_v7, %v12101_v33  ;;  %v6461_v29 = vpop.xlane.xlu0 %6460  ;;  %v6806_v33 = vpop.permute.xlu2 %6805 }
0x18f8   : > { %12118 = vrcp.f32 %v6461_v29 }
0x18f9   : > { %11313 = vmatmul.msk.f32.vlgmr.msrb.gmra.mxu3 %vm318_vm0, %v6489_v3 }
0x18fa   : > { %11325 = vmatpush.xpose.msk.msrb.mxu3 %vm416_vm2, %v14361_v10 }
0x18fe   : > { %v12119_v50 = vpop.eup %12118 }
0x18ff   : > { %v6487_v43 = vmul.f32 %v12119_v50, %v14428_v8 }
0x1901   : > { %11311 = vmatmul.msk.f32.vlgmr.msra.gmra.mxu1 %vm318_vm0, %v6487_v43  ;;  %11318 = vmatmul.msk.f32.vlgmr.msra.gmra.mxu3 %vm416_vm2, %v14385_v34 }
0x1902   : > { %11321 = vmatpush.xpose.msk.msra.mxu1 %vm416_vm2, %v14419_v61 }
0x1909   : > { %11326 = vmatmul.msk.f32.vlgmr.msrb.gmra.mxu3 %vm416_vm2, %v14375_v58 }
0x190c   : > { %v6470_v37 = vpop.xlane.xlu1 %6469 }
0x190d   : > { %12120 = vrcp.f32 %v6470_v37 }
0x1910   : > { %v6464_v52 = vpop.xlane.xlu0 %6463 }
0x1911   : > { %12122 = vrcp.f32 %v6464_v52 }
0x1913   : > { %v12121_v10 = vpop.eup %12120 }
0x1914   : > { %v6490_v26 = vmul.f32 %v12121_v10, %v12105_v22  ;;  %v6473_v8 = vpop.xlane.xlu1 %6472 }
0x1915   : > { %12124 = vrcp.f32 %v6473_v8 }
0x1916   : > { %11314 = vmatmul.msk.f32.vlgmr.msrb.gmra.mxu0 %vm318_vm0, %v6490_v26 }
0x1917   : > { %v12123_v13 = vpop.eup %12122  ;;  %11327 = vmatpush.xpose.msk.msrb.mxu0 %vm416_vm2, %v6892_v35 }
0x1918   : > { %v6488_v34 = vmul.f32 %v12123_v13, %v12107_v20  ;;  %v6476_v61 = vpop.xlane.xlu2 %6475 }
0x1919   : > { %12126 = vrcp.f32 %v6476_v61 }
0x191a   : > { %11312 = vmatmul.msk.f32.vlgmr.msra.gmra.mxu2 %vm318_vm0, %v6488_v34 }
0x191b   : > { %v12125_v58 = vpop.eup %12124  ;;  %11323 = vmatpush.xpose.msk.msra.mxu2 %vm416_vm2, %v14417_v9 }
0x191c   : > { %v6491_v63 = vmul.f32 %v12125_v58, %v14434_v5 }
0x191e   : > { %11315 = vmatmul.msk.f32.vlgmr.msrb.gmra.mxu1 %vm318_vm0, %v6491_v63  ;;  %11320 = vmatmul.msk.f32.vlgmr.msra.gmra.mxu0 %vm416_vm2, %v14411_v0 }
0x191f   : > { %v12127_v22 = vpop.eup %12126 }
0x1920   : > { %v6492_v54 = vmul.f32 %v12127_v22, %v14438_v59  ;;  %v6918_v12 = vpop.permute.xlu2 %6917 }
0x1922   : > { %11316 = vmatmul.msk.f32.vlgmr.msrb.gmra.mxu2 %vm318_vm0, %v6492_v54 }
0x1923   : > { %11331 = vmatpush.xpose.msk.msrb.mxu2 %vm416_vm2, %v14407_v47  ;;  %v6920_v20 = vpop.permute.xlu0 %6919 }
0x1924   : > { %11329 = vmatpush.xpose.msk.msrb.mxu1 %vm416_vm2, %v6920_v20 }
0x1926   : > { %11322 = vmatmul.msk.f32.vlgmr.msra.gmra.mxu1 %vm416_vm2, %v6806_v33 }
0x1928   : > { %v11714_v9 = vpop.permute.xlu2 %11713 }
0x1929   : > { %v11716_v15 = vunpack.i.h.bf16 %v11714_v9  ;;  %v11715_v5 = vunpack.i.l.bf16 %v11714_v9 }
0x192a   : > { %11324 = vmatmul.msk.f32.vlgmr.msra.gmra.mxu2 %vm416_vm2, %v14405_v19 }
0x192b   : > { %v11709_v0 = vpop.permute.xlu0 %11708  ;;  %7116 = vmatpush.msra.mxu0 %v11715_v5  ;;  %7168 = vmatpush.msra.mxu2 %v11716_v15 }
0x192c   : > { %v11711_v31 = vunpack.i.h.bf16 %v11709_v0  ;;  %v11710_v59 = vunpack.i.l.bf16 %v11709_v0  ;;  %v6890_v53 = vpop.permute.xlu1 %6889 }
0x192d   : > { %11328 = vmatmul.msk.f32.vlgmr.msrb.gmra.mxu0 %vm416_vm2, %v6890_v53 }
0x192e   : > { %11330 = vmatmul.msk.f32.vlgmr.msrb.gmra.mxu1 %vm416_vm2, %v6918_v12  ;;  %7090 = vmatpush.msra.mxu3 %v11710_v59 }
0x1930   : > { %7194 = vmatpush.msrb.mxu3 %v11711_v31 }
0x1932   : > { %11332 = vmatmul.msk.f32.vlgmr.msrb.gmra.mxu2 %vm416_vm2, %v14468_v30 }
0x1933   : > { %v14506_v47 = vpop.permute.xlu0 %7317 }
0x1934   : > { %v14508_v46 = vpop.permute.xlu1 %7319 }
0x193b   : > { %v11719_v19 = vpop.permute.xlu0 %11718 }
0x193c   : > { %v11721_v28 = vunpack.i.h.bf16 %v11719_v19  ;;  %v11720_v14 = vunpack.i.l.bf16 %v11719_v19  ;;  %v11724_v42 = vpop.permute.xlu1 %11723 }
0x193d   : > { %v11726_v16 = vunpack.i.h.bf16 %v11724_v42  ;;  %v11725_v27 = vunpack.i.l.bf16 %v11724_v42 }
0x193e   : > { %7142 = vmatpush.msra.mxu1 %v11720_v14  ;;  %7220 = vmatpush.msrb.mxu0 %v11721_v28 }
0x193f   : > { %7272 = vmatpush.msrb.mxu2 %v11725_v27 }
0x1940   : > { %7246 = vmatpush.msrb.mxu1 %v11726_v16 }
0x195f   : > { %v14510_v38 = vpop.f32.mrf.mxu3 }
0x196e   : > { %v14515_v3 = vpop.f32.mrf.mxu0 }
0x197c   : > { %v14512_v11 = vpop.f32.mrf.mxu3 }
0x197e   : > { %v14517_v29 = vpop.f32.mrf.mxu1 }
0x1984   : > { %v6774_v48 = vpop.f32.mrf.mxu3 }
0x1985   : > { %v6973_v30 = vmul.f32 0.25, %v6774_v48 }
0x1987   : > { %v6981_v7 = vsel %vm318_vm0, %v6973_v30, -inf }
0x1988   : > { %6982 = vmax.xlane.f32.xlu1 %v6981_v7 }
0x198c   : > { %v6886_v34 = vpop.f32.mrf.mxu3 }
0x198d   : > { %v6977_v61 = vmul.f32 0.25, %v6886_v34 }
0x198f   : > { %v6993_v20 = vsel %vm318_vm0, %v6977_v61, -inf }
0x1993   : > { %v14519_v50 = vpop.f32.mrf.mxu0 }
0x199b   : > { %v14521_v43 = vpop.f32.mrf.mxu1  ;;  %v6802_v35 = vpop.f32.mrf.mxu0 }
0x199c   : > { %v6974_v37 = vmul.f32 0.25, %v6802_v35 }
0x199d   : > { %v14523_v33 = vpop.f32.mrf.mxu2 }
0x199e   : > { %v6984_v52 = vsel %vm318_vm0, %v6974_v37, -inf }
0x199f   : > { %6985 = vmax.xlane.f32.xlu2 %v6984_v52 }
0x19a3   : > { %v6830_v10 = vpop.f32.mrf.mxu1 }
0x19a4   : > { %v6975_v26 = vmul.f32 0.25, %v6830_v10 }
0x19a5   : > { %v14526_v8 = vpop.f32.mrf.mxu2 }
0x19a6   : > { %v6987_v13 = vsel %vm318_vm0, %v6975_v26, -inf }
0x19a7   : > { %6988 = vmax.xlane.f32.xlu0 %v6987_v13 }
0x19aa   : > { %v6914_v58 = vpop.f32.mrf.mxu0 }
0x19ab   : > { %v6978_v63 = vmul.f32 0.25, %v6914_v58  ;;  %v6942_v9 = vpop.f32.mrf.mxu1 }
0x19ac   : > { %v6979_v5 = vmul.f32 0.25, %v6942_v9 }
0x19ad   : > { %v6858_v22 = vpop.f32.mrf.mxu2  ;;  %v6996_v54 = vsel %vm318_vm0, %v6978_v63, -inf }
0x19ae   : > { %v6976_v12 = vmul.f32 0.25, %v6858_v22  ;;  %6997 = vmax.xlane.f32.xlu2 %v6996_v54  ;;  %v6999_v59 = vsel %vm318_vm0, %v6979_v5, -inf }
0x19af   : > { %6994 = vmax.xlane.f32.xlu0 %v6993_v20 }
0x19b0   : > { %v6990_v15 = vsel %vm318_vm0, %v6976_v12, -inf }
0x19b1   : > { %6991 = vmax.xlane.f32.xlu1 %v6990_v15 }
0x19b5   : > { %v6970_v0 = vpop.f32.mrf.mxu2 }
0x19b6   : > { %v14532_v31 = vmul.f32 0.25, %v6970_v0 }
0x19b7   : > { %7000 = vmax.xlane.f32.xlu0 %v6999_v59 }
0x19b8   : > { %v7002_v53 = vsel %vm318_vm0, %v14532_v31, -inf }
0x19b9   : > { %7003 = vmax.xlane.f32.xlu1 %v7002_v53 }
0x19cb   : > { %7347 = vrot.lane.b32.xlu0 %v14116_v25, %s12454_s16 }
0x19fb   : > { %v6983_v19 = vpop.xlane.xlu1 %6982 }
0x19fc   : > { %v7005_v42 = vsub.f32 %v6973_v30, %v6983_v19 }
0x19fe   : > { %v7013_v27 = vmul.f32 1.442695, %v7005_v42 }
0x1a12   : > { %v6986_v28 = vpop.xlane.xlu2 %6985 }
0x1a13   : > { %v7006_v14 = vsub.f32 %v6974_v37, %v6986_v28 }
0x1a15   : > { %v7015_v16 = vmul.f32 1.442695, %v7006_v14 }
0x1a17   : > { %12128 = vpow2.f32 %v7015_v16 }
0x1a18   : > { %12130 = vpow2.f32 %v7013_v27 }
0x1a1a   : > { %v6989_v48 = vpop.xlane.xlu0 %6988 }
0x1a1b   : > { %v7007_v35 = vsub.f32 %v6975_v26, %v6989_v48 }
0x1a1d   : > { %v14539_v7 = vpop.eup %12128  ;;  %v7017_v10 = vmul.f32 1.442695, %v7007_v35 }
0x1a1e   : > { %v7032_v52 = vsel %vm318_vm0, %v14539_v7, 0.0  ;;  %v12131_v22 = vpop.eup %12130 }
0x1a1f   : > { %7033 = vadd.xlane.f32.xlu2 %v7032_v52  ;;  %12132 = vpow2.f32 %v7017_v10  ;;  %v7029_v20 = vsel %vm318_vm0, %v12131_v22, 0.0 }
0x1a21   : > { %v6998_v13 = vpop.xlane.xlu2 %6997 }
0x1a22   : > { %v7010_v34 = vsub.f32 %v6978_v63, %v6998_v13  ;;  %v6995_v58 = vpop.xlane.xlu0 %6994 }
0x1a23   : > { %v7009_v54 = vsub.f32 %v6977_v61, %v6995_v58 }
0x1a24   : > { %v7023_v37 = vmul.f32 1.442695, %v7010_v34  ;;  %v6992_v9 = vpop.xlane.xlu1 %6991 }
0x1a25   : > { %v7021_v30 = vmul.f32 1.442695, %v7009_v54  ;;  %v14544_v15 = vpop.eup %12132  ;;  %v7008_v63 = vsub.f32 %v6976_v12, %v6992_v9 }
0x1a26   : > { %12134 = vpow2.f32 %v7023_v37  ;;  %v7035_v28 = vsel %vm318_vm0, %v14544_v15, 0.0 }
0x1a27   : > { %12136 = vpow2.f32 %v7021_v30  ;;  %7030 = vadd.xlane.f32.xlu2 %v7029_v20  ;;  %v7019_v42 = vmul.f32 1.442695, %v7008_v63 }
0x1a2a   : > { %v7001_v26 = vpop.xlane.xlu0 %7000 }
0x1a2b   : > { %v7011_v0 = vsub.f32 %v6979_v5, %v7001_v26 }
0x1a2c   : > { %v12135_v59 = vpop.eup %12134 }
0x1a2d   : > { %v14546_v53 = vpop.eup %12136  ;;  %v7025_v19 = vmul.f32 1.442695, %v7011_v0  ;;  %v7044_v61 = vsel %vm318_vm0, %v12135_v59, 0.0 }
0x1a2e   : > { %7045 = vadd.xlane.f32.xlu0 %v7044_v61  ;;  %v7041_v14 = vsel %vm318_vm0, %v14546_v53, 0.0 }
0x1a2f   : > { %12138 = vpow2.f32 %v7025_v19  ;;  %7036 = vadd.xlane.f32.xlu2 %v7035_v28  ;;  %7042 = vadd.xlane.f32.xlu1 %v7041_v14 }
0x1a30   : > { %12140 = vpow2.f32 %v7019_v42 }
0x1a35   : > { %v12139_v16 = vpop.eup %12138 }
0x1a36   : > { %v7047_v5 = vsel %vm318_vm0, %v12139_v16, 0.0  ;;  %v12141_v12 = vpop.eup %12140 }
0x1a37   : > { %7048 = vadd.xlane.f32.xlu2 %v7047_v5  ;;  %v7038_v27 = vsel %vm318_vm0, %v12141_v12, 0.0 }
0x1a3d   : > { %v7348_v10 = vpop.permute.xlu0 %7347 }
0x1a3f   : > { %7039 = vadd.xlane.f32.xlu2 %v7038_v27 }
0x1a42   : > { %7403 = vrot.lane.b32.xlu0 %v14146_v44, %s12454_s16 }
0x1a48   : > { %7401 = vrot.lane.b32.xlu1 %v14146_v44, %s12455_s17  ;;  %v7004_v44 = vpop.xlane.xlu1 %7003 }
0x1a4a   : > { %7375 = vrot.lane.b32.xlu0 %v14134_v32, %s12454_s16 }
0x1a50   : > { %7373 = vrot.lane.b32.xlu1 %v14134_v32, %s12455_s17  ;;  %v7012_v32 = vsub.f32 %v14532_v31, %v7004_v44 }
0x1a52   : > { %7431 = vrot.lane.b32.xlu0 %v14154_v56, %s12454_s16  ;;  %v7027_v48 = vmul.f32 1.442695, %v7012_v32 }
0x1a54   : > { %12142 = vpow2.f32 %v7027_v48 }
0x1a57   : > { %7345 = vrot.lane.b32.xlu2 %v14116_v25, %s12455_s17 }
0x1a5a   : > { %7457 = vrot.lane.b32.xlu0 %v14160_v39, %s12455_s17  ;;  %v14576_v35 = vpop.eup %12142 }
0x1a5b   : > { %v7050_v25 = vsel %vm318_vm0, %v14576_v35, 0.0 }
0x1a5f   : > { %7459 = vrot.lane.b32.xlu2 %v14160_v39, %s12454_s16 }
0x1a62   : > { %7487 = vrot.lane.b32.xlu0 %v14171_v60, %s12454_s16 }
0x1a67   : > { %7513 = vrot.lane.b32.xlu2 %v14182_v23, %s12455_s17 }
0x1a7a   : > { %7051 = vadd.xlane.f32.xlu1 %v7050_v25 }
0x1a92   : > { %v7034_v52 = vpop.xlane.xlu2 %7033 }
0x1a93   : > { %12144 = vrcp.f32 %v7034_v52  ;;  %7429 = vrot.lane.b32.xlu1 %v14154_v56, %s12455_s17 }
0x1a99   : > { %v12145_v39 = vpop.eup %12144 }
0x1a9a   : > { %v7062_v13 = vmul.f32 %v12145_v39, %v14539_v7  ;;  %v7031_v34 = vpop.xlane.xlu2 %7030 }
0x1a9b   : > { %12146 = vrcp.f32 %v7031_v34  ;;  %7515 = vrot.lane.b32.xlu1 %v14182_v23, %s12454_s16 }
0x1a9c   : > { %11334 = vmatmul.msk.f32.vlgmr.msra.gmra.mxu0 %vm318_vm0, %v7062_v13 }
0x1a9d   : > { %11343 = vmatpush.xpose.msk.msra.mxu0 %vm416_vm2, %v7348_v10 }
0x1aa1   : > { %v12147_v31 = vpop.eup %12146  ;;  %v7046_v58 = vpop.xlane.xlu0 %7045 }
0x1aa2   : > { %v7061_v54 = vmul.f32 %v12147_v31, %v12131_v22  ;;  %12148 = vrcp.f32 %v7046_v58  ;;  %v7037_v37 = vpop.xlane.xlu2 %7036  ;;  %v7043_v30 = vpop.xlane.xlu1 %7042 }
0x1aa3   : > { %12150 = vrcp.f32 %v7037_v37  ;;  %7485 = vrot.lane.b32.xlu1 %v14171_v60, %s12455_s17 }
0x1aa4   : > { %12152 = vrcp.f32 %v7043_v30  ;;  %11333 = vmatmul.msk.f32.vlgmr.msra.gmra.mxu3 %vm318_vm0, %v7061_v54 }
0x1aa5   : > { %11341 = vmatpush.xpose.msk.msra.mxu3 %vm416_vm2, %v14508_v46 }
0x1aa8   : > { %v12149_v56 = vpop.eup %12148 }
0x1aa9   : > { %v12151_v23 = vpop.eup %12150  ;;  %v7066_v7 = vmul.f32 %v12149_v56, %v12135_v59 }
0x1aaa   : > { %v12153_v20 = vpop.eup %12152  ;;  %v7063_v9 = vmul.f32 %v12151_v23, %v14544_v15  ;;  %v7049_v22 = vpop.xlane.xlu2 %7048 }
0x1aab   : > { %v7065_v26 = vmul.f32 %v12153_v20, %v14546_v53  ;;  %12154 = vrcp.f32 %v7049_v22  ;;  %11338 = vmatmul.msk.f32.vlgmr.msrb.gmra.mxu0 %vm318_vm0, %v7066_v7 }
0x1aac   : > { %11335 = vmatmul.msk.f32.vlgmr.msra.gmra.mxu1 %vm318_vm0, %v7063_v9 }
0x1aad   : > { %11337 = vmatmul.msk.f32.vlgmr.msrb.gmra.mxu3 %vm318_vm0, %v7065_v26 }
0x1ab1   : > { %v12155_v60 = vpop.eup %12154 }
0x1ab2   : > { %v7067_v0 = vmul.f32 %v12155_v60, %v12139_v16  ;;  %v7040_v63 = vpop.xlane.xlu2 %7039 }
0x1ab3   : > { %12156 = vrcp.f32 %v7040_v63 }
0x1ab4   : > { %11339 = vmatmul.msk.f32.vlgmr.msrb.gmra.mxu1 %vm318_vm0, %v7067_v0  ;;  %v7404_v46 = vpop.permute.xlu0 %7403 }
0x1ab5   : > { %11342 = vmatmul.msk.f32.vlgmr.msra.gmra.mxu3 %vm416_vm2, %v14506_v47 }
0x1ab9   : > { %v12157_v15 = vpop.eup %12156 }
0x1aba   : > { %v7064_v59 = vmul.f32 %v12157_v15, %v12141_v12  ;;  %v7402_v53 = vpop.permute.xlu1 %7401  ;;  %v7346_v19 = vpop.permute.xlu2 %7345 }
0x1abb   : > { %11344 = vmatmul.msk.f32.vlgmr.msra.gmra.mxu0 %vm416_vm2, %v7346_v19 }
0x1abc   : > { %11336 = vmatmul.msk.f32.vlgmr.msra.gmra.mxu2 %vm318_vm0, %v7064_v59  ;;  %v7376_v61 = vpop.permute.xlu0 %7375 }
0x1abd   : > { %11347 = vmatpush.xpose.msk.msra.mxu2 %vm416_vm2, %v7404_v46  ;;  %11345 = vmatpush.xpose.msk.msra.mxu1 %vm416_vm2, %v7376_v61 }
0x1ac2   : > { %v7374_v28 = vpop.permute.xlu1 %7373  ;;  %v7460_v14 = vpop.permute.xlu2 %7459 }
0x1ac3   : > { %11346 = vmatmul.msk.f32.vlgmr.msra.gmra.mxu1 %vm416_vm2, %v7374_v28  ;;  %11351 = vmatpush.xpose.msk.msrb.mxu0 %vm416_vm2, %v7460_v14 }
0x1ac4   : > { %v7432_v47 = vpop.permute.xlu0 %7431 }
0x1ac5   : > { %11349 = vmatpush.xpose.msk.msrb.mxu3 %vm416_vm2, %v7432_v47 }
0x1aca   : > { %v7514_v48 = vpop.permute.xlu2 %7513 }
0x1acc   : > { %v7458_v42 = vpop.permute.xlu0 %7457 }
0x1acd   : > { %11352 = vmatmul.msk.f32.vlgmr.msrb.gmra.mxu0 %vm416_vm2, %v7458_v42 }
0x1ad4   : > { %v7488_v16 = vpop.permute.xlu0 %7487 }
0x1ad5   : > { %11353 = vmatpush.xpose.msk.msrb.mxu1 %vm416_vm2, %v7488_v16 }
0x1aed   : > { %v7052_v5 = vpop.xlane.xlu1 %7051 }
0x1aee   : > { %12158 = vrcp.f32 %v7052_v5  ;;  %v11727_v5 = vpack.i.bf16 %v14126_v1, %v14223_v24 }
0x1af4   : > { %v12159_v12 = vpop.eup %12158 }
0x1af5   : > { %v7068_v27 = vmul.f32 %v12159_v12, %v14576_v35 }
0x1af7   : > { %11340 = vmatmul.msk.f32.vlgmr.msrb.gmra.mxu2 %vm318_vm0, %v7068_v27 }
0x1aff   : > { %11348 = vmatmul.msk.f32.vlgmr.msra.gmra.mxu2 %vm416_vm2, %v7402_v53 }
0x1b05   : > { %v7430_v44 = vpop.permute.xlu1 %7429 }
0x1b06   : > { %11350 = vmatmul.msk.f32.vlgmr.msrb.gmra.mxu3 %vm416_vm2, %v7430_v44 }
0x1b0d   : > { %v7516_v32 = vpop.permute.xlu1 %7515 }
0x1b0e   : > { %11355 = vmatpush.xpose.msk.msrb.mxu2 %vm416_vm2, %v7516_v32 }
0x1b11   : > { %11356 = vmatmul.msk.f32.vlgmr.msrb.gmra.mxu2 %vm416_vm2, %v7514_v48 }
0x1b15   : > { %v7486_v25 = vpop.permute.xlu1 %7485 }
0x1b16   : > { %11354 = vmatmul.msk.f32.vlgmr.msrb.gmra.mxu1 %vm416_vm2, %v7486_v25 }
0x1b19   : > { %v14618_v39 = vpop.f32.mrf.mxu0 }
0x1b27   : > { %v14616_v52 = vpop.f32.mrf.mxu3 }
0x1b28   : > { %v14622_v10 = vpop.f32.mrf.mxu0 }
0x1b29   : > { %v14620_v35 = vpop.f32.mrf.mxu1 }
0x1b30   : > { %v14624_v13 = vpop.f32.mrf.mxu3 }
0x1b31   : > { %v14626_v34 = vpop.f32.mrf.mxu1 }
0x1b38   : > { %v7342_v31 = vpop.f32.mrf.mxu3  ;;  %v7370_v58 = vpop.f32.mrf.mxu0 }
0x1b39   : > { %v7541_v54 = vmul.f32 0.25, %v7342_v31  ;;  %v7542_v37 = vmul.f32 0.25, %v7370_v58 }
0x1b3b   : > { %v7549_v30 = vsel %vm318_vm0, %v7541_v54, -inf  ;;  %v7552_v56 = vsel %vm318_vm0, %v7542_v37, -inf }
0x1b3c   : > { %7550 = vmax.xlane.f32.xlu2 %v7549_v30  ;;  %7553 = vmax.xlane.f32.xlu0 %v7552_v56 }
0x1b3f   : > { %v14632_v60 = vpop.f32.mrf.mxu2 }
0x1b40   : > { %v7398_v23 = vpop.f32.mrf.mxu1 }
0x1b41   : > { %v7543_v7 = vmul.f32 0.25, %v7398_v23 }
0x1b43   : > { %v7555_v20 = vsel %vm318_vm0, %v7543_v7, -inf }
0x1b44   : > { %7556 = vmax.xlane.f32.xlu1 %v7555_v20 }
0x1b4a   : > { %v7482_v9 = vpop.f32.mrf.mxu0 }
0x1b4b   : > { %v7546_v22 = vmul.f32 0.25, %v7482_v9 }
0x1b4d   : > { %v7564_v26 = vsel %vm318_vm0, %v7546_v22, -inf }
0x1b4e   : > { %7565 = vmax.xlane.f32.xlu1 %v7564_v26 }
0x1b7a   : > { %v14634_v0 = vpop.f32.mrf.mxu2 }
0x1b82   : > { %v7426_v15 = vpop.f32.mrf.mxu2 }
0x1b83   : > { %v7544_v42 = vmul.f32 0.25, %v7426_v15 }
0x1b85   : > { %v7558_v16 = vsel %vm318_vm0, %v7544_v42, -inf }
0x1b89   : > { %v7454_v63 = vpop.f32.mrf.mxu3 }
0x1b8a   : > { %v7545_v46 = vmul.f32 0.25, %v7454_v63 }
0x1b8c   : > { %v7561_v59 = vsel %vm318_vm0, %v7545_v46, -inf }
0x1b8d   : > { %7562 = vmax.xlane.f32.xlu0 %v7561_v59 }
0x1b93   : > { %v7510_v53 = vpop.f32.mrf.mxu1 }
0x1b94   : > { %v14637_v19 = vmul.f32 0.25, %v7510_v53  ;;  %v7538_v61 = vpop.f32.mrf.mxu2 }
0x1b95   : > { %v7548_v28 = vmul.f32 0.25, %v7538_v61 }
0x1b96   : > { %v7567_v14 = vsel %vm318_vm0, %v14637_v19, -inf }
0x1b97   : > { %7568 = vmax.xlane.f32.xlu2 %v7567_v14  ;;  %v7570_v47 = vsel %vm318_vm0, %v7548_v28, -inf }
0x1b98   : > { %7571 = vmax.xlane.f32.xlu1 %v7570_v47 }
0x1b9f   : > { %7559 = vmax.xlane.f32.xlu2 %v7558_v16 }
0x1ba1   : > { %11728 = vrot.lane.b32.xlu0 %v11727_v5, %s12455_s17 }
0x1baf   : > { %v7554_v12 = vpop.xlane.xlu0 %7553  ;;  %v7551_v32 = vpop.xlane.xlu2 %7550 }
0x1bb0   : > { %v7574_v27 = vsub.f32 %v7542_v37, %v7554_v12  ;;  %v7573_v31 = vsub.f32 %v7541_v54, %v7551_v32  ;;  %v11732_v54 = vpack.i.bf16 %v14151_v57, %v14139_v40 }
0x1bb2   : > { %v7583_v44 = vmul.f32 1.442695, %v7574_v27  ;;  %v7581_v23 = vmul.f32 1.442695, %v7573_v31 }
0x1bb4   : > { %12160 = vpow2.f32 %v7583_v44 }
0x1bb7   : > { %v7557_v48 = vpop.xlane.xlu1 %7556 }
0x1bb8   : > { %v7575_v25 = vsub.f32 %v7543_v7, %v7557_v48 }
0x1bba   : > { %v7585_v58 = vmul.f32 1.442695, %v7575_v25  ;;  %v12161_v30 = vpop.eup %12160 }
0x1bbb   : > { %v7600_v56 = vsel %vm318_vm0, %v12161_v30, 0.0 }
0x1bbc   : > { %12162 = vpow2.f32 %v7585_v58  ;;  %7601 = vadd.xlane.f32.xlu1 %v7600_v56 }
0x1bbd   : > { %12164 = vpow2.f32 %v7581_v23 }
0x1bc1   : > { %v7566_v7 = vpop.xlane.xlu1 %7565 }
0x1bc2   : > { %v14647_v20 = vpop.eup %12162  ;;  %v7578_v9 = vsub.f32 %v7546_v22, %v7566_v7 }
0x1bc3   : > { %v7603_v1 = vsel %vm318_vm0, %v14647_v20, 0.0  ;;  %v12165_v24 = vpop.eup %12164 }
0x1bc4   : > { %7604 = vadd.xlane.f32.xlu2 %v7603_v1  ;;  %v7597_v37 = vsel %vm318_vm0, %v12165_v24, 0.0  ;;  %v7591_v26 = vmul.f32 1.442695, %v7578_v9 }
0x1bc6   : > { %12166 = vpow2.f32 %v7591_v26 }
0x1bcc   : > { %7598 = vadd.xlane.f32.xlu2 %v7597_v37  ;;  %v14657_v53 = vpop.eup %12166 }
0x1bcd   : > { %v7612_v40 = vsel %vm318_vm0, %v14657_v53, 0.0 }
0x1bd5   : > { %7741 = vrot.lane.b32.xlu1 %v14228_v36, %s12455_s17 }
0x1be4   : > { %11733 = vrot.lane.b32.xlu2 %v11732_v54, %s12455_s17 }
0x1c00   : > { %v7563_v63 = vpop.xlane.xlu0 %7562 }
0x1c01   : > { %v7577_v15 = vsub.f32 %v7545_v46, %v7563_v63 }
0x1c03   : > { %v7589_v59 = vmul.f32 1.442695, %v7577_v15 }
0x1c05   : > { %12168 = vpow2.f32 %v7589_v59 }
0x1c0a   : > { %v7569_v61 = vpop.xlane.xlu2 %7568 }
0x1c0b   : > { %v14659_v14 = vpop.eup %12168  ;;  %v7572_v47 = vpop.xlane.xlu1 %7571 }
0x1c0c   : > { %v7580_v36 = vsub.f32 %v7548_v28, %v7572_v47  ;;  %v7609_v57 = vsel %vm318_vm0, %v14659_v14, 0.0 }
0x1c0d   : > { %7613 = vadd.xlane.f32.xlu2 %v7612_v40  ;;  %7610 = vadd.xlane.f32.xlu0 %v7609_v57 }
0x1c0e   : > { %v7595_v22 = vmul.f32 1.442695, %v7580_v36 }
0x1c10   : > { %12170 = vpow2.f32 %v7595_v22 }
0x1c12   : > { %v7560_v46 = vpop.xlane.xlu2 %7559 }
0x1c13   : > { %v7576_v16 = vsub.f32 %v7544_v42, %v7560_v46  ;;  %v11729_v5 = vpop.permute.xlu0 %11728 }
0x1c14   : > { %v11731_v12 = vunpack.i.h.bf16 %v11729_v5  ;;  %v11730_v27 = vunpack.i.l.bf16 %v11729_v5 }
0x1c15   : > { %v7587_v44 = vmul.f32 1.442695, %v7576_v16  ;;  %v7901_v16 = vld [vmem:[#allocation7 + $0xb8] sm:$0xff] }
0x1c16   : > { %v14665_v32 = vpop.eup %12170  ;;  %7658 = vmatpush.msra.mxu3 %v11730_v27  ;;  %7684 = vmatpush.msra.mxu0 %v11731_v12  ;;  %v7900_v12 = vld [vmem:[#allocation7 + $0xb0] sm:$0xff]  ;;  %v7899_v27 = vld [vmem:[#allocation7 + $0xa8] sm:$0xff] }
0x1c17   : > { %12172 = vpow2.f32 %v7587_v44  ;;  %v7618_v28 = vsel %vm318_vm0, %v14665_v32, 0.0 }
0x1c18   : > { %7619 = vadd.xlane.f32.xlu0 %v7618_v28  ;;  %v7896_v28 = vld [vmem:[#allocation7 + $0x90] sm:$0xff] }
0x1c1d   : > { %v12173_v48 = vpop.eup %12172 }
0x1c1e   : > { %v7606_v25 = vsel %vm318_vm0, %v12173_v48, 0.0 }
0x1c1f   : > { %7607 = vadd.xlane.f32.xlu1 %v7606_v25 }
0x1c25   : > { %6717 = vrot.lane.b32.xlu2 %v14510_v38, %s12454_s16 }
0x1c2c   : > { %11738 = vrot.lane.b32.xlu0 %v11737_v45, %s12455_s17 }
0x1c2f   : > { %v7602_v42 = vpop.xlane.xlu1 %7601 }
0x1c30   : > { %12174 = vrcp.f32 %v7602_v42  ;;  %v7894_v42 = vld [vmem:[#allocation7 + $0x80] sm:$0xff] }
0x1c34   : > { %7285 = vrot.lane.b32.xlu0 %v14616_v52, %s12452_s14 }
0x1c36   : > { %v12175_v31 = vpop.eup %12174 }
0x1c37   : > { %v7605_v58 = vpop.xlane.xlu2 %7604  ;;  %v7630_v56 = vmul.f32 %v12175_v31, %v12161_v30 }
0x1c38   : > { %7767 = vrot.lane.b32.xlu1 %v14168_v6, %s12455_s17  ;;  %12176 = vrcp.f32 %v7605_v58  ;;  %v7579_v6 = vsub.f32 %v14637_v19, %v7569_v61 }
0x1c39   : > { %11358 = vmatmul.msk.f32.vlgmr.msra.gmra.mxu0 %vm318_vm0, %v7630_v56 }
0x1c3c   : > { %7287 = vrot.lane.b32.xlu0 %v14618_v39, %s12452_s14  ;;  %v7593_v39 = vmul.f32 1.442695, %v7579_v6 }
0x1c3e   : > { %v12177_v17 = vpop.eup %12176 }
0x1c3f   : > { %v7599_v38 = vpop.xlane.xlu2 %7598  ;;  %v7631_v30 = vmul.f32 %v12177_v17, %v14647_v20 }
0x1c40   : > { %12178 = vrcp.f32 %v7599_v38 }
0x1c41   : > { %12180 = vpow2.f32 %v7593_v39 }
0x1c46   : > { %v12179_v55 = vpop.eup %12178 }
0x1c47   : > { %v7629_v45 = vmul.f32 %v12179_v55, %v12165_v24  ;;  %v11734_v23 = vpop.permute.xlu2 %11733  ;;  %v7742_v37 = vpop.permute.xlu1 %7741 }
0x1c48   : > { %v11736_v1 = vunpack.i.h.bf16 %v11734_v23  ;;  %v11735_v52 = vunpack.i.l.bf16 %v11734_v23  ;;  %7762 = vmatpush.msrb.mxu3 %v7742_v37  ;;  %v12181_v54 = vpop.eup %12180  ;;  %v11802_v37 = vld [vmem:[%s15595_s5 + $0x5] ss:$0 sm:$0xff] }
0x1c49   : > { %11357 = vmatmul.msk.f32.vlgmr.msra.gmra.mxu3 %vm318_vm0, %v7629_v45  ;;  %v7615_v24 = vsel %vm318_vm0, %v12181_v54, 0.0 }
0x1c4a   : > { %7710 = vmatpush.msra.mxu1 %v11735_v52  ;;  %7736 = vmatpush.msra.mxu2 %v11736_v1 }
0x1c4b   : > { %11359 = vmatmul.msk.f32.vlgmr.msra.gmra.mxu1 %vm318_vm0, %v7631_v30  ;;  %7940 = vmatpush.msra.mxu3 %v7901_v16 }
0x1c4d   : > { %7941 = vmatpush.msra.mxu3 %v7900_v12 }
0x1c4f   : > { %7942 = vmatpush.msra.mxu3 %v7899_v27 }
0x1c62   : > { %7616 = vadd.xlane.f32.xlu1 %v7615_v24 }
0x1c7b   : > { %6719 = vrot.lane.b32.xlu1 %v14515_v3, %s12454_s16 }
0x1c80   : > { %v7614_v7 = vpop.xlane.xlu2 %7613  ;;  %v7611_v20 = vpop.xlane.xlu0 %7610 }
0x1c81   : > { %12182 = vrcp.f32 %v7611_v20 }
0x1c83   : > { %7291 = vrot.lane.b32.xlu1 %v14632_v60, %s12452_s14 }
0x1c87   : > { %v12183_v9 = vpop.eup %12182 }
0x1c88   : > { %v6718_v26 = vpop.permute.xlu2 %6717  ;;  %v7633_v63 = vmul.f32 %v12183_v9, %v14659_v14  ;;  %v8020_v9 = vld [vmem:[#allocation5 + $0x1f0] sm:$0xff] }
0x1c89   : > { %6741 = vst.msk [vmem:[#allocation2] sm:$0xff] %vm1807_vm15, %v6718_v26  ;;  %v8021_v26 = vld [vmem:[#allocation5 + $0x1f8] sm:$0xff] }
0x1c8a   : > { %11361 = vmatmul.msk.f32.vlgmr.msrb.gmra.mxu3 %vm318_vm0, %v7633_v63  ;;  %v8018_v63 = vld [vmem:[#allocation5 + $0x1e0] sm:$0xff] }
0x1c8b   : > { %7293 = vrot.lane.b32.xlu1 %v14624_v13, %s12452_s14  ;;  %v7620_v3 = vpop.xlane.xlu0 %7619 }
0x1c92   : > { %v7608_v19 = vpop.xlane.xlu1 %7607 }
0x1c93   : > { %12184 = vrcp.f32 %v7608_v19  ;;  %7295 = vrot.lane.b32.xlu1 %v14622_v10, %s12452_s14  ;;  %v8019_v19 = vld [vmem:[#allocation5 + $0x1e8] sm:$0xff] }
0x1c94   : > { %12186 = vrcp.f32 %v7620_v3  ;;  %v8016_v3 = vld [vmem:[#allocation5 + $0x1d0] sm:$0xff] }
0x1c95   : > { %12188 = vrcp.f32 %v7614_v7 }
0x1c99   : > { %v12185_v15 = vpop.eup %12184 }
0x1c9a   : > { %v7632_v60 = vmul.f32 %v12185_v15, %v12173_v48  ;;  %v12187_v61 = vpop.eup %12186  ;;  %v7895_v48 = vld [vmem:[#allocation7 + $0x88] sm:$0xff]  ;;  %v8017_v15 = vld [vmem:[#allocation5 + $0x1d8] sm:$0xff] }
0x1c9b   : > { %7297 = vrot.lane.b32.xlu1 %v14626_v34, %s12452_s14  ;;  %v7636_v13 = vmul.f32 %v12187_v61, %v14665_v32  ;;  %v12189_v36 = vpop.eup %12188  ;;  %v7897_v32 = vld [vmem:[#allocation7 + $0x98] sm:$0xff] }
0x1c9c   : > { %11360 = vmatmul.msk.f32.vlgmr.msra.gmra.mxu2 %vm318_vm0, %v7632_v60  ;;  %v7634_v34 = vmul.f32 %v12189_v36, %v14657_v53  ;;  %v8014_v60 = vld [vmem:[#allocation5 + $0x1c0] sm:$0xff] }
0x1c9e   : > { %v11739_v59 = vpop.permute.xlu0 %11738 }
0x1c9f   : > { %v11741_v14 = vunpack.i.h.bf16 %v11739_v59  ;;  %v11740_v47 = vunpack.i.l.bf16 %v11739_v59  ;;  %v8015_v59 = vld [vmem:[#allocation5 + $0x1c8] sm:$0xff] }
0x1ca1   : > { %7814 = vmatpush.msrb.mxu1 %v11740_v47  ;;  %7840 = vmatpush.msrb.mxu2 %v11741_v14 }
0x1ca3   : > { %7299 = vrot.lane.b32.xlu1 %v14634_v0, %s12452_s14  ;;  %8102 = vmatpush.msra.mxu1 %v8021_v26 }
0x1ca4   : > { %11364 = vmatmul.msk.f32.vlgmr.msrb.gmra.mxu2 %vm318_vm0, %v7636_v13 }
0x1ca5   : > { %8103 = vmatpush.msra.mxu1 %v8019_v19 }
0x1ca6   : > { %v7286_v10 = vpop.permute.xlu0 %7285 }
0x1ca7   : > { %7309 = vst.msk [vmem:[#allocation2] sm:$0xff] %vm2376_vm1, %v7286_v10  ;;  %8104 = vmatpush.msra.mxu1 %v8017_v15 }
0x1ca9   : > { %8105 = vmatpush.msra.mxu1 %v8015_v59 }
0x1caa   : > { %v7768_v40 = vpop.permute.xlu1 %7767 }
0x1cab   : > { %7788 = vmatpush.msrb.mxu0 %v7768_v40  ;;  %v8013_v40 = vld [vmem:[#allocation5 + $0x1b8] sm:$0xff] }
0x1cac   : > { %11362 = vmatmul.msk.f32.vlgmr.msrb.gmra.mxu0 %vm318_vm0, %v7634_v34  ;;  %v8012_v34 = vld [vmem:[#allocation5 + $0x1b0] sm:$0xff]  ;;  %8106 = vmatpush.msra.mxu1 %v8013_v40 }
0x1cad   : > { %8061 = vmatpush.msra.mxu0 %v8020_v9 }
0x1caf   : > { %8062 = vmatpush.msra.mxu0 %v8018_v63 }
0x1cb1   : > { %8063 = vmatpush.msra.mxu0 %v8016_v3 }
0x1cb3   : > { %8064 = vmatpush.msra.mxu0 %v8014_v60 }
0x1cb5   : > { %8065 = vmatpush.msra.mxu0 %v8012_v34 }
0x1cb6   : > { %v7686_v57 = vpop.f32.mrf.mxu0 }
0x1cb7   : > { %7855 = vrot.lane.b32.xlu2 %v7686_v57, %s12450_s12  ;;  %v8010_v57 = vld [vmem:[#allocation5 + $0x1a0] sm:$0xff] }
0x1cb8   : > { %8066 = vmatpush.msra.mxu0 %v8010_v57 }
0x1cbf   : > { %7289 = vrot.lane.b32.xlu2 %v14620_v35, %s12452_s14 }
0x1cc7   : > { %6723 = vrot.lane.b32.xlu2 %v14523_v33, %s12454_s16  ;;  %v7288_v33 = vpop.permute.xlu0 %7287 }
0x1cc8   : > { %v7712_v46 = vpop.f32.mrf.mxu1 }
0x1ccc   : > { %v7660_v0 = vpop.f32.mrf.mxu3 }
0x1ccd   : > { %7853 = vrot.lane.b32.xlu0 %v7660_v0, %s12450_s12  ;;  %v8011_v0 = vld [vmem:[#allocation5 + $0x1a8] sm:$0xff] }
0x1cce   : > { %8107 = vmatpush.msra.mxu1 %v8011_v0 }
0x1ccf   : > { %6725 = vrot.lane.b32.xlu2 %v14512_v11, %s12454_s16 }
0x1cd5   : > { %v7617_v53 = vpop.xlane.xlu1 %7616  ;;  %6721 = vrot.lane.b32.xlu0 %v14517_v29, %s12454_s16 }
0x1cd6   : > { %12190 = vrcp.f32 %v7617_v53  ;;  %v8008_v53 = vld [vmem:[#allocation5 + $0x190] sm:$0xff] }
0x1cd7   : > { %6727 = vrot.lane.b32.xlu2 %v14519_v50, %s12454_s16  ;;  %8067 = vmatpush.msra.mxu0 %v8008_v53 }
0x1cdc   : > { %v12191_v22 = vpop.eup %12190 }
0x1cdd   : > { %v7635_v35 = vmul.f32 %v12191_v22, %v12181_v54  ;;  %7857 = vrot.lane.b32.xlu0 %v7712_v46, %s12450_s12  ;;  %v8009_v22 = vld [vmem:[#allocation5 + $0x198] sm:$0xff]  ;;  %v8006_v46 = vld [vmem:[#allocation5 + $0x180] sm:$0xff] }
0x1cde   : > { %8108 = vmatpush.msra.mxu1 %v8009_v22  ;;  %8068 = vmatpush.msra.mxu0 %v8006_v46 }
0x1cdf   : > { %11363 = vmatmul.msk.f32.vlgmr.msrb.gmra.mxu1 %vm318_vm0, %v7635_v35  ;;  %6729 = vrot.lane.b32.xlu2 %v14521_v43, %s12454_s16  ;;  %v7898_v43 = vld [vmem:[#allocation7 + $0xa0] sm:$0xff]  ;;  %v8007_v35 = vld [vmem:[#allocation5 + $0x188] sm:$0xff] }
0x1ce0   : > { %7943 = vmatpush.msra.mxu3 %v7898_v43  ;;  %8109 = vmatpush.msra.mxu1 %v8007_v35 }
0x1ce2   : > { %7944 = vmatpush.msra.mxu3 %v7897_v32 }
0x1ce4   : > { %7945 = vmatpush.msra.mxu3 %v7896_v28 }
0x1ce6   : > { %7946 = vmatpush.msra.mxu3 %v7895_v48 }
0x1ce7   : > { %6731 = vrot.lane.b32.xlu2 %v14526_v8, %s12454_s16 }
0x1ce8   : > { %7947 = vmatpush.msra.mxu3 %v7894_v42 }
0x1ced   : > { %v6720_v11 = vpop.permute.xlu1 %6719 }
0x1cee   : > { %6742 = vst.msk [vmem:[#allocation2 + $0x8] sm:$0xff] %vm1807_vm15, %v6720_v11 }
0x1cef   : > { %7310 = vst.msk [vmem:[#allocation2 + $0x8] sm:$0xff] %vm2376_vm1, %v7288_v33  ;;  %7905 = vrot.lane.b32.xlu2 %v11802_v37, %s12449_s11 }
0x1cf5   : > { %v7292_v5 = vpop.permute.xlu1 %7291 }
0x1cfd   : > { %v7294_v25 = vpop.permute.xlu1 %7293 }
0x1d05   : > { %v7296_v56 = vpop.permute.xlu1 %7295 }
0x1d0d   : > { %v7764_v31 = vpop.f32.mrf.mxu3  ;;  %v7298_v55 = vpop.permute.xlu1 %7297 }
0x1d11   : > { %v7856_v29 = vpop.permute.xlu2 %7855 }
0x1d12   : > { %7878 = vst.msk [vmem:[#allocation2 + $0x8] sm:$0xff] %vm2945_vm3, %v7856_v29 }
0x1d15   : > { %v7300_v52 = vpop.permute.xlu1 %7299 }
0x1d19   : > { %v7290_v50 = vpop.permute.xlu2 %7289  ;;  %v7886_v54 = vld [vmem:[#allocation2 + $0x8] sm:$0xff] }
0x1d1f   : > { %v7738_v44 = vpop.f32.mrf.mxu2 }
0x1d20   : > { %7859 = vrot.lane.b32.xlu0 %v7738_v44, %s12450_s12 }
0x1d21   : > { %v6724_v8 = vpop.permute.xlu2 %6723 }
0x1d22   : > { %6744 = vst.msk [vmem:[#allocation2 + $0x18] sm:$0xff] %vm1807_vm15, %v6724_v8 }
0x1d23   : > { %7312 = vst.msk [vmem:[#allocation2 + $0x18] sm:$0xff] %vm2376_vm1, %v7292_v5 }
0x1d27   : > { %v7842_v20 = vpop.f32.mrf.mxu2 }
0x1d28   : > { %7861 = vrot.lane.b32.xlu0 %v7764_v31, %s12450_s12 }
0x1d29   : > { %v6726_v58 = vpop.permute.xlu2 %6725  ;;  %v7790_v38 = vpop.f32.mrf.mxu0 }
0x1d2a   : > { %6745 = vst.msk [vmem:[#allocation2 + $0x20] sm:$0xff] %vm1807_vm15, %v6726_v58 }
0x1d2b   : > { %7313 = vst.msk [vmem:[#allocation2 + $0x20] sm:$0xff] %vm2376_vm1, %v7294_v25 }
0x1d30   : > { %7863 = vrot.lane.b32.xlu0 %v7790_v38, %s12450_s12 }
0x1d31   : > { %v6728_v17 = vpop.permute.xlu2 %6727 }
0x1d32   : > { %6746 = vst.msk [vmem:[#allocation2 + $0x28] sm:$0xff] %vm1807_vm15, %v6728_v17 }
0x1d33   : > { %7314 = vst.msk [vmem:[#allocation2 + $0x28] sm:$0xff] %vm2376_vm1, %v7296_v56 }
0x1d39   : > { %v6730_v45 = vpop.permute.xlu2 %6729 }
0x1d3a   : > { %6747 = vst.msk [vmem:[#allocation2 + $0x30] sm:$0xff] %vm1807_vm15, %v6730_v45 }
0x1d3b   : > { %7315 = vst.msk [vmem:[#allocation2 + $0x30] sm:$0xff] %vm2376_vm1, %v7298_v55 }
0x1d3f   : > { %v7854_v23 = vpop.permute.xlu0 %7853 }
0x1d40   : > { %7877 = vst.msk [vmem:[#allocation2] sm:$0xff] %vm2945_vm3, %v7854_v23 }
0x1d41   : > { %v6732_v1 = vpop.permute.xlu2 %6731 }
0x1d42   : > { %6748 = vst.msk [vmem:[#allocation2 + $0x38] sm:$0xff] %vm1807_vm15, %v6732_v1 }
0x1d43   : > { %7316 = vst.msk [vmem:[#allocation2 + $0x38] sm:$0xff] %vm2376_vm1, %v7300_v52 }
0x1d47   : > { %v6722_v30 = vpop.permute.xlu0 %6721  ;;  %v7885_v6 = vld [vmem:[#allocation2] sm:$0xff] }
0x1d48   : > { %6743 = vst.msk [vmem:[#allocation2 + $0x10] sm:$0xff] %vm1807_vm15, %v6722_v30  ;;  %11366 = vmatmul.msk.f32.vlgmr.msra.gmra.mxu3 %vm628_vm6, %v7885_v6 }
0x1d49   : > { %7311 = vst.msk [vmem:[#allocation2 + $0x10] sm:$0xff] %vm2376_vm1, %v7290_v50  ;;  %v14762_v11 = vpop.permute.xlu2 %7905 }
0x1d4f   : > { %v7858_v39 = vpop.permute.xlu0 %7857 }
0x1d50   : > { %7879 = vst.msk [vmem:[#allocation2 + $0x10] sm:$0xff] %vm2945_vm3, %v7858_v39  ;;  %11367 = vmatmul.msk.f32.gmra.mxu3 %vm628_vm6, %v7886_v54 }
0x1d57   : > { %v7887_v24 = vld [vmem:[#allocation2 + $0x10] sm:$0xff] }
0x1d58   : > { %11368 = vmatmul.msk.f32.gmra.mxu3 %vm628_vm6, %v7887_v24 }
0x1d5c   : > { %v7816_v7 = vpop.f32.mrf.mxu1 }
0x1d5d   : > { %7865 = vrot.lane.b32.xlu0 %v7816_v7, %s12450_s12 }
0x1d65   : > { %7867 = vrot.lane.b32.xlu0 %v7842_v20, %s12450_s12 }
0x1d92   : > { %v7860_v61 = vpop.permute.xlu0 %7859 }
0x1d93   : > { %7880 = vst.msk [vmem:[#allocation2 + $0x18] sm:$0xff] %vm2945_vm3, %v7860_v61 }
0x1d9a   : > { %v7862_v14 = vpop.permute.xlu0 %7861  ;;  %v7888_v47 = vld [vmem:[#allocation2 + $0x18] sm:$0xff] }
0x1d9b   : > { %7881 = vst.msk [vmem:[#allocation2 + $0x20] sm:$0xff] %vm2945_vm3, %v7862_v14  ;;  %11369 = vmatmul.msk.f32.gmra.mxu3 %vm628_vm6, %v7888_v47 }
0x1da2   : > { %v7864_v13 = vpop.permute.xlu0 %7863  ;;  %v7889_v10 = vld [vmem:[#allocation2 + $0x20] sm:$0xff] }
0x1da3   : > { %7882 = vst.msk [vmem:[#allocation2 + $0x28] sm:$0xff] %vm2945_vm3, %v7864_v13  ;;  %11370 = vmatmul.msk.f32.gmra.mxu3 %vm628_vm6, %v7889_v10 }
0x1daa   : > { %v7890_v36 = vld [vmem:[#allocation2 + $0x28] sm:$0xff] }
0x1dab   : > { %11371 = vmatmul.msk.f32.gmra.mxu3 %vm628_vm6, %v7890_v36 }
0x1dcb   : > { %v7949_v33 = vpop.f32.mrf.mxu3 }
0x1dcc   : > { %v7950_v29 = vadd.f32 %v7949_v33, %v14762_v11 }
0x1dce   : > { %v7973_v50 = vadd.f32 %v7950_v29, %v14047_v62 }
0x1dcf   : > { %v7866_v16 = vpop.permute.xlu0 %7865 }
0x1dd0   : > { %7883 = vst.msk [vmem:[#allocation2 + $0x30] sm:$0xff] %vm2945_vm3, %v7866_v16  ;;  %vm7981_vm13 = vcmp.ge.f32.partialorder %v7973_v50, 0.0  ;;  %v7989_v5 = vmul.f32 0.2, %v7973_v50 }
0x1dd2   : > { %v14767_v12 = vsel %vm7981_vm13, %v7973_v50, %v7989_v5 }
0x1dd3   : > { %v7952_v27 = vpop.f32.mrf.mxu3  ;;  %11375 = vmatmul.msk.f32.vlgmr.msra.gmra.mxu0 %vm628_vm6, %v14767_v12  ;;  %11383 = vmatmul.msk.f32.vlgmr.msra.gmra.mxu1 %vm628_vm6, %v14767_v12 }
0x1dd4   : > { %v7953_v43 = vadd.f32 %v7952_v27, %v14762_v11 }
0x1dd6   : > { %v7974_v44 = vadd.f32 %v7953_v43, %v14056_v4 }
0x1dd7   : > { %v7868_v8 = vpop.permute.xlu0 %7867  ;;  %v7891_v62 = vld [vmem:[#allocation2 + $0x30] sm:$0xff] }
0x1dd8   : > { %7884 = vst.msk [vmem:[#allocation2 + $0x38] sm:$0xff] %vm2945_vm3, %v7868_v8  ;;  %11372 = vmatmul.msk.f32.gmra.mxu3 %vm628_vm6, %v7891_v62  ;;  %vm7982_vm14 = vcmp.ge.f32.partialorder %v7974_v44, 0.0  ;;  %v7990_v32 = vmul.f32 0.2, %v7974_v44 }
0x1dda   : > { %v14777_v28 = vsel %vm7982_vm14, %v7974_v44, %v7990_v32 }
0x1ddb   : > { %v7955_v48 = vpop.f32.mrf.mxu3  ;;  %11376 = vmatmul.msk.f32.gmra.mxu0 %vm628_vm6, %v14777_v28  ;;  %11384 = vmatmul.msk.f32.gmra.mxu1 %vm628_vm6, %v14777_v28 }
0x1ddc   : > { %v7956_v25 = vadd.f32 %v7955_v48, %v14762_v11 }
0x1dde   : > { %v7975_v4 = vadd.f32 %v7956_v25, %v14064_v49 }
0x1ddf   : > { %v7892_v42 = vld [vmem:[#allocation2 + $0x38] sm:$0xff] }
0x1de0   : > { %11373 = vmatmul.msk.f32.gmra.mxu3 %vm628_vm6, %v7892_v42  ;;  %vm7983_vm4 = vcmp.ge.f32.partialorder %v7975_v4, 0.0  ;;  %v7991_v31 = vmul.f32 0.2, %v7975_v4 }
0x1de2   : > { %v14786_v58 = vsel %vm7983_vm4, %v7975_v4, %v7991_v31 }
0x1de3   : > { %11377 = vmatmul.msk.f32.gmra.mxu0 %vm628_vm6, %v14786_v58  ;;  %11385 = vmatmul.msk.f32.gmra.mxu1 %vm628_vm6, %v14786_v58 }
0x1e1e   : > { %v7958_v56 = vpop.f32.mrf.mxu3 }
0x1e1f   : > { %v7959_v38 = vadd.f32 %v7958_v56, %v14762_v11 }
0x1e21   : > { %v7976_v17 = vadd.f32 %v7959_v38, %v14072_v18 }
0x1e23   : > { %vm7984_vm5 = vcmp.ge.f32.partialorder %v7976_v17, 0.0  ;;  %v7992_v49 = vmul.f32 0.2, %v7976_v17 }
0x1e25   : > { %v14794_v55 = vsel %vm7984_vm5, %v7976_v17, %v7992_v49 }
0x1e26   : > { %v7961_v45 = vpop.f32.mrf.mxu3  ;;  %11378 = vmatmul.msk.f32.gmra.mxu0 %vm628_vm6, %v14794_v55  ;;  %11386 = vmatmul.msk.f32.gmra.mxu1 %vm628_vm6, %v14794_v55 }
0x1e27   : > { %v7962_v23 = vadd.f32 %v7961_v45, %v14762_v11 }
0x1e29   : > { %v7977_v1 = vadd.f32 %v7962_v23, %v14080_v41  ;;  %v11374_v41 = vld [vmem:[%s15595_s5 + $0x6] sm:$0x3] }
0x1e2a   : > { %v14819_v24 = vperm.slane %v11374_v41, 0  ;;  %v14828_v9 = vperm.slane %v11374_v41, 1 }
0x1e2b   : > { %vm7985_vm7 = vcmp.ge.f32.partialorder %v7977_v1, 0.0  ;;  %v7993_v52 = vmul.f32 0.2, %v7977_v1 }
0x1e2d   : > { %v14802_v37 = vsel %vm7985_vm7, %v7977_v1, %v7993_v52 }
0x1e2e   : > { %v7964_v18 = vpop.f32.mrf.mxu3  ;;  %11379 = vmatmul.msk.f32.gmra.mxu0 %vm628_vm6, %v14802_v37  ;;  %11387 = vmatmul.msk.f32.gmra.mxu1 %vm628_vm6, %v14802_v37 }
0x1e2f   : > { %v7965_v30 = vadd.f32 %v7964_v18, %v14762_v11 }
0x1e31   : > { %v7978_v6 = vadd.f32 %v7965_v30, %v14093_v51 }
0x1e33   : > { %vm7986_vm8 = vcmp.ge.f32.partialorder %v7978_v6, 0.0  ;;  %v7994_v39 = vmul.f32 0.2, %v7978_v6 }
0x1e35   : > { %v14810_v54 = vsel %vm7986_vm8, %v7978_v6, %v7994_v39 }
0x1e36   : > { %11380 = vmatmul.msk.f32.gmra.mxu0 %vm628_vm6, %v14810_v54  ;;  %11388 = vmatmul.msk.f32.gmra.mxu1 %vm628_vm6, %v14810_v54 }
0x1e50   : > { %v8070_v7 = vpop.f32.mrf.mxu0  ;;  %v14821_v20 = vpop.f32.mrf.mxu1 }
0x1e51   : > { %v14824_v51 = vadd.f32 %v8070_v7, %v14819_v24  ;;  %v14948_v6 = vadd.f32 %v14821_v20, %v14828_v9 }
0x1e53   : > { %8136 = vrot.lane.b32.xlu1 %v14824_v51, %s12449_s11 }
0x1e58   : > { %v8073_v26 = vpop.f32.mrf.mxu0  ;;  %v8114_v63 = vpop.f32.mrf.mxu1 }
0x1e59   : > { %v14831_v19 = vadd.f32 %v8073_v26, %v14819_v24  ;;  %v14834_v3 = vadd.f32 %v8114_v63, %v14828_v9 }
0x1e5b   : > { %v7967_v15 = vpop.f32.mrf.mxu3  ;;  %8488 = vmatpush.msrb.mxu3 %v14834_v3  ;;  %8163 = vrot.lane.b32.xlu0 %v14831_v19, %s12449_s11 }
0x1e5c   : > { %v7968_v60 = vadd.f32 %v7967_v15, %v14762_v11 }
0x1e5e   : > { %v7979_v59 = vadd.f32 %v7968_v60, %v14108_v2 }
0x1e60   : > { %v7995_v61 = vmul.f32 0.2, %v7979_v59  ;;  %vm7987_vm9 = vcmp.ge.f32.partialorder %v7979_v59, 0.0  ;;  %v8076_v14 = vpop.f32.mrf.mxu0  ;;  %v8117_v47 = vpop.f32.mrf.mxu1 }
0x1e61   : > { %v14842_v13 = vadd.f32 %v8076_v14, %v14819_v24  ;;  %v14845_v10 = vadd.f32 %v8117_v47, %v14828_v9 }
0x1e62   : > { %v14847_v36 = vsel %vm7987_vm9, %v7979_v59, %v7995_v61 }
0x1e63   : > { %v7970_v34 = vpop.f32.mrf.mxu3  ;;  %11381 = vmatmul.msk.f32.gmra.mxu0 %vm628_vm6, %v14847_v36  ;;  %11389 = vmatmul.msk.f32.gmra.mxu1 %vm628_vm6, %v14847_v36 }
0x1e64   : > { %v7971_v2 = vadd.f32 %v7970_v34, %v14762_v11  ;;  %8511 = vmatpush.msrb.mxu0 %v14845_v10  ;;  %8190 = vrot.lane.b32.xlu2 %v14842_v13, %s12449_s11 }
0x1e66   : > { %v7980_v40 = vadd.f32 %v7971_v2, %v14123_v21 }
0x1e68   : > { %v7996_v57 = vmul.f32 0.2, %v7980_v40  ;;  %vm7988_vm10 = vcmp.ge.f32.partialorder %v7980_v40, 0.0 }
0x1e6a   : > { %v14858_v0 = vsel %vm7988_vm10, %v7980_v40, %v7996_v57 }
0x1e6b   : > { %11382 = vmatmul.msk.f32.gmra.mxu0 %vm628_vm6, %v14858_v0  ;;  %11390 = vmatmul.msk.f32.gmra.mxu1 %vm628_vm6, %v14858_v0 }
0x1ea3   : > { %v8079_v53 = vpop.f32.mrf.mxu0  ;;  %v8120_v22 = vpop.f32.mrf.mxu1 }
0x1ea4   : > { %v14865_v46 = vadd.f32 %v8079_v53, %v14819_v24  ;;  %v14868_v35 = vadd.f32 %v8120_v22, %v14828_v9 }
0x1ea6   : > { %8534 = vmatpush.msrb.mxu1 %v14868_v35  ;;  %8217 = vrot.lane.b32.xlu1 %v14865_v46, %s12449_s11 }
0x1eab   : > { %v8082_v21 = vpop.f32.mrf.mxu0  ;;  %v14873_v11 = vpop.f32.mrf.mxu1 }
0x1eac   : > { %v14876_v33 = vadd.f32 %v8082_v21, %v14819_v24  ;;  %v14954_v7 = vadd.f32 %v14873_v11, %v14828_v9 }
0x1eae   : > { %8244 = vrot.lane.b32.xlu0 %v14876_v33, %s12449_s11 }
0x1eb3   : > { %v8085_v29 = vpop.f32.mrf.mxu0  ;;  %v8126_v50 = vpop.f32.mrf.mxu1 }
0x1eb4   : > { %v14881_v16 = vadd.f32 %v8085_v29, %v14819_v24  ;;  %v14884_v5 = vadd.f32 %v8126_v50, %v14828_v9 }
0x1eb6   : > { %8580 = vmatpush.msra.mxu3 %v14884_v5  ;;  %8271 = vrot.lane.b32.xlu2 %v14881_v16, %s12449_s11 }
0x1ebe   : > { %8641 = vrot.lane.b32.xlu2 %v14824_v51, %s12450_s12  ;;  %v8191_v44 = vpop.permute.xlu2 %8190 }
0x1ec5   : > { %v8137_v27 = vpop.permute.xlu1 %8136 }
0x1ec6   : > { %8753 = vrot.lane.b32.xlu2 %v14876_v33, %s12450_s12  ;;  %11391 = vmatpush.xpose.msk.msra.mxu2 %vm416_vm2, %v8137_v27 }
0x1ec9   : > { %11392 = vmatmul.msk.f32.vlgmr.msra.gmra.mxu2 %vm416_vm2, %v14824_v51 }
0x1ecd   : > { %v8164_v43 = vpop.permute.xlu0 %8163 }
0x1ece   : > { %8781 = vrot.lane.b32.xlu2 %v14881_v16, %s12450_s12  ;;  %11393 = vmatpush.xpose.msk.msrb.mxu2 %vm416_vm2, %v8164_v43 }
0x1ed1   : > { %11394 = vmatmul.msk.f32.vlgmr.msrb.gmra.mxu2 %vm416_vm2, %v14831_v19 }
0x1ed2   : > { %11395 = vmatpush.xpose.msk.msra.mxu2 %vm416_vm2, %v8191_v44 }
0x1ed9   : > { %11396 = vmatmul.msk.f32.vlgmr.msra.gmra.mxu2 %vm416_vm2, %v14842_v13 }
0x1ee0   : > { %v8088_v8 = vpop.f32.mrf.mxu0  ;;  %v8129_v62 = vpop.f32.mrf.mxu1 }
0x1ee1   : > { %v14905_v32 = vadd.f32 %v8088_v8, %v14819_v24  ;;  %v14908_v48 = vadd.f32 %v8129_v62, %v14828_v9 }
0x1ee3   : > { %8603 = vmatpush.msra.mxu0 %v14908_v48  ;;  %8298 = vrot.lane.b32.xlu1 %v14905_v32, %s12449_s11 }
0x1ee8   : > { %v8091_v25 = vpop.f32.mrf.mxu0  ;;  %v8132_v4 = vpop.f32.mrf.mxu1 }
0x1ee9   : > { %v14914_v42 = vadd.f32 %v8091_v25, %v14819_v24  ;;  %v14917_v31 = vadd.f32 %v8132_v4, %v14828_v9 }
0x1eeb   : > { %8626 = vmatpush.msra.mxu1 %v14917_v31  ;;  %8325 = vrot.lane.b32.xlu0 %v14914_v42, %s12449_s11 }
0x1eec   : > { %8639 = vrot.lane.b32.xlu1 %v14824_v51, %s12451_s13 }
0x1ef3   : > { %8669 = vrot.lane.b32.xlu0 %v14831_v19, %s12450_s12 }
0x1ef4   : > { %8751 = vrot.lane.b32.xlu1 %v14876_v33, %s12451_s13 }
0x1efb   : > { %8667 = vrot.lane.b32.xlu0 %v14831_v19, %s12451_s13 }
0x1efc   : > { %8779 = vrot.lane.b32.xlu1 %v14881_v16, %s12451_s13 }
0x1f10   : > { %v8272_v17 = vpop.permute.xlu2 %8271 }
0x1f18   : > { %v8218_v56 = vpop.permute.xlu1 %8217  ;;  %v14961_v59 = vpop.permute.xlu2 %8641 }
0x1f19   : > { %11397 = vmatpush.xpose.msk.msrb.mxu2 %vm416_vm2, %v8218_v56 }
0x1f1c   : > { %11398 = vmatmul.msk.f32.vlgmr.msrb.gmra.mxu2 %vm416_vm2, %v14865_v46 }
0x1f20   : > { %v8245_v38 = vpop.permute.xlu0 %8244  ;;  %v14964_v34 = vpop.permute.xlu2 %8753 }
0x1f21   : > { %11399 = vmatpush.xpose.msk.msra.mxu2 %vm416_vm2, %v8245_v38 }
0x1f24   : > { %11400 = vmatmul.msk.f32.vlgmr.msra.gmra.mxu2 %vm416_vm2, %v14876_v33 }
0x1f25   : > { %11401 = vmatpush.xpose.msk.msrb.mxu2 %vm416_vm2, %v8272_v17 }
0x1f28   : > { %v14969_v57 = vpop.permute.xlu2 %8781 }
0x1f2c   : > { %11402 = vmatmul.msk.f32.vlgmr.msrb.gmra.mxu2 %vm416_vm2, %v14881_v16 }
0x1f4c   : > { %v8159_v49 = vpop.f32.mrf.mxu2 }
0x1f4d   : > { %v8351_v45 = vmul.f32 0.25, %v8159_v49 }
0x1f4f   : > { %v8359_v23 = vsel %vm318_vm0, %v8351_v45, -inf }
0x1f50   : > { %8360 = vmax.xlane.f32.xlu2 %v8359_v23 }
0x1f54   : > { %v8186_v1 = vpop.f32.mrf.mxu2 }
0x1f55   : > { %v8299_v52 = vpop.permute.xlu1 %8298  ;;  %v8352_v18 = vmul.f32 0.25, %v8186_v1 }
0x1f56   : > { %11403 = vmatpush.xpose.msk.msra.mxu2 %vm416_vm2, %v8299_v52 }
0x1f57   : > { %v8362_v30 = vsel %vm318_vm0, %v8352_v18, -inf }
0x1f58   : > { %8363 = vmax.xlane.f32.xlu1 %v8362_v30 }
0x1f59   : > { %11404 = vmatmul.msk.f32.vlgmr.msra.gmra.mxu2 %vm416_vm2, %v14905_v32 }
0x1f5c   : > { %v8213_v39 = vpop.f32.mrf.mxu2 }
0x1f5d   : > { %v8326_v41 = vpop.permute.xlu0 %8325  ;;  %v8353_v24 = vmul.f32 0.25, %v8213_v39 }
0x1f5e   : > { %11405 = vmatpush.xpose.msk.msrb.mxu2 %vm416_vm2, %v8326_v41  ;;  %v14967_v40 = vpop.permute.xlu1 %8639 }
0x1f5f   : > { %v8365_v26 = vsel %vm318_vm0, %v8353_v24, -inf }
0x1f60   : > { %8366 = vmax.xlane.f32.xlu1 %v8365_v26 }
0x1f61   : > { %11406 = vmatmul.msk.f32.vlgmr.msrb.gmra.mxu2 %vm416_vm2, %v14914_v42 }
0x1f62   : > { %8465 = vmatpush.msra.mxu2 %v14948_v6 }
0x1f64   : > { %8557 = vmatpush.msrb.mxu2 %v14954_v7 }
0x1f65   : > { %v8670_v23 = vpop.permute.xlu0 %8669 }
0x1f66   : > { %v14971_v53 = vpop.permute.xlu1 %8751 }
0x1f6d   : > { %v14983_v1 = vpop.permute.xlu0 %8667 }
0x1f6e   : > { %v14973_v29 = vpop.permute.xlu1 %8779 }
0x1f9f   : > { %v8240_v20 = vpop.f32.mrf.mxu2 }
0x1fa0   : > { %v8354_v63 = vmul.f32 0.25, %v8240_v20 }
0x1fa2   : > { %v8368_v15 = vsel %vm318_vm0, %v8354_v63, -inf }
0x1fa3   : > { %8369 = vmax.xlane.f32.xlu0 %v8368_v15 }
0x1fa7   : > { %v8267_v60 = vpop.f32.mrf.mxu2 }
0x1fa8   : > { %v8355_v61 = vmul.f32 0.25, %v8267_v60 }
0x1faa   : > { %v8371_v9 = vsel %vm318_vm0, %v8355_v61, -inf }
0x1fab   : > { %8372 = vmax.xlane.f32.xlu0 %v8371_v9 }
0x1faf   : > { %v8294_v14 = vpop.f32.mrf.mxu2 }
0x1fb0   : > { %v8356_v47 = vmul.f32 0.25, %v8294_v14 }
0x1fb2   : > { %v8374_v2 = vsel %vm318_vm0, %v8356_v47, -inf }
0x1fb3   : > { %8375 = vmax.xlane.f32.xlu2 %v8374_v2 }
0x1fc3   : > { %v8361_v22 = vpop.xlane.xlu2 %8360 }
0x1fc4   : > { %v8383_v21 = vsub.f32 %v8351_v45, %v8361_v22 }
0x1fc6   : > { %v8391_v11 = vmul.f32 1.442695, %v8383_v21 }
0x1fc8   : > { %12192 = vpow2.f32 %v8391_v11 }
0x1fcb   : > { %v8364_v43 = vpop.xlane.xlu1 %8363 }
0x1fcc   : > { %v8384_v44 = vsub.f32 %v8352_v18, %v8364_v43 }
0x1fce   : > { %v12193_v50 = vpop.eup %12192  ;;  %v8393_v8 = vmul.f32 1.442695, %v8384_v44 }
0x1fcf   : > { %v8407_v27 = vsel %vm318_vm0, %v12193_v50, 0.0 }
0x1fd0   : > { %8408 = vadd.xlane.f32.xlu1 %v8407_v27  ;;  %12194 = vpow2.f32 %v8393_v8 }
0x1fd3   : > { %v8367_v52 = vpop.xlane.xlu1 %8366 }
0x1fd4   : > { %v8385_v18 = vsub.f32 %v8353_v24, %v8367_v52 }
0x1fd6   : > { %v12195_v56 = vpop.eup %12194  ;;  %v8395_v41 = vmul.f32 1.442695, %v8385_v18 }
0x1fd7   : > { %v8410_v45 = vsel %vm318_vm0, %v12195_v56, 0.0 }
0x1fd8   : > { %12196 = vpow2.f32 %v8395_v41 }
0x1fdc   : > { %v8321_v62 = vpop.f32.mrf.mxu2 }
0x1fdd   : > { %v8357_v25 = vmul.f32 0.25, %v8321_v62  ;;  %v15014_v62 = vpack.i.bf16 %v14884_v5, %v14954_v7  ;;  %v15026_v7 = vpack.i.bf16 %v14868_v35, %v14845_v10  ;;  %v15041_v10 = vpack.i.bf16 %v14834_v3, %v14948_v6 }
0x1fde   : > { %v14985_v9 = vpop.eup %12196 }
0x1fdf   : > { %v8377_v4 = vsel %vm318_vm0, %v8357_v25, -inf  ;;  %v8413_v2 = vsel %vm318_vm0, %v14985_v9, 0.0 }
0x1fe0   : > { %8378 = vmax.xlane.f32.xlu2 %v8377_v4 }
0x1fe4   : > { %v8348_v38 = vpop.f32.mrf.mxu2 }
0x1fe5   : > { %v8358_v17 = vmul.f32 0.25, %v8348_v38 }
0x1fe7   : > { %v8380_v49 = vsel %vm318_vm0, %v8358_v17, -inf }
0x1fe8   : > { %8381 = vmax.xlane.f32.xlu0 %v8380_v49  ;;  %8411 = vadd.xlane.f32.xlu2 %v8410_v45 }
0x1ffc   : > { %8695 = vrot.lane.b32.xlu0 %v14842_v13, %s12451_s13 }
0x2000   : > { %8697 = vrot.lane.b32.xlu2 %v14842_v13, %s12450_s12 }
0x2016   : > { %v8370_v30 = vpop.xlane.xlu0 %8369 }
0x2017   : > { %v8386_v39 = vsub.f32 %v8354_v63, %v8370_v30 }
0x2019   : > { %v8397_v26 = vmul.f32 1.442695, %v8386_v39 }
0x201b   : > { %12198 = vpow2.f32 %v8397_v26 }
0x201e   : > { %v8373_v20 = vpop.xlane.xlu0 %8372 }
0x201f   : > { %v8387_v15 = vsub.f32 %v8355_v61, %v8373_v20 }
0x2021   : > { %v8399_v60 = vmul.f32 1.442695, %v8387_v15  ;;  %v14987_v14 = vpop.eup %12198 }
0x2022   : > { %v8416_v63 = vsel %vm318_vm0, %v14987_v14, 0.0 }
0x2023   : > { %12200 = vpow2.f32 %v8399_v60 }
0x2026   : > { %v8376_v22 = vpop.xlane.xlu2 %8375  ;;  %8414 = vadd.xlane.f32.xlu0 %v8413_v2 }
0x2027   : > { %v8388_v24 = vsub.f32 %v8356_v47, %v8376_v22 }
0x2029   : > { %v14993_v21 = vpop.eup %12200  ;;  %v8401_v11 = vmul.f32 1.442695, %v8388_v24  ;;  %8417 = vadd.xlane.f32.xlu2 %v8416_v63 }
0x202a   : > { %v8419_v61 = vsel %vm318_vm0, %v14993_v21, 0.0 }
0x202b   : > { %12202 = vpow2.f32 %v8401_v11  ;;  %8420 = vadd.xlane.f32.xlu1 %v8419_v61 }
0x2031   : > { %v14997_v27 = vpop.eup %12202 }
0x2032   : > { %v8422_v43 = vsel %vm318_vm0, %v14997_v27, 0.0 }
0x2033   : > { %8423 = vadd.xlane.f32.xlu0 %v8422_v43 }
0x2041   : > { %8809 = vrot.lane.b32.xlu2 %v14905_v32, %s12450_s12 }
0x2043   : > { %v8409_v47 = vpop.xlane.xlu1 %8408 }
0x2044   : > { %8725 = vrot.lane.b32.xlu1 %v14865_v46, %s12450_s12  ;;  %12204 = vrcp.f32 %v8409_v47 }
0x2047   : > { %8723 = vrot.lane.b32.xlu0 %v14865_v46, %s12451_s13 }
0x2049   : > { %8837 = vrot.lane.b32.xlu2 %v14914_v42, %s12450_s12 }
0x204a   : > { %v12205_v44 = vpop.eup %12204 }
0x204b   : > { %v8439_v8 = vmul.f32 %v12205_v44, %v12193_v50 }
0x204d   : > { %11407 = vmatmul.msk.f32.vlgmr.msra.gmra.mxu2 %vm318_vm0, %v8439_v8 }
0x204e   : > { %11415 = vmatpush.xpose.msk.msra.mxu2 %vm416_vm2, %v14961_v59 }
0x2051   : > { %11748 = vrot.lane.b32.xlu2 %v15014_v62, %s12451_s13 }
0x2053   : > { %v8379_v4 = vpop.xlane.xlu2 %8378 }
0x2054   : > { %v8389_v49 = vsub.f32 %v8357_v25, %v8379_v4 }
0x2056   : > { %v8403_v52 = vmul.f32 1.442695, %v8389_v49 }
0x2059   : > { %9329 = vrot.lane.b32.xlu2 %v14876_v33, %s12452_s14 }
0x205b   : > { %v8412_v38 = vpop.xlane.xlu2 %8411  ;;  %v8382_v45 = vpop.xlane.xlu0 %8381 }
0x205c   : > { %12206 = vrcp.f32 %v8412_v38  ;;  %v8390_v50 = vsub.f32 %v8358_v17, %v8382_v45 }
0x205d   : > { %12208 = vpow2.f32 %v8403_v52 }
0x205e   : > { %v8405_v18 = vmul.f32 1.442695, %v8390_v50 }
0x2060   : > { %12210 = vpow2.f32 %v8405_v18 }
0x2061   : > { %9327 = vrot.lane.b32.xlu2 %v14876_v33, %s12453_s15 }
0x2062   : > { %v12207_v59 = vpop.eup %12206 }
0x2063   : > { %v8440_v5 = vmul.f32 %v12207_v59, %v12195_v56  ;;  %v12209_v25 = vpop.eup %12208 }
0x2064   : > { %v8425_v30 = vsel %vm318_vm0, %v12209_v25, 0.0 }
0x2065   : > { %11408 = vmatmul.msk.f32.vlgmr.msrb.gmra.mxu3 %vm318_vm0, %v8440_v5 }
0x2066   : > { %11417 = vmatpush.xpose.msk.msrb.mxu3 %vm416_vm2, %v8670_v23  ;;  %v15030_v17 = vpop.eup %12210  ;;  %v8698_v23 = vpop.permute.xlu2 %8697 }
0x2067   : > { %v8428_v56 = vsel %vm318_vm0, %v15030_v17, 0.0 }
0x2069   : > { %11753 = vrot.lane.b32.xlu2 %v15026_v7, %s12451_s13 }
0x206e   : > { %8426 = vadd.xlane.f32.xlu1 %v8425_v30  ;;  %v8696_v35 = vpop.permute.xlu0 %8695 }
0x2071   : > { %8429 = vadd.xlane.f32.xlu0 %v8428_v56 }
0x2085   : > { %8835 = vrot.lane.b32.xlu0 %v14914_v42, %s12451_s13 }
0x2087   : > { %8807 = vrot.lane.b32.xlu1 %v14905_v32, %s12451_s13 }
0x208d   : > { %11743 = vrot.lane.b32.xlu0 %v15041_v10, %s12451_s13 }
0x208f   : > { %9217 = vrot.lane.b32.xlu1 %v14824_v51, %s12452_s14 }
0x2095   : > { %9215 = vrot.lane.b32.xlu0 %v14824_v51, %s12453_s15 }
0x2097   : > { %9243 = vrot.lane.b32.xlu1 %v14831_v19, %s12453_s15 }
0x2099   : > { %v8415_v39 = vpop.xlane.xlu0 %8414 }
0x209a   : > { %12212 = vrcp.f32 %v8415_v39 }
0x209c   : > { %v8418_v41 = vpop.xlane.xlu2 %8417 }
0x209d   : > { %12214 = vrcp.f32 %v8418_v41  ;;  %9245 = vrot.lane.b32.xlu0 %v14831_v19, %s12452_s14 }
0x209e   : > { %v8421_v3 = vpop.xlane.xlu1 %8420 }
0x209f   : > { %12216 = vrcp.f32 %v8421_v3  ;;  %9357 = vrot.lane.b32.xlu1 %v14881_v16, %s12452_s14 }
0x20a0   : > { %v12213_v6 = vpop.eup %12212 }
0x20a1   : > { %v8441_v26 = vmul.f32 %v12213_v6, %v14985_v9 }
0x20a3   : > { %v12215_v20 = vpop.eup %12214  ;;  %11409 = vmatmul.msk.f32.vlgmr.msrb.gmra.mxu0 %vm318_vm0, %v8441_v26 }
0x20a4   : > { %v8442_v15 = vmul.f32 %v12215_v20, %v14987_v14  ;;  %11419 = vmatpush.xpose.msk.msrb.mxu0 %vm416_vm2, %v8698_v23 }
0x20a5   : > { %v12217_v60 = vpop.eup %12216  ;;  %9355 = vrot.lane.b32.xlu0 %v14881_v16, %s12453_s15 }
0x20a6   : > { %v8443_v2 = vmul.f32 %v12217_v60, %v14993_v21  ;;  %11410 = vmatmul.msk.f32.vlgmr.msrb.gmra.mxu1 %vm318_vm0, %v8442_v15  ;;  %v8424_v22 = vpop.xlane.xlu0 %8423 }
0x20a7   : > { %12218 = vrcp.f32 %v8424_v22 }
0x20a8   : > { %11411 = vmatmul.msk.f32.vlgmr.msrb.gmra.mxu2 %vm318_vm0, %v8443_v2 }
0x20a9   : > { %11423 = vmatpush.xpose.msk.msrb.mxu2 %vm416_vm2, %v14964_v34  ;;  %v8810_v34 = vpop.permute.xlu2 %8809 }
0x20ad   : > { %v12219_v9 = vpop.eup %12218 }
0x20ae   : > { %v8444_v14 = vmul.f32 %v12219_v9, %v14997_v27 }
0x20b0   : > { %11412 = vmatmul.msk.f32.vlgmr.msra.gmra.mxu3 %vm318_vm0, %v8444_v14  ;;  %11416 = vmatmul.msk.f32.vlgmr.msra.gmra.mxu2 %vm416_vm2, %v14967_v40 }
0x20b1   : > { %11425 = vmatpush.xpose.msk.msra.mxu3 %vm416_vm2, %v14969_v57  ;;  %v8838_v63 = vpop.permute.xlu2 %8837 }
0x20b6   : > { %v8726_v24 = vpop.permute.xlu1 %8725 }
0x20b7   : > { %11421 = vmatpush.xpose.msk.msrb.mxu1 %vm416_vm2, %v8726_v24 }
0x20b8   : > { %11418 = vmatmul.msk.f32.vlgmr.msrb.gmra.mxu3 %vm416_vm2, %v14983_v1  ;;  %11424 = vmatmul.msk.f32.vlgmr.msrb.gmra.mxu2 %vm416_vm2, %v14971_v53 }
0x20b9   : > { %v11749_v21 = vpop.permute.xlu2 %11748  ;;  %v8724_v57 = vpop.permute.xlu0 %8723 }
0x20ba   : > { %v11751_v18 = vunpack.i.h.bf16 %v11749_v21  ;;  %v11750_v5 = vunpack.i.l.bf16 %v11749_v21 }
0x20c0   : > { %11426 = vmatmul.msk.f32.vlgmr.msra.gmra.mxu3 %vm416_vm2, %v14973_v29 }
0x20c1   : > { %v15080_v40 = vpop.permute.xlu2 %9329 }
0x20c9   : > { %v15082_v43 = vpop.permute.xlu2 %9327 }
0x20d0   : > { %v8467_v11 = vpop.f32.mrf.mxu2 }
0x20d1   : > { %8631 = vst.msk [vmem:[#allocation2] sm:$0xff] %vm416_vm2, %v8467_v11  ;;  %v11754_v8 = vpop.permute.xlu2 %11753 }
0x20d2   : > { %v11755_v4 = vunpack.i.l.bf16 %v11754_v8  ;;  %v11756_v38 = vunpack.i.h.bf16 %v11754_v8 }
0x20e1   : > { %v8427_v61 = vpop.xlane.xlu1 %8426 }
0x20e2   : > { %12220 = vrcp.f32 %v8427_v61 }
0x20e4   : > { %v8430_v27 = vpop.xlane.xlu0 %8429 }
0x20e5   : > { %12222 = vrcp.f32 %v8430_v27 }
0x20e8   : > { %v12221_v1 = vpop.eup %12220  ;;  %v8490_v53 = vpop.f32.mrf.mxu3 }
0x20e9   : > { %v8445_v47 = vmul.f32 %v12221_v1, %v12209_v25  ;;  %8632 = vst.msk [vmem:[#allocation2 + $0x8] sm:$0xff] %vm416_vm2, %v8490_v53 }
0x20eb   : > { %v12223_v29 = vpop.eup %12222  ;;  %11413 = vmatmul.msk.f32.vlgmr.msra.gmra.mxu0 %vm318_vm0, %v8445_v47 }
0x20ec   : > { %v8446_v44 = vmul.f32 %v12223_v29, %v15030_v17  ;;  %11427 = vmatpush.xpose.msk.msra.mxu0 %vm416_vm2, %v8810_v34 }
0x20ee   : > { %11414 = vmatmul.msk.f32.vlgmr.msra.gmra.mxu1 %vm318_vm0, %v8446_v44 }
0x20ef   : > { %11429 = vmatpush.xpose.msk.msra.mxu1 %vm416_vm2, %v8838_v63 }
0x20f3   : > { %11420 = vmatmul.msk.f32.vlgmr.msrb.gmra.mxu0 %vm416_vm2, %v8696_v35 }
0x20f4   : > { %9035 = vmatpush.msrb.mxu0 %v11755_v4 }
0x20f6   : > { %11422 = vmatmul.msk.f32.vlgmr.msrb.gmra.mxu1 %vm416_vm2, %v8724_v57 }
0x20f7   : > { %9062 = vmatpush.msrb.mxu1 %v11756_v38  ;;  %v8836_v49 = vpop.permute.xlu0 %8835 }
0x20f9   : > { %v8808_v45 = vpop.permute.xlu1 %8807 }
0x20fb   : > { %11428 = vmatmul.msk.f32.vlgmr.msra.gmra.mxu0 %vm416_vm2, %v8808_v45 }
0x20fe   : > { %11430 = vmatmul.msk.f32.vlgmr.msra.gmra.mxu1 %vm416_vm2, %v8836_v49 }
0x20ff   : > { %v11744_v50 = vpop.permute.xlu0 %11743 }
0x2100   : > { %v11746_v52 = vunpack.i.h.bf16 %v11744_v50  ;;  %v11745_v59 = vunpack.i.l.bf16 %v11744_v50 }
0x2101   : > { %v15108_v44 = vpop.permute.xlu1 %9217 }
0x2102   : > { %8981 = vmatpush.msra.mxu2 %v11745_v59  ;;  %9008 = vmatpush.msrb.mxu3 %v11746_v52 }
0x2104   : > { %9089 = vmatpush.msrb.mxu2 %v11750_v5  ;;  %9116 = vmatpush.msra.mxu3 %v11751_v18 }
0x2107   : > { %v15110_v8 = vpop.permute.xlu0 %9215 }
0x2109   : > { %v15112_v4 = vpop.permute.xlu1 %9243 }
0x210f   : > { %v15114_v38 = vpop.permute.xlu0 %9245 }
0x2111   : > { %v15116_v49 = vpop.permute.xlu1 %9357 }
0x2117   : > { %v15118_v45 = vpop.permute.xlu0 %9355 }
0x2120   : > { %v8513_v25 = vpop.f32.mrf.mxu0 }
0x2121   : > { %8633 = vst.msk [vmem:[#allocation2 + $0x10] sm:$0xff] %vm416_vm2, %v8513_v25 }
0x2123   : > { %v8536_v17 = vpop.f32.mrf.mxu1 }
0x2124   : > { %8634 = vst.msk [vmem:[#allocation2 + $0x18] sm:$0xff] %vm416_vm2, %v8536_v17 }
0x212b   : > { %v8559_v30 = vpop.f32.mrf.mxu2 }
0x212c   : > { %8635 = vst.msk [vmem:[#allocation2 + $0x20] sm:$0xff] %vm416_vm2, %v8559_v30 }
0x2133   : > { %v8582_v56 = vpop.f32.mrf.mxu3  ;;  %v8664_v35 = vpop.f32.mrf.mxu2 }
0x2134   : > { %8636 = vst.msk [vmem:[#allocation2 + $0x28] sm:$0xff] %vm416_vm2, %v8582_v56  ;;  %v8863_v23 = vmul.f32 0.25, %v8664_v35 }
0x2136   : > { %v8871_v39 = vsel %vm318_vm0, %v8863_v23, -inf }
0x2137   : > { %8872 = vmax.xlane.f32.xlu1 %v8871_v39 }
0x213b   : > { %v8692_v41 = vpop.f32.mrf.mxu3  ;;  %v8776_v3 = vpop.f32.mrf.mxu2 }
0x213c   : > { %v8864_v6 = vmul.f32 0.25, %v8692_v41  ;;  %v8867_v26 = vmul.f32 0.25, %v8776_v3 }
0x213e   : > { %v8874_v20 = vsel %vm318_vm0, %v8864_v6, -inf  ;;  %v8883_v15 = vsel %vm318_vm0, %v8867_v26, -inf }
0x213f   : > { %8875 = vmax.xlane.f32.xlu2 %v8874_v20  ;;  %8884 = vmax.xlane.f32.xlu0 %v8883_v15 }
0x2143   : > { %v8804_v60 = vpop.f32.mrf.mxu3 }
0x2144   : > { %v8868_v2 = vmul.f32 0.25, %v8804_v60 }
0x2146   : > { %v8886_v22 = vsel %vm318_vm0, %v8868_v2, -inf }
0x2147   : > { %8887 = vmax.xlane.f32.xlu1 %v8886_v22 }
0x2168   : > { %v8605_v9 = vpop.f32.mrf.mxu0 }
0x2169   : > { %8637 = vst.msk [vmem:[#allocation2 + $0x30] sm:$0xff] %vm416_vm2, %v8605_v9 }
0x216b   : > { %v8628_v14 = vpop.f32.mrf.mxu1 }
0x216c   : > { %8638 = vst.msk [vmem:[#allocation2 + $0x38] sm:$0xff] %vm416_vm2, %v8628_v14 }
0x2170   : > { %v8720_v24 = vpop.f32.mrf.mxu0 }
0x2171   : > { %v8865_v34 = vmul.f32 0.25, %v8720_v24 }
0x2173   : > { %v8748_v63 = vpop.f32.mrf.mxu1  ;;  %v8877_v21 = vsel %vm318_vm0, %v8865_v34, -inf }
0x2174   : > { %v8866_v11 = vmul.f32 0.25, %v8748_v63  ;;  %8878 = vmax.xlane.f32.xlu2 %v8877_v21 }
0x2176   : > { %v8880_v57 = vsel %vm318_vm0, %v8866_v11, -inf }
0x2177   : > { %8881 = vmax.xlane.f32.xlu0 %v8880_v57 }
0x2178   : > { %v8832_v61 = vpop.f32.mrf.mxu0 }
0x2179   : > { %v8869_v27 = vmul.f32 0.25, %v8832_v61 }
0x217b   : > { %v8860_v1 = vpop.f32.mrf.mxu1  ;;  %v8889_v53 = vsel %vm318_vm0, %v8869_v27, -inf }
0x217c   : > { %v8870_v47 = vmul.f32 0.25, %v8860_v1  ;;  %8890 = vmax.xlane.f32.xlu1 %v8889_v53 }
0x217e   : > { %v8892_v29 = vsel %vm318_vm0, %v8870_v47, -inf }
0x217f   : > { %8893 = vmax.xlane.f32.xlu2 %v8892_v29 }
0x21aa   : > { %v8873_v50 = vpop.xlane.xlu1 %8872 }
0x21ab   : > { %v8895_v52 = vsub.f32 %v8863_v23, %v8873_v50 }
0x21ad   : > { %v8903_v59 = vmul.f32 1.442695, %v8895_v52 }
0x21af   : > { %12224 = vpow2.f32 %v8903_v59 }
0x21b2   : > { %v8876_v18 = vpop.xlane.xlu2 %8875  ;;  %v8885_v5 = vpop.xlane.xlu0 %8884 }
0x21b3   : > { %v8896_v25 = vsub.f32 %v8864_v6, %v8876_v18  ;;  %v8899_v17 = vsub.f32 %v8867_v26, %v8885_v5 }
0x21b5   : > { %v15120_v30 = vpop.eup %12224  ;;  %v8905_v56 = vmul.f32 1.442695, %v8896_v25  ;;  %v8911_v35 = vmul.f32 1.442695, %v8899_v17 }
0x21b6   : > { %v8919_v39 = vsel %vm318_vm0, %v15120_v30, 0.0 }
0x21b7   : > { %12226 = vpow2.f32 %v8905_v56  ;;  %8920 = vadd.xlane.f32.xlu0 %v8919_v39 }
0x21b8   : > { %12228 = vpow2.f32 %v8911_v35 }
0x21ba   : > { %v8888_v41 = vpop.xlane.xlu1 %8887 }
0x21bb   : > { %v8900_v3 = vsub.f32 %v8868_v2, %v8888_v41  ;;  %v15138_v2 = vpack.i.bf16 %v14917_v31, %v14908_v48 }
0x21bd   : > { %v15124_v20 = vpop.eup %12226  ;;  %v8913_v23 = vmul.f32 1.442695, %v8900_v3 }
0x21be   : > { %v15126_v15 = vpop.eup %12228  ;;  %v8922_v6 = vsel %vm318_vm0, %v15124_v20, 0.0 }
0x21bf   : > { %12230 = vpow2.f32 %v8913_v23  ;;  %v8931_v26 = vsel %vm318_vm0, %v15126_v15, 0.0  ;;  %8923 = vadd.xlane.f32.xlu1 %v8922_v6 }
0x21c0   : > { %8932 = vadd.xlane.f32.xlu2 %v8931_v26 }
0x21c5   : > { %v15132_v60 = vpop.eup %12230 }
0x21c6   : > { %v8934_v22 = vsel %vm318_vm0, %v15132_v60, 0.0 }
0x21c7   : > { %8935 = vadd.xlane.f32.xlu1 %v8934_v22 }
0x21cb   : > { %11758 = vrot.lane.b32.xlu0 %v15138_v2, %s12451_s13 }
0x21d8   : > { %9301 = vrot.lane.b32.xlu2 %v14865_v46, %s12452_s14 }
0x21e0   : > { %9299 = vrot.lane.b32.xlu2 %v14865_v46, %s12453_s15  ;;  %9273 = vrot.lane.b32.xlu1 %v14842_v13, %s12452_s14 }
0x21e7   : > { %v8879_v9 = vpop.xlane.xlu2 %8878 }
0x21e8   : > { %v8897_v14 = vsub.f32 %v8865_v34, %v8879_v9 }
0x21ea   : > { %v8907_v24 = vmul.f32 1.442695, %v8897_v14  ;;  %v8882_v57 = vpop.xlane.xlu0 %8881 }
0x21eb   : > { %v8898_v1 = vsub.f32 %v8866_v11, %v8882_v57 }
0x21ec   : > { %12232 = vpow2.f32 %v8907_v24 }
0x21ed   : > { %v8909_v29 = vmul.f32 1.442695, %v8898_v1 }
0x21ef   : > { %v8891_v61 = vpop.xlane.xlu1 %8890  ;;  %12234 = vpow2.f32 %v8909_v29 }
0x21f0   : > { %v8901_v53 = vsub.f32 %v8869_v27, %v8891_v61 }
0x21f2   : > { %v15148_v63 = vpop.eup %12232  ;;  %v8915_v50 = vmul.f32 1.442695, %v8901_v53  ;;  %v8894_v52 = vpop.xlane.xlu2 %8893 }
0x21f3   : > { %v8925_v21 = vsel %vm318_vm0, %v15148_v63, 0.0  ;;  %v8902_v59 = vsub.f32 %v8870_v47, %v8894_v52 }
0x21f4   : > { %12236 = vpow2.f32 %v8915_v50 }
0x21f5   : > { %8926 = vadd.xlane.f32.xlu0 %v8925_v21  ;;  %v8917_v18 = vmul.f32 1.442695, %v8902_v59  ;;  %v15152_v34 = vpop.eup %12234 }
0x21f6   : > { %v8928_v25 = vsel %vm318_vm0, %v15152_v34, 0.0 }
0x21f7   : > { %12238 = vpow2.f32 %v8917_v18 }
0x21fa   : > { %v15154_v5 = vpop.eup %12236 }
0x21fb   : > { %v8937_v11 = vsel %vm318_vm0, %v15154_v5, 0.0 }
0x21fd   : > { %v15162_v27 = vpop.eup %12238 }
0x21fe   : > { %v8940_v47 = vsel %vm318_vm0, %v15162_v27, 0.0 }
0x2209   : > { %8929 = vadd.xlane.f32.xlu2 %v8928_v25  ;;  %9271 = vrot.lane.b32.xlu0 %v14842_v13, %s12453_s15 }
0x220a   : > { %8938 = vadd.xlane.f32.xlu1 %v8937_v11 }
0x2211   : > { %9385 = vrot.lane.b32.xlu0 %v14905_v32, %s12452_s14 }
0x2212   : > { %8941 = vadd.xlane.f32.xlu1 %v8940_v47 }
0x2219   : > { %9383 = vrot.lane.b32.xlu0 %v14905_v32, %s12453_s15 }
0x2221   : > { %9413 = vrot.lane.b32.xlu2 %v14914_v42, %s12452_s14  ;;  %9785 = vrot.lane.b32.xlu0 %v14824_v51, %s12454_s16 }
0x2229   : > { %11768 = vrot.lane.b32.xlu2 %v15014_v62, %s12453_s15  ;;  %11773 = vrot.lane.b32.xlu0 %v15026_v7, %s12453_s15 }
0x222a   : > { %v8921_v17 = vpop.xlane.xlu0 %8920 }
0x222b   : > { %12240 = vrcp.f32 %v8921_v17  ;;  %9411 = vrot.lane.b32.xlu1 %v14914_v42, %s12453_s15 }
0x2231   : > { %v12241_v56 = vpop.eup %12240  ;;  %9813 = vrot.lane.b32.xlu2 %v14831_v19, %s12454_s16 }
0x2232   : > { %v8951_v35 = vmul.f32 %v12241_v56, %v15120_v30  ;;  %v8924_v39 = vpop.xlane.xlu1 %8923 }
0x2233   : > { %v8933_v41 = vpop.xlane.xlu2 %8932  ;;  %12242 = vrcp.f32 %v8924_v39  ;;  %11763 = vrot.lane.b32.xlu1 %v15041_v10, %s12453_s15 }
0x2234   : > { %12244 = vrcp.f32 %v8933_v41  ;;  %11431 = vmatmul.msk.f32.vlgmr.msra.gmra.mxu2 %vm318_vm0, %v8951_v35 }
0x2235   : > { %11439 = vmatpush.xpose.msk.msra.mxu2 %vm416_vm2, %v15108_v44 }
0x2239   : > { %v12243_v3 = vpop.eup %12242 }
0x223a   : > { %v12245_v23 = vpop.eup %12244  ;;  %v8952_v6 = vmul.f32 %v12243_v3, %v15124_v20  ;;  %v8936_v26 = vpop.xlane.xlu1 %8935 }
0x223b   : > { %v8955_v22 = vmul.f32 %v12245_v23, %v15126_v15  ;;  %12246 = vrcp.f32 %v8936_v26  ;;  %9783 = vrot.lane.b32.xlu1 %v14824_v51, %s12455_s17 }
0x223c   : > { %11432 = vmatmul.msk.f32.vlgmr.msrb.gmra.mxu3 %vm318_vm0, %v8952_v6 }
0x223d   : > { %11435 = vmatmul.msk.f32.vlgmr.msrb.gmra.mxu2 %vm318_vm0, %v8955_v22  ;;  %11441 = vmatpush.xpose.msk.msrb.mxu3 %vm416_vm2, %v15114_v38  ;;  %v11759_v30 = vpop.permute.xlu0 %11758 }
0x223e   : > { %11447 = vmatpush.xpose.msk.msrb.mxu2 %vm416_vm2, %v15080_v40  ;;  %v11761_v44 = vunpack.i.h.bf16 %v11759_v30  ;;  %v11760_v20 = vunpack.i.l.bf16 %v11759_v30 }
0x2240   : > { %9143 = vmatpush.msra.mxu0 %v11760_v20  ;;  %9170 = vmatpush.msra.mxu1 %v11761_v44 }
0x2241   : > { %v12247_v15 = vpop.eup %12246 }
0x2242   : > { %v8956_v9 = vmul.f32 %v12247_v15, %v15132_v60 }
0x2243   : > { %9811 = vrot.lane.b32.xlu1 %v14831_v19, %s12455_s17  ;;  %v9302_v19 = vpop.permute.xlu2 %9301 }
0x2244   : > { %11436 = vmatmul.msk.f32.vlgmr.msra.gmra.mxu3 %vm318_vm0, %v8956_v9 }
0x2245   : > { %11440 = vmatmul.msk.f32.vlgmr.msra.gmra.mxu2 %vm416_vm2, %v15110_v8  ;;  %11449 = vmatpush.xpose.msk.msra.mxu3 %vm416_vm2, %v15116_v49 }
0x224b   : > { %v9300_v8 = vpop.permute.xlu2 %9299 }
0x224c   : > { %11442 = vmatmul.msk.f32.vlgmr.msrb.gmra.mxu3 %vm416_vm2, %v15112_v4 }
0x224d   : > { %11448 = vmatmul.msk.f32.vlgmr.msrb.gmra.mxu2 %vm416_vm2, %v15082_v43 }
0x2252   : > { %v9274_v60 = vpop.permute.xlu1 %9273 }
0x2254   : > { %11450 = vmatmul.msk.f32.vlgmr.msra.gmra.mxu3 %vm416_vm2, %v15118_v45 }
0x2268   : > { %v8927_v51 = vpop.xlane.xlu0 %8926 }
0x2269   : > { %12248 = vrcp.f32 %v8927_v51 }
0x226f   : > { %v12249_v40 = vpop.eup %12248 }
0x2270   : > { %v8953_v38 = vmul.f32 %v12249_v40, %v15148_v63 }
0x2272   : > { %11433 = vmatmul.msk.f32.vlgmr.msrb.gmra.mxu0 %vm318_vm0, %v8953_v38 }
0x2273   : > { %11443 = vmatpush.xpose.msk.msrb.mxu0 %vm416_vm2, %v9274_v60 }
0x227b   : > { %v9272_v49 = vpop.permute.xlu0 %9271 }
0x227c   : > { %v8930_v4 = vpop.xlane.xlu2 %8929 }
0x227d   : > { %12250 = vrcp.f32 %v8930_v4  ;;  %v8939_v14 = vpop.xlane.xlu1 %8938 }
0x227e   : > { %12252 = vrcp.f32 %v8939_v14 }
0x2283   : > { %v12251_v43 = vpop.eup %12250  ;;  %v9386_v24 = vpop.permute.xlu0 %9385 }
0x2284   : > { %v12253_v45 = vpop.eup %12252  ;;  %v8954_v21 = vmul.f32 %v12251_v43, %v15152_v34  ;;  %v9414_v29 = vpop.permute.xlu2 %9413 }
0x2285   : > { %v8957_v57 = vmul.f32 %v12253_v45, %v15154_v5  ;;  %v8942_v61 = vpop.xlane.xlu1 %8941 }
0x2286   : > { %11434 = vmatmul.msk.f32.vlgmr.msrb.gmra.mxu1 %vm318_vm0, %v8954_v21  ;;  %12254 = vrcp.f32 %v8942_v61 }
0x2287   : > { %11445 = vmatpush.xpose.msk.msrb.mxu1 %vm416_vm2, %v9302_v19  ;;  %11437 = vmatmul.msk.f32.vlgmr.msra.gmra.mxu0 %vm318_vm0, %v8957_v57 }
0x2288   : > { %11451 = vmatpush.xpose.msk.msra.mxu0 %vm416_vm2, %v9386_v24 }
0x228b   : > { %v9384_v63 = vpop.permute.xlu0 %9383 }
0x228c   : > { %v12255_v1 = vpop.eup %12254  ;;  %v11769_v5 = vpop.permute.xlu2 %11768 }
0x228d   : > { %v8958_v53 = vmul.f32 %v12255_v1, %v15162_v27  ;;  %v11771_v47 = vunpack.i.h.bf16 %v11769_v5  ;;  %v11770_v17 = vunpack.i.l.bf16 %v11769_v5 }
0x228f   : > { %11438 = vmatmul.msk.f32.vlgmr.msra.gmra.mxu1 %vm318_vm0, %v8958_v53  ;;  %11444 = vmatmul.msk.f32.vlgmr.msrb.gmra.mxu0 %vm416_vm2, %v9272_v49 }
0x2290   : > { %11453 = vmatpush.xpose.msk.msra.mxu1 %vm416_vm2, %v9414_v29 }
0x2293   : > { %v15225_v50 = vpop.permute.xlu0 %9785 }
0x2297   : > { %11446 = vmatmul.msk.f32.vlgmr.msrb.gmra.mxu1 %vm416_vm2, %v9300_v8  ;;  %11452 = vmatmul.msk.f32.vlgmr.msra.gmra.mxu0 %vm416_vm2, %v9384_v63 }
0x229b   : > { %v11774_v52 = vpop.permute.xlu0 %11773 }
0x229c   : > { %v11776_v59 = vunpack.i.h.bf16 %v11774_v52  ;;  %v11775_v18 = vunpack.i.l.bf16 %v11774_v52 }
0x229d   : > { %v9412_v34 = vpop.permute.xlu1 %9411 }
0x229e   : > { %9608 = vmatpush.msrb.mxu0 %v11775_v18  ;;  %9634 = vmatpush.msrb.mxu1 %v11776_v59 }
0x229f   : > { %11454 = vmatmul.msk.f32.vlgmr.msra.gmra.mxu1 %vm416_vm2, %v9412_v34 }
0x22a5   : > { %v11764_v25 = vpop.permute.xlu1 %11763 }
0x22a6   : > { %v11766_v11 = vunpack.i.h.bf16 %v11764_v25  ;;  %v11765_v27 = vunpack.i.l.bf16 %v11764_v25 }
0x22a8   : > { %9556 = vmatpush.msra.mxu2 %v11765_v27  ;;  %9582 = vmatpush.msrb.mxu3 %v11766_v11 }
0x22aa   : > { %9660 = vmatpush.msrb.mxu2 %v11770_v17  ;;  %9686 = vmatpush.msra.mxu3 %v11771_v47 }
0x22ad   : > { %v15261_v29 = vpop.permute.xlu1 %9783 }
0x22b5   : > { %v15265_v34 = vpop.permute.xlu1 %9811 }
0x22b7   : > { %v15230_v56 = vpop.f32.mrf.mxu2 }
0x22bf   : > { %v15236_v22 = vpop.f32.mrf.mxu3 }
0x22c0   : > { %v15232_v35 = vpop.f32.mrf.mxu2 }
0x22c7   : > { %v15240_v44 = vpop.f32.mrf.mxu3 }
0x22c8   : > { %v9240_v39 = vpop.f32.mrf.mxu2 }
0x22c9   : > { %v9439_v41 = vmul.f32 0.25, %v9240_v39  ;;  %v15274_v39 = vpop.permute.xlu2 %9813 }
0x22cb   : > { %v9447_v3 = vsel %vm318_vm0, %v9439_v41, -inf }
0x22cc   : > { %9448 = vmax.xlane.f32.xlu0 %v9447_v3 }
0x22cf   : > { %v9268_v40 = vpop.f32.mrf.mxu3 }
0x22d0   : > { %v9352_v23 = vpop.f32.mrf.mxu2  ;;  %v9440_v60 = vmul.f32 0.25, %v9268_v40 }
0x22d1   : > { %v9443_v6 = vmul.f32 0.25, %v9352_v23 }
0x22d2   : > { %v9450_v43 = vsel %vm318_vm0, %v9440_v60, -inf }
0x22d3   : > { %v9459_v26 = vsel %vm318_vm0, %v9443_v6, -inf }
0x22d4   : > { %9460 = vmax.xlane.f32.xlu1 %v9459_v26 }
0x22d7   : > { %v9380_v21 = vpop.f32.mrf.mxu3 }
0x22d8   : > { %v9444_v57 = vmul.f32 0.25, %v9380_v21 }
0x22da   : > { %v9462_v1 = vsel %vm318_vm0, %v9444_v57, -inf }
0x22ef   : > { %v15238_v30 = vpop.f32.mrf.mxu0 }
0x2303   : > { %v15242_v20 = vpop.f32.mrf.mxu1 }
0x2304   : > { %v15244_v15 = vpop.f32.mrf.mxu0 }
0x230c   : > { %v15246_v9 = vpop.f32.mrf.mxu1  ;;  %v9296_v51 = vpop.f32.mrf.mxu0 }
0x230d   : > { %v9441_v19 = vmul.f32 0.25, %v9296_v51 }
0x230f   : > { %v9453_v38 = vsel %vm318_vm0, %v9441_v19, -inf }
0x2310   : > { %9454 = vmax.xlane.f32.xlu2 %v9453_v38 }
0x2314   : > { %v9324_v8 = vpop.f32.mrf.mxu1  ;;  %v9408_v49 = vpop.f32.mrf.mxu0 }
0x2315   : > { %v9442_v4 = vmul.f32 0.25, %v9324_v8  ;;  %v9445_v14 = vmul.f32 0.25, %v9408_v49 }
0x2317   : > { %v9465_v24 = vsel %vm318_vm0, %v9445_v14, -inf  ;;  %v9456_v45 = vsel %vm318_vm0, %v9442_v4, -inf }
0x2318   : > { %9451 = vmax.xlane.f32.xlu2 %v9450_v43  ;;  %9466 = vmax.xlane.f32.xlu0 %v9465_v24 }
0x2319   : > { %9457 = vmax.xlane.f32.xlu1 %v9456_v45 }
0x231c   : > { %v9436_v61 = vpop.f32.mrf.mxu1 }
0x231d   : > { %v15252_v63 = vmul.f32 0.25, %v9436_v61 }
0x231f   : > { %v9468_v53 = vsel %vm318_vm0, %v15252_v63, -inf }
0x2320   : > { %9463 = vmax.xlane.f32.xlu0 %v9462_v1  ;;  %9469 = vmax.xlane.f32.xlu2 %v9468_v53 }
0x2334   : > { %9839 = vrot.lane.b32.xlu0 %v14842_v13, %s12455_s17 }
0x2338   : > { %9841 = vrot.lane.b32.xlu2 %v14842_v13, %s12454_s16 }
0x233c   : > { %9897 = vrot.lane.b32.xlu0 %v14876_v33, %s12454_s16 }
0x233f   : > { %v9449_v52 = vpop.xlane.xlu0 %9448 }
0x2340   : > { %v9471_v59 = vsub.f32 %v9439_v41, %v9449_v52 }
0x2342   : > { %v9479_v18 = vmul.f32 1.442695, %v9471_v59 }
0x2344   : > { %12256 = vpow2.f32 %v9479_v18 }
0x2347   : > { %v9461_v11 = vpop.xlane.xlu1 %9460 }
0x2348   : > { %v9475_v27 = vsub.f32 %v9443_v6, %v9461_v11 }
0x234a   : > { %v12257_v5 = vpop.eup %12256  ;;  %v9487_v47 = vmul.f32 1.442695, %v9475_v27 }
0x234b   : > { %v9495_v25 = vsel %vm318_vm0, %v12257_v5, 0.0 }
0x234c   : > { %9496 = vadd.xlane.f32.xlu1 %v9495_v25  ;;  %12258 = vpow2.f32 %v9487_v47 }
0x2352   : > { %v15268_v13 = vpop.eup %12258 }
0x2353   : > { %v9507_v17 = vsel %vm318_vm0, %v15268_v13, 0.0 }
0x2361   : > { %9508 = vadd.xlane.f32.xlu2 %v9507_v17 }
0x2365   : > { %11778 = vrot.lane.b32.xlu1 %v15138_v2, %s12453_s15 }
0x2383   : > { %v9455_v41 = vpop.xlane.xlu2 %9454 }
0x2384   : > { %v9473_v3 = vsub.f32 %v9441_v19, %v9455_v41 }
0x2386   : > { %v9483_v23 = vmul.f32 1.442695, %v9473_v3 }
0x2388   : > { %12260 = vpow2.f32 %v9483_v23 }
0x238b   : > { %v9452_v26 = vpop.xlane.xlu2 %9451  ;;  %v9467_v51 = vpop.xlane.xlu0 %9466 }
0x238c   : > { %v9472_v6 = vsub.f32 %v9440_v60, %v9452_v26  ;;  %v9477_v40 = vsub.f32 %v9445_v14, %v9467_v51  ;;  %v9458_v38 = vpop.xlane.xlu1 %9457 }
0x238d   : > { %v9474_v8 = vsub.f32 %v9442_v4, %v9458_v38 }
0x238e   : > { %v15276_v49 = vpop.eup %12260  ;;  %v9481_v43 = vmul.f32 1.442695, %v9472_v6  ;;  %v9491_v24 = vmul.f32 1.442695, %v9477_v40 }
0x238f   : > { %v9485_v45 = vmul.f32 1.442695, %v9474_v8  ;;  %v9501_v2 = vsel %vm318_vm0, %v15276_v49, 0.0 }
0x2390   : > { %12262 = vpow2.f32 %v9481_v43  ;;  %9502 = vadd.xlane.f32.xlu0 %v9501_v2 }
0x2391   : > { %12264 = vpow2.f32 %v9491_v24 }
0x2392   : > { %12266 = vpow2.f32 %v9485_v45 }
0x2393   : > { %v9464_v19 = vpop.xlane.xlu0 %9463  ;;  %v9470_v25 = vpop.xlane.xlu2 %9469 }
0x2394   : > { %v9476_v21 = vsub.f32 %v9444_v57, %v9464_v19  ;;  %v9478_v27 = vsub.f32 %v15252_v63, %v9470_v25 }
0x2396   : > { %v15280_v61 = vpop.eup %12262  ;;  %v9489_v60 = vmul.f32 1.442695, %v9476_v21 }
0x2397   : > { %v15282_v14 = vpop.eup %12264  ;;  %v9498_v4 = vsel %vm318_vm0, %v15280_v61, 0.0 }
0x2398   : > { %v15286_v1 = vpop.eup %12266  ;;  %12268 = vpow2.f32 %v9489_v60  ;;  %9499 = vadd.xlane.f32.xlu0 %v9498_v4  ;;  %v9513_v53 = vsel %vm318_vm0, %v15282_v14, 0.0 }
0x2399   : > { %9514 = vadd.xlane.f32.xlu1 %v9513_v53  ;;  %v9504_v52 = vsel %vm318_vm0, %v15286_v1, 0.0 }
0x239a   : > { %9505 = vadd.xlane.f32.xlu2 %v9504_v52 }
0x239e   : > { %v15292_v57 = vpop.eup %12268 }
0x239f   : > { %v9510_v59 = vsel %vm318_vm0, %v15292_v57, 0.0 }
0x23a0   : > { %9511 = vadd.xlane.f32.xlu0 %v9510_v59 }
0x23a6   : > { %v9840_v47 = vpop.permute.xlu0 %9839 }
0x23ae   : > { %v9898_v6 = vpop.permute.xlu0 %9897 }
0x23b2   : > { %9867 = vrot.lane.b32.xlu2 %v14865_v46, %s12455_s17  ;;  %9869 = vrot.lane.b32.xlu1 %v14865_v46, %s12454_s16 }
0x23b4   : > { %9895 = vrot.lane.b32.xlu0 %v14876_v33, %s12455_s17  ;;  %v9842_v33 = vpop.permute.xlu2 %9841 }
0x23ba   : > { %9923 = vrot.lane.b32.xlu1 %v14881_v16, %s12455_s17 }
0x23bc   : > { %9925 = vrot.lane.b32.xlu0 %v14881_v16, %s12454_s16  ;;  %v9493_v16 = vmul.f32 1.442695, %v9478_v27 }
0x23bf   : > { %v9497_v18 = vpop.xlane.xlu1 %9496 }
0x23c0   : > { %12270 = vrcp.f32 %v9497_v18 }
0x23c1   : > { %12272 = vpow2.f32 %v9493_v16 }
0x23c2   : > { %9981 = vrot.lane.b32.xlu1 %v14914_v42, %s12454_s16 }
0x23c4   : > { %9951 = vrot.lane.b32.xlu0 %v14905_v32, %s12455_s17 }
0x23c6   : > { %v12271_v11 = vpop.eup %12270 }
0x23c7   : > { %v9527_v46 = vmul.f32 %v12271_v11, %v12257_v5  ;;  %v12273_v41 = vpop.eup %12272 }
0x23c8   : > { %v9516_v51 = vsel %vm318_vm0, %v12273_v41, 0.0 }
0x23c9   : > { %11455 = vmatmul.msk.f32.vlgmr.msra.gmra.mxu2 %vm318_vm0, %v9527_v46 }
0x23ca   : > { %11463 = vmatpush.xpose.msk.msra.mxu2 %vm416_vm2, %v15225_v50 }
0x23d4   : > { %v9509_v17 = vpop.xlane.xlu2 %9508 }
0x23d5   : > { %12274 = vrcp.f32 %v9509_v17 }
0x23d7   : > { %v11779_v3 = vpop.permute.xlu1 %11778 }
0x23d8   : > { %v11781_v23 = vunpack.i.h.bf16 %v11779_v3  ;;  %v11780_v26 = vunpack.i.l.bf16 %v11779_v3 }
0x23da   : > { %9712 = vmatpush.msra.mxu0 %v11780_v26  ;;  %9738 = vmatpush.msra.mxu1 %v11781_v23 }
0x23db   : > { %v12275_v63 = vpop.eup %12274  ;;  %9517 = vadd.xlane.f32.xlu2 %v9516_v51 }
0x23dc   : > { %v9531_v5 = vmul.f32 %v12275_v63, %v15268_v13 }
0x23de   : > { %11459 = vmatmul.msk.f32.vlgmr.msrb.gmra.mxu2 %vm318_vm0, %v9531_v5 }
0x23df   : > { %11471 = vmatpush.xpose.msk.msrb.mxu2 %vm416_vm2, %v9898_v6 }
0x23e6   : > { %11464 = vmatmul.msk.f32.vlgmr.msra.gmra.mxu2 %vm416_vm2, %v15261_v29 }
0x23f3   : > { %9953 = vrot.lane.b32.xlu2 %v14905_v32, %s12454_s16 }
0x23fb   : > { %9979 = vrot.lane.b32.xlu2 %v14914_v42, %s12455_s17 }
0x2403   : > { %v9503_v50 = vpop.xlane.xlu0 %9502 }
0x2404   : > { %12276 = vrcp.f32 %v9503_v50 }
0x240a   : > { %v12277_v40 = vpop.eup %12276 }
0x240b   : > { %v9529_v38 = vmul.f32 %v12277_v40, %v15276_v49  ;;  %v9500_v13 = vpop.xlane.xlu0 %9499 }
0x240c   : > { %12278 = vrcp.f32 %v9500_v13  ;;  %v9515_v8 = vpop.xlane.xlu1 %9514 }
0x240d   : > { %v9506_v43 = vpop.xlane.xlu2 %9505  ;;  %12280 = vrcp.f32 %v9515_v8  ;;  %11457 = vmatmul.msk.f32.vlgmr.msrb.gmra.mxu0 %vm318_vm0, %v9529_v38 }
0x240e   : > { %12282 = vrcp.f32 %v9506_v43  ;;  %11467 = vmatpush.xpose.msk.msrb.mxu0 %vm416_vm2, %v9842_v33 }
0x2412   : > { %v12279_v29 = vpop.eup %12278 }
0x2413   : > { %v12281_v32 = vpop.eup %12280  ;;  %v9528_v24 = vmul.f32 %v12279_v29, %v15280_v61  ;;  %v9512_v42 = vpop.xlane.xlu0 %9511 }
0x2414   : > { %v12283_v45 = vpop.eup %12282  ;;  %v9533_v2 = vmul.f32 %v12281_v32, %v15282_v14  ;;  %12284 = vrcp.f32 %v9512_v42 }
0x2415   : > { %v9530_v49 = vmul.f32 %v12283_v45, %v15286_v1  ;;  %11456 = vmatmul.msk.f32.vlgmr.msrb.gmra.mxu3 %vm318_vm0, %v9528_v24  ;;  %v9868_v4 = vpop.permute.xlu2 %9867 }
0x2416   : > { %11461 = vmatmul.msk.f32.vlgmr.msra.gmra.mxu0 %vm318_vm0, %v9533_v2  ;;  %11465 = vmatpush.xpose.msk.msrb.mxu3 %vm416_vm2, %v15274_v39 }
0x2417   : > { %11458 = vmatmul.msk.f32.vlgmr.msrb.gmra.mxu1 %vm318_vm0, %v9530_v49 }
0x241a   : > { %v12285_v19 = vpop.eup %12284 }
0x241b   : > { %v9532_v21 = vmul.f32 %v12285_v19, %v15292_v57 }
0x241d   : > { %11460 = vmatmul.msk.f32.vlgmr.msra.gmra.mxu3 %vm318_vm0, %v9532_v21 }
0x241e   : > { %11468 = vmatmul.msk.f32.vlgmr.msrb.gmra.mxu0 %vm416_vm2, %v9840_v47 }
0x2424   : > { %v9870_v61 = vpop.permute.xlu1 %9869 }
0x2425   : > { %11469 = vmatpush.xpose.msk.msrb.mxu1 %vm416_vm2, %v9870_v61  ;;  %11466 = vmatmul.msk.f32.vlgmr.msrb.gmra.mxu3 %vm416_vm2, %v15265_v34 }
0x2426   : > { %v9896_v60 = vpop.permute.xlu0 %9895 }
0x2427   : > { %11472 = vmatmul.msk.f32.vlgmr.msrb.gmra.mxu2 %vm416_vm2, %v9896_v60 }
0x242c   : > { %v9924_v39 = vpop.permute.xlu1 %9923 }
0x242e   : > { %v9926_v14 = vpop.permute.xlu0 %9925 }
0x242f   : > { %11473 = vmatpush.xpose.msk.msra.mxu3 %vm416_vm2, %v9926_v14 }
0x2432   : > { %11474 = vmatmul.msk.f32.vlgmr.msra.gmra.mxu3 %vm416_vm2, %v9924_v39 }
0x2434   : > { %v9982_v59 = vpop.permute.xlu1 %9981 }
0x2436   : > { %v9952_v34 = vpop.permute.xlu0 %9951 }
0x244c   : > { %v15346_v18 = vpop.f32.mrf.mxu2 }
0x244e   : > { %v9518_v1 = vpop.xlane.xlu2 %9517 }
0x244f   : > { %12286 = vrcp.f32 %v9518_v1 }
0x2455   : > { %v12287_v53 = vpop.eup %12286 }
0x2456   : > { %v9534_v52 = vmul.f32 %v12287_v53, %v12273_v41  ;;  %v9954_v57 = vpop.permute.xlu2 %9953 }
0x2457   : > { %11475 = vmatpush.xpose.msk.msra.mxu0 %vm416_vm2, %v9954_v57 }
0x2458   : > { %11462 = vmatmul.msk.f32.vlgmr.msra.gmra.mxu1 %vm318_vm0, %v9534_v52 }
0x2459   : > { %11477 = vmatpush.xpose.msk.msra.mxu1 %vm416_vm2, %v9982_v59 }
0x245a   : > { %11476 = vmatmul.msk.f32.vlgmr.msra.gmra.mxu0 %vm416_vm2, %v9952_v34 }
0x245e   : > { %v9980_v11 = vpop.permute.xlu2 %9979 }
0x2460   : > { %11470 = vmatmul.msk.f32.vlgmr.msrb.gmra.mxu1 %vm416_vm2, %v9868_v4 }
0x2461   : > { %v15351_v25 = vpop.f32.mrf.mxu2 }
0x2468   : > { %11478 = vmatmul.msk.f32.vlgmr.msra.gmra.mxu1 %vm416_vm2, %v9980_v11 }
0x2469   : > { %v9808_v46 = vpop.f32.mrf.mxu2 }
0x246a   : > { %v10007_v27 = vmul.f32 0.25, %v9808_v46 }
0x246c   : > { %v10015_v33 = vsel %vm318_vm0, %v10007_v27, -inf }
0x246d   : > { %10016 = vmax.xlane.f32.xlu0 %v10015_v33 }
0x248a   : > { %v15355_v16 = vpop.f32.mrf.mxu0 }
0x2493   : > { %v15357_v47 = vpop.f32.mrf.mxu0 }
0x2494   : > { %v15366_v38 = vpop.f32.mrf.mxu1 }
0x2498   : > { %v15359_v17 = vpop.f32.mrf.mxu3 }
0x249b   : > { %v9864_v41 = vpop.f32.mrf.mxu0 }
0x249c   : > { %v10009_v3 = vmul.f32 0.25, %v9864_v41 }
0x249e   : > { %v10021_v23 = vsel %vm318_vm0, %v10009_v3, -inf }
0x249f   : > { %10022 = vmax.xlane.f32.xlu2 %v10021_v23 }
0x24a0   : > { %v15362_v26 = vpop.f32.mrf.mxu3 }
0x24a8   : > { %v9836_v51 = vpop.f32.mrf.mxu3 }
0x24a9   : > { %v10008_v63 = vmul.f32 0.25, %v9836_v51 }
0x24aa   : > { %v9920_v32 = vpop.f32.mrf.mxu2 }
0x24ab   : > { %v10018_v5 = vsel %vm318_vm0, %v10008_v63, -inf  ;;  %v10011_v42 = vmul.f32 0.25, %v9920_v32 }
0x24ac   : > { %10019 = vmax.xlane.f32.xlu1 %v10018_v5 }
0x24ad   : > { %v10027_v21 = vsel %vm318_vm0, %v10011_v42, -inf }
0x24b5   : > { %v9948_v6 = vpop.f32.mrf.mxu3 }
0x24b6   : > { %v10012_v50 = vmul.f32 0.25, %v9948_v6 }
0x24b8   : > { %v10030_v40 = vsel %vm318_vm0, %v10012_v50, -inf }
0x24b9   : > { %10031 = vmax.xlane.f32.xlu2 %v10030_v40 }
0x24d5   : > { %v15368_v13 = vpop.f32.mrf.mxu1 }
0x24d7   : > { %v9976_v8 = vpop.f32.mrf.mxu0 }
0x24d8   : > { %v10013_v43 = vmul.f32 0.25, %v9976_v8 }
0x24da   : > { %v10033_v29 = vsel %vm318_vm0, %v10013_v43, -inf }
0x24db   : > { %10034 = vmax.xlane.f32.xlu1 %v10033_v29 }
0x24dd   : > { %v9892_v24 = vpop.f32.mrf.mxu1 }
0x24de   : > { %v10010_v45 = vmul.f32 0.25, %v9892_v24 }
0x24e0   : > { %v10024_v2 = vsel %vm318_vm0, %v10010_v45, -inf  ;;  %v10017_v49 = vpop.xlane.xlu0 %10016 }
0x24e1   : > { %10025 = vmax.xlane.f32.xlu0 %v10024_v2  ;;  %v10039_v19 = vsub.f32 %v10007_v27, %v10017_v49 }
0x24e3   : > { %v10047_v61 = vmul.f32 1.442695, %v10039_v19  ;;  %10028 = vmax.xlane.f32.xlu1 %v10027_v21 }
0x24e5   : > { %12288 = vpow2.f32 %v10047_v61  ;;  %v10004_v60 = vpop.f32.mrf.mxu1 }
0x24e6   : > { %v15373_v14 = vmul.f32 0.25, %v10004_v60 }
0x24e8   : > { %v10036_v39 = vsel %vm318_vm0, %v15373_v14, -inf }
0x24eb   : > { %v12289_v4 = vpop.eup %12288  ;;  %10037 = vmax.xlane.f32.xlu1 %v10036_v39 }
0x24ec   : > { %v10063_v1 = vsel %vm318_vm0, %v12289_v4, 0.0 }
0x24ed   : > { %10064 = vadd.xlane.f32.xlu0 %v10063_v1 }
0x2501   : > { %11783 = vrot.lane.b32.xlu0 %v15041_v10, %s12455_s17 }
0x2512   : > { %v10023_v53 = vpop.xlane.xlu2 %10022 }
0x2513   : > { %v10041_v52 = vsub.f32 %v10009_v3, %v10023_v53 }
0x2515   : > { %v10051_v57 = vmul.f32 1.442695, %v10041_v52 }
0x2517   : > { %12290 = vpow2.f32 %v10051_v57 }
0x251d   : > { %v15380_v59 = vpop.eup %12290 }
0x251e   : > { %v10069_v34 = vsel %vm318_vm0, %v15380_v59, 0.0 }
0x251f   : > { %10070 = vadd.xlane.f32.xlu2 %v10069_v34  ;;  %v10020_v11 = vpop.xlane.xlu1 %10019 }
0x2520   : > { %v10040_v46 = vsub.f32 %v10008_v63, %v10020_v11 }
0x2522   : > { %v10049_v27 = vmul.f32 1.442695, %v10040_v46 }
0x2524   : > { %12292 = vpow2.f32 %v10049_v27 }
0x252a   : > { %v12293_v33 = vpop.eup %12292 }
0x252b   : > { %v10066_v41 = vsel %vm318_vm0, %v12293_v33, 0.0 }
0x252c   : > { %10067 = vadd.xlane.f32.xlu2 %v10066_v41  ;;  %v10032_v23 = vpop.xlane.xlu2 %10031 }
0x252d   : > { %v10044_v10 = vsub.f32 %v10012_v50, %v10032_v23 }
0x252f   : > { %v10057_v51 = vmul.f32 1.442695, %v10044_v10 }
0x2531   : > { %12294 = vpow2.f32 %v10057_v51 }
0x2537   : > { %v15385_v3 = vpop.eup %12294 }
0x2538   : > { %v10078_v5 = vsel %vm318_vm0, %v15385_v3, 0.0 }
0x2539   : > { %10079 = vadd.xlane.f32.xlu0 %v10078_v5 }
0x2544   : > { %11788 = vrot.lane.b32.xlu2 %v15026_v7, %s12455_s17 }
0x254d   : > { %10259 = vrot.lane.b32.xlu0 %v14908_v48, %s12455_s17 }
0x254e   : > { %v10035_v63 = vpop.xlane.xlu1 %10034 }
0x254f   : > { %v10045_v32 = vsub.f32 %v10013_v43, %v10035_v63 }
0x2551   : > { %v10059_v7 = vmul.f32 1.442695, %v10045_v32 }
0x2554   : > { %v10026_v6 = vpop.xlane.xlu0 %10025 }
0x2555   : > { %v10042_v40 = vsub.f32 %v10010_v45, %v10026_v6  ;;  %9183 = vrot.lane.b32.xlu0 %v15230_v56, %s12454_s16 }
0x2556   : > { %v10029_v50 = vpop.xlane.xlu1 %10028 }
0x2557   : > { %v10053_v8 = vmul.f32 1.442695, %v10042_v40  ;;  %v10043_v29 = vsub.f32 %v10011_v42, %v10029_v50 }
0x2559   : > { %12296 = vpow2.f32 %v10053_v8  ;;  %v10055_v24 = vmul.f32 1.442695, %v10043_v29 }
0x255b   : > { %12298 = vpow2.f32 %v10055_v24 }
0x255c   : > { %12300 = vpow2.f32 %v10059_v7 }
0x255d   : > { %9751 = vrot.lane.b32.xlu0 %v15346_v18, %s12452_s14 }
0x255f   : > { %v12297_v2 = vpop.eup %12296 }
0x2560   : > { %v10072_v48 = vsel %vm318_vm0, %v12297_v2, 0.0  ;;  %v10065_v42 = vpop.xlane.xlu0 %10064 }
0x2561   : > { %10073 = vadd.xlane.f32.xlu1 %v10072_v48  ;;  %v15398_v45 = vpop.eup %12298  ;;  %12302 = vrcp.f32 %v10065_v42 }
0x2562   : > { %v10075_v56 = vsel %vm318_vm0, %v15398_v45, 0.0  ;;  %v12301_v43 = vpop.eup %12300 }
0x2563   : > { %v10081_v18 = vsel %vm318_vm0, %v12301_v43, 0.0 }
0x2565   : > { %9185 = vrot.lane.b32.xlu0 %v15236_v22, %s12454_s16  ;;  %v10038_v22 = vpop.xlane.xlu1 %10037 }
0x2567   : > { %v12303_v49 = vpop.eup %12302 }
0x2568   : > { %v10095_v60 = vmul.f32 %v12303_v49, %v12289_v4  ;;  %v10046_v4 = vsub.f32 %v15373_v14, %v10038_v22 }
0x2569   : > { %10076 = vadd.xlane.f32.xlu1 %v10075_v56 }
0x256a   : > { %v10061_v1 = vmul.f32 1.442695, %v10046_v4 }
0x256d   : > { %10082 = vadd.xlane.f32.xlu2 %v10081_v18 }
0x2573   : > { %v11784_v19 = vpop.permute.xlu0 %11783 }
0x2574   : > { %v11786_v21 = vunpack.i.h.bf16 %v11784_v19  ;;  %v11785_v61 = vunpack.i.l.bf16 %v11784_v19  ;;  %v10363_v19 = vld [vmem:[#allocation7 + $0xd8] sm:$0xff] }
0x2576   : > { %10124 = vmatpush.msra.mxu2 %v11785_v61  ;;  %10150 = vmatpush.msrb.mxu3 %v11786_v21  ;;  %v10362_v21 = vld [vmem:[#allocation7 + $0xd0] sm:$0xff] }
0x2577   : > { %11479 = vmatmul.msk.f32.vlgmr.msra.gmra.mxu2 %vm318_vm0, %v10095_v60 }
0x2582   : > { %11793 = vrot.lane.b32.xlu1 %v15014_v62, %s12455_s17 }
0x2585   : > { %10285 = vrot.lane.b32.xlu2 %v14917_v31, %s12455_s17 }
0x258d   : > { %9753 = vrot.lane.b32.xlu2 %v15359_v17, %s12452_s14 }
0x2592   : > { %v10071_v39 = vpop.xlane.xlu2 %10070 }
0x2593   : > { %12304 = vrcp.f32 %v10071_v39 }
0x2595   : > { %9187 = vrot.lane.b32.xlu2 %v15238_v30, %s12454_s16 }
0x2599   : > { %v12305_v52 = vpop.eup %12304 }
0x259a   : > { %v10097_v17 = vmul.f32 %v12305_v52, %v15380_v59 }
0x259f   : > { %v10068_v53 = vpop.xlane.xlu2 %10067 }
0x25a0   : > { %12306 = vrcp.f32 %v10068_v53 }
0x25a1   : > { %12308 = vpow2.f32 %v10061_v1 }
0x25a6   : > { %v12307_v62 = vpop.eup %12306 }
0x25a7   : > { %v10096_v57 = vmul.f32 %v12307_v62, %v12293_v33  ;;  %v11789_v34 = vpop.permute.xlu2 %11788  ;;  %v12309_v31 = vpop.eup %12308 }
0x25a8   : > { %v11791_v11 = vunpack.i.h.bf16 %v11789_v34  ;;  %v11790_v46 = vunpack.i.l.bf16 %v11789_v34  ;;  %v10084_v30 = vsel %vm318_vm0, %v12309_v31, 0.0 }
0x25a9   : > { %11480 = vmatmul.msk.f32.vlgmr.msrb.gmra.mxu3 %vm318_vm0, %v10096_v57 }
0x25aa   : > { %10176 = vmatpush.msrb.mxu0 %v11790_v46  ;;  %10202 = vmatpush.msrb.mxu1 %v11791_v11 }
0x25ab   : > { %11481 = vmatmul.msk.f32.vlgmr.msrb.gmra.mxu0 %vm318_vm0, %v10097_v17 }
0x25ac   : > { %10085 = vadd.xlane.f32.xlu1 %v10084_v30  ;;  %v10080_v14 = vpop.xlane.xlu0 %10079 }
0x25bf   : > { %v10260_v27 = vpop.permute.xlu0 %10259 }
0x25c0   : > { %10280 = vmatpush.msra.mxu0 %v10260_v27 }
0x25c7   : > { %v9184_v41 = vpop.permute.xlu0 %9183 }
0x25c8   : > { %9207 = vst.msk [vmem:[#allocation2] sm:$0xff] %vm1807_vm15, %v9184_v41 }
0x25cf   : > { %v9752_v33 = vpop.permute.xlu0 %9751 }
0x25d0   : > { %9775 = vst.msk [vmem:[#allocation2] sm:$0xff] %vm2376_vm1, %v9752_v33 }
0x25d4   : > { %v10074_v23 = vpop.xlane.xlu1 %10073 }
0x25d5   : > { %12310 = vrcp.f32 %v10074_v23 }
0x25d7   : > { %v9186_v59 = vpop.permute.xlu0 %9185 }
0x25d8   : > { %9208 = vst.msk [vmem:[#allocation2 + $0x8] sm:$0xff] %vm1807_vm15, %v9186_v59  ;;  %v10479_v59 = vld [vmem:[#allocation3 + $0xf8] sm:$0xff] }
0x25db   : > { %v12311_v10 = vpop.eup %12310 }
0x25dc   : > { %v10098_v51 = vmul.f32 %v12311_v10, %v12297_v2  ;;  %v10077_v50 = vpop.xlane.xlu1 %10076  ;;  %v10478_v10 = vld [vmem:[#allocation3 + $0xf0] sm:$0xff] }
0x25de   : > { %11482 = vmatmul.msk.f32.vlgmr.msrb.gmra.mxu1 %vm318_vm0, %v10098_v51  ;;  %v10477_v51 = vld [vmem:[#allocation3 + $0xe8] sm:$0xff] }
0x25e0   : > { %v10083_v5 = vpop.xlane.xlu2 %10082 }
0x25e1   : > { %12312 = vrcp.f32 %v10083_v5  ;;  %v10476_v5 = vld [vmem:[#allocation3 + $0xe0] sm:$0xff] }
0x25e2   : > { %12314 = vrcp.f32 %v10080_v14 }
0x25e3   : > { %12316 = vrcp.f32 %v10077_v50 }
0x25e7   : > { %v12313_v63 = vpop.eup %12312 }
0x25e8   : > { %v10101_v6 = vmul.f32 %v12313_v63, %v12301_v43  ;;  %v10286_v40 = vpop.permute.xlu2 %10285  ;;  %v12315_v29 = vpop.eup %12314 }
0x25e9   : > { %10306 = vmatpush.msra.mxu1 %v10286_v40  ;;  %v12317_v32 = vpop.eup %12316  ;;  %v10100_v48 = vmul.f32 %v12315_v29, %v15385_v3  ;;  %v10473_v29 = vld [vmem:[#allocation3 + $0xc8] sm:$0xff] }
0x25ea   : > { %11485 = vmatmul.msk.f32.vlgmr.msra.gmra.mxu0 %vm318_vm0, %v10101_v6  ;;  %v10099_v56 = vmul.f32 %v12317_v32, %v15398_v45  ;;  %v10475_v6 = vld [vmem:[#allocation3 + $0xd8] sm:$0xff]  ;;  %v10472_v32 = vld [vmem:[#allocation3 + $0xc0] sm:$0xff] }
0x25f0   : > { %v9754_v8 = vpop.permute.xlu2 %9753 }
0x25f1   : > { %9776 = vst.msk [vmem:[#allocation2 + $0x8] sm:$0xff] %vm2376_vm1, %v9754_v8  ;;  %v10474_v8 = vld [vmem:[#allocation3 + $0xd0] sm:$0xff] }
0x25f4   : > { %v11794_v24 = vpop.permute.xlu1 %11793 }
0x25f5   : > { %v11796_v2 = vunpack.i.h.bf16 %v11794_v24  ;;  %v11795_v7 = vunpack.i.l.bf16 %v11794_v24 }
0x25f7   : > { %10228 = vmatpush.msrb.mxu2 %v11795_v7  ;;  %10254 = vmatpush.msra.mxu3 %v11796_v2 }
0x25f8   : > { %11483 = vmatmul.msk.f32.vlgmr.msrb.gmra.mxu2 %vm318_vm0, %v10099_v56  ;;  %11484 = vmatmul.msk.f32.vlgmr.msra.gmra.mxu3 %vm318_vm0, %v10100_v48  ;;  %v9188_v43 = vpop.permute.xlu2 %9187 }
0x25f9   : > { %9209 = vst.msk [vmem:[#allocation2 + $0x10] sm:$0xff] %vm1807_vm15, %v9188_v43  ;;  %10517 = vmatpush.msrb.mxu3 %v10479_v59 }
0x25fa   : > { %v10126_v42 = vpop.f32.mrf.mxu2 }
0x25fb   : > { %10319 = vrot.lane.b32.xlu1 %v10126_v42, %s12450_s12  ;;  %10518 = vmatpush.msrb.mxu3 %v10478_v10 }
0x25fd   : > { %10519 = vmatpush.msrb.mxu3 %v10477_v51 }
0x25ff   : > { %10520 = vmatpush.msrb.mxu3 %v10476_v5 }
0x2601   : > { %10521 = vmatpush.msrb.mxu3 %v10475_v6 }
0x2603   : > { %9189 = vrot.lane.b32.xlu1 %v15242_v20, %s12454_s16  ;;  %10522 = vmatpush.msrb.mxu3 %v10474_v8 }
0x2605   : > { %10523 = vmatpush.msrb.mxu3 %v10473_v29 }
0x2607   : > { %10524 = vmatpush.msrb.mxu3 %v10472_v32 }
0x260b   : > { %9191 = vrot.lane.b32.xlu1 %v15232_v35, %s12454_s16  ;;  %v10367_v35 = vld [vmem:[#allocation7 + $0xf8] sm:$0xff] }
0x260c   : > { %10406 = vmatpush.msra.mxu2 %v10367_v35 }
0x2613   : > { %9193 = vrot.lane.b32.xlu1 %v15240_v44, %s12454_s16  ;;  %v10366_v44 = vld [vmem:[#allocation7 + $0xf0] sm:$0xff] }
0x2614   : > { %10407 = vmatpush.msra.mxu2 %v10366_v44 }
0x261b   : > { %9195 = vrot.lane.b32.xlu1 %v15244_v15, %s12454_s16  ;;  %v10365_v15 = vld [vmem:[#allocation7 + $0xe8] sm:$0xff] }
0x261c   : > { %10408 = vmatpush.msra.mxu2 %v10365_v15 }
0x261f   : > { %v10086_v3 = vpop.xlane.xlu1 %10085 }
0x2620   : > { %12318 = vrcp.f32 %v10086_v3 }
0x2623   : > { %9197 = vrot.lane.b32.xlu1 %v15246_v9, %s12454_s16  ;;  %v10364_v9 = vld [vmem:[#allocation7 + $0xe0] sm:$0xff] }
0x2624   : > { %10409 = vmatpush.msra.mxu2 %v10364_v9 }
0x2626   : > { %v12319_v45 = vpop.eup %12318  ;;  %10410 = vmatpush.msra.mxu2 %v10363_v19 }
0x2627   : > { %v10102_v18 = vmul.f32 %v12319_v45, %v12309_v31 }
0x2628   : > { %v10178_v49 = vpop.f32.mrf.mxu0  ;;  %10411 = vmatpush.msra.mxu2 %v10362_v21 }
0x2629   : > { %11486 = vmatmul.msk.f32.vlgmr.msra.gmra.mxu1 %vm318_vm0, %v10102_v18  ;;  %10323 = vrot.lane.b32.xlu2 %v10178_v49, %s12450_s12 }
0x262c   : > { %v10152_v20 = vpop.f32.mrf.mxu3 }
0x262d   : > { %10321 = vrot.lane.b32.xlu0 %v10152_v20, %s12450_s12 }
0x2635   : > { %9755 = vrot.lane.b32.xlu0 %v15355_v16, %s12452_s14  ;;  %v10361_v16 = vld [vmem:[#allocation7 + $0xc8] sm:$0xff] }
0x2636   : > { %10412 = vmatpush.msra.mxu2 %v10361_v16 }
0x263d   : > { %9757 = vrot.lane.b32.xlu0 %v15366_v38, %s12452_s14 }
0x2645   : > { %9759 = vrot.lane.b32.xlu0 %v15351_v25, %s12452_s14  ;;  %v10360_v25 = vld [vmem:[#allocation7 + $0xc0] sm:$0xff] }
0x2646   : > { %10413 = vmatpush.msra.mxu2 %v10360_v25 }
0x264d   : > { %9761 = vrot.lane.b32.xlu0 %v15362_v26, %s12452_s14  ;;  %v11803_v26 = vld [vmem:[%s15595_s5 + $0x7] ss:$0 sm:$0xff] }
0x264e   : > { %10371 = vrot.lane.b32.xlu1 %v11803_v26, %s12449_s11 }
0x2655   : > { %9763 = vrot.lane.b32.xlu0 %v15357_v47, %s12452_s14 }
0x265b   : > { %v10204_v38 = vpop.f32.mrf.mxu1 }
0x265c   : > { %10325 = vrot.lane.b32.xlu2 %v10204_v38, %s12450_s12 }
0x265d   : > { %9765 = vrot.lane.b32.xlu0 %v15368_v13, %s12452_s14 }
0x2667   : > { %v10282_v1 = vpop.f32.mrf.mxu0 }
0x266d   : > { %v10320_v61 = vpop.permute.xlu1 %10319 }
0x266e   : > { %10343 = vst.msk [vmem:[#allocation2] sm:$0xff] %vm2945_vm3, %v10320_v61 }
0x2675   : > { %v9190_v60 = vpop.permute.xlu1 %9189  ;;  %v10351_v47 = vld [vmem:[#allocation2] sm:$0xff] }
0x2676   : > { %9210 = vst.msk [vmem:[#allocation2 + $0x18] sm:$0xff] %vm1807_vm15, %v9190_v60  ;;  %11488 = vmatmul.msk.f32.vlgmr.msra.gmra.mxu2 %vm628_vm6, %v10351_v47  ;;  %v10578_v47 = vld [vmem:[#allocation3 + $0x118] sm:$0xff] }
0x2677   : > { %10620 = vmatpush.msrb.mxu0 %v10578_v47 }
0x267b   : > { %v10230_v22 = vpop.f32.mrf.mxu2  ;;  %v10256_v13 = vpop.f32.mrf.mxu3 }
0x267c   : > { %10327 = vrot.lane.b32.xlu2 %v10230_v22, %s12450_s12 }
0x267d   : > { %v9192_v39 = vpop.permute.xlu1 %9191 }
0x267e   : > { %9211 = vst.msk [vmem:[#allocation2 + $0x20] sm:$0xff] %vm1807_vm15, %v9192_v39 }
0x2683   : > { %v10324_v11 = vpop.permute.xlu2 %10323 }
0x2684   : > { %10329 = vrot.lane.b32.xlu2 %v10256_v13, %s12450_s12 }
0x2685   : > { %v9194_v4 = vpop.permute.xlu1 %9193 }
0x2686   : > { %9212 = vst.msk [vmem:[#allocation2 + $0x28] sm:$0xff] %vm1807_vm15, %v9194_v4  ;;  %v10577_v4 = vld [vmem:[#allocation3 + $0x110] sm:$0xff] }
0x2687   : > { %10621 = vmatpush.msrb.mxu0 %v10577_v4 }
0x268c   : > { %10331 = vrot.lane.b32.xlu2 %v10282_v1, %s12450_s12 }
0x268d   : > { %v9196_v53 = vpop.permute.xlu1 %9195 }
0x268e   : > { %9213 = vst.msk [vmem:[#allocation2 + $0x30] sm:$0xff] %vm1807_vm15, %v9196_v53  ;;  %v10576_v53 = vld [vmem:[#allocation3 + $0x108] sm:$0xff] }
0x268f   : > { %10622 = vmatpush.msrb.mxu0 %v10576_v53 }
0x2695   : > { %v9198_v52 = vpop.permute.xlu1 %9197 }
0x2696   : > { %9214 = vst.msk [vmem:[#allocation2 + $0x38] sm:$0xff] %vm1807_vm15, %v9198_v52  ;;  %v10575_v52 = vld [vmem:[#allocation3 + $0x100] sm:$0xff] }
0x2697   : > { %10623 = vmatpush.msrb.mxu0 %v10575_v52 }
0x269f   : > { %v10322_v62 = vpop.permute.xlu0 %10321 }
0x26a0   : > { %10344 = vst.msk [vmem:[#allocation2 + $0x8] sm:$0xff] %vm2945_vm3, %v10322_v62 }
0x26a6   : > { %v10308_v57 = vpop.f32.mrf.mxu1 }
0x26a7   : > { %10333 = vrot.lane.b32.xlu2 %v10308_v57, %s12450_s12  ;;  %v9756_v34 = vpop.permute.xlu0 %9755  ;;  %v10352_v31 = vld [vmem:[#allocation2 + $0x8] sm:$0xff] }
0x26a8   : > { %9777 = vst.msk [vmem:[#allocation2 + $0x10] sm:$0xff] %vm2376_vm1, %v9756_v34  ;;  %11489 = vmatmul.msk.f32.gmra.mxu2 %vm628_vm6, %v10352_v31 }
0x26a9   : > { %10345 = vst.msk [vmem:[#allocation2 + $0x10] sm:$0xff] %vm2945_vm3, %v10324_v11 }
0x26af   : > { %v9758_v46 = vpop.permute.xlu0 %9757 }
0x26b0   : > { %9778 = vst.msk [vmem:[#allocation2 + $0x18] sm:$0xff] %vm2376_vm1, %v9758_v46  ;;  %v10353_v17 = vld [vmem:[#allocation2 + $0x10] sm:$0xff] }
0x26b1   : > { %11490 = vmatmul.msk.f32.gmra.mxu2 %vm628_vm6, %v10353_v17 }
0x26b6   : > { %v10326_v30 = vpop.permute.xlu2 %10325 }
0x26b7   : > { %10346 = vst.msk [vmem:[#allocation2 + $0x18] sm:$0xff] %vm2945_vm3, %v10326_v30  ;;  %v9760_v14 = vpop.permute.xlu0 %9759 }
0x26b8   : > { %9779 = vst.msk [vmem:[#allocation2 + $0x20] sm:$0xff] %vm2376_vm1, %v9760_v14  ;;  %v11804_v14 = vld [vmem:[%s15592_s2 + $0x3] ss:$0 sm:$0xff] }
0x26be   : > { %v10354_v27 = vld [vmem:[#allocation2 + $0x18] sm:$0xff] }
0x26bf   : > { %11491 = vmatmul.msk.f32.gmra.mxu2 %vm628_vm6, %v10354_v27  ;;  %v9762_v41 = vpop.permute.xlu0 %9761 }
0x26c0   : > { %9780 = vst.msk [vmem:[#allocation2 + $0x28] sm:$0xff] %vm2376_vm1, %v9762_v41  ;;  %v15490_v48 = vpop.permute.xlu1 %10371 }
0x26c7   : > { %v9764_v33 = vpop.permute.xlu0 %9763 }
0x26c8   : > { %9781 = vst.msk [vmem:[#allocation2 + $0x30] sm:$0xff] %vm2376_vm1, %v9764_v33 }
0x26cf   : > { %v9766_v23 = vpop.permute.xlu0 %9765 }
0x26d0   : > { %9782 = vst.msk [vmem:[#allocation2 + $0x38] sm:$0xff] %vm2376_vm1, %v9766_v23 }
0x26d6   : > { %v10328_v63 = vpop.permute.xlu2 %10327 }
0x26d7   : > { %10347 = vst.msk [vmem:[#allocation2 + $0x20] sm:$0xff] %vm2945_vm3, %v10328_v63 }
0x26de   : > { %v10330_v40 = vpop.permute.xlu2 %10329  ;;  %v10355_v50 = vld [vmem:[#allocation2 + $0x20] sm:$0xff] }
0x26df   : > { %10348 = vst.msk [vmem:[#allocation2 + $0x28] sm:$0xff] %vm2945_vm3, %v10330_v40  ;;  %11492 = vmatmul.msk.f32.gmra.mxu2 %vm628_vm6, %v10355_v50 }
0x26e6   : > { %v10332_v24 = vpop.permute.xlu2 %10331  ;;  %v10356_v2 = vld [vmem:[#allocation2 + $0x28] sm:$0xff] }
0x26e7   : > { %10349 = vst.msk [vmem:[#allocation2 + $0x30] sm:$0xff] %vm2945_vm3, %v10332_v24  ;;  %11493 = vmatmul.msk.f32.gmra.mxu2 %vm628_vm6, %v10356_v2 }
0x26ee   : > { %v10357_v7 = vld [vmem:[#allocation2 + $0x30] sm:$0xff] }
0x26ef   : > { %11494 = vmatmul.msk.f32.gmra.mxu2 %vm628_vm6, %v10357_v7 }
0x26f9   : > { %v10415_v56 = vpop.f32.mrf.mxu2 }
0x26fa   : > { %v10416_v43 = vadd.f32 %v10415_v56, %v15490_v48  ;;  %v10674_v56 = vld [vmem:[#allocation3 + $0x140] sm:$0xff] }
0x26fc   : > { %v10439_v42 = vadd.f32 %v10416_v43, %v14767_v12 }
0x26fe   : > { %vm10447_vm15 = vcmp.ge.f32.partialorder %v10439_v42, 0.0  ;;  %v10455_v3 = vmul.f32 0.2, %v10439_v42 }
0x2700   : > { %v10463_v45 = vsel %vm10447_vm15, %v10439_v42, %v10455_v3 }
0x2701   : > { %v10334_v18 = vpop.permute.xlu2 %10333  ;;  %11497 = vmatmul.msk.f32.vlgmr.msrb.gmra.mxu3 %vm628_vm6, %v10463_v45 }
0x2702   : > { %10350 = vst.msk [vmem:[#allocation2 + $0x38] sm:$0xff] %vm2945_vm3, %v10334_v18 }
0x2709   : > { %v10358_v49 = vld [vmem:[#allocation2 + $0x38] sm:$0xff] }
0x270a   : > { %11495 = vmatmul.msk.f32.gmra.mxu2 %vm628_vm6, %v10358_v49 }
0x272b   : > { %v10418_v20 = vpop.f32.mrf.mxu2 }
0x272c   : > { %v10419_v35 = vadd.f32 %v10418_v20, %v15490_v48 }
0x272e   : > { %v10440_v44 = vadd.f32 %v10419_v35, %v14777_v28 }
0x2730   : > { %v10456_v15 = vmul.f32 0.2, %v10440_v44  ;;  %vm10448_vm1 = vcmp.ge.f32.partialorder %v10440_v44, 0.0 }
0x2732   : > { %v10464_v9 = vsel %vm10448_vm1, %v10440_v44, %v10456_v15 }
0x2733   : > { %11498 = vmatmul.msk.f32.gmra.mxu3 %vm628_vm6, %v10464_v9 }
0x2734   : > { %v10421_v12 = vpop.f32.mrf.mxu2 }
0x2735   : > { %v10422_v19 = vadd.f32 %v10421_v12, %v15490_v48 }
0x2737   : > { %v10441_v21 = vadd.f32 %v10422_v19, %v14786_v58  ;;  %v11805_v19 = vld [vmem:[%s15592_s2 + $0x4] ss:$0 sm:$0xff] }
0x2739   : > { %v10457_v16 = vmul.f32 0.2, %v10441_v21  ;;  %vm10449_vm3 = vcmp.ge.f32.partialorder %v10441_v21, 0.0 }
0x273b   : > { %v10465_v25 = vsel %vm10449_vm3, %v10441_v21, %v10457_v16 }
0x273c   : > { %11499 = vmatmul.msk.f32.gmra.mxu3 %vm628_vm6, %v10465_v25 }
0x2742   : > { %v10424_v38 = vpop.f32.mrf.mxu2 }
0x2743   : > { %v10425_v26 = vadd.f32 %v10424_v38, %v15490_v48 }
0x2745   : > { %v10442_v28 = vadd.f32 %v10425_v26, %v14794_v55 }
0x2747   : > { %v10458_v61 = vmul.f32 0.2, %v10442_v28  ;;  %vm10450_vm12 = vcmp.ge.f32.partialorder %v10442_v28, 0.0 }
0x2749   : > { %v10466_v60 = vsel %vm10450_vm12, %v10442_v28, %v10458_v61 }
0x274a   : > { %11500 = vmatmul.msk.f32.gmra.mxu3 %vm628_vm6, %v10466_v60 }
0x2762   : > { %v10427_v22 = vpop.f32.mrf.mxu2 }
0x2763   : > { %v10428_v58 = vadd.f32 %v10427_v22, %v15490_v48 }
0x2765   : > { %v10443_v39 = vadd.f32 %v10428_v58, %v14802_v37 }
0x2767   : > { %v10459_v13 = vmul.f32 0.2, %v10443_v39  ;;  %vm10451_vm13 = vcmp.ge.f32.partialorder %v10443_v39, 0.0 }
0x2769   : > { %v10467_v1 = vsel %vm10451_vm13, %v10443_v39, %v10459_v13 }
0x276a   : > { %v10430_v55 = vpop.f32.mrf.mxu2  ;;  %11501 = vmatmul.msk.f32.gmra.mxu3 %vm628_vm6, %v10467_v1 }
0x276b   : > { %v10431_v62 = vadd.f32 %v10430_v55, %v15490_v48 }
0x276d   : > { %v10444_v57 = vadd.f32 %v10431_v62, %v14810_v54 }
0x276f   : > { %v10460_v34 = vmul.f32 0.2, %v10444_v57  ;;  %vm10452_vm14 = vcmp.ge.f32.partialorder %v10444_v57, 0.0 }
0x2771   : > { %v10468_v31 = vsel %vm10452_vm14, %v10444_v57, %v10460_v34  ;;  %v10771_v34 = vld [vmem:[#allocation3 + $0x180] sm:$0xff] }
0x2772   : > { %v10433_v37 = vpop.f32.mrf.mxu2  ;;  %11502 = vmatmul.msk.f32.gmra.mxu3 %vm628_vm6, %v10468_v31  ;;  %10816 = vmatpush.msra.mxu0 %v10771_v34 }
0x2773   : > { %v10434_v11 = vadd.f32 %v10433_v37, %v15490_v48 }
0x2775   : > { %v10445_v46 = vadd.f32 %v10434_v11, %v14847_v36 }
0x2777   : > { %v10461_v17 = vmul.f32 0.2, %v10445_v46  ;;  %vm10453_vm4 = vcmp.ge.f32.partialorder %v10445_v46, 0.0 }
0x2779   : > { %v10469_v30 = vsel %vm10453_vm4, %v10445_v46, %v10461_v17 }
0x277a   : > { %11503 = vmatmul.msk.f32.gmra.mxu3 %vm628_vm6, %v10469_v30 }
0x2784   : > { %v10526_v54 = vpop.f32.mrf.mxu3 }
0x2785   : > { %v10527_v27 = vadd.f32 %v11804_v14, %v10526_v54 }
0x2787   : > { %vm10550_vm5 = vcmp.ge.f32.partialorder %v10527_v27, 0.0  ;;  %v10558_v41 = vmul.f32 0.2, %v10527_v27 }
0x2789   : > { %v10566_v33 = vsel %vm10550_vm5, %v10527_v27, %v10558_v41 }
0x278a   : > { %11506 = vmatmul.msk.f32.vlgmr.msrb.gmra.mxu0 %vm516_vm11, %v10566_v33 }
0x278d   : > { %v10436_v23 = vpop.f32.mrf.mxu2 }
0x278e   : > { %v10437_v59 = vadd.f32 %v10436_v23, %v15490_v48  ;;  %v10675_v48 = vld [vmem:[#allocation3 + $0x148] sm:$0xff] }
0x278f   : > { %10719 = vmatpush.msrb.mxu1 %v10675_v48 }
0x2790   : > { %v10446_v36 = vadd.f32 %v10437_v59, %v14858_v0  ;;  %v11806_v59 = vld [vmem:[%s15592_s2 + $0x5] ss:$0 sm:$0xff] }
0x2791   : > { %10720 = vmatpush.msrb.mxu1 %v10674_v56 }
0x2792   : > { %v10462_v10 = vmul.f32 0.2, %v10446_v36  ;;  %vm10454_vm7 = vcmp.ge.f32.partialorder %v10446_v36, 0.0 }
0x2794   : > { %v10470_v51 = vsel %vm10454_vm7, %v10446_v36, %v10462_v10 }
0x2795   : > { %11504 = vmatmul.msk.f32.gmra.mxu3 %vm628_vm6, %v10470_v51 }
0x27b6   : > { %v10529_v5 = vpop.f32.mrf.mxu3 }
0x27b7   : > { %v10530_v63 = vadd.f32 %v11804_v14, %v10529_v5 }
0x27b9   : > { %vm10551_vm8 = vcmp.ge.f32.partialorder %v10530_v63, 0.0  ;;  %v10559_v6 = vmul.f32 0.2, %v10530_v63 }
0x27bb   : > { %v10567_v40 = vsel %vm10551_vm8, %v10530_v63, %v10559_v6 }
0x27bc   : > { %11507 = vmatmul.msk.f32.gmra.mxu0 %vm516_vm11, %v10567_v40 }
0x27bf   : > { %v10532_v50 = vpop.f32.mrf.mxu3 }
0x27c0   : > { %v10533_v8 = vadd.f32 %v11804_v14, %v10532_v50 }
0x27c2   : > { %vm10552_vm9 = vcmp.ge.f32.partialorder %v10533_v8, 0.0  ;;  %v10560_v29 = vmul.f32 0.2, %v10533_v8 }
0x27c4   : > { %v10568_v32 = vsel %vm10552_vm9, %v10533_v8, %v10560_v29 }
0x27c5   : > { %11508 = vmatmul.msk.f32.gmra.mxu0 %vm516_vm11, %v10568_v32 }
0x27cd   : > { %v10535_v0 = vpop.f32.mrf.mxu3 }
0x27ce   : > { %v10536_v24 = vadd.f32 %v11804_v14, %v10535_v0 }
0x27d0   : > { %vm10553_vm10 = vcmp.ge.f32.partialorder %v10536_v24, 0.0  ;;  %v10561_v2 = vmul.f32 0.2, %v10536_v24 }
0x27d2   : > { %v10569_v7 = vsel %vm10553_vm10, %v10536_v24, %v10561_v2 }
0x27d3   : > { %11509 = vmatmul.msk.f32.gmra.mxu0 %vm516_vm11, %v10569_v7 }
0x27ed   : > { %v10538_v43 = vpop.f32.mrf.mxu3 }
0x27ee   : > { %v10539_v42 = vadd.f32 %v11804_v14, %v10538_v43 }
0x27f0   : > { %vm10554_vm6 = vcmp.ge.f32.partialorder %v10539_v42, 0.0  ;;  %v10562_v3 = vmul.f32 0.2, %v10539_v42 }
0x27f2   : > { %v10570_v45 = vsel %vm10554_vm6, %v10539_v42, %v10562_v3 }
0x27f3   : > { %11510 = vmatmul.msk.f32.gmra.mxu0 %vm516_vm11, %v10570_v45 }
0x27f5   : > { %v10541_v18 = vpop.f32.mrf.mxu3 }
0x27f6   : > { %v10542_v49 = vadd.f32 %v11804_v14, %v10541_v18 }
0x27f8   : > { %vm10555_vm15 = vcmp.ge.f32.partialorder %v10542_v49, 0.0  ;;  %v10563_v20 = vmul.f32 0.2, %v10542_v49 }
0x27fa   : > { %v10571_v35 = vsel %vm10555_vm15, %v10542_v49, %v10563_v20 }
0x27fb   : > { %11511 = vmatmul.msk.f32.gmra.mxu0 %vm516_vm11, %v10571_v35 }
0x27fd   : > { %v10544_v44 = vpop.f32.mrf.mxu3 }
0x27fe   : > { %v10545_v15 = vadd.f32 %v11804_v14, %v10544_v44 }
0x2800   : > { %vm10556_vm1 = vcmp.ge.f32.partialorder %v10545_v15, 0.0  ;;  %v10564_v9 = vmul.f32 0.2, %v10545_v15 }
0x2802   : > { %v10572_v12 = vsel %vm10556_vm1, %v10545_v15, %v10564_v9 }
0x2803   : > { %11512 = vmatmul.msk.f32.gmra.mxu0 %vm516_vm11, %v10572_v12 }
0x2807   : > { %v10625_v21 = vpop.f32.mrf.mxu0 }
0x2808   : > { %v10626_v16 = vadd.f32 %v11805_v19, %v10625_v21 }
0x280a   : > { %vm10649_vm3 = vcmp.ge.f32.partialorder %v10626_v16, 0.0  ;;  %v10657_v25 = vmul.f32 0.2, %v10626_v16 }
0x280c   : > { %v10665_v38 = vsel %vm10649_vm3, %v10626_v16, %v10657_v25  ;;  %v15553_v25 = vld [vmem:[%s15592_s2 + $0x6] ss:$0 sm:$0xff] }
0x280d   : > { %11515 = vmatmul.msk.f32.vlgmr.msrb.gmra.mxu1 %vm416_vm2, %v10665_v38 }
0x2818   : > { %v10547_v26 = vpop.f32.mrf.mxu3 }
0x2819   : > { %v10548_v28 = vadd.f32 %v11804_v14, %v10547_v26 }
0x281b   : > { %vm10557_vm12 = vcmp.ge.f32.partialorder %v10548_v28, 0.0  ;;  %v10565_v61 = vmul.f32 0.2, %v10548_v28 }
0x281d   : > { %v10573_v60 = vsel %vm10557_vm12, %v10548_v28, %v10565_v61 }
0x281e   : > { %11513 = vmatmul.msk.f32.gmra.mxu0 %vm516_vm11, %v10573_v60 }
0x2839   : > { %v10628_v47 = vpop.f32.mrf.mxu0 }
0x283a   : > { %v10629_v22 = vadd.f32 %v11805_v19, %v10628_v47 }
0x283c   : > { %vm10650_vm13 = vcmp.ge.f32.partialorder %v10629_v22, 0.0  ;;  %v10658_v58 = vmul.f32 0.2, %v10629_v22 }
0x283e   : > { %v10666_v39 = vsel %vm10650_vm13, %v10629_v22, %v10658_v58 }
0x283f   : > { %11516 = vmatmul.msk.f32.gmra.mxu1 %vm416_vm2, %v10666_v39 }
0x2842   : > { %v10631_v13 = vpop.f32.mrf.mxu0 }
0x2843   : > { %v10632_v4 = vadd.f32 %v11805_v19, %v10631_v13 }
0x2845   : > { %vm10651_vm14 = vcmp.ge.f32.partialorder %v10632_v4, 0.0  ;;  %v10659_v1 = vmul.f32 0.2, %v10632_v4 }
0x2847   : > { %v10667_v53 = vsel %vm10651_vm14, %v10632_v4, %v10659_v1 }
0x2848   : > { %11517 = vmatmul.msk.f32.gmra.mxu1 %vm416_vm2, %v10667_v53 }
0x2850   : > { %v10634_v52 = vpop.f32.mrf.mxu0 }
0x2851   : > { %v10635_v55 = vadd.f32 %v11805_v19, %v10634_v52 }
0x2853   : > { %vm10652_vm4 = vcmp.ge.f32.partialorder %v10635_v55, 0.0  ;;  %v10660_v62 = vmul.f32 0.2, %v10635_v55 }
0x2855   : > { %v10668_v57 = vsel %vm10652_vm4, %v10635_v55, %v10660_v62 }
0x2856   : > { %11518 = vmatmul.msk.f32.gmra.mxu1 %vm416_vm2, %v10668_v57 }
0x2870   : > { %v10637_v31 = vpop.f32.mrf.mxu0 }
0x2871   : > { %v10638_v37 = vadd.f32 %v11805_v19, %v10637_v31 }
0x2873   : > { %vm10653_vm11 = vcmp.ge.f32.partialorder %v10638_v37, 0.0  ;;  %v10661_v11 = vmul.f32 0.2, %v10638_v37 }
0x2875   : > { %v10669_v46 = vsel %vm10653_vm11, %v10638_v37, %v10661_v11 }
0x2876   : > { %11519 = vmatmul.msk.f32.gmra.mxu1 %vm416_vm2, %v10669_v46 }
0x2878   : > { %v10640_v17 = vpop.f32.mrf.mxu0 }
0x2879   : > { %v10641_v30 = vadd.f32 %v11805_v19, %v10640_v17 }
0x287b   : > { %vm10654_vm5 = vcmp.ge.f32.partialorder %v10641_v30, 0.0  ;;  %v10662_v14 = vmul.f32 0.2, %v10641_v30 }
0x287d   : > { %v10670_v54 = vsel %vm10654_vm5, %v10641_v30, %v10662_v14 }
0x287e   : > { %11520 = vmatmul.msk.f32.gmra.mxu1 %vm416_vm2, %v10670_v54 }
0x2880   : > { %v10643_v27 = vpop.f32.mrf.mxu0 }
0x2881   : > { %v10644_v41 = vadd.f32 %v11805_v19, %v10643_v27 }
0x2883   : > { %vm10655_vm7 = vcmp.ge.f32.partialorder %v10644_v41, 0.0  ;;  %v10663_v33 = vmul.f32 0.2, %v10644_v41 }
0x2885   : > { %v10671_v23 = vsel %vm10655_vm7, %v10644_v41, %v10663_v33 }
0x2886   : > { %11521 = vmatmul.msk.f32.gmra.mxu1 %vm416_vm2, %v10671_v23 }
0x288a   : > { %v10722_v36 = vpop.f32.mrf.mxu1 }
0x288b   : > { %v10723_v10 = vadd.f32 %v11806_v59, %v10722_v36 }
0x288d   : > { %vm10746_vm8 = vcmp.ge.f32.partialorder %v10723_v10, 0.0  ;;  %v10754_v51 = vmul.f32 0.2, %v10723_v10 }
0x288f   : > { %v10762_v5 = vsel %vm10746_vm8, %v10723_v10, %v10754_v51 }
0x2890   : > { %11524 = vmatmul.msk.f32.vlgmr.msra.gmra.mxu0 %vm318_vm0, %v10762_v5 }
0x289b   : > { %v10646_v63 = vpop.f32.mrf.mxu0 }
0x289c   : > { %v10647_v6 = vadd.f32 %v11805_v19, %v10646_v63 }
0x289e   : > { %vm10656_vm9 = vcmp.ge.f32.partialorder %v10647_v6, 0.0  ;;  %v10664_v40 = vmul.f32 0.2, %v10647_v6 }
0x28a0   : > { %v10672_v50 = vsel %vm10656_vm9, %v10647_v6, %v10664_v40 }
0x28a1   : > { %11522 = vmatmul.msk.f32.gmra.mxu1 %vm416_vm2, %v10672_v50 }
0x28bc   : > { %v10725_v8 = vpop.f32.mrf.mxu1 }
0x28bd   : > { %v10726_v29 = vadd.f32 %v11806_v59, %v10725_v8 }
0x28bf   : > { %vm10747_vm10 = vcmp.ge.f32.partialorder %v10726_v29, 0.0  ;;  %v10755_v32 = vmul.f32 0.2, %v10726_v29 }
0x28c1   : > { %v10763_v0 = vsel %vm10747_vm10, %v10726_v29, %v10755_v32 }
0x28c2   : > { %11525 = vmatmul.msk.f32.gmra.mxu0 %vm318_vm0, %v10763_v0 }
0x28c5   : > { %v10728_v24 = vpop.f32.mrf.mxu1 }
0x28c6   : > { %v10729_v2 = vadd.f32 %v11806_v59, %v10728_v24 }
0x28c8   : > { %vm10748_vm6 = vcmp.ge.f32.partialorder %v10729_v2, 0.0  ;;  %v10756_v7 = vmul.f32 0.2, %v10729_v2 }
0x28ca   : > { %v10764_v48 = vsel %vm10748_vm6, %v10729_v2, %v10756_v7 }
0x28cb   : > { %11526 = vmatmul.msk.f32.gmra.mxu0 %vm318_vm0, %v10764_v48 }
0x28d3   : > { %v10731_v56 = vpop.f32.mrf.mxu1 }
0x28d4   : > { %v10732_v43 = vadd.f32 %v11806_v59, %v10731_v56 }
0x28d6   : > { %vm10749_vm15 = vcmp.ge.f32.partialorder %v10732_v43, 0.0  ;;  %v10757_v42 = vmul.f32 0.2, %v10732_v43 }
0x28d8   : > { %v10765_v3 = vsel %vm10749_vm15, %v10732_v43, %v10757_v42 }
0x28d9   : > { %11527 = vmatmul.msk.f32.gmra.mxu0 %vm318_vm0, %v10765_v3 }
0x28f3   : > { %v10734_v45 = vpop.f32.mrf.mxu1 }
0x28f4   : > { %v10735_v18 = vadd.f32 %v11806_v59, %v10734_v45 }
0x28f6   : > { %vm10750_vm2 = vcmp.ge.f32.partialorder %v10735_v18, 0.0  ;;  %v10758_v49 = vmul.f32 0.2, %v10735_v18 }
0x28f8   : > { %v10766_v20 = vsel %vm10750_vm2, %v10735_v18, %v10758_v49 }
0x28f9   : > { %11528 = vmatmul.msk.f32.gmra.mxu0 %vm318_vm0, %v10766_v20 }
0x28fb   : > { %v10737_v35 = vpop.f32.mrf.mxu1 }
0x28fc   : > { %v10738_v44 = vadd.f32 %v11806_v59, %v10737_v35 }
0x28fe   : > { %vm10751_vm1 = vcmp.ge.f32.partialorder %v10738_v44, 0.0  ;;  %v10759_v15 = vmul.f32 0.2, %v10738_v44 }
0x2900   : > { %v10767_v9 = vsel %vm10751_vm1, %v10738_v44, %v10759_v15 }
0x2901   : > { %11529 = vmatmul.msk.f32.gmra.mxu0 %vm318_vm0, %v10767_v9 }
0x2903   : > { %v10740_v12 = vpop.f32.mrf.mxu1 }
0x2904   : > { %v10741_v19 = vadd.f32 %v11806_v59, %v10740_v12 }
0x2906   : > { %vm10752_vm3 = vcmp.ge.f32.partialorder %v10741_v19, 0.0  ;;  %v10760_v21 = vmul.f32 0.2, %v10741_v19 }
0x2908   : > { %v10768_v16 = vsel %vm10752_vm3, %v10741_v19, %v10760_v21 }
0x2909   : > { %11530 = vmatmul.msk.f32.gmra.mxu0 %vm318_vm0, %v10768_v16 }
0x290d   : > { %v10818_v38 = vpop.f32.mrf.mxu0 }
0x290e   : > { %v10819_v26 = vadd.f32 %v15553_v25, %v10818_v38 }
0x2910   : > { %v10842_v28 = vmul.f32 0.5, %v10819_v26 }
0x2912   : > { %12320 = vtanh.f32 %v10842_v28 }
0x2918   : > { %v12321_v61 = vpop.eup %12320 }
0x2919   : > { %v10858_v60 = vadd.f32 1.0, %v12321_v61 }
0x291b   : > { %v10866_v47 = vmul.f32 0.5, %v10858_v60 }
0x291d   : > { %10874 = vst.msk [vmem:[%s15561_s24] sm:$0xff] %vm318_vm0, %v10866_v47 }
0x291e   : > { %v10743_v22 = vpop.f32.mrf.mxu1 }
0x291f   : > { %v10744_v58 = vadd.f32 %v11806_v59, %v10743_v22 }
0x2921   : > { %vm10753_vm12 = vcmp.ge.f32.partialorder %v10744_v58, 0.0  ;;  %v10761_v39 = vmul.f32 0.2, %v10744_v58 }
0x2923   : > { %v10769_v13 = vsel %vm10753_vm12, %v10744_v58, %v10761_v39 }
0x2924   : > { %11531 = vmatmul.msk.f32.gmra.mxu0 %vm318_vm0, %v10769_v13 }
0x293f   : > { %v10821_v4 = vpop.f32.mrf.mxu0 }
0x2940   : > { %v10822_v1 = vadd.f32 %v15553_v25, %v10821_v4 }
0x2942   : > { %v10843_v53 = vmul.f32 0.5, %v10822_v1 }
0x2944   : > { %12322 = vtanh.f32 %v10843_v53 }
0x2948   : > { %v10824_v52 = vpop.f32.mrf.mxu0 }
0x2949   : > { %v10825_v55 = vadd.f32 %v15553_v25, %v10824_v52 }
0x294a   : > { %v12323_v62 = vpop.eup %12322 }
0x294b   : > { %v10859_v57 = vadd.f32 1.0, %v12323_v62  ;;  %v10844_v34 = vmul.f32 0.5, %v10825_v55 }
0x294d   : > { %v10867_v31 = vmul.f32 0.5, %v10859_v57  ;;  %12324 = vtanh.f32 %v10844_v34 }
0x294f   : > { %10875 = vst.msk [vmem:[%s15561_s24 + $0x8] sm:$0xff] %vm318_vm0, %v10867_v31 }
0x2953   : > { %v12325_v37 = vpop.eup %12324 }
0x2954   : > { %v10860_v11 = vadd.f32 1.0, %v12325_v37 }
0x2956   : > { %v10868_v46 = vmul.f32 0.5, %v10860_v11  ;;  %v10827_v17 = vpop.f32.mrf.mxu0 }
0x2957   : > { %v10828_v30 = vadd.f32 %v15553_v25, %v10827_v17 }
0x2958   : > { %10876 = vst.msk [vmem:[%s15561_s24 + $0x10] sm:$0xff] %vm318_vm0, %v10868_v46 }
0x2959   : > { %v10845_v14 = vmul.f32 0.5, %v10828_v30 }
0x295b   : > { %12326 = vtanh.f32 %v10845_v14 }
0x2961   : > { %v12327_v54 = vpop.eup %12326 }
0x2962   : > { %v10861_v27 = vadd.f32 1.0, %v12327_v54 }
0x2964   : > { %v10869_v41 = vmul.f32 0.5, %v10861_v27 }
0x2966   : > { %10877 = vst.msk [vmem:[%s15561_s24 + $0x18] sm:$0xff] %vm318_vm0, %v10869_v41 }
0x2976   : > { %v10830_v33 = vpop.f32.mrf.mxu0 }
0x2977   : > { %v10831_v23 = vadd.f32 %v15553_v25, %v10830_v33 }
0x2979   : > { %v10846_v59 = vmul.f32 0.5, %v10831_v23 }
0x297b   : > { %12328 = vtanh.f32 %v10846_v59 }
0x297e   : > { %v10833_v36 = vpop.f32.mrf.mxu0 }
0x297f   : > { %v10834_v10 = vadd.f32 %v15553_v25, %v10833_v36 }
0x2981   : > { %v12329_v51 = vpop.eup %12328  ;;  %v10847_v5 = vmul.f32 0.5, %v10834_v10 }
0x2982   : > { %v10862_v63 = vadd.f32 1.0, %v12329_v51 }
0x2983   : > { %12330 = vtanh.f32 %v10847_v5 }
0x2984   : > { %v10870_v6 = vmul.f32 0.5, %v10862_v63 }
0x2986   : > { %10878 = vst.msk [vmem:[%s15561_s24 + $0x20] sm:$0xff] %vm318_vm0, %v10870_v6  ;;  %v10836_v40 = vpop.f32.mrf.mxu0 }
0x2987   : > { %v10837_v50 = vadd.f32 %v15553_v25, %v10836_v40 }
0x2989   : > { %v12331_v8 = vpop.eup %12330  ;;  %v10848_v29 = vmul.f32 0.5, %v10837_v50 }
0x298a   : > { %v10863_v32 = vadd.f32 1.0, %v12331_v8 }
0x298b   : > { %12332 = vtanh.f32 %v10848_v29 }
0x298c   : > { %v10871_v0 = vmul.f32 0.5, %v10863_v32 }
0x298e   : > { %10879 = vst.msk [vmem:[%s15561_s24 + $0x28] sm:$0xff] %vm318_vm0, %v10871_v0 }
0x2991   : > { %v12333_v24 = vpop.eup %12332 }
0x2992   : > { %v10864_v2 = vadd.f32 1.0, %v12333_v24 }
0x2994   : > { %v10872_v7 = vmul.f32 0.5, %v10864_v2 }
0x2996   : > { %10880 = vst.msk [vmem:[%s15561_s24 + $0x30] sm:$0xff] %vm318_vm0, %v10872_v7 }
0x29a1   : > { %v10839_v48 = vpop.f32.mrf.mxu0 }
0x29a2   : > { %v10840_v56 = vadd.f32 %v15553_v25, %v10839_v48 }
0x29a4   : > { %v10849_v43 = vmul.f32 0.5, %v10840_v56 }
0x29a6   : > { %12334 = vtanh.f32 %v10849_v43 }
0x29ac   : > { %v12335_v42 = vpop.eup %12334 }
0x29ad   : > { %v10865_v3 = vadd.f32 1.0, %v12335_v42 }
0x29af   : > { %v10873_v45 = vmul.f32 0.5, %v10865_v3 }
0x29b1   : > { %10881 = vst.msk [vmem:[%s15561_s24 + $0x38] sm:$0xff] %vm318_vm0, %v10873_v45 }
0x29b2 PF: > { %s18_s21 = sadd.s32 1, %s12440_s21  }
0x29b3   : > { %p15_p7 = scmp.ge.s32.totalorder %s18_s21, 4  }
0x29b5   :  { %17 = sbr.rel (!%p15_p7) target bundleno = 2 (0x2), region = 108 }
0x29ba   :  { %10904 = vsyncpa [#allocation4], 1 }
0x29bb   :  { %10906 = vsyncpa [#allocation4 + $0x1], 1 }
0x29bc   :  { %10907 = vsyncpa [#allocation6], 1 }

</bundles_post_ra>
